<compile_context>
chip_gen: v7x
topology: tpu7x:2x2x1
jax: 0.10.0
libtpu: 0.0.40
codegen_flags: <defaults>
</compile_context>

<pallas_src>
import jax
import jax.numpy as jnp
import numpy as np
from jax.experimental import pallas as pl
from jax.experimental.pallas import tpu as pltpu

_PAD_COL = 8  # replicate-padded interior starts at a sublane-aligned column


def _bottleneck_kernel(x_ref, w1_ref, w2_ref, w3_ref, b1_ref, b2_ref, b3_ref,
                       o_ref, pad_ref):
    Nb, H, W, Cin = x_ref.shape
    width = w1_ref.shape[1]
    Cout = w3_ref.shape[1]
    M = Nb * H * W
    P = _PAD_COL

    # --- conv1 (1x1, BN scale pre-folded into w1) + bias + relu --------------
    x2d = x_ref[...].reshape(M, Cin)                         # bf16 (M, Cin)
    h1 = jnp.dot(x2d, w1_ref[...], preferred_element_type=jnp.float32)
    h1 = jnp.maximum(h1 + b1_ref[...], 0.0)                  # f32 (M, width)
    h1 = h1.reshape(Nb, H, W, width).astype(jnp.bfloat16)

    # --- conv2 (3x3, replicate padding, stride 1, groups 1) ------------------
    # Write h1 once into a padded bf16 VMEM scratch with replicated edges. The
    # interior starts at column P (multiple of 8) so the big (M, width) store
    # is sublane-aligned; the 1-column edge stores are tiny.
    pad_ref[:, 1:H + 1, P:P + W, :] = h1
    pad_ref[:, 1:H + 1, P - 1:P, :] = h1[:, :, 0:1, :]                 # left
    pad_ref[:, 1:H + 1, P + W:P + W + 1, :] = h1[:, :, W - 1:W, :]     # right
    pad_ref[:, 0:1, P - 1:P + W + 1, :] = pad_ref[:, 1:2, P - 1:P + W + 1, :]
    pad_ref[:, H + 1:H + 2, P - 1:P + W + 1, :] = \
        pad_ref[:, H:H + 1, P - 1:P + W + 1, :]

    taps = []
    for ky in range(3):
        for kx in range(3):
            c0 = P - 1 + kx
            taps.append(pad_ref[:, ky:ky + H, c0:c0 + W, :].reshape(M, width))

    if width >= 256:
        # Wide stages: 9 accumulating MXU matmuls (K=width already fills the
        # MXU K dim); avoids the (M, 9*width) slab and its concat relayout.
        h2 = None
        for t, tap in enumerate(taps):
            part = jnp.dot(tap, w2_ref[t * width:(t + 1) * width, :],
                           preferred_element_type=jnp.float32)
            h2 = part if h2 is None else h2 + part
    else:
        # Narrow stages: single im2col matmul with K = 9*width.
        # TODO(synk): pad/group taps to 128-lane chunks for width=64/128
        # stages so the lane-axis concat is layout-free on v5e/v6e.
        col = jnp.concatenate(taps, axis=1)                  # (M, 9*width) bf16
        h2 = jnp.dot(col, w2_ref[...], preferred_element_type=jnp.float32)

    # --- bn2 bias + relu (f32 on the VPU) -------------------------------------
    h2 = jnp.maximum(h2 + b2_ref[...], 0.0)

    # --- conv3 (1x1) + bn3 bias ------------------------------------------------
    h3 = jnp.dot(h2.astype(jnp.bfloat16), w3_ref[...],
                 preferred_element_type=jnp.float32)
    h3 = h3 + b3_ref[...]

    # --- residual add (re-read the resident input block) + relu ---------------
    res = x_ref[...].reshape(M, Cout).astype(jnp.float32)    # identity: Cin==Cout
    out = jnp.maximum(h3 + res, 0.0)
    o_ref[...] = out.reshape(Nb, H, W, Cout).astype(o_ref.dtype)


def fold_bn(gamma, beta, mean, var, eps=1e-5):
    s = gamma / jnp.sqrt(var + eps)
    return s, beta - mean * s


def _vmem_cap_bytes():
    # Generation-aware cap (v5e/v6e: 128 MiB, v7x: 64 MiB per TensorCore).
    try:
        return int(pltpu.get_tpu_info().vmem_capacity_bytes)
    except Exception:
        return 64 << 20  # most restrictive known value (v7x)


def bottleneck_pallas_nhwc(x, w1, w2, w3, s1, b1, s2, b2, s3, b3,
                           block_batch=None):
    """x: (N, H, W, C) — cast to bf16 at the boundary. Weights: w1 (Cin,width),
    w2 (3,3,width,width) HWIO, w3 (width,Cout). BN as folded (scale, bias)."""
    N, H, W, Cin = x.shape
    width = w1.shape[1]
    Cout = w3.shape[1]
    assert Cin == Cout, "downsample=None requires inplanes == planes * expansion"

    x = x.astype(jnp.bfloat16)

    # Fold BN scales into bf16 conv weights host-side; biases stay f32.
    w1f = (w1 * s1[None, :]).astype(jnp.bfloat16)                  # (Cin, width)
    w2f = (w2 * s2[None, None, None, :]).astype(jnp.bfloat16)      # (3,3,w,w)
    w2k = w2f.reshape(9 * width, width)                            # im2col layout
    w3f = (w3 * s3[None, :]).astype(jnp.bfloat16)                  # (width, Cout)
    b1v = b1.reshape(1, width).astype(jnp.float32)
    b2v = b2.reshape(1, width).astype(jnp.float32)
    b3v = b3.reshape(1, Cout).astype(jnp.float32)

    P = _PAD_COL
    w_pad = ((P + W + 1 + 7) // 8) * 8
    weight_bytes = (Cin * width + 9 * width * width + width * Cout) * 2

    def block_bytes(nb):
        io = nb * H * W * (Cin + Cout) * 2                # bf16 x + o
        pad = nb * (H + 2) * w_pad * width * 2            # padded scratch
        col = nb * H * W * 9 * width * 2 if width < 256 else 0
        f32 = nb * H * W * max(width, Cout) * 4 * 3       # f32 temporaries
        return 2 * io + pad + col + f32 + 2 * weight_bytes  # 2x: double-buffer

    # Batch-fold as many images per block as fit a conservative budget: raises
    # the MXU M dim (7x7 / 14x14 stages) and amortizes per-grid-step overhead.
    budget = 24 << 20
    if block_batch is None:
        nb = 1
        for d in range(N, 0, -1):
            if N % d == 0 and block_bytes(d) <= budget:
                nb = d
                break
    else:
        nb = int(block_batch)
        assert N % nb == 0

    vmem_limit = int(min(max(block_bytes(nb) + (8 << 20), 16 << 20),
                         _vmem_cap_bytes() - (4 << 20)))

    flops = 2 * N * H * W * (Cin * width + 9 * width * width + width * Cout)
    bytes_accessed = N * H * W * (Cin + Cout) * 2 + weight_bytes

    def full(shape):
        return pl.BlockSpec(shape, lambda n: (0,) * len(shape))

    out = pl.pallas_call(
        _bottleneck_kernel,
        out_shape=jax.ShapeDtypeStruct((N, H, W, Cout), jnp.bfloat16),
        grid_spec=pltpu.PrefetchScalarGridSpec(
            num_scalar_prefetch=0,
            grid=(N // nb,),
            in_specs=[
                pl.BlockSpec((nb, H, W, Cin), lambda n: (n, 0, 0, 0)),  # x
                full((Cin, width)),                                     # w1
                full((9 * width, width)),                               # w2 im2col
                full((width, Cout)),                                    # w3
                full((1, width)), full((1, width)), full((1, Cout)),    # biases
            ],
            out_specs=pl.BlockSpec((nb, H, W, Cout), lambda n: (n, 0, 0, 0)),
            scratch_shapes=[pltpu.VMEM((nb, H + 2, w_pad, width), jnp.bfloat16)],
        ),
        compiler_params=pltpu.CompilerParams(
            dimension_semantics=("parallel",),
            vmem_limit_bytes=vmem_limit),
        cost_estimate=pl.CostEstimate(flops=flops, transcendentals=0,
                                      bytes_accessed=bytes_accessed),
    )(x, w1f, w2k, w3f, b1v, b2v, b3v)
    return out


def bottleneck_pallas(x_nchw, *args, **kwargs):
    """NCHW/f32 wrapper matching the PyTorch module's convention. In a full
    NHWC bf16 network, call bottleneck_pallas_nhwc directly (no transposes)."""
    x = jnp.transpose(x_nchw, (0, 2, 3, 1))
    out = bottleneck_pallas_nhwc(x, *args, **kwargs)
    return jnp.transpose(out, (0, 3, 1, 2)).astype(x_nchw.dtype)


# ----------------------------- references -----------------------------------

def bottleneck_ref_f32(x_nchw, w1, w2, w3, s1, b1, s2, b2, s3, b3):
    """Pure-f32 reference of the module semantics (NHWC convs)."""
    dn = ("NHWC", "HWIO", "NHWC")
    x = jnp.transpose(x_nchw, (0, 2, 3, 1))
    h = jax.lax.conv_general_dilated(x, w1[None, None], (1, 1), "VALID",
                                     dimension_numbers=dn)
    h = jnp.maximum(h * s1 + b1, 0.0)
    hp = jnp.pad(h, ((0, 0), (1, 1), (1, 1), (0, 0)), mode="edge")
    h = jax.lax.conv_general_dilated(hp, w2, (1, 1), "VALID",
                                     dimension_numbers=dn)
    h = jnp.maximum(h * s2 + b2, 0.0)
    h = jax.lax.conv_general_dilated(h, w3[None, None], (1, 1), "VALID",
                                     dimension_numbers=dn)
    h = h * s3 + b3
    out = jnp.maximum(h + x, 0.0)
    return jnp.transpose(out, (0, 3, 1, 2))


def bottleneck_ref_bf16(x_nchw, w1, w2, w3, s1, b1, s2, b2, s3, b3):
    """Reference with the same bf16-operand / f32-accumulate precision as the
    Pallas kernel (bf16 activation I/O, BN scales folded into bf16 weights,
    biases and the residual add in f32)."""
    dn = ("NHWC", "HWIO", "NHWC")
    x_bf = jnp.transpose(x_nchw, (0, 2, 3, 1)).astype(jnp.bfloat16)
    w1f = (w1 * s1[None, :]).astype(jnp.bfloat16)
    w2f = (w2 * s2[None, None, None, :]).astype(jnp.bfloat16)
    w3f = (w3 * s3[None, :]).astype(jnp.bfloat16)

    h = jax.lax.conv_general_dilated(
        x_bf, w1f[None, None], (1, 1), "VALID",
        dimension_numbers=dn, preferred_element_type=jnp.float32)
    h = jnp.maximum(h + b1, 0.0)
    hp = jnp.pad(h.astype(jnp.bfloat16), ((0, 0), (1, 1), (1, 1), (0, 0)),
                 mode="edge")
    h = jax.lax.conv_general_dilated(
        hp, w2f, (1, 1), "VALID", dimension_numbers=dn,
        preferred_element_type=jnp.float32)
    h = jnp.maximum(h + b2, 0.0)
    h = jax.lax.conv_general_dilated(
        h.astype(jnp.bfloat16), w3f[None, None], (1, 1), "VALID",
        dimension_numbers=dn, preferred_element_type=jnp.float32)
    out = jnp.maximum(h + b3 + x_bf.astype(jnp.float32), 0.0)
    return jnp.transpose(out, (0, 3, 1, 2))


# ----------------------------- self-test -------------------------------------

def _make_case(key, N, inplanes, planes, H, W):
    width = planes                       # base_width=64, groups=1
    cout = planes * 4                    # expansion = 4
    ks = jax.random.split(key, 7)
    x = jax.random.normal(ks[0], (N, inplanes, H, W), jnp.float32)
    # Conv weights stored IO / HWIO (PyTorch OIHW equivalents:
    # (width,inplanes,1,1), (width,width,3,3), (cout,width,1,1)).
    w1 = 0.1 * jax.random.normal(ks[1], (inplanes, width), jnp.float32)
    w2 = 0.1 * jax.random.normal(ks[2], (3, 3, width, width), jnp.float32)
    w3 = 0.1 * jax.random.normal(ks[3], (width, cout), jnp.float32)

    def bn_params(k, c):
        k1, k2, k3, k4 = jax.random.split(k, 4)
        gamma = jax.random.uniform(k1, (c,), jnp.float32, 0.5, 1.5)
        beta = 0.1 * jax.random.normal(k2, (c,), jnp.float32)
        mean = 0.1 * jax.random.normal(k3, (c,), jnp.float32)
        var = jax.random.uniform(k4, (c,), jnp.float32, 0.5, 1.5)
        return fold_bn(gamma, beta, mean, var)

    s1, b1 = bn_params(ks[4], width)
    s2, b2 = bn_params(ks[5], width)
    s3, b3 = bn_params(ks[6], cout)
    return x, (w1, w2, w3, s1, b1, s2, b2, s3, b3)


if __name__ == "__main__":
    key = jax.random.PRNGKey(0)
    k1, k2 = jax.random.split(key)

    # Case 1: tiny narrow stage -> im2col conv2 path, batch-folded block (Nb=2).
    x, args = _make_case(k1, N=2, inplanes=16, planes=4, H=16, W=16)
    out = jax.block_until_ready(bottleneck_pallas(x, *args))
    # Tight check against the precision-matched (bf16 operand / f32 acc) ref.
    np.testing.assert_allclose(np.asarray(out, np.float32),
                               np.asarray(bottleneck_ref_bf16(x, *args)),
                               rtol=1e-2, atol=1e-2)
    # Loose sanity check against the pure-f32 module semantics (bf16 I/O and
    # bf16-folded weights introduce the expected sub-percent deviations).
    np.testing.assert_allclose(np.asarray(out, np.float32),
                               np.asarray(bottleneck_ref_f32(x, *args)),
                               rtol=5e-2, atol=8e-2)

    # Case 2: wide stage (width>=256 -> accumulating-dot conv2 path), Nb forced
    # to 1 so the grid has multiple sequential steps.
    x2, args2 = _make_case(k2, N=2, inplanes=1024, planes=256, H=8, W=8)
    out2 = jax.block_until_ready(bottleneck_pallas(x2, *args2, block_batch=1))
    np.testing.assert_allclose(np.asarray(out2, np.float32),
                               np.asarray(bottleneck_ref_bf16(x2, *args2)),
                               rtol=1e-2, atol=1e-2)

    print("KERNEL_OK")
</pallas_src>

<mosaic_0001>
module attributes {stable_mosaic.version = 11 : i64} {
  func.func @_bottleneck_kernel(%arg0: i32, %arg1: memref<2x16x16x16xbf16, #tpu.memory_space<vmem>>, %arg2: memref<16x4xbf16, #tpu.memory_space<vmem>>, %arg3: memref<36x4xbf16, #tpu.memory_space<vmem>>, %arg4: memref<4x16xbf16, #tpu.memory_space<vmem>>, %arg5: memref<1x4xf32, #tpu.memory_space<vmem>>, %arg6: memref<1x4xf32, #tpu.memory_space<vmem>>, %arg7: memref<1x16xf32, #tpu.memory_space<vmem>>, %arg8: memref<2x16x16x16xbf16, #tpu.memory_space<vmem>>, %arg9: memref<2x18x32x4xbf16, #tpu.memory_space<vmem>>) attributes {dimension_semantics = [#tpu.dimension_semantics<parallel>], iteration_bounds = array<i64: 1>, scalar_prefetch = 0 : i64, scratch_operands = 1 : i64, tpu.core_type = #tpu.core_type<tc>, window_params = [{transform_indices = @transform_0, window_bounds = array<i64: 2, 16, 16, 16>}, {pipeline_mode = #tpu.pipeline_mode<synchronous>, transform_indices = @transform_1, window_bounds = array<i64: 16, 4>}, {pipeline_mode = #tpu.pipeline_mode<synchronous>, transform_indices = @transform_2, window_bounds = array<i64: 36, 4>}, {pipeline_mode = #tpu.pipeline_mode<synchronous>, transform_indices = @transform_3, window_bounds = array<i64: 4, 16>}, {pipeline_mode = #tpu.pipeline_mode<synchronous>, transform_indices = @transform_4, window_bounds = array<i64: 1, 4>}, {pipeline_mode = #tpu.pipeline_mode<synchronous>, transform_indices = @transform_5, window_bounds = array<i64: 1, 4>}, {pipeline_mode = #tpu.pipeline_mode<synchronous>, transform_indices = @transform_6, window_bounds = array<i64: 1, 16>}, {transform_indices = @transform_7, window_bounds = array<i64: 2, 16, 16, 16>}]} {
    %c0 = arith.constant 0 : index
    %c0_0 = arith.constant 0 : index
    %c0_1 = arith.constant 0 : index
    %c0_2 = arith.constant 0 : index
    %0 = vector.load %arg1[%c0, %c0_0, %c0_1, %c0_2] : memref<2x16x16x16xbf16, #tpu.memory_space<vmem>>, vector<2x16x16x16xbf16>
    %1 = vector.shape_cast %0 : vector<2x16x16x16xbf16> to vector<512x16xbf16>
    %c0_3 = arith.constant 0 : index
    %c0_4 = arith.constant 0 : index
    %2 = vector.load %arg2[%c0_3, %c0_4] : memref<16x4xbf16, #tpu.memory_space<vmem>>, vector<16x4xbf16>
    %cst = arith.constant dense<0.000000e+00> : vector<512x4xf32>
    %3 = tpu.matmul %1, %2, %cst {dimension_numbers = #tpu.dot_dimension_numbers<[1], [0], [0], [1], [0, 0, 1, 1], [], []>} : vector<512x16xbf16>, vector<16x4xbf16>, vector<512x4xf32> -> vector<512x4xf32>
    %c0_5 = arith.constant 0 : index
    %c0_6 = arith.constant 0 : index
    %4 = vector.load %arg5[%c0_5, %c0_6] : memref<1x4xf32, #tpu.memory_space<vmem>>, vector<1x4xf32>
    %5 = vector.broadcast %4 : vector<1x4xf32> to vector<512x4xf32>
    %6 = arith.addf %3, %5 : vector<512x4xf32>
    %cst_7 = arith.constant 0.000000e+00 : f32
    %7 = vector.broadcast %cst_7 : f32 to vector<512x4xf32>
    %8 = arith.maximumf %6, %7 : vector<512x4xf32>
    %9 = vector.shape_cast %8 : vector<512x4xf32> to vector<2x16x16x4xf32>
    %10 = arith.truncf %9 : vector<2x16x16x4xf32> to vector<2x16x16x4xbf16>
    %c0_8 = arith.constant 0 : index
    %c1 = arith.constant 1 : index
    %c8 = arith.constant 8 : index
    %c0_9 = arith.constant 0 : index
    %11 = vector.load %arg9[%c0_8, %c1, %c8, %c0_9] : memref<2x18x32x4xbf16, #tpu.memory_space<vmem>>, vector<2x16x16x4xbf16>
    tpu.vector_store %arg9[%c0_8, %c1, %c8, %c0_9], %10 {strides = array<i32>} : memref<2x18x32x4xbf16, #tpu.memory_space<vmem>>, vector<2x16x16x4xbf16>,
    %12 = vector.extract_strided_slice %10 {offsets = [0, 0, 0, 0], sizes = [2, 16, 1, 4], strides = [1, 1, 1, 1]} : vector<2x16x16x4xbf16> to vector<2x16x1x4xbf16>
    %c0_10 = arith.constant 0 : index
    %c1_11 = arith.constant 1 : index
    %c7 = arith.constant 7 : index
    %c0_12 = arith.constant 0 : index
    %13 = vector.load %arg9[%c0_10, %c1_11, %c7, %c0_12] : memref<2x18x32x4xbf16, #tpu.memory_space<vmem>>, vector<2x16x1x4xbf16>
    tpu.vector_store %arg9[%c0_10, %c1_11, %c7, %c0_12], %12 {strides = array<i32>} : memref<2x18x32x4xbf16, #tpu.memory_space<vmem>>, vector<2x16x1x4xbf16>,
    %14 = vector.extract_strided_slice %10 {offsets = [0, 0, 15, 0], sizes = [2, 16, 1, 4], strides = [1, 1, 1, 1]} : vector<2x16x16x4xbf16> to vector<2x16x1x4xbf16>
    %c0_13 = arith.constant 0 : index
    %c1_14 = arith.constant 1 : index
    %c24 = arith.constant 24 : index
    %c0_15 = arith.constant 0 : index
    %15 = vector.load %arg9[%c0_13, %c1_14, %c24, %c0_15] : memref<2x18x32x4xbf16, #tpu.memory_space<vmem>>, vector<2x16x1x4xbf16>
    tpu.vector_store %arg9[%c0_13, %c1_14, %c24, %c0_15], %14 {strides = array<i32>} : memref<2x18x32x4xbf16, #tpu.memory_space<vmem>>, vector<2x16x1x4xbf16>,
    %c0_16 = arith.constant 0 : index
    %c1_17 = arith.constant 1 : index
    %c7_18 = arith.constant 7 : index
    %c0_19 = arith.constant 0 : index
    %16 = vector.load %arg9[%c0_16, %c1_17, %c7_18, %c0_19] : memref<2x18x32x4xbf16, #tpu.memory_space<vmem>>, vector<2x1x18x4xbf16>
    %c0_20 = arith.constant 0 : index
    %c0_21 = arith.constant 0 : index
    %c7_22 = arith.constant 7 : index
    %c0_23 = arith.constant 0 : index
    %17 = vector.load %arg9[%c0_20, %c0_21, %c7_22, %c0_23] : memref<2x18x32x4xbf16, #tpu.memory_space<vmem>>, vector<2x1x18x4xbf16>
    tpu.vector_store %arg9[%c0_20, %c0_21, %c7_22, %c0_23], %16 {strides = array<i32>} : memref<2x18x32x4xbf16, #tpu.memory_space<vmem>>, vector<2x1x18x4xbf16>,
    %c0_24 = arith.constant 0 : index
    %c16 = arith.constant 16 : index
    %c7_25 = arith.constant 7 : index
    %c0_26 = arith.constant 0 : index
    %18 = vector.load %arg9[%c0_24, %c16, %c7_25, %c0_26] : memref<2x18x32x4xbf16, #tpu.memory_space<vmem>>, vector<2x1x18x4xbf16>
    %c0_27 = arith.constant 0 : index
    %c17 = arith.constant 17 : index
    %c7_28 = arith.constant 7 : index
    %c0_29 = arith.constant 0 : index
    %19 = vector.load %arg9[%c0_27, %c17, %c7_28, %c0_29] : memref<2x18x32x4xbf16, #tpu.memory_space<vmem>>, vector<2x1x18x4xbf16>
    tpu.vector_store %arg9[%c0_27, %c17, %c7_28, %c0_29], %18 {strides = array<i32>} : memref<2x18x32x4xbf16, #tpu.memory_space<vmem>>, vector<2x1x18x4xbf16>,
    %c0_30 = arith.constant 0 : index
    %c0_31 = arith.constant 0 : index
    %c7_32 = arith.constant 7 : index
    %c0_33 = arith.constant 0 : index
    %20 = vector.load %arg9[%c0_30, %c0_31, %c7_32, %c0_33] : memref<2x18x32x4xbf16, #tpu.memory_space<vmem>>, vector<2x16x16x4xbf16>
    %21 = vector.shape_cast %20 : vector<2x16x16x4xbf16> to vector<512x4xbf16>
    %c0_34 = arith.constant 0 : index
    %c0_35 = arith.constant 0 : index
    %c8_36 = arith.constant 8 : index
    %c0_37 = arith.constant 0 : index
    %22 = vector.load %arg9[%c0_34, %c0_35, %c8_36, %c0_37] : memref<2x18x32x4xbf16, #tpu.memory_space<vmem>>, vector<2x16x16x4xbf16>
    %23 = vector.shape_cast %22 : vector<2x16x16x4xbf16> to vector<512x4xbf16>
    %c0_38 = arith.constant 0 : index
    %c0_39 = arith.constant 0 : index
    %c9 = arith.constant 9 : index
    %c0_40 = arith.constant 0 : index
    %24 = vector.load %arg9[%c0_38, %c0_39, %c9, %c0_40] : memref<2x18x32x4xbf16, #tpu.memory_space<vmem>>, vector<2x16x16x4xbf16>
    %25 = vector.shape_cast %24 : vector<2x16x16x4xbf16> to vector<512x4xbf16>
    %c0_41 = arith.constant 0 : index
    %c1_42 = arith.constant 1 : index
    %c7_43 = arith.constant 7 : index
    %c0_44 = arith.constant 0 : index
    %26 = vector.load %arg9[%c0_41, %c1_42, %c7_43, %c0_44] : memref<2x18x32x4xbf16, #tpu.memory_space<vmem>>, vector<2x16x16x4xbf16>
    %27 = vector.shape_cast %26 : vector<2x16x16x4xbf16> to vector<512x4xbf16>
    %c0_45 = arith.constant 0 : index
    %c1_46 = arith.constant 1 : index
    %c8_47 = arith.constant 8 : index
    %c0_48 = arith.constant 0 : index
    %28 = vector.load %arg9[%c0_45, %c1_46, %c8_47, %c0_48] : memref<2x18x32x4xbf16, #tpu.memory_space<vmem>>, vector<2x16x16x4xbf16>
    %29 = vector.shape_cast %28 : vector<2x16x16x4xbf16> to vector<512x4xbf16>
    %c0_49 = arith.constant 0 : index
    %c1_50 = arith.constant 1 : index
    %c9_51 = arith.constant 9 : index
    %c0_52 = arith.constant 0 : index
    %30 = vector.load %arg9[%c0_49, %c1_50, %c9_51, %c0_52] : memref<2x18x32x4xbf16, #tpu.memory_space<vmem>>, vector<2x16x16x4xbf16>
    %31 = vector.shape_cast %30 : vector<2x16x16x4xbf16> to vector<512x4xbf16>
    %c0_53 = arith.constant 0 : index
    %c2 = arith.constant 2 : index
    %c7_54 = arith.constant 7 : index
    %c0_55 = arith.constant 0 : index
    %32 = vector.load %arg9[%c0_53, %c2, %c7_54, %c0_55] : memref<2x18x32x4xbf16, #tpu.memory_space<vmem>>, vector<2x16x16x4xbf16>
    %33 = vector.shape_cast %32 : vector<2x16x16x4xbf16> to vector<512x4xbf16>
    %c0_56 = arith.constant 0 : index
    %c2_57 = arith.constant 2 : index
    %c8_58 = arith.constant 8 : index
    %c0_59 = arith.constant 0 : index
    %34 = vector.load %arg9[%c0_56, %c2_57, %c8_58, %c0_59] : memref<2x18x32x4xbf16, #tpu.memory_space<vmem>>, vector<2x16x16x4xbf16>
    %35 = vector.shape_cast %34 : vector<2x16x16x4xbf16> to vector<512x4xbf16>
    %c0_60 = arith.constant 0 : index
    %c2_61 = arith.constant 2 : index
    %c9_62 = arith.constant 9 : index
    %c0_63 = arith.constant 0 : index
    %36 = vector.load %arg9[%c0_60, %c2_61, %c9_62, %c0_63] : memref<2x18x32x4xbf16, #tpu.memory_space<vmem>>, vector<2x16x16x4xbf16>
    %37 = vector.shape_cast %36 : vector<2x16x16x4xbf16> to vector<512x4xbf16>
    %38 = tpu.concatenate %21, %23, %25, %27, %29, %31, %33, %35, %37 in 1 : vector<512x4xbf16>, vector<512x4xbf16>, vector<512x4xbf16>, vector<512x4xbf16>, vector<512x4xbf16>, vector<512x4xbf16>, vector<512x4xbf16>, vector<512x4xbf16>, vector<512x4xbf16> -> vector<512x36xbf16>
    %c0_64 = arith.constant 0 : index
    %c0_65 = arith.constant 0 : index
    %39 = vector.load %arg3[%c0_64, %c0_65] : memref<36x4xbf16, #tpu.memory_space<vmem>>, vector<36x4xbf16>
    %cst_66 = arith.constant dense<0.000000e+00> : vector<512x4xf32>
    %40 = tpu.matmul %38, %39, %cst_66 {dimension_numbers = #tpu.dot_dimension_numbers<[1], [0], [0], [1], [0, 0, 1, 1], [], []>} : vector<512x36xbf16>, vector<36x4xbf16>, vector<512x4xf32> -> vector<512x4xf32>
    %c0_67 = arith.constant 0 : index
    %c0_68 = arith.constant 0 : index
    %41 = vector.load %arg6[%c0_67, %c0_68] : memref<1x4xf32, #tpu.memory_space<vmem>>, vector<1x4xf32>
    %42 = vector.broadcast %41 : vector<1x4xf32> to vector<512x4xf32>
    %43 = arith.addf %40, %42 : vector<512x4xf32>
    %cst_69 = arith.constant 0.000000e+00 : f32
    %44 = vector.broadcast %cst_69 : f32 to vector<512x4xf32>
    %45 = arith.maximumf %43, %44 : vector<512x4xf32>
    %46 = arith.truncf %45 : vector<512x4xf32> to vector<512x4xbf16>
    %c0_70 = arith.constant 0 : index
    %c0_71 = arith.constant 0 : index
    %47 = vector.load %arg4[%c0_70, %c0_71] : memref<4x16xbf16, #tpu.memory_space<vmem>>, vector<4x16xbf16>
    %cst_72 = arith.constant dense<0.000000e+00> : vector<512x16xf32>
    %48 = tpu.matmul %46, %47, %cst_72 {dimension_numbers = #tpu.dot_dimension_numbers<[1], [0], [0], [1], [0, 0, 1, 1], [], []>} : vector<512x4xbf16>, vector<4x16xbf16>, vector<512x16xf32> -> vector<512x16xf32>
    %c0_73 = arith.constant 0 : index
    %c0_74 = arith.constant 0 : index
    %49 = vector.load %arg7[%c0_73, %c0_74] : memref<1x16xf32, #tpu.memory_space<vmem>>, vector<1x16xf32>
    %50 = vector.broadcast %49 : vector<1x16xf32> to vector<512x16xf32>
    %51 = arith.addf %48, %50 : vector<512x16xf32>
    %c0_75 = arith.constant 0 : index
    %c0_76 = arith.constant 0 : index
    %c0_77 = arith.constant 0 : index
    %c0_78 = arith.constant 0 : index
    %52 = vector.load %arg1[%c0_75, %c0_76, %c0_77, %c0_78] : memref<2x16x16x16xbf16, #tpu.memory_space<vmem>>, vector<2x16x16x16xbf16>
    %53 = vector.shape_cast %52 : vector<2x16x16x16xbf16> to vector<512x16xbf16>
    %54 = arith.extf %53 : vector<512x16xbf16> to vector<512x16xf32>
    %55 = arith.addf %51, %54 : vector<512x16xf32>
    %cst_79 = arith.constant 0.000000e+00 : f32
    %56 = vector.broadcast %cst_79 : f32 to vector<512x16xf32>
    %57 = arith.maximumf %55, %56 : vector<512x16xf32>
    %58 = vector.shape_cast %57 : vector<512x16xf32> to vector<2x16x16x16xf32>
    %59 = arith.truncf %58 : vector<2x16x16x16xf32> to vector<2x16x16x16xbf16>
    %c0_80 = arith.constant 0 : index
    %c0_81 = arith.constant 0 : index
    %c0_82 = arith.constant 0 : index
    %c0_83 = arith.constant 0 : index
    %60 = vector.load %arg8[%c0_80, %c0_81, %c0_82, %c0_83] : memref<2x16x16x16xbf16, #tpu.memory_space<vmem>>, vector<2x16x16x16xbf16>
    tpu.vector_store %arg8[%c0_80, %c0_81, %c0_82, %c0_83], %59 {strides = array<i32>} : memref<2x16x16x16xbf16, #tpu.memory_space<vmem>>, vector<2x16x16x16xbf16>,
    return
  }
  func.func @transform_0(%arg0: i32) -> (i32, i32, i32, i32) {
    %c0_i32 = arith.constant 0 : i32
    %c0_i32_0 = arith.constant 0 : i32
    %c0_i32_1 = arith.constant 0 : i32
    %c0_i32_2 = arith.constant 0 : i32
    return %arg0, %c0_i32, %c0_i32_0, %c0_i32_1 : i32, i32, i32, i32
  }
  func.func @transform_1(%arg0: i32) -> (i32, i32) {
    %c0_i32 = arith.constant 0 : i32
    %c0_i32_0 = arith.constant 0 : i32
    %c0_i32_1 = arith.constant 0 : i32
    return %c0_i32, %c0_i32_0 : i32, i32
  }
  func.func @transform_2(%arg0: i32) -> (i32, i32) {
    %c0_i32 = arith.constant 0 : i32
    %c0_i32_0 = arith.constant 0 : i32
    %c0_i32_1 = arith.constant 0 : i32
    return %c0_i32, %c0_i32_0 : i32, i32
  }
  func.func @transform_3(%arg0: i32) -> (i32, i32) {
    %c0_i32 = arith.constant 0 : i32
    %c0_i32_0 = arith.constant 0 : i32
    %c0_i32_1 = arith.constant 0 : i32
    return %c0_i32, %c0_i32_0 : i32, i32
  }
  func.func @transform_4(%arg0: i32) -> (i32, i32) {
    %c0_i32 = arith.constant 0 : i32
    %c0_i32_0 = arith.constant 0 : i32
    %c0_i32_1 = arith.constant 0 : i32
    return %c0_i32, %c0_i32_0 : i32, i32
  }
  func.func @transform_5(%arg0: i32) -> (i32, i32) {
    %c0_i32 = arith.constant 0 : i32
    %c0_i32_0 = arith.constant 0 : i32
    %c0_i32_1 = arith.constant 0 : i32
    return %c0_i32, %c0_i32_0 : i32, i32
  }
  func.func @transform_6(%arg0: i32) -> (i32, i32) {
    %c0_i32 = arith.constant 0 : i32
    %c0_i32_0 = arith.constant 0 : i32
    %c0_i32_1 = arith.constant 0 : i32
    return %c0_i32, %c0_i32_0 : i32, i32
  }
  func.func @transform_7(%arg0: i32) -> (i32, i32, i32, i32) {
    %c0_i32 = arith.constant 0 : i32
    %c0_i32_0 = arith.constant 0 : i32
    %c0_i32_1 = arith.constant 0 : i32
    %c0_i32_2 = arith.constant 0 : i32
    return %arg0, %c0_i32, %c0_i32_0, %c0_i32_1 : i32, i32, i32, i32
  }
}

</mosaic_0001>

<bundles_post_ra>
// kernel: tpu_custom_call.1
= control target key start
LH: loop header
LB: loop body
LE: loop exit
PB: predicated region body
PF: predicated region fallthrough
CT: control target
= control target key end

     0   :  { %12 = vsyncpa [#allocation4], 0  ;;  %s12789_s0 = inlined_call_operand.hbm [shape: bf16[2,16,16,16], index: 0, kind: input, shape index: {}]   ;;  %s12790_s1 = inlined_call_operand.vmem [shape: bf16[16,4], index: 1, kind: input, shape index: {}]   ;;  %s12791_s2 = inlined_call_operand.vmem [shape: bf16[36,4], index: 2, kind: input, shape index: {}]   ;;  %s12792_s3 = inlined_call_operand.vmem [shape: bf16[4,16], index: 3, kind: input, shape index: {}]   ;;  %s12793_s4 = inlined_call_operand.vmem [shape: f32[1,4], index: 4, kind: input, shape index: {}]   ;;  %s12794_s5 = inlined_call_operand.vmem [shape: f32[1,4], index: 5, kind: input, shape index: {}]   ;;  %s12795_s6 = inlined_call_operand.vmem [shape: f32[1,16], index: 6, kind: input, shape index: {}]   ;;  %s12796_s7 = inlined_call_operand.hbm [shape: bf16[2,16,16,16], index: 7, kind: output, shape index: {}]  }
   0x1   :  { %13 = vsyncpa [#allocation5], 0  ;;  %s8961_s24 = smov [#allocation3]   ;;  %s8913_s28 = scalar_lea.hbm %s12789_s0, 4096 }
   0x2   :  { %s19_s25 = sshll.u32 %s8961_s24, 4  ;;  %p8914_p0 = scmp.ne.s32.totalorder %s12789_s0, %s8913_s28  ;;  %s20_s25 = int_to_ptr.vmem [resolvable:$true] %s19_s25 }
   0x3   :  { %p8917_p1 = scmp.lt.u32.totalorder %s8913_s28, %s12789_s0 }
   0x5   :  { %p8919_p2 = pnand %p8917_p1, %p8914_p0 }
   0x7   :  { %8922 = shalt.err (!%p8919_p2)
}
   0x8   :  { %s8923_s10 = scalar_lea.vmem %s20_s25, 4096  ;;  %p8928_p4 = scmp.lt.s32.totalorder %s20_s25, %s20_s25 }
   0x9   :  { %p8924_p3 = scmp.ne.s32.totalorder %s20_s25, %s8923_s10  ;;  %p8929_p5 = scmp.lt.s32.totalorder %s8923_s10, %s8923_s10 }
   0xb   :  { %p8930_p6 = por %p8929_p5, %p8928_p4 }
   0xd   :  { %p8931_p7 = pnand %p8930_p6, %p8924_p3 }
   0xf   :  { %8934 = shalt.err (!%p8931_p7)
}
  0x10   :  { %s8962_s11 = smov 64   ;;  %s8963_s12 = smov 4  }
  0x11   :  { %25 = dma.hbm_to_vmem [thread:$0]  %s12789_s0, 4096, %s20_s25, [#allocation4], %s8962_s11, %s8962_s11, %s8963_s12  }
  0x12   :  { %8957 = dma.done.wait [#allocation4], 4096  }
  0x13   :  { %8958 = vsyncadd [#allocation4], 4294963200  ;;  %v8855_v0 = vld [vmem:[%s12790_s1] sm:$0xff]   ;;  %vm281_vm0 = vcmask 130048   ;;  %v8858_v3 = vld [vmem:[#allocation3 + $0x8] sm:$0xff]   ;;  %vm12820_vm1 = vcmask 31748  }
  0x14   :  { %v8856_v1 = vld [vmem:[#allocation3] sm:$0xff]   ;;  %8638 = vmatprep.subr.bf16.mxu0 %v8855_v0  ;;  %8840 = vmatprep.subr.bf16.mxu1 %v8855_v0  ;;  %v8859_v4 = vld [vmem:[#allocation3 + $0x88] sm:$0xff]   ;;  %v8860_v5 = vld [vmem:[#allocation3 + $0x10] sm:$0xff]   ;;  %vm12818_vm2 = vcmask 27648   ;;  %vm1086_vm3 = vcmask 27651   ;;  %vm1313_vm5 = vcmask 28676  }
  0x15   :  { %v8857_v2 = vld [vmem:[#allocation3 + $0x80] sm:$0xff]   ;;  %8639 = vmatpush3.bf16.msra.mxu0 %v8855_v0  ;;  %8841 = vmatpush3.bf16.msra.mxu1 %v8855_v0  ;;  %v8862_v6 = vld [vmem:[#allocation3 + $0x90] sm:$0xff]   ;;  %v8861_v7 = vld [vmem:[#allocation3 + $0x18] sm:$0xff]   ;;  %vm1087_vm4 = vsmask.f32 7950  ;;  %vm2154_vm9 = vcmask 1043456  }
  0x16   :  { %8640 = vmatprep.mubr.msk.bf16.mxu0 %vm281_vm0, %v8856_v1  ;;  %8672 = vmatprep.mubr.msk.bf16.mxu1 %vm281_vm0, %v8857_v2  ;;  %v8863_v8 = vld [vmem:[#allocation3 + $0x98] sm:$0xff]   ;;  %v8864_v9 = vld [vmem:[#allocation3 + $0x20] sm:$0xff]   ;;  %v8865_v11 = vld [vmem:[#allocation3 + $0x28] sm:$0xff]   ;;  %vm12827_vm6 = vsmask.f32 4352  ;;  %s8964_s17 = smov 28  }
  0x17   :  { %v8866_v10 = vld [vmem:[#allocation3 + $0xa0] sm:$0xff]   ;;  %v8867_v12 = vld [vmem:[#allocation3 + $0xa8] sm:$0xff]   ;;  %v8868_v13 = vld [vmem:[#allocation3 + $0x30] sm:$0xff]   ;;  %s8965_s18 = smov 16   ;;  %vm2283_vm10 = vsmask.f32 3328 }
  0x18   :  { %8641 = vmatmul.mubr.msk.bf16.vlgmr.msra.gmra.mrb[0].mxu0 %vm281_vm0, %v8858_v3  ;;  %8673 = vmatmul.mubr.msk.bf16.vlgmr.msra.gmra.mrb[0].mxu1 %vm281_vm0, %v8859_v4  ;;  %v8869_v14 = vld [vmem:[#allocation3 + $0x38] sm:$0xff]   ;;  %v8870_v15 = vld [vmem:[#allocation3 + $0x40] sm:$0xff]   ;;  %v8871_v16 = vld [vmem:[#allocation3 + $0x48] sm:$0xff]   ;;  %s8966_s19 = smov 12   ;;  %s8967_s20 = smov 24   ;;  %vm1416_vm11 = vcmask 31747  }
  0x19   :  { %8644 = vmatprep.mubr.msk.bf16.mxu0 %vm281_vm0, %v8860_v5  ;;  %8676 = vmatprep.mubr.msk.bf16.mxu1 %vm281_vm0, %v8862_v6  ;;  %v8872_v17 = vld [vmem:[#allocation3 + $0x50] sm:$0xff]   ;;  %v8873_v18 = vld [vmem:[#allocation3 + $0x58] sm:$0xff]   ;;  %v8874_v19 = vld [vmem:[#allocation3 + $0x60] sm:$0xff]   ;;  %s8968_s21 = smov 20   ;;  %s8969_s22 = smov 32   ;;  %vm1421_vm12 = vcmask 28672  }
  0x1a   :  { %v8875_v20 = vld [vmem:[#allocation3 + $0x68] sm:$0xff]   ;;  %v8876_v21 = vld [vmem:[#allocation3 + $0x70] sm:$0xff]   ;;  %v8877_v22 = vld [vmem:[#allocation3 + $0x78] sm:$0xff]   ;;  %s8970_s23 = smov 8   ;;  %vm12811_vm15 = vcmask 31744  }
  0x1b   :  { %v9055_v23 = vld [vmem:[%s12793_s4] ss:$0 sm:$0xff]  ;;  %v8878_v50 = vld [vmem:[#allocation3 + $0xb0] sm:$0xff]   ;;  %v8879_v51 = vld [vmem:[#allocation3 + $0xb8] sm:$0xff]  }
  0x1c   :  { %v1092_v52 = vld [vmem:[#allocation2 + $0x20] sm:$0x8]  ;;  %v1319_v53 = vld [vmem:[#allocation2 + $0x28] sm:$0x10]  ;;  %vm9069_vm7 = vmand %vm1086_vm3, %vm1087_vm4  ;;  %vm12828_vm3 = vcmask 64512  }
  0x1d   :  { %v1140_v63 = vld [vmem:[#allocation2 + $0x140] sm:$0x8]  ;;  %v1367_v0 = vld [vmem:[#allocation2 + $0x148] sm:$0x10]  ;;  %v1089_v1 = vld [vmem:[#allocation2 + $0x10] sm:$0x8] }
  0x1e   :  { %vm9078_vm8 = vmand %vm1313_vm5, %vm12827_vm6  ;;  %vm6384_vm5 = vcmask 162816  }
  0x1f   :  { %vm9423_vm13 = vmand %vm1416_vm11, %vm1087_vm4  ;;  %vm6255_vm4 = vcmask 97280   ;;  %vm6449_vm11 = vcmask 195584  }
  0x20   :  { %8645 = vmatmul.mubr.msk.bf16.gmra.mrb[4].mxu0 %vm281_vm0, %v8861_v7  ;;  %8677 = vmatmul.mubr.msk.bf16.gmra.mrb[4].mxu1 %vm281_vm0, %v8863_v8  ;;  %vm9449_vm14 = vmand %vm1421_vm12, %vm12827_vm6  ;;  %vm6514_vm12 = vcmask 228352  }
  0x21   :  { %8648 = vmatprep.mubr.msk.bf16.mxu0 %vm281_vm0, %v8864_v9  ;;  %8680 = vmatprep.mubr.msk.bf16.mxu1 %vm281_vm0, %v8866_v10 }
  0x28   :  { %8649 = vmatmul.mubr.msk.bf16.gmra.mrb[8].mxu0 %vm281_vm0, %v8865_v11  ;;  %8681 = vmatmul.mubr.msk.bf16.gmra.mrb[8].mxu1 %vm281_vm0, %v8867_v12 }
  0x29   :  { %8652 = vmatprep.mubr.msk.bf16.mxu0 %vm281_vm0, %v8868_v13  ;;  %8684 = vmatprep.mubr.msk.bf16.mxu1 %vm281_vm0, %v8878_v50 }
  0x30   :  { %8653 = vmatmul.mubr.msk.bf16.gmra.mrb[12].mxu0 %vm281_vm0, %v8869_v14  ;;  %8685 = vmatmul.mubr.msk.bf16.gmra.mrb[12].mxu1 %vm281_vm0, %v8879_v51 }
  0x31   :  { %8656 = vmatprep.mubr.msk.bf16.mxu0 %vm281_vm0, %v8870_v15 }
  0x38   :  { %8657 = vmatmul.mubr.msk.bf16.gmra.mrb[16].mxu0 %vm281_vm0, %v8871_v16 }
  0x39   :  { %8660 = vmatprep.mubr.msk.bf16.mxu0 %vm281_vm0, %v8872_v17 }
  0x40   :  { %8661 = vmatmul.mubr.msk.bf16.gmra.mrb[20].mxu0 %vm281_vm0, %v8873_v18 }
  0x41   :  { %8664 = vmatprep.mubr.msk.bf16.mxu0 %vm281_vm0, %v8874_v19 }
  0x48   :  { %8665 = vmatmul.mubr.msk.bf16.gmra.mrb[24].mxu0 %vm281_vm0, %v8875_v20  ;;  %v1316_v20 = vld [vmem:[#allocation2 + $0x18] sm:$0x10] }
  0x49   :  { %8668 = vmatprep.mubr.msk.bf16.mxu0 %vm281_vm0, %v8876_v21 }
  0x50   :  { %8669 = vmatmul.mubr.msk.bf16.gmra.mrb[28].mxu0 %vm281_vm0, %v8877_v22 }
  0xeb   :  { %v8642_v24 = vpop.f32.mrb[0].mxu0  ;;  %v8674_v25 = vpop.f32.mrb[0].mxu1 }
  0xec   :  { %v421_v26 = vadd.f32 %v8642_v24, %v9055_v23  ;;  %v549_v27 = vadd.f32 %v8674_v25, %v9055_v23  ;;  %v412_v28 = vpop.f32.mrb[1].mxu0  ;;  %v540_v29 = vpop.f32.mrb[1].mxu1 }
  0xed   :  { %v413_v30 = vadd.f32 %v9055_v23, %v412_v28  ;;  %v541_v31 = vadd.f32 %v9055_v23, %v540_v29  ;;  %v8643_v32 = vpop.f32.mrb[2].mxu0  ;;  %v8675_v33 = vpop.f32.mrb[2].mxu1 }
  0xee   :  { %v701_v34 = vmax.f32 %v549_v27, 0.0  ;;  %v424_v35 = vadd.f32 %v8643_v32, %v9055_v23  ;;  %v552_v36 = vadd.f32 %v8675_v33, %v9055_v23  ;;  %v415_v37 = vpop.f32.mrb[3].mxu0  ;;  %v543_v38 = vpop.f32.mrb[3].mxu1  ;;  %v669_v42 = vmax.f32 %v421_v26, 0.0  ;;  %v1137_v26 = vld [vmem:[#allocation2 + $0x130] sm:$0x8] }
  0xef   :  { %v699_v39 = vmax.f32 %v541_v31, 0.0  ;;  %v416_v40 = vadd.f32 %v9055_v23, %v415_v37  ;;  %v544_v41 = vadd.f32 %v9055_v23, %v543_v38  ;;  %v667_v45 = vmax.f32 %v413_v30, 0.0  ;;  %v1364_v32 = vld [vmem:[#allocation2 + $0x138] sm:$0x10] }
  0xf0   :  { %v670_v43 = vmax.f32 %v424_v35, 0.0  ;;  %v702_v44 = vmax.f32 %v552_v36, 0.0 }
  0xf1   :  { %v668_v46 = vmax.f32 %v416_v40, 0.0  ;;  %v700_v47 = vmax.f32 %v544_v41, 0.0 }
  0xf2   :  { %v732_v48 = vpack.c.bf16 %v670_v43, %v669_v42  ;;  %v748_v49 = vpack.c.bf16 %v702_v44, %v701_v34 }
  0xf3   :  { %v731_v54 = vpack.c.bf16 %v668_v46, %v667_v45  ;;  %v747_v55 = vpack.c.bf16 %v700_v47, %v699_v39  ;;  %v8646_v56 = vpop.f32.mrb[4].mxu0  ;;  %v9065_v57 = vpop.f32.mrb[4].mxu1 }
  0xf4   :  { %v796_v58 = vrot.slane %v732_v48, 4  ;;  %v931_v59 = vshll.u32 %v732_v48, 16  ;;  %v1188_v61 = vshrl.u32 %v732_v48, 16  ;;  %v812_v62 = vrot.slane %v748_v49, 4  ;;  %v428_v2 = vpop.f32.mrb[5].mxu0  ;;  %v9073_v3 = vpop.f32.mrb[5].mxu1 }
  0xf5   :  { %v995_v5 = vshll.u32 %v748_v49, 16  ;;  %v1236_v6 = vshrl.u32 %v748_v49, 16  ;;  %v795_v7 = vrot.slane %v731_v54, 4  ;;  %v927_v8 = vshll.u32 %v731_v54, 16  ;;  %v8647_v9 = vpop.f32.mrb[6].mxu0  ;;  %v9082_v10 = vpop.f32.mrb[6].mxu1 }
  0xf6   :  { %864 = vst.msk [vmem:[#allocation2 + $0x20] sm:$0xf0] %vm12820_vm1, %v796_v58  ;;  %v933_v11 = vrot.slane %v931_v59, 5  ;;  %v1190_v12 = vrot.slane %v1188_v61, 3  ;;  %896 = vst.msk [vmem:[#allocation2 + $0x140] sm:$0xf0] %vm12820_vm1, %v812_v62  ;;  %v437_v35 = vadd.f32 %v8646_v56, %v9055_v23  ;;  %v429_v36 = vadd.f32 %v9055_v23, %v428_v2 }
  0xf7   :  { %865 = vst.msk [vmem:[#allocation2 + $0x28] sm:$0xf] %vm12818_vm2, %v796_v58  ;;  %897 = vst.msk [vmem:[#allocation2 + $0x148] sm:$0xf] %vm12818_vm2, %v812_v62  ;;  %v1185_v13 = vshrl.u32 %v731_v54, 16  ;;  %v811_v14 = vrot.slane %v747_v55, 4  ;;  %v440_v38 = vadd.f32 %v8647_v9, %v9055_v23 }
  0xf8   :  { %v431_v15 = vpop.f32.mrb[7].mxu0  ;;  %v9089_v16 = vpop.f32.mrb[7].mxu1  ;;  %v997_v17 = vrot.slane %v995_v5, 5  ;;  %v1238_v18 = vrot.slane %v1236_v6, 3  ;;  %861 = vst.msk [vmem:[#allocation2 + $0x10] sm:$0xf0] %vm12820_vm1, %v795_v7  ;;  %v1093_v22 = vsel %vm9069_vm7, %v933_v11, %v1092_v52  ;;  %v1320_v24 = vsel %vm9078_vm8, %v1190_v12, %v1319_v53 }
  0xf9   :  { %863 = vst.msk [vmem:[#allocation2 + $0x18] sm:$0xf] %vm12818_vm2, %v795_v7  ;;  %v929_v19 = vrot.slane %v927_v8, 5  ;;  %v991_v21 = vshll.u32 %v747_v55, 16  ;;  %v1187_v25 = vrot.slane %v1185_v13, 3  ;;  %v1233_v27 = vshrl.u32 %v747_v55, 16 }
  0xfa   :  { %894 = vst.msk [vmem:[#allocation2 + $0x130] sm:$0xf0] %vm12820_vm1, %v811_v14  ;;  %1094 = vst [vmem:[#allocation2 + $0x20] sm:$0x8] %v1093_v22  ;;  %v1141_v28 = vsel %vm9069_vm7, %v997_v17, %v1140_v63  ;;  %v1368_v29 = vsel %vm9078_vm8, %v1238_v18, %v1367_v0  ;;  %v432_v39 = vadd.f32 %v9055_v23, %v431_v15  ;;  %v673_v43 = vmax.f32 %v437_v35, 0.0 }
  0xfb   :  { %895 = vst.msk [vmem:[#allocation2 + $0x138] sm:$0xf] %vm12818_vm2, %v811_v14  ;;  %1321 = vst [vmem:[#allocation2 + $0x28] sm:$0x10] %v1320_v24  ;;  %v1090_v30 = vsel %vm9069_vm7, %v929_v19, %v1089_v1  ;;  %v993_v31 = vrot.slane %v991_v21, 5  ;;  %v1317_v33 = vsel %vm9078_vm8, %v1187_v25, %v1316_v20  ;;  %v1235_v34 = vrot.slane %v1233_v27, 3 }
  0xfc   :  { %1142 = vst [vmem:[#allocation2 + $0x140] sm:$0x8] %v1141_v28  ;;  %1369 = vst [vmem:[#allocation2 + $0x148] sm:$0x10] %v1368_v29  ;;  %v9113_v40 = vpop.f32.mrb[8].mxu0  ;;  %v9115_v41 = vpop.f32.mrb[8].mxu1  ;;  %v9170_v20 = vadd.f32 %v9065_v57, %v9055_v23 }
  0xfd   :  { %1091 = vst [vmem:[#allocation2 + $0x10] sm:$0x8] %v1090_v30  ;;  %1318 = vst [vmem:[#allocation2 + $0x18] sm:$0x10] %v1317_v33  ;;  %v1138_v37 = vsel %vm9069_vm7, %v993_v31, %v1137_v26  ;;  %v1365_v42 = vsel %vm9078_vm8, %v1235_v34, %v1364_v32  ;;  %v671_v44 = vmax.f32 %v429_v36, 0.0  ;;  %v9119_v45 = vpop.f32.mrb[9].mxu0  ;;  %v9189_v30 = vadd.f32 %v9055_v23, %v9073_v3 }
  0xfe   :  { %1139 = vst [vmem:[#allocation2 + $0x130] sm:$0x8] %v1138_v37  ;;  %v9121_v46 = vpop.f32.mrb[9].mxu1  ;;  %1366 = vst [vmem:[#allocation2 + $0x138] sm:$0x10] %v1365_v42  ;;  %v674_v54 = vmax.f32 %v440_v38, 0.0  ;;  %v9193_v31 = vadd.f32 %v9082_v10, %v9055_v23  ;;  %v9197_v32 = vadd.f32 %v9055_v23, %v9089_v16 }
  0xff   :  { %v9123_v47 = vld [vmem:[#allocation2 + $0x28] sm:$0xf]  ;;  %v9125_v48 = vld [vmem:[#allocation2 + $0x20] sm:$0xf0]  ;;  %v672_v59 = vmax.f32 %v432_v39, 0.0  ;;  %v9151_v8 = vpop.f32.mrb[10].mxu0 }
 0x100   :  { %v9127_v49 = vld [vmem:[#allocation2 + $0x28] sm:$0xf]  ;;  %v4909_v50 = vrot.slane %v9125_v48, 4  ;;  %v4910_v51 = vrot.slane %v9123_v47, 4  ;;  %v9131_v52 = vld [vmem:[#allocation2 + $0x20] sm:$0xf0]  ;;  %v734_v2 = vpack.c.bf16 %v674_v54, %v673_v43 }
 0x101   :  { %v3536_v53 = vrot.slane %v9127_v49, 4  ;;  %v3535_v55 = vrot.slane %v9131_v52, 4  ;;  %v9135_v56 = vld [vmem:[#allocation2 + $0x148] sm:$0xf]  ;;  %v9137_v58 = vld [vmem:[#allocation2 + $0x140] sm:$0xf0]  ;;  %v9159_v13 = vpack.c.bf16 %v672_v59, %v671_v44 }
 0x102   :  { %v4911_v61 = vsel %vm2154_vm9, %v4909_v50, %v4910_v51  ;;  %v4957_v62 = vrot.slane %v9137_v58, 4  ;;  %v4958_v63 = vrot.slane %v9135_v56, 4  ;;  %v9142_v0 = vld [vmem:[#allocation2 + $0x28] sm:$0xf]  ;;  %v9144_v1 = vld [vmem:[#allocation2 + $0x20] sm:$0xf0] }
 0x103   :  { %5965 = vrot.lane.b32.xlu0 %v4911_v61, %s8964_s17  ;;  %v3537_v5 = vsel %vm2154_vm9, %v3535_v55, %v3536_v53  ;;  %v2161_v6 = vrot.slane %v9144_v1, 4  ;;  %v9149_v7 = vld [vmem:[#allocation2 + $0x148] sm:$0xf]  ;;  %v2162_v9 = vrot.slane %v9142_v0, 4  ;;  %v9155_v11 = vld [vmem:[#allocation2 + $0x140] sm:$0xf0] }
 0x104   :  { %5775 = vrot.lane.b32.xlu1 %v3537_v5, %s8965_s18  ;;  %v9157_v12 = vld [vmem:[#allocation2 + $0x18] sm:$0xf]  ;;  %v9161_v14 = vld [vmem:[#allocation2 + $0x10] sm:$0xf0]  ;;  %v4959_v15 = vsel %vm2154_vm9, %v4957_v62, %v4958_v63  ;;  %v9166_v19 = vld [vmem:[#allocation2 + $0x148] sm:$0xf] }
 0x105   :  { %v2158_v17 = vrot.slane %v9161_v14, 4  ;;  %v2159_v18 = vrot.slane %v9157_v12, 4  ;;  %v9172_v21 = vpop.f32.mrb[11].mxu0  ;;  %v1557_v22 = vshrl.u32 %v9142_v0, 16  ;;  %v2163_v24 = vsel %vm2154_vm9, %v2161_v6, %v2162_v9  ;;  %v9179_v27 = vld [vmem:[#allocation2 + $0x140] sm:$0xf0] }
 0x106   :  { %v3583_v25 = vrot.slane %v9155_v11, 4  ;;  %v3584_v26 = vrot.slane %v9149_v7, 4  ;;  %v9181_v28 = vpop.f32.mrb[10].mxu1  ;;  %v1560_v29 = vshll.u32 %v9142_v0, 16  ;;  %v9185_v57 = vld [vmem:[#allocation2 + $0x18] sm:$0xf] }
 0x107   :  { %5997 = vrot.lane.b32.xlu0 %v4959_v15, %s8964_s17  ;;  %v9199_v33 = vpop.f32.mrb[11].mxu1  ;;  %v2209_v34 = vrot.slane %v9179_v27, 4  ;;  %v2210_v35 = vrot.slane %v9166_v19, 4  ;;  %v9203_v36 = vld [vmem:[#allocation2 + $0x10] sm:$0xf0]  ;;  %v3533_v37 = vrot.slane %v9185_v57, 4  ;;  %v2160_v10 = vsel %vm2154_vm9, %v2158_v17, %v2159_v18 }
 0x108   :  { %5585 = vrot.lane.b32.xlu1 %v2163_v24, %s8963_s12  ;;  %v798_v3 = vrot.slane %v734_v2, 4  ;;  %v1098_v38 = vld [vmem:[#allocation2 + $0x40] sm:$0x8]  ;;  %v1325_v39 = vld [vmem:[#allocation2 + $0x48] sm:$0x10]  ;;  %v3532_v42 = vrot.slane %v9203_v36, 4  ;;  %v3585_v51 = vsel %vm2154_vm9, %v3583_v25, %v3584_v26 }
 0x109   :  { %v939_v43 = vshll.u32 %v734_v2, 16  ;;  %v1194_v16 = vshrl.u32 %v734_v2, 16  ;;  %v9208_v44 = vld [vmem:[#allocation2 + $0x138] sm:$0xf]  ;;  %v9210_v50 = vrot.slane %v1557_v22, 3  ;;  %v797_v55 = vrot.slane %v9159_v13, 4 }
 0x10a   :  { %868 = vst.msk [vmem:[#allocation2 + $0x40] sm:$0xf0] %vm12820_vm1, %v798_v3  ;;  %v9216_v53 = vld [vmem:[#allocation2 + $0x130] sm:$0xf0]  ;;  %v2207_v54 = vrot.slane %v9208_v44, 4  ;;  %v1540_v59 = vshrl.u32 %v9157_v12, 16  ;;  %v2211_v6 = vsel %vm2154_vm9, %v2209_v34, %v2210_v35  ;;  %v3534_v9 = vsel %vm2154_vm9, %v3532_v42, %v3533_v37 }
 0x10b   :  { %5583 = vrot.lane.b32.xlu0 %v2160_v10, %s8963_s12  ;;  %869 = vst.msk [vmem:[#allocation2 + $0x48] sm:$0xf] %vm12818_vm2, %v798_v3  ;;  %v941_v61 = vrot.slane %v939_v43, 5  ;;  %v1196_v62 = vrot.slane %v1194_v16, 3  ;;  %v2206_v63 = vrot.slane %v9216_v53, 4  ;;  %v935_v15 = vshll.u32 %v9159_v13, 16 }
 0x10c   :  { %5807 = vrot.lane.b32.xlu1 %v3585_v51, %s8965_s18  ;;  %v1095_v2 = vld [vmem:[#allocation2 + $0x30] sm:$0x8]  ;;  %v9223_v5 = vld [vmem:[#allocation2 + $0x138] sm:$0xf]  ;;  %866 = vst.msk [vmem:[#allocation2 + $0x30] sm:$0xf0] %vm12820_vm1, %v797_v55 }
 0x10d   :  { %867 = vst.msk [vmem:[#allocation2 + $0x38] sm:$0xf] %vm12818_vm2, %v797_v55  ;;  %v1191_v17 = vshrl.u32 %v9159_v13, 16  ;;  %v1322_v18 = vld [vmem:[#allocation2 + $0x38] sm:$0x10]  ;;  %v1099_v24 = vsel %vm9069_vm7, %v941_v61, %v1098_v38  ;;  %v1326_v25 = vsel %vm9078_vm8, %v1196_v62, %v1325_v39  ;;  %v2208_v26 = vsel %vm2154_vm9, %v2206_v63, %v2207_v54 }
 0x10e   :  { %v9231_v22 = vld [vmem:[#allocation2 + $0x130] sm:$0xf0]  ;;  %v2830_v35 = vld [vmem:[#allocation2 + $0x20] sm:$0xf8]  ;;  %1100 = vst [vmem:[#allocation2 + $0x40] sm:$0x8] %v1099_v24 }
 0x10f   :  { %v3580_v34 = vrot.slane %v9231_v22, 4  ;;  %v4205_v37 = vld [vmem:[#allocation2 + $0x20] sm:$0xf8]  ;;  %5773 = vrot.lane.b32.xlu0 %v3534_v9, %s8965_s18  ;;  %1327 = vst [vmem:[#allocation2 + $0x48] sm:$0x10] %v1326_v25  ;;  %v937_v13 = vrot.slane %v935_v15, 5 }
 0x110   :  { %v1193_v3 = vrot.slane %v1191_v17, 3  ;;  %v3581_v10 = vrot.slane %v9223_v5, 4  ;;  %v2910_v42 = vshrl.u32 %v2830_v35, 16  ;;  %5617 = vrot.lane.b32.xlu1 %v2211_v6, %s8963_s12  ;;  %v2913_v38 = vshll.u32 %v2830_v35, 16  ;;  %v3629_v62 = vld [vmem:[#allocation2 + $0x28] sm:$0x1f] }
 0x111   :  { %v2918_v39 = vshrl.u32 %v9127_v49, 16  ;;  %v2921_v43 = vshll.u32 %v9127_v49, 16  ;;  %v4270_v16 = vshrl.u32 %v4205_v37, 16  ;;  %v1096_v51 = vsel %vm9069_vm7, %v937_v13, %v1095_v2 }
 0x112   :  { %v1323_v54 = vsel %vm9078_vm8, %v1193_v3, %v1322_v18  ;;  %v3582_v55 = vsel %vm2154_vm9, %v3580_v34, %v3581_v10  ;;  %v2912_v61 = vrot.slane %v2910_v42, 3  ;;  %1097 = vst [vmem:[#allocation2 + $0x30] sm:$0x8] %v1096_v51  ;;  %v2915_v63 = vrot.slane %v2913_v38, 4  ;;  %v5005_v38 = vld [vmem:[#allocation2 + $0x28] sm:$0x1f] }
 0x113   :  { %1324 = vst [vmem:[#allocation2 + $0x38] sm:$0x10] %v1323_v54  ;;  %v2920_v6 = vrot.slane %v2918_v39, 3  ;;  %v2923_v9 = vrot.slane %v2921_v43, 4  ;;  %v4272_v15 = vrot.slane %v4270_v16, 3  ;;  %5805 = vrot.lane.b32.xlu0 %v3582_v55, %s8965_s18  ;;  %v4273_v49 = vshll.u32 %v4205_v37, 16 }
 0x114   :  { %v4278_v17 = vshrl.u32 %v9123_v47, 16  ;;  %v4281_v2 = vshll.u32 %v9123_v47, 16  ;;  %v3678_v18 = vshrl.u32 %v9131_v52, 16  ;;  %5615 = vrot.lane.b32.xlu1 %v2208_v26, %s8963_s12  ;;  %v2916_v24 = vor.u32 %v2915_v63, %v2912_v61 }
 0x115   :  { %v2924_v25 = vor.u32 %v2923_v9, %v2920_v6  ;;  %v3681_v34 = vshll.u32 %v9131_v52, 16  ;;  %v3686_v35 = vshrl.u32 %v3629_v62, 16  ;;  %v4275_v13 = vrot.slane %v4273_v49, 4  ;;  %v2862_v6 = vld [vmem:[#allocation2 + $0x140] sm:$0xf8] }
 0x116   :  { %v4280_v3 = vrot.slane %v4278_v17, 3  ;;  %v4283_v10 = vrot.slane %v4281_v2, 4  ;;  %v3680_v42 = vrot.slane %v3678_v18, 4  ;;  %v3689_v16 = vshll.u32 %v3629_v62, 16 }
 0x117   :  { %v2925_v37 = vsel %vm12827_vm6, %v2916_v24, %v2924_v25  ;;  %v3683_v39 = vrot.slane %v3681_v34, 5  ;;  %v3688_v43 = vrot.slane %v3686_v35, 4  ;;  %v4276_v47 = vor.u32 %v4275_v13, %v4272_v15  ;;  %v9263_v24 = vpop.f32.mrb[12].mxu0 }
 0x118   :  { %v4284_v51 = vor.u32 %v4283_v10, %v4280_v3  ;;  %v5038_v54 = vshrl.u32 %v9125_v48, 16  ;;  %v5041_v26 = vshll.u32 %v9125_v48, 16  ;;  %5711 = vrot.lane.b32.xlu1 %v2925_v37, %s8966_s19  ;;  %v3691_v55 = vrot.slane %v3689_v16, 5  ;;  %v9267_v3 = vpop.f32.mrb[13].mxu0  ;;  %v1373_v16 = vld [vmem:[#allocation2 + $0x168] sm:$0x10] }
 0x119   :  { %v3684_v52 = vor.u32 %v3683_v39, %v3680_v42  ;;  %v5046_v61 = vshrl.u32 %v5005_v38, 16  ;;  %v5049_v63 = vshll.u32 %v5005_v38, 16  ;;  %v705_v62 = vmax.f32 %v9170_v20, 0.0 }
 0x11a   :  { %v4285_v9 = vsel %vm12827_vm6, %v4276_v47, %v4284_v51  ;;  %v5040_v49 = vrot.slane %v5038_v54, 4  ;;  %v5043_v17 = vrot.slane %v5041_v26, 5  ;;  %v3692_v15 = vor.u32 %v3691_v55, %v3688_v43 }
 0x11b   :  { %5901 = vrot.lane.b32.xlu0 %v4285_v9, %s8967_s20  ;;  %v5048_v2 = vrot.slane %v5046_v61, 4  ;;  %v5051_v48 = vrot.slane %v5049_v63, 5  ;;  %v703_v18 = vmax.f32 %v9189_v30, 0.0  ;;  %v706_v34 = vmax.f32 %v9193_v31, 0.0  ;;  %v2253_v63 = vld [vmem:[#allocation2 + $0x28] sm:$0x1f] }
 0x11c   :  { %v5044_v25 = vor.u32 %v5043_v17, %v5040_v49  ;;  %v704_v35 = vmax.f32 %v9197_v32, 0.0  ;;  %v3182_v13 = vshrl.u32 %v2862_v6, 16  ;;  %v3693_v20 = vsel %vm2283_vm10, %v3684_v52, %v3692_v15  ;;  %v1146_v32 = vld [vmem:[#allocation2 + $0x160] sm:$0x8]  ;;  %v1143_v9 = vld [vmem:[#allocation2 + $0x150] sm:$0x8] }
 0x11d   :  { %v5052_v10 = vor.u32 %v5051_v48, %v5048_v2  ;;  %v3185_v42 = vshll.u32 %v2862_v6, 16  ;;  %v3190_v38 = vshrl.u32 %v9149_v7, 16  ;;  %5839 = vrot.lane.b32.xlu1 %v3693_v20, %s8968_s21  ;;  %v750_v30 = vpack.c.bf16 %v706_v34, %v705_v62  ;;  %v9276_v62 = vpop.f32.mrb[14].mxu0  ;;  %v1370_v48 = vld [vmem:[#allocation2 + $0x158] sm:$0x10] }
 0x11e   :  { %v749_v37 = vpack.c.bf16 %v704_v35, %v703_v18  ;;  %v3184_v39 = vrot.slane %v3182_v13, 3  ;;  %v3193_v43 = vshll.u32 %v9149_v7, 16  ;;  %v2319_v54 = vshrl.u32 %v9144_v1, 16 }
 0x11f   :  { %v5053_v31 = vsel %vm2283_vm10, %v5044_v25, %v5052_v10  ;;  %v3187_v47 = vrot.slane %v3185_v42, 4  ;;  %v3192_v51 = vrot.slane %v3190_v38, 3  ;;  %v814_v26 = vrot.slane %v750_v30, 4 }
 0x120   :  { %6029 = vrot.lane.b32.xlu0 %v5053_v31, %s8969_s22  ;;  %v1003_v52 = vshll.u32 %v750_v30, 16  ;;  %v1242_v55 = vshrl.u32 %v750_v30, 16  ;;  %v813_v61 = vrot.slane %v749_v37, 4  ;;  %v999_v6 = vshll.u32 %v749_v37, 16 }
 0x121   :  { %v1239_v49 = vshrl.u32 %v749_v37, 16  ;;  %v3188_v7 = vor.u32 %v3187_v47, %v3184_v39  ;;  %v3195_v17 = vrot.slane %v3193_v43, 4  ;;  %900 = vst.msk [vmem:[#allocation2 + $0x160] sm:$0xf0] %vm12820_vm1, %v814_v26  ;;  %v2321_v18 = vrot.slane %v2319_v54, 4 }
 0x122   :  { %901 = vst.msk [vmem:[#allocation2 + $0x168] sm:$0xf] %vm12818_vm2, %v814_v26  ;;  %v1005_v15 = vrot.slane %v1003_v52, 5  ;;  %v1244_v2 = vrot.slane %v1242_v55, 3  ;;  %899 = vst.msk [vmem:[#allocation2 + $0x158] sm:$0xf] %vm12818_vm2, %v813_v61 }
 0x123   :  { %898 = vst.msk [vmem:[#allocation2 + $0x150] sm:$0xf0] %vm12820_vm1, %v813_v61  ;;  %v2322_v25 = vshll.u32 %v9144_v1, 16  ;;  %v1001_v34 = vrot.slane %v999_v6, 5  ;;  %v1241_v35 = vrot.slane %v1239_v49, 3  ;;  %v3196_v13 = vor.u32 %v3195_v17, %v3192_v51  ;;  %v9292_v51 = vpop.f32.mrb[15].mxu0 }
 0x124   :  { %v2327_v20 = vshrl.u32 %v2253_v63, 16  ;;  %v1147_v10 = vsel %vm9069_vm7, %v1005_v15, %v1146_v32  ;;  %v1374_v42 = vsel %vm9078_vm8, %v1244_v2, %v1373_v16  ;;  %v2330_v30 = vshll.u32 %v2253_v63, 16  ;;  %v3645_v37 = vld [vmem:[#allocation2 + $0x148] sm:$0x1f]  ;;  %v4237_v39 = vld [vmem:[#allocation2 + $0x140] sm:$0xf8] }
 0x125   :  { %v2324_v38 = vrot.slane %v2322_v25, 5  ;;  %1148 = vst [vmem:[#allocation2 + $0x160] sm:$0x8] %v1147_v10  ;;  %1375 = vst [vmem:[#allocation2 + $0x168] sm:$0x10] %v1374_v42  ;;  %v1144_v43 = vsel %vm9069_vm7, %v1001_v34, %v1143_v9  ;;  %v1371_v1 = vsel %vm9078_vm8, %v1241_v35, %v1370_v48  ;;  %v3197_v31 = vsel %vm12827_vm6, %v3188_v7, %v3196_v13  ;;  %v8880_v52 = vld [vmem:[#allocation3 + $0xc0] sm:$0xff]  }
 0x126   :  { %v2329_v47 = vrot.slane %v2327_v20, 4  ;;  %1145 = vst [vmem:[#allocation2 + $0x150] sm:$0x8] %v1144_v43  ;;  %1372 = vst [vmem:[#allocation2 + $0x158] sm:$0x10] %v1371_v1  ;;  %5743 = vrot.lane.b32.xlu1 %v3197_v31, %s8966_s19  ;;  %v2332_v16 = vrot.slane %v2330_v30, 5  ;;  %8688 = vmatprep.mubr.msk.bf16.mxu1 %vm281_vm0, %v8880_v52 }
 0x127   :  { %v2325_v32 = vor.u32 %v2324_v38, %v2321_v18  ;;  %v3950_v54 = vshrl.u32 %v9155_v11, 16  ;;  %v3953_v26 = vshll.u32 %v9155_v11, 16  ;;  %v3958_v55 = vshrl.u32 %v3645_v37, 16  ;;  %v8881_v15 = vld [vmem:[#allocation3 + $0xc8] sm:$0xff]   ;;  %v2252_v34 = vld [vmem:[#allocation2 + $0x18] sm:$0x1f] }
 0x128   :  { %v3961_v61 = vshll.u32 %v3645_v37, 16  ;;  %v4542_v63 = vshrl.u32 %v4237_v39, 16  ;;  %v4545_v6 = vshll.u32 %v4237_v39, 16  ;;  %v2333_v9 = vor.u32 %v2332_v16, %v2329_v47  ;;  %8689 = vmatmul.mubr.msk.bf16.gmra.mrb[16].mxu1 %vm281_vm0, %v8881_v15  ;;  %v5021_v37 = vld [vmem:[#allocation2 + $0x148] sm:$0x1f] }
 0x129   :  { %v3952_v49 = vrot.slane %v3950_v54, 4  ;;  %v3955_v7 = vrot.slane %v3953_v26, 5  ;;  %v4550_v17 = vshrl.u32 %v9135_v56, 16  ;;  %v3960_v2 = vrot.slane %v3958_v55, 4  ;;  %v9306_v47 = vld [vmem:[#allocation2 + $0x48] sm:$0xf] }
 0x12a   :  { %v3963_v48 = vrot.slane %v3961_v61, 5  ;;  %v4544_v18 = vrot.slane %v4542_v63, 3  ;;  %v4547_v25 = vrot.slane %v4545_v6, 4  ;;  %v2334_v11 = vsel %vm2283_vm10, %v2325_v32, %v2333_v9  ;;  %v9310_v26 = vld [vmem:[#allocation2 + $0x40] sm:$0xf0] }
 0x12b   :  { %v3956_v35 = vor.u32 %v3955_v7, %v3952_v49  ;;  %v4552_v13 = vrot.slane %v4550_v17, 3  ;;  %v4553_v20 = vshll.u32 %v9135_v56, 16  ;;  %5649 = vrot.lane.b32.xlu0 %v2334_v11, %s8970_s23  ;;  %v2302_v38 = vshrl.u32 %v9161_v14, 16  ;;  %v2269_v7 = vld [vmem:[#allocation2 + $0x148] sm:$0x1f] }
 0x12c   :  { %v3964_v10 = vor.u32 %v3963_v48, %v3960_v2  ;;  %v4548_v42 = vor.u32 %v4547_v25, %v4544_v18  ;;  %v2305_v30 = vshll.u32 %v9161_v14, 16  ;;  %v2310_v43 = vshrl.u32 %v2252_v34, 16  ;;  %v9318_v11 = vld [vmem:[#allocation2 + $0x40] sm:$0xf0] }
 0x12d   :  { %v4555_v39 = vrot.slane %v4553_v20, 4  ;;  %v2313_v1 = vshll.u32 %v2252_v34, 16  ;;  %v5310_v31 = vshrl.u32 %v9137_v58, 16  ;;  %v2304_v32 = vrot.slane %v2302_v38, 4 }
 0x12e   :  { %v3965_v56 = vsel %vm2283_vm10, %v3956_v35, %v3964_v10  ;;  %v2307_v16 = vrot.slane %v2305_v30, 5  ;;  %v5313_v54 = vshll.u32 %v9137_v58, 16  ;;  %v2312_v14 = vrot.slane %v2310_v43, 4  ;;  %v2828_v43 = vld [vmem:[#allocation2 + $0x10] sm:$0xf8] }
 0x12f   :  { %5871 = vrot.lane.b32.xlu1 %v3965_v56, %s8968_s21  ;;  %v4556_v52 = vor.u32 %v4555_v39, %v4552_v13  ;;  %v2315_v55 = vrot.slane %v2313_v1, 5  ;;  %v5312_v61 = vrot.slane %v5310_v31, 4  ;;  %v5318_v9 = vshrl.u32 %v5021_v37, 16 }
 0x130   :  { %v2308_v63 = vor.u32 %v2307_v16, %v2304_v32  ;;  %v5315_v6 = vrot.slane %v5313_v54, 5  ;;  %v5321_v49 = vshll.u32 %v5021_v37, 16  ;;  %v3541_v2 = vrot.slane %v9310_v26, 4 }
 0x131   :  { %v4557_v17 = vsel %vm12827_vm6, %v4548_v42, %v4556_v52  ;;  %v2316_v15 = vor.u32 %v2315_v55, %v2312_v14  ;;  %v3542_v58 = vrot.slane %v9306_v47, 4  ;;  %v5320_v18 = vrot.slane %v5318_v9, 4  ;;  %v9326_v42 = vld [vmem:[#allocation2 + $0x48] sm:$0xf] }
 0x132   :  { %5933 = vrot.lane.b32.xlu0 %v4557_v17, %s8967_s20  ;;  %v5316_v48 = vor.u32 %v5315_v6, %v5312_v61  ;;  %v5323_v25 = vrot.slane %v5321_v49, 5  ;;  %v2591_v34 = vshrl.u32 %v9179_v27, 16  ;;  %v9322_v35 = vrot.slane %v1560_v29, 4  ;;  %v2268_v61 = vld [vmem:[#allocation2 + $0x138] sm:$0x1f] }
 0x133   :  { %v2317_v13 = vsel %vm2283_vm10, %v2308_v63, %v2316_v15  ;;  %v2594_v20 = vshll.u32 %v9179_v27, 16  ;;  %v2599_v10 = vshrl.u32 %v2269_v7, 16  ;;  %v1543_v38 = vshll.u32 %v9157_v12, 16 }
 0x134   :  { %5647 = vrot.lane.b32.xlu1 %v2317_v13, %s8970_s23  ;;  %v5324_v30 = vor.u32 %v5323_v25, %v5320_v18  ;;  %v2593_v37 = vrot.slane %v2591_v34, 4  ;;  %v2602_v39 = vshll.u32 %v2269_v7, 16  ;;  %v3543_v1 = vsel %vm2154_vm9, %v3541_v2, %v3542_v58  ;;  %v3628_v25 = vld [vmem:[#allocation2 + $0x18] sm:$0x1f] }
 0x135   :  { %v2596_v0 = vrot.slane %v2594_v20, 5  ;;  %v2601_v29 = vrot.slane %v2599_v10, 4  ;;  %v2167_v31 = vrot.slane %v9318_v11, 4  ;;  %v9334_v27 = vrot.slane %v1540_v59, 3 }
 0x136   :  { %v5325_v56 = vsel %vm2283_vm10, %v5316_v48, %v5324_v30  ;;  %v2604_v32 = vrot.slane %v2602_v39, 5  ;;  %v2168_v16 = vrot.slane %v9326_v42, 4  ;;  %v1829_v54 = vshrl.u32 %v9166_v19, 16  ;;  %v9348_v30 = vld [vmem:[#allocation2 + $0x160] sm:$0xf0] }
 0x137   :  { %12833 = vst [vmem:[#allocation9_spill] sm:$0xff] %v9334_v27  ;;  %6061 = vrot.lane.b32.xlu0 %v5325_v56, %s8969_s22  ;;  %v2597_v52 = vor.u32 %v2596_v0, %v2593_v37  ;;  %v2893_v14 = vshrl.u32 %v2828_v43, 16  ;;  %v2896_v55 = vshll.u32 %v2828_v43, 16  ;;  %v2901_v59 = vshrl.u32 %v9185_v57, 16  ;;  %v9357_v0 = vld [vmem:[#allocation2 + $0x48] sm:$0xf] }
 0x138   :  { %5779 = vrot.lane.b32.xlu1 %v3543_v1, %s8965_s18  ;;  %v2605_v63 = vor.u32 %v2604_v32, %v2601_v29  ;;  %v2169_v6 = vsel %vm2154_vm9, %v2167_v31, %v2168_v16  ;;  %v2904_v9 = vshll.u32 %v9185_v57, 16  ;;  %v2574_v17 = vshrl.u32 %v9216_v53, 16  ;;  %v9350_v57 = vld [vmem:[#allocation2 + $0x40] sm:$0xf0]  ;;  %v9355_v1 = vld [vmem:[#allocation2 + $0x168] sm:$0xf] }
 0x139   :  { %v2895_v49 = vrot.slane %v2893_v14, 3  ;;  %v2898_v7 = vrot.slane %v2896_v55, 4  ;;  %v2577_v15 = vshll.u32 %v9216_v53, 16  ;;  %v2903_v58 = vrot.slane %v2901_v59, 3  ;;  %v9359_v16 = vld [vmem:[#allocation2 + $0x38] sm:$0xf] }
 0x13a   :  { %v2606_v2 = vsel %vm2283_vm10, %v2597_v52, %v2605_v63  ;;  %v2906_v48 = vrot.slane %v2904_v9, 4  ;;  %v2582_v18 = vshrl.u32 %v2268_v61, 16  ;;  %v2576_v13 = vrot.slane %v2574_v17, 4  ;;  %v9363_v63 = vld [vmem:[#allocation2 + $0x30] sm:$0xf0] }
 0x13b   :  { %5681 = vrot.lane.b32.xlu0 %v2606_v2, %s8970_s23  ;;  %v2899_v34 = vor.u32 %v2898_v7, %v2895_v49  ;;  %v2579_v20 = vrot.slane %v2577_v15, 5  ;;  %v2585_v10 = vshll.u32 %v2268_v61, 16  ;;  %v3661_v39 = vshrl.u32 %v9203_v36, 16  ;;  %v2860_v49 = vld [vmem:[#allocation2 + $0x130] sm:$0xf8] }
 0x13c   :  { %5589 = vrot.lane.b32.xlu1 %v2169_v6, %s8963_s12  ;;  %v2907_v37 = vor.u32 %v2906_v48, %v2903_v58  ;;  %v2584_v53 = vrot.slane %v2582_v18, 4  ;;  %v3664_v43 = vshll.u32 %v9203_v36, 16  ;;  %v3669_v56 = vshrl.u32 %v3628_v25, 16 }
 0x13d   :  { %v2580_v29 = vor.u32 %v2579_v20, %v2576_v13  ;;  %v2587_v31 = vrot.slane %v2585_v10, 5  ;;  %v3672_v32 = vshll.u32 %v3628_v25, 16  ;;  %v3663_v14 = vrot.slane %v3661_v39, 4  ;;  %v9386_v39 = vld [vmem:[#allocation2 + $0x30] sm:$0xf0] }
 0x13e   :  { %v2908_v52 = vsel %vm12827_vm6, %v2899_v34, %v2907_v37  ;;  %v3666_v55 = vrot.slane %v3664_v43, 5  ;;  %v3589_v61 = vrot.slane %v9348_v30, 4  ;;  %v3671_v6 = vrot.slane %v3669_v56, 4 }
 0x13f   :  { %5709 = vrot.lane.b32.xlu0 %v2908_v52, %s8966_s19  ;;  %v2588_v36 = vor.u32 %v2587_v31, %v2584_v53  ;;  %v3674_v59 = vrot.slane %v3672_v32, 5  ;;  %v3590_v9 = vrot.slane %v9355_v1, 4  ;;  %v9369_v7 = vrot.slane %v1543_v38, 4  ;;  %v3644_v32 = vld [vmem:[#allocation2 + $0x138] sm:$0x1f] }
 0x140   :  { %v1832_v17 = vshll.u32 %v9166_v19, 16  ;;  %v3667_v15 = vor.u32 %v3666_v55, %v3663_v14  ;;  %v4915_v2 = vrot.slane %v9350_v57, 4  ;;  %v4916_v18 = vrot.slane %v9357_v0, 4  ;;  %v9391_v52 = vld [vmem:[#allocation2 + $0x38] sm:$0xf] }
 0x141   :  { %12834 = vst [vmem:[#allocation10_spill] sm:$0xff] %v9369_v7  ;;  %v2589_v58 = vsel %vm2283_vm10, %v2580_v29, %v2588_v36  ;;  %v3675_v48 = vor.u32 %v3674_v59, %v3671_v6  ;;  %v4912_v25 = vrot.slane %v9363_v63, 4  ;;  %v4913_v34 = vrot.slane %v9359_v16, 4  ;;  %v9393_v14 = vld [vmem:[#allocation2 + $0x158] sm:$0xf] }
 0x142   :  { %5679 = vrot.lane.b32.xlu1 %v2589_v58, %s8970_s23  ;;  %v3165_v12 = vshrl.u32 %v2860_v49, 16  ;;  %v3168_v38 = vshll.u32 %v2860_v49, 16  ;;  %v3173_v13 = vshrl.u32 %v9223_v5, 16  ;;  %v9381_v20 = vrot.slane %v1829_v54, 3  ;;  %v9408_v59 = vld [vmem:[#allocation2 + $0x150] sm:$0xf0] }
 0x143   :  { %v3676_v10 = vsel %vm2283_vm10, %v3667_v15, %v3675_v48  ;;  %v3591_v37 = vsel %vm2154_vm9, %v3589_v61, %v3590_v9  ;;  %v3176_v53 = vshll.u32 %v9223_v5, 16  ;;  %v1812_v43 = vshrl.u32 %v9208_v44, 16  ;;  %v9410_v9 = vld [vmem:[#allocation2 + $0x168] sm:$0xf] }
 0x144   :  { %12835 = vst [vmem:[#allocation11_spill] sm:$0xff] %v9381_v20  ;;  %5837 = vrot.lane.b32.xlu0 %v3676_v10, %s8968_s21  ;;  %v3167_v29 = vrot.slane %v3165_v12, 3  ;;  %v3170_v31 = vrot.slane %v3168_v38, 4  ;;  %v3175_v56 = vrot.slane %v3173_v13, 3  ;;  %v1815_v19 = vshll.u32 %v9208_v44, 16 }
 0x145   :  { %v3178_v54 = vrot.slane %v3176_v53, 4  ;;  %v9397_v5 = vadd.f32 %v9113_v40, %v9055_v23  ;;  %v9401_v55 = vadd.f32 %v9055_v23, %v9119_v45  ;;  %v4917_v61 = vsel %vm2154_vm9, %v4915_v2, %v4916_v18  ;;  %v4831_v45 = vld [vmem:[#allocation2 + $0x160] sm:$0xf0]  ;;  %v1429_v13 = vld [vmem:[#allocation2 + $0x128] sm:$0x1f] }
 0x146   :  { %5811 = vrot.lane.b32.xlu1 %v3591_v37, %s8965_s18  ;;  %v4914_v36 = vsel %vm2154_vm9, %v4912_v25, %v4913_v34  ;;  %v3933_v44 = vshrl.u32 %v9231_v22, 16  ;;  %v3936_v6 = vshll.u32 %v9231_v22, 16  ;;  %v3171_v40 = vor.u32 %v3170_v31, %v3167_v29  ;;  %v1426_v25 = vld [vmem:[#allocation2 + $0x120] sm:$0xf8]  ;;  %v9419_v53 = vld [vmem:[#allocation2 + $0x150] sm:$0xf0] }
 0x147   :  { %v2164_v49 = vrot.slane %v9386_v39, 4  ;;  %v3941_v15 = vshrl.u32 %v3644_v32, 16  ;;  %v3944_v23 = vshll.u32 %v3644_v32, 16  ;;  %v3179_v58 = vor.u32 %v3178_v54, %v3175_v56  ;;  %v1414_v29 = vld [vmem:[#allocation2 + $0x130] sm:$0xf8] }
 0x148   :  { %5969 = vrot.lane.b32.xlu0 %v4917_v61, %s8964_s17  ;;  %v2165_v2 = vrot.slane %v9391_v52, 4  ;;  %v3935_v48 = vrot.slane %v3933_v44, 4  ;;  %v3938_v18 = vrot.slane %v3936_v6, 5  ;;  %v4960_v12 = vrot.slane %v9408_v59, 4  ;;  %v9430_v56 = vld [vmem:[%s12793_s4] ss:$0 sm:$0xff] }
 0x149   :  { %v3943_v34 = vrot.slane %v3941_v15, 4  ;;  %v3946_v22 = vrot.slane %v3944_v23, 5  ;;  %v4961_v38 = vrot.slane %v9393_v14, 4  ;;  %v4963_v10 = vrot.slane %v4831_v45, 4  ;;  %v9445_v15 = vld [vmem:[#allocation2 + $0x158] sm:$0xf] }
 0x14a   :  { %5967 = vrot.lane.b32.xlu1 %v4914_v36, %s8964_s17  ;;  %v4964_v37 = vrot.slane %v9410_v9, 4  ;;  %v12836_v31 = vmov 0  ;;  %v9434_v32 = vadd.f32 %v9430_v56, %v9115_v41  ;;  %v9438_v54 = vadd.f32 %v9430_v56, %v9121_v46  ;;  %v1415_v23 = vld [vmem:[#allocation2 + $0x138] sm:$0x1f]  ;;  %v9495_v46 = vpop.f32.mrb[16].mxu0 }
 0x14b   :  { %v12837_v31 = vsel %vm9423_vm13, 4294967295, %v12836_v31  ;;  %v9440_v61 = vrot.slane %v1832_v17, 4  ;;  %v9442_v36 = vrot.slane %v1812_v43, 3  ;;  %v3180_v44 = vsel %vm12827_vm6, %v3171_v40, %v3179_v58  ;;  %v1418_v40 = vld [vmem:[#allocation2] sm:$0xf8]  ;;  %12845 = vst [vmem:[#allocation17_spill] sm:$0xff] %v9495_v46 }
 0x14c   :  { %12838 = vst [vmem:[#allocation12_spill] sm:$0xff] %v12837_v31  ;;  %v3947_v6 = vor.u32 %v3946_v22, %v3943_v34  ;;  %v12841_v45 = vmov 0  ;;  %v9453_v41 = vrot.slane %v1815_v19, 4  ;;  %5741 = vrot.lane.b32.xlu0 %v3180_v44, %s8966_s19  ;;  %v3939_v43 = vor.u32 %v3938_v18, %v3935_v48 }
 0x14d   :  { %12839 = vst [vmem:[#allocation13_spill] sm:$0xff] %v9440_v61  ;;  %12840 = vst [vmem:[#allocation14_spill] sm:$0xff] %v9442_v36  ;;  %v12842_v45 = vsel %vm9449_vm14, 4294967295, %v12841_v45  ;;  %v2166_v58 = vsel %vm2154_vm9, %v2164_v49, %v2165_v2  ;;  %v4962_v34 = vsel %vm2154_vm9, %v4960_v12, %v4961_v38  ;;  %v2212_v22 = vrot.slane %v9419_v53, 4  ;;  %v9461_v36 = vld [vmem:[#allocation2 + $0x30] sm:$0xf0] }
 0x14e   :  { %12843 = vst [vmem:[#allocation15_spill] sm:$0xff] %v12842_v45  ;;  %12844 = vst [vmem:[#allocation16_spill] sm:$0xff] %v9453_v41  ;;  %v1427_v19 = vsel %vm9423_vm13, %v1414_v29, %v1426_v25  ;;  %v2834_v41 = vld [vmem:[#allocation2 + $0x40] sm:$0xf8]  ;;  %v1423_v61 = vld [vmem:[#allocation2 + $0x8] sm:$0x1f]  ;;  %5587 = vrot.lane.b32.xlu1 %v2166_v58, %s8963_s12  ;;  %v3948_v17 = vsel %vm2283_vm10, %v3939_v43, %v3947_v6  ;;  %v4965_v48 = vsel %vm2154_vm9, %v4963_v10, %v4964_v37 }
 0x14f   :  { %v2213_v18 = vrot.slane %v9445_v15, 4  ;;  %v9469_v49 = vld [vmem:[#allocation2 + $0x38] sm:$0xf]  ;;  %1428 = vst [vmem:[#allocation2 + $0x120] sm:$0xf8] %v1427_v19  ;;  %v1430_v2 = vsel %vm9449_vm14, %v1415_v23, %v1429_v13  ;;  %v677_v25 = vmax.f32 %v9397_v5, 0.0  ;;  %v456_v44 = vadd.f32 %v9430_v56, %v9151_v8 }
 0x150   :  { %v1412_v12 = vld [vmem:[#allocation2 + $0x10] sm:$0xf8]  ;;  %1431 = vst [vmem:[#allocation2 + $0x128] sm:$0x1f] %v1430_v2  ;;  %v675_v29 = vmax.f32 %v9401_v55, 0.0  ;;  %v448_v10 = vadd.f32 %v9430_v56, %v9172_v21  ;;  %5869 = vrot.lane.b32.xlu0 %v3948_v17, %s8968_s21  ;;  %v3538_v6 = vrot.slane %v9461_v36, 4 }
 0x151   :  { %v9473_v38 = vld [vmem:[#allocation2 + $0x150] sm:$0xf0]  ;;  %v1413_v37 = vld [vmem:[#allocation2 + $0x18] sm:$0x1f]  ;;  %v2944_v23 = vshrl.u32 %v2834_v41, 16  ;;  %v2947_v43 = vshll.u32 %v2834_v41, 16  ;;  %v1419_v8 = vsel %vm9423_vm13, %v1412_v12, %v1418_v40  ;;  %v2214_v21 = vsel %vm2154_vm9, %v2212_v22, %v2213_v18 }
 0x152   :  { %v9483_v13 = vld [vmem:[#allocation2 + $0x158] sm:$0xf]  ;;  %v2952_v58 = vshrl.u32 %v9306_v47, 16  ;;  %v678_v5 = vmax.f32 %v456_v44, 0.0  ;;  %v676_v19 = vmax.f32 %v448_v10, 0.0  ;;  %v2955_v55 = vshll.u32 %v9306_v47, 16  ;;  %5999 = vrot.lane.b32.xlu1 %v4962_v34, %s8964_s17 }
 0x153   :  { %v3539_v17 = vrot.slane %v9469_v49, 4  ;;  %1420 = vst [vmem:[#allocation2] sm:$0xf8] %v1419_v8  ;;  %v1424_v41 = vsel %vm9449_vm14, %v1413_v37, %v1423_v61  ;;  %v8882_v44 = vld [vmem:[#allocation3 + $0xd0] sm:$0xff]   ;;  %v8883_v10 = vld [vmem:[#allocation3 + $0xd8] sm:$0xff]   ;;  %v3587_v47 = vrot.slane %v9483_v13, 4 }
 0x154   :  { %v736_v31 = vpack.c.bf16 %v678_v5, %v677_v25  ;;  %v735_v40 = vpack.c.bf16 %v676_v19, %v675_v29  ;;  %v9498_v12 = vrot.slane %v2944_v23, 3  ;;  %1425 = vst [vmem:[#allocation2 + $0x8] sm:$0x1f] %v1424_v41  ;;  %v9500_v34 = vpop.f32.mrb[17].mxu0  ;;  %6001 = vrot.lane.b32.xlu0 %v4965_v48, %s8964_s17  ;;  %v1104_v22 = vld [vmem:[#allocation2 + $0x60] sm:$0x8]  ;;  %8692 = vmatprep.mubr.msk.bf16.mxu1 %vm281_vm0, %v8882_v44 }
 0x155   :  { %12846 = vst [vmem:[#allocation18_spill] sm:$0xff] %v9500_v34  ;;  %v9503_v18 = vrot.slane %v2947_v43, 4  ;;  %v9505_v8 = vrot.slane %v2952_v58, 3  ;;  %v9507_v61 = vrot.slane %v2955_v55, 4  ;;  %v3631_v37 = vld [vmem:[#allocation2 + $0x48] sm:$0x1f]  ;;  %8693 = vmatmul.mubr.msk.bf16.gmra.mrb[20].mxu1 %vm281_vm0, %v8883_v10  ;;  %v3540_v43 = vsel %vm2154_vm9, %v3538_v6, %v3539_v17 }
 0x156   :  { %v3712_v2 = vshrl.u32 %v9310_v26, 16  ;;  %v9511_v25 = vld [vmem:[#allocation2 + $0x120] sm:$0xf0]  ;;  %v800_v29 = vrot.slane %v736_v31, 4  ;;  %v947_v23 = vshll.u32 %v736_v31, 16  ;;  %v1200_v5 = vshrl.u32 %v736_v31, 16  ;;  %5619 = vrot.lane.b32.xlu1 %v2214_v21, %s8963_s12 }
 0x157   :  { %v1331_v19 = vld [vmem:[#allocation2 + $0x68] sm:$0x10]  ;;  %v799_v41 = vrot.slane %v735_v40, 4  ;;  %v1101_v48 = vld [vmem:[#allocation2 + $0x50] sm:$0x8]  ;;  %v2203_v55 = vrot.slane %v9511_v25, 4 }
 0x158   :  { %v9516_v58 = vld [vmem:[#allocation2 + $0x128] sm:$0xf]  ;;  %v943_v45 = vshll.u32 %v735_v40, 16  ;;  %v1197_v44 = vshrl.u32 %v735_v40, 16  ;;  %v9519_v34 = vpop.f32.mrb[18].mxu0  ;;  %v949_v31 = vrot.slane %v947_v23, 5  ;;  %5777 = vrot.lane.b32.xlu0 %v3540_v43, %s8965_s18  ;;  %v2950_v23 = vor.u32 %v9503_v18, %v9498_v12 }
 0x159   :  { %12847 = vst [vmem:[#allocation19_spill] sm:$0xff] %v9519_v34  ;;  %v2204_v46 = vrot.slane %v9516_v58, 4  ;;  %872 = vst.msk [vmem:[#allocation2 + $0x60] sm:$0xf0] %vm12820_vm1, %v800_v29  ;;  %v1328_v6 = vld [vmem:[#allocation2 + $0x58] sm:$0x10] }
 0x15a   :  { %873 = vst.msk [vmem:[#allocation2 + $0x68] sm:$0xf] %vm12818_vm2, %v800_v29  ;;  %871 = vst.msk [vmem:[#allocation2 + $0x58] sm:$0xf] %vm12818_vm2, %v799_v41  ;;  %v3715_v21 = vshll.u32 %v9310_v26, 16  ;;  %v3720_v17 = vshrl.u32 %v3631_v37, 16  ;;  %v1105_v29 = vsel %vm9069_vm7, %v949_v31, %v1104_v22 }
 0x15b   :  { %870 = vst.msk [vmem:[#allocation2 + $0x50] sm:$0xf0] %vm12820_vm1, %v799_v41  ;;  %v1202_v10 = vrot.slane %v1200_v5, 3  ;;  %v945_v40 = vrot.slane %v943_v45, 5  ;;  %v1199_v34 = vrot.slane %v1197_v44, 3  ;;  %v3723_v20 = vshll.u32 %v3631_v37, 16 }
 0x15c   :  { %v2205_v7 = vsel %vm2154_vm9, %v2203_v55, %v2204_v46  ;;  %v2958_v41 = vor.u32 %v9507_v61, %v9505_v8  ;;  %v9535_v27 = vld [vmem:[#allocation2] sm:$0xf0]  ;;  %1106 = vst [vmem:[#allocation2 + $0x60] sm:$0x8] %v1105_v29  ;;  %v9544_v37 = vld [vmem:[#allocation2 + $0x8] sm:$0xf] }
 0x15d   :  { %v4209_v26 = vld [vmem:[#allocation2 + $0x40] sm:$0xf8]  ;;  %5613 = vrot.lane.b32.xlu1 %v2205_v7, %s8963_s12  ;;  %v1332_v45 = vsel %vm9078_vm8, %v1202_v10, %v1331_v19  ;;  %v1102_v46 = vsel %vm9069_vm7, %v945_v40, %v1101_v48  ;;  %v1329_v22 = vsel %vm9078_vm8, %v1199_v34, %v1328_v6  ;;  %v2155_v12 = vrot.slane %v9535_v27, 4  ;;  %v9547_v18 = vpop.f32.mrb[19].mxu0 }
 0x15e   :  { %v12848_v8 = vshrl.u32 %v9326_v42, 16  ;;  %v12849_v7 = vrot.slane %v9473_v38, 4  ;;  %1333 = vst [vmem:[#allocation2 + $0x68] sm:$0x10] %v1332_v45  ;;  %1103 = vst [vmem:[#allocation2 + $0x50] sm:$0x8] %v1102_v46  ;;  %v2959_v40 = vsel %vm12827_vm6, %v2950_v23, %v2958_v41 }
 0x15f   :  { %1330 = vst [vmem:[#allocation2 + $0x58] sm:$0x10] %v1329_v22  ;;  %v2156_v19 = vrot.slane %v9544_v37, 4  ;;  %v3714_v34 = vrot.slane %v3712_v2, 4  ;;  %v3717_v48 = vrot.slane %v3715_v21, 5  ;;  %v3722_v43 = vrot.slane %v3720_v17, 4 }
 0x160   :  { %v9551_v61 = vrot.slane %v12848_v8, 3  ;;  %v3588_v5 = vsel %vm2154_vm9, %v12849_v7, %v3587_v47  ;;  %v3725_v55 = vrot.slane %v3723_v20, 5  ;;  %v4304_v44 = vshrl.u32 %v4209_v26, 16  ;;  %v2866_v31 = vld [vmem:[#allocation2 + $0x160] sm:$0xf8] }
 0x161   :  { %5809 = vrot.lane.b32.xlu0 %v3588_v5, %s8965_s18  ;;  %v12850_v6 = vshll.u32 %v9326_v42, 16  ;;  %v2157_v47 = vsel %vm2154_vm9, %v2155_v12, %v2156_v19  ;;  %v4307_v29 = vshll.u32 %v4209_v26, 16  ;;  %5715 = vrot.lane.b32.xlu1 %v2959_v40, %s8966_s19  ;;  %v3718_v45 = vor.u32 %v3717_v48, %v3714_v34  ;;  %v5007_v12 = vld [vmem:[#allocation2 + $0x48] sm:$0x1f] }
 0x162   :  { %v3726_v2 = vor.u32 %v3725_v55, %v3722_v43  ;;  %v4306_v46 = vrot.slane %v4304_v44, 3  ;;  %v4312_v21 = vshrl.u32 %v9357_v0, 16  ;;  %v4315_v20 = vshll.u32 %v9357_v0, 16 }
 0x163   :  { %v9560_v10 = vrot.slane %v12850_v6, 4  ;;  %v4309_v17 = vrot.slane %v4307_v29, 4  ;;  %v3216_v22 = vshrl.u32 %v2866_v31, 16  ;;  %v3219_v8 = vshll.u32 %v2866_v31, 16 }
 0x164   :  { %v3727_v42 = vsel %vm2283_vm10, %v3718_v45, %v3726_v2  ;;  %v4314_v23 = vrot.slane %v4312_v21, 3  ;;  %v3224_v41 = vshrl.u32 %v9355_v1, 16  ;;  %v3227_v26 = vshll.u32 %v9355_v1, 16 }
 0x165   :  { %5581 = vrot.lane.b32.xlu0 %v2157_v47, %s8963_s12  ;;  %v4310_v7 = vor.u32 %v4309_v17, %v4306_v46  ;;  %v4317_v5 = vrot.slane %v4315_v20, 4  ;;  %v3218_v19 = vrot.slane %v3216_v22, 3  ;;  %v3221_v34 = vrot.slane %v3219_v8, 4  ;;  %5843 = vrot.lane.b32.xlu1 %v3727_v42, %s8968_s21  ;;  %v3647_v47 = vld [vmem:[#allocation2 + $0x168] sm:$0x1f] }
 0x166   :  { %v3226_v48 = vrot.slane %v3224_v41, 3  ;;  %v3229_v0 = vrot.slane %v3227_v26, 4  ;;  %v5072_v43 = vshrl.u32 %v9350_v57, 16  ;;  %v5075_v55 = vshll.u32 %v9350_v57, 16  ;;  %v2255_v22 = vld [vmem:[#allocation2 + $0x48] sm:$0x1f] }
 0x167   :  { %v4318_v44 = vor.u32 %v4317_v5, %v4314_v23  ;;  %v3222_v31 = vor.u32 %v3221_v34, %v3218_v19  ;;  %v5080_v6 = vshrl.u32 %v5007_v12, 16  ;;  %v5083_v40 = vshll.u32 %v5007_v12, 16 }
 0x168   :  { %v3230_v29 = vor.u32 %v3229_v0, %v3226_v48  ;;  %v5074_v1 = vrot.slane %v5072_v43, 4  ;;  %v5077_v45 = vrot.slane %v5075_v55, 5  ;;  %v3984_v2 = vshrl.u32 %v9348_v30, 16 }
 0x169   :  { %v4319_v46 = vsel %vm12827_vm6, %v4310_v7, %v4318_v44  ;;  %v5082_v21 = vrot.slane %v5080_v6, 4  ;;  %v5085_v17 = vrot.slane %v5083_v40, 5  ;;  %v3987_v20 = vshll.u32 %v9348_v30, 16  ;;  %v4207_v7 = vld [vmem:[#allocation2 + $0x30] sm:$0xf8] }
 0x16a   :  { %5905 = vrot.lane.b32.xlu0 %v4319_v46, %s8967_s20  ;;  %v3231_v57 = vsel %vm12827_vm6, %v3222_v31, %v3230_v29  ;;  %v5078_v8 = vor.u32 %v5077_v45, %v5074_v1  ;;  %v3986_v42 = vrot.slane %v3984_v2, 4  ;;  %v3992_v23 = vshrl.u32 %v3647_v47, 16  ;;  %v4241_v31 = vld [vmem:[#allocation2 + $0x160] sm:$0xf8] }
 0x16b   :  { %5747 = vrot.lane.b32.xlu1 %v3231_v57, %s8966_s19  ;;  %v5086_v41 = vor.u32 %v5085_v17, %v5082_v21  ;;  %v3989_v26 = vrot.slane %v3987_v20, 5  ;;  %v3995_v12 = vshll.u32 %v3647_v47, 16  ;;  %v2353_v5 = vshrl.u32 %v9318_v11, 16 }
 0x16c   :  { %v3994_v19 = vrot.slane %v3992_v23, 4  ;;  %v2356_v34 = vshll.u32 %v9318_v11, 16  ;;  %v2361_v30 = vshrl.u32 %v2255_v22, 16  ;;  %v2364_v48 = vshll.u32 %v2255_v22, 16  ;;  %v2254_v23 = vld [vmem:[#allocation2 + $0x38] sm:$0x1f] }
 0x16d   :  { %v5087_v0 = vsel %vm2283_vm10, %v5078_v8, %v5086_v41  ;;  %v3990_v43 = vor.u32 %v3989_v26, %v3986_v42  ;;  %v3997_v55 = vrot.slane %v3995_v12, 5  ;;  %v2355_v44 = vrot.slane %v2353_v5, 4 }
 0x16e   :  { %6033 = vrot.lane.b32.xlu0 %v5087_v0, %s8969_s22  ;;  %v2358_v6 = vrot.slane %v2356_v34, 5  ;;  %v2363_v40 = vrot.slane %v2361_v30, 4  ;;  %v2366_v29 = vrot.slane %v2364_v48, 5  ;;  %v4287_v47 = vshrl.u32 %v4207_v7, 16 }
 0x16f   :  { %v3998_v1 = vor.u32 %v3997_v55, %v3994_v19  ;;  %v4290_v45 = vshll.u32 %v4207_v7, 16  ;;  %v4295_v2 = vshrl.u32 %v9359_v16, 16  ;;  %v4298_v11 = vshll.u32 %v9359_v16, 16  ;;  %v5006_v55 = vld [vmem:[#allocation2 + $0x38] sm:$0x1f] }
 0x170   :  { %v2359_v46 = vor.u32 %v2358_v6, %v2355_v44  ;;  %v2367_v21 = vor.u32 %v2366_v29, %v2363_v40  ;;  %v4289_v17 = vrot.slane %v4287_v47, 3  ;;  %v4576_v20 = vshrl.u32 %v4241_v31, 16  ;;  %v2832_v29 = vld [vmem:[#allocation2 + $0x30] sm:$0xf8] }
 0x171   :  { %v3999_v22 = vsel %vm2283_vm10, %v3990_v43, %v3998_v1  ;;  %v4292_v57 = vrot.slane %v4290_v45, 4  ;;  %v4297_v8 = vrot.slane %v4295_v2, 3  ;;  %v4300_v42 = vrot.slane %v4298_v11, 4  ;;  %v9597_v2 = vld [vmem:[#allocation2 + $0x68] sm:$0xf] }
 0x172   :  { %5875 = vrot.lane.b32.xlu1 %v3999_v22, %s8968_s21  ;;  %v2368_v41 = vsel %vm2283_vm10, %v2359_v46, %v2367_v21  ;;  %v4578_v26 = vrot.slane %v4576_v20, 3  ;;  %v4579_v12 = vshll.u32 %v4241_v31, 16  ;;  %v4584_v5 = vshrl.u32 %v9410_v9, 16 }
 0x173   :  { %5653 = vrot.lane.b32.xlu0 %v2368_v41, %s8970_s23  ;;  %v4293_v16 = vor.u32 %v4292_v57, %v4289_v17  ;;  %v4301_v7 = vor.u32 %v4300_v42, %v4297_v8  ;;  %v4587_v19 = vshll.u32 %v9410_v9, 16  ;;  %v2336_v34 = vshrl.u32 %v9386_v39, 16  ;;  %v9600_v17 = vld [vmem:[#allocation2 + $0x60] sm:$0xf0] }
 0x174   :  { %v4581_v30 = vrot.slane %v4579_v12, 4  ;;  %v4586_v48 = vrot.slane %v4584_v5, 3  ;;  %v2339_v0 = vshll.u32 %v9386_v39, 16  ;;  %v2344_v43 = vshrl.u32 %v2254_v23, 16 }
 0x175   :  { %v4302_v44 = vsel %vm12827_vm6, %v4293_v16, %v4301_v7  ;;  %v4589_v6 = vrot.slane %v4587_v19, 4  ;;  %v2338_v31 = vrot.slane %v2336_v34, 4  ;;  %v2347_v40 = vshll.u32 %v2254_v23, 16 }
 0x176   :  { %5903 = vrot.lane.b32.xlu1 %v4302_v44, %s8967_s20  ;;  %v4582_v47 = vor.u32 %v4581_v30, %v4578_v26  ;;  %v2341_v1 = vrot.slane %v2339_v0, 5  ;;  %v2346_v45 = vrot.slane %v2344_v43, 4  ;;  %v5055_v9 = vshrl.u32 %v9363_v63, 16 }
 0x177   :  { %v4590_v11 = vor.u32 %v4589_v6, %v4586_v48  ;;  %v2349_v46 = vrot.slane %v2347_v40, 5  ;;  %v5058_v39 = vshll.u32 %v9363_v63, 16  ;;  %v5063_v21 = vshrl.u32 %v5006_v55, 16  ;;  %v9609_v48 = vpop.permute.xlu0 %5965  ;;  %v9614_v6 = vld [vmem:[#allocation2 + $0x60] sm:$0xf0] }
 0x178   :  { %v1574_v20 = vshrl.u32 %v9391_v52, 16  ;;  %v2342_v22 = vor.u32 %v2341_v1, %v2338_v31  ;;  %v5057_v57 = vrot.slane %v5055_v9, 4  ;;  %v5066_v8 = vshll.u32 %v5006_v55, 16  ;;  %12851 = vst [vmem:[#allocation20_spill] sm:$0xff] %v9609_v48  ;;  %v9616_v31 = vpop.permute.xlu1 %5775 }
 0x179   :  { %v4591_v42 = vsel %vm12827_vm6, %v4582_v47, %v4590_v11  ;;  %v2350_v23 = vor.u32 %v2349_v46, %v2346_v45  ;;  %v5060_v41 = vrot.slane %v5058_v39, 5  ;;  %v5065_v26 = vrot.slane %v5063_v21, 4  ;;  %12852 = vst [vmem:[#allocation21_spill] sm:$0xff] %v9616_v31  ;;  %v9621_v45 = vld [vmem:[#allocation2 + $0x68] sm:$0xf] }
 0x17a   :  { %5937 = vrot.lane.b32.xlu0 %v4591_v42, %s8967_s20  ;;  %v5068_v12 = vrot.slane %v5066_v8, 5  ;;  %v3547_v5 = vrot.slane %v9600_v17, 4  ;;  %v3548_v63 = vrot.slane %v9597_v2, 4  ;;  %v2927_v16 = vshrl.u32 %v2832_v29, 16 }
 0x17b   :  { %v2351_v7 = vsel %vm2283_vm10, %v2342_v22, %v2350_v23  ;;  %v5061_v19 = vor.u32 %v5060_v41, %v5057_v57  ;;  %v2930_v34 = vshll.u32 %v2832_v29, 16  ;;  %v2935_v30 = vshrl.u32 %v9469_v49, 16  ;;  %v3630_v57 = vld [vmem:[#allocation2 + $0x38] sm:$0x1f] }
 0x17c   :  { %5651 = vrot.lane.b32.xlu1 %v2351_v7, %s8970_s23  ;;  %v5069_v0 = vor.u32 %v5068_v12, %v5065_v26  ;;  %v709_v43 = vmax.f32 %v9434_v32, 0.0  ;;  %v2929_v55 = vrot.slane %v2927_v16, 3  ;;  %v2938_v44 = vshll.u32 %v9469_v49, 16  ;;  %v1152_v16 = vld [vmem:[#allocation2 + $0x180] sm:$0x8] }
 0x17d   :  { %v3549_v40 = vsel %vm2154_vm9, %v3547_v5, %v3548_v63  ;;  %v2932_v47 = vrot.slane %v2930_v34, 4  ;;  %v2937_v29 = vrot.slane %v2935_v30, 3  ;;  %v584_v1 = vadd.f32 %v9430_v56, %v9181_v28  ;;  %v9630_v28 = vpop.permute.xlu0 %5997 }
 0x17e   :  { %v5070_v9 = vsel %vm2283_vm10, %v5061_v19, %v5069_v0  ;;  %v2940_v11 = vrot.slane %v2938_v44, 4  ;;  %v707_v32 = vmax.f32 %v9438_v54, 0.0  ;;  %v576_v49 = vadd.f32 %v9430_v56, %v9199_v33  ;;  %12853 = vst [vmem:[#allocation22_spill] sm:$0xff] %v9630_v28  ;;  %v9636_v33 = vpop.permute.xlu1 %5585  ;;  %v1149_v44 = vld [vmem:[#allocation2 + $0x170] sm:$0x8] }
 0x17f   :  { %6031 = vrot.lane.b32.xlu0 %v5070_v9, %s8969_s22  ;;  %v2933_v39 = vor.u32 %v2932_v47, %v2929_v55  ;;  %v710_v21 = vmax.f32 %v584_v1, 0.0  ;;  %v2173_v22 = vrot.slane %v9614_v6, 4  ;;  %v9632_v8 = vrot.slane %v1574_v20, 3  ;;  %v1379_v20 = vld [vmem:[#allocation2 + $0x188] sm:$0x10] }
 0x180   :  { %5783 = vrot.lane.b32.xlu1 %v3549_v40, %s8965_s18  ;;  %v2941_v42 = vor.u32 %v2940_v11, %v2937_v29  ;;  %v708_v54 = vmax.f32 %v576_v49, 0.0  ;;  %v2174_v23 = vrot.slane %v9621_v45, 4  ;;  %v3695_v12 = vshrl.u32 %v9461_v36, 16  ;;  %v1376_v40 = vld [vmem:[#allocation2 + $0x178] sm:$0x10] }
 0x181   :  { %v752_v26 = vpack.c.bf16 %v710_v21, %v709_v43  ;;  %v3698_v5 = vshll.u32 %v9461_v36, 16  ;;  %v3703_v34 = vshrl.u32 %v3630_v57, 16  ;;  %v4239_v47 = vld [vmem:[#allocation2 + $0x150] sm:$0xf8]  ;;  %v9645_v11 = vld [vmem:[#allocation2 + $0x60] sm:$0xf0]  ;;  %v9649_v49 = vpop.permute.xlu0 %5583 }
 0x182   :  { %v2942_v63 = vsel %vm12827_vm6, %v2933_v39, %v2941_v42  ;;  %v751_v7 = vpack.c.bf16 %v708_v54, %v707_v32  ;;  %v2175_v19 = vsel %vm2154_vm9, %v2173_v22, %v2174_v23  ;;  %v3697_v43 = vrot.slane %v3695_v12, 4  ;;  %v9647_v32 = vpop.permute.xlu1 %5807  ;;  %v9653_v54 = vpop.f32.mrb[20].mxu0  ;;  %v8884_v23 = vld [vmem:[#allocation3 + $0xe0] sm:$0xff]  }
 0x183   :  { %5713 = vrot.lane.b32.xlu0 %v2942_v63, %s8966_s19  ;;  %v816_v30 = vrot.slane %v752_v26, 4  ;;  %v1011_v0 = vshll.u32 %v752_v26, 16  ;;  %v1248_v55 = vshrl.u32 %v752_v26, 16  ;;  %v3700_v9 = vrot.slane %v3698_v5, 5  ;;  %12854 = vst [vmem:[#allocation23_spill] sm:$0xff] %v9647_v32  ;;  %8696 = vmatprep.mubr.msk.bf16.mxu1 %vm281_vm0, %v8884_v23 }
 0x184   :  { %v815_v29 = vrot.slane %v751_v7, 4  ;;  %v1007_v1 = vshll.u32 %v751_v7, 16  ;;  %v1245_v36 = vshrl.u32 %v751_v7, 16  ;;  %5593 = vrot.lane.b32.xlu1 %v2175_v19, %s8963_s12  ;;  %v3705_v22 = vrot.slane %v3703_v34, 4  ;;  %v9657_v7 = vpop.f32.mrb[21].mxu0  ;;  %v8885_v19 = vld [vmem:[#allocation3 + $0xe8] sm:$0xff]  }
 0x185   :  { %904 = vst.msk [vmem:[#allocation2 + $0x180] sm:$0xf0] %vm12820_vm1, %v816_v30  ;;  %v1013_v39 = vrot.slane %v1011_v0, 5  ;;  %v1250_v21 = vrot.slane %v1248_v55, 3  ;;  %v3706_v42 = vshll.u32 %v3630_v57, 16  ;;  %v3701_v5 = vor.u32 %v3700_v9, %v3697_v43  ;;  %12855 = vst [vmem:[#allocation24_spill] sm:$0xff] %v9657_v7  ;;  %8697 = vmatmul.mubr.msk.bf16.gmra.mrb[24].mxu1 %vm281_vm0, %v8885_v19 }
 0x186   :  { %905 = vst.msk [vmem:[#allocation2 + $0x188] sm:$0xf] %vm12818_vm2, %v816_v30  ;;  %903 = vst.msk [vmem:[#allocation2 + $0x178] sm:$0xf] %vm12818_vm2, %v815_v29  ;;  %v1009_v26 = vrot.slane %v1007_v1, 5  ;;  %v1247_v12 = vrot.slane %v1245_v36, 3  ;;  %v9671_v9 = vpop.permute.xlu1 %5617 }
 0x187   :  { %902 = vst.msk [vmem:[#allocation2 + $0x170] sm:$0xf0] %vm12820_vm1, %v815_v29  ;;  %v4559_v63 = vshrl.u32 %v4239_v47, 16  ;;  %v1153_v30 = vsel %vm9069_vm7, %v1013_v39, %v1152_v16  ;;  %v1380_v57 = vsel %vm9078_vm8, %v1250_v21, %v1379_v20  ;;  %v3708_v34 = vrot.slane %v3706_v42, 5  ;;  %v9663_v55 = vld [vmem:[#allocation2 + $0x68] sm:$0xf] }
 0x188   :  { %v4562_v0 = vshll.u32 %v4239_v47, 16  ;;  %1154 = vst [vmem:[#allocation2 + $0x180] sm:$0x8] %v1153_v30  ;;  %1381 = vst [vmem:[#allocation2 + $0x188] sm:$0x10] %v1380_v57  ;;  %v1150_v43 = vsel %vm9069_vm7, %v1009_v26, %v1149_v44  ;;  %v1377_v29 = vsel %vm9078_vm8, %v1247_v12, %v1376_v40  ;;  %v4567_v16 = vshrl.u32 %v9393_v14, 16  ;;  %v9679_v26 = vpop.permute.xlu0 %5773 }
 0x189   :  { %v4561_v1 = vrot.slane %v4559_v63, 3  ;;  %v2270_v36 = vld [vmem:[#allocation2 + $0x158] sm:$0x1f]  ;;  %1151 = vst [vmem:[#allocation2 + $0x170] sm:$0x8] %v1150_v43  ;;  %v3709_v20 = vor.u32 %v3708_v34, %v3705_v22  ;;  %v4570_v39 = vshll.u32 %v9393_v14, 16 }
 0x18a   :  { %1378 = vst [vmem:[#allocation2 + $0x178] sm:$0x10] %v1377_v29  ;;  %v4564_v47 = vrot.slane %v4562_v0, 4  ;;  %v4921_v21 = vrot.slane %v9645_v11, 4  ;;  %v4569_v44 = vrot.slane %v4567_v16, 3  ;;  %v4922_v42 = vrot.slane %v9663_v55, 4  ;;  %v9688_v46 = vpop.permute.xlu1 %5615 }
 0x18b   :  { %v2608_v40 = vshrl.u32 %v9419_v53, 16  ;;  %v2611_v23 = vshll.u32 %v9419_v53, 16  ;;  %12856 = vst [vmem:[#allocation25_spill] sm:$0xff] %v9679_v26  ;;  %v9681_v12 = vpop.f32.mrb[22].mxu0  ;;  %v3710_v63 = vsel %vm2283_vm10, %v3701_v5, %v3709_v20  ;;  %v4572_v22 = vrot.slane %v4570_v39, 4 }
 0x18c   :  { %12857 = vst [vmem:[#allocation26_spill] sm:$0xff] %v9681_v12  ;;  %v4565_v19 = vor.u32 %v4564_v47, %v4561_v1  ;;  %v2616_v30 = vshrl.u32 %v2270_v36, 16  ;;  %v5022_v57 = vld [vmem:[#allocation2 + $0x158] sm:$0x1f]  ;;  %5841 = vrot.lane.b32.xlu0 %v3710_v63, %s8968_s21  ;;  %v4923_v14 = vsel %vm2154_vm9, %v4921_v21, %v4922_v42  ;;  %v2619_v43 = vshll.u32 %v2270_v36, 16 }
 0x18d   :  { %v2610_v34 = vrot.slane %v2608_v40, 4  ;;  %v2613_v0 = vrot.slane %v2611_v23, 5  ;;  %v4573_v29 = vor.u32 %v4572_v22, %v4569_v44  ;;  %v5327_v53 = vshrl.u32 %v9408_v59, 16  ;;  %v2251_v39 = vld [vmem:[#allocation2 + $0x8] sm:$0x1f]  ;;  %v9692_v44 = vpop.f32.mrb[23].mxu0 }
 0x18e   :  { %v2618_v16 = vrot.slane %v2616_v30, 4  ;;  %v5330_v41 = vshll.u32 %v9408_v59, 16  ;;  %v2621_v1 = vrot.slane %v2619_v43, 5  ;;  %v5335_v20 = vshrl.u32 %v5022_v57, 16  ;;  %v2864_v36 = vld [vmem:[#allocation2 + $0x150] sm:$0xf8]  ;;  %v9697_v30 = vpop.permute.xlu0 %5805 }
 0x18f   :  { %v2614_v5 = vor.u32 %v2613_v0, %v2610_v34  ;;  %v5338_v47 = vshll.u32 %v5022_v57, 16  ;;  %v4574_v63 = vsel %vm12827_vm6, %v4565_v19, %v4573_v29  ;;  %v5329_v28 = vrot.slane %v5327_v53, 4  ;;  %12858 = vst [vmem:[#allocation27_spill] sm:$0xff] %v9692_v44  ;;  %12859 = vst [vmem:[#allocation28_spill] sm:$0xff] %v9697_v30  ;;  %v9787_v26 = vld [vmem:[#allocation2 + $0x178] sm:$0xf] }
 0x190   :  { %v5332_v21 = vrot.slane %v5330_v41, 5  ;;  %v2285_v42 = vshrl.u32 %v9535_v27, 16  ;;  %5935 = vrot.lane.b32.xlu1 %v4574_v63, %s8967_s20  ;;  %5973 = vrot.lane.b32.xlu0 %v4923_v14, %s8964_s17  ;;  %v2622_v59 = vor.u32 %v2621_v1, %v2618_v16  ;;  %v5337_v40 = vrot.slane %v5335_v20, 4  ;;  %v9701_v16 = vpop.permute.xlu1 %5711 }
 0x191   :  { %v5340_v23 = vrot.slane %v5338_v47, 5  ;;  %v2288_v22 = vshll.u32 %v9535_v27, 16  ;;  %v2293_v34 = vshrl.u32 %v2251_v39, 16  ;;  %v2296_v41 = vshll.u32 %v2251_v39, 16  ;;  %v9706_v47 = vld [vmem:[#allocation2 + $0x58] sm:$0xf] }
 0x192   :  { %v5333_v57 = vor.u32 %v5332_v21, %v5329_v28  ;;  %v2287_v19 = vrot.slane %v2285_v42, 4  ;;  %v2623_v0 = vsel %vm2283_vm10, %v2614_v5, %v2622_v59  ;;  %v3199_v53 = vshrl.u32 %v2864_v36, 16  ;;  %v9708_v5 = vld [vmem:[#allocation2 + $0x50] sm:$0xf0] }
 0x193   :  { %v5341_v43 = vor.u32 %v5340_v23, %v5337_v40  ;;  %v2290_v29 = vrot.slane %v2288_v22, 5  ;;  %v2295_v48 = vrot.slane %v2293_v34, 4  ;;  %v2298_v63 = vrot.slane %v2296_v41, 5  ;;  %v9721_v34 = vpop.permute.xlu0 %5901 }
 0x194   :  { %v3202_v32 = vshll.u32 %v2864_v36, 16  ;;  %v3207_v14 = vshrl.u32 %v9483_v13, 16  ;;  %5683 = vrot.lane.b32.xlu1 %v2623_v0, %s8970_s23  ;;  %v3201_v1 = vrot.slane %v3199_v53, 3  ;;  %v3210_v20 = vshll.u32 %v9483_v13, 16  ;;  %12862 = vst [vmem:[#allocation29_spill] sm:$0xff] %v9721_v34 }
 0x195   :  { %v5342_v27 = vsel %vm2283_vm10, %v5333_v57, %v5341_v43  ;;  %v2291_v28 = vor.u32 %v2290_v29, %v2287_v19  ;;  %v1849_v39 = vshll.u32 %v9445_v15, 16  ;;  %v2299_v21 = vor.u32 %v2298_v63, %v2295_v48  ;;  %v3646_v19 = vld [vmem:[#allocation2 + $0x158] sm:$0x1f] }
 0x196   :  { %6063 = vrot.lane.b32.xlu0 %v5342_v27, %s8969_s22  ;;  %v3204_v42 = vrot.slane %v3202_v32, 4  ;;  %v3209_v36 = vrot.slane %v3207_v14, 3  ;;  %v12860_v59 = vshll.u32 %v9391_v52, 16  ;;  %v12861_v23 = vshrl.u32 %v9445_v15, 16 }
 0x197   :  { %v1795_v13 = vshrl.u32 %v9516_v58, 16  ;;  %v3212_v57 = vrot.slane %v3210_v20, 4  ;;  %v2300_v41 = vsel %vm2283_vm10, %v2291_v28, %v2299_v21  ;;  %v4918_v48 = vrot.slane %v9708_v5, 4  ;;  %v9733_v28 = vpop.permute.xlu1 %5839  ;;  %v1454_v20 = vld [vmem:[#allocation2 + $0x20] sm:$0xf8] }
 0x198   :  { %v9714_v40 = vrot.slane %v12860_v59, 4  ;;  %v9718_v22 = vrot.slane %v12861_v23, 3  ;;  %v3205_v0 = vor.u32 %v3204_v42, %v3201_v1  ;;  %v4919_v32 = vrot.slane %v9706_v47, 4  ;;  %5645 = vrot.lane.b32.xlu1 %v2300_v41, %s8970_s23  ;;  %12863 = vst [vmem:[#allocation30_spill] sm:$0xff] %v9733_v28 }
 0x199   :  { %v1798_v52 = vshll.u32 %v9516_v58, 16  ;;  %v1523_v43 = vshrl.u32 %v9544_v37, 16  ;;  %v3213_v15 = vor.u32 %v3212_v57, %v3209_v36  ;;  %v3967_v29 = vshrl.u32 %v9473_v38, 16 }
 0x19a   :  { %v9730_v53 = vrot.slane %v1849_v39, 4  ;;  %v3970_v63 = vshll.u32 %v9473_v38, 16  ;;  %v3975_v14 = vshrl.u32 %v3646_v19, 16  ;;  %v3978_v27 = vshll.u32 %v3646_v19, 16 }
 0x19b   :  { %v3214_v1 = vsel %vm12827_vm6, %v3205_v0, %v3213_v15  ;;  %v4920_v58 = vsel %vm2154_vm9, %v4918_v48, %v4919_v32  ;;  %v3969_v21 = vrot.slane %v3967_v29, 4  ;;  %v469_v42 = vadd.f32 %v9430_v56, %v9263_v24  ;;  %v9750_v0 = vld [vmem:[#allocation2 + $0x50] sm:$0xf0]  ;;  %v9752_v24 = vpop.permute.xlu0 %6029 }
 0x19c   :  { %5745 = vrot.lane.b32.xlu0 %v3214_v1, %s8966_s19  ;;  %v3972_v36 = vrot.slane %v3970_v63, 5  ;;  %v3977_v39 = vrot.slane %v3975_v14, 4  ;;  %v3980_v59 = vrot.slane %v3978_v27, 5  ;;  %v461_v38 = vadd.f32 %v9430_v56, %v9267_v3  ;;  %5971 = vrot.lane.b32.xlu1 %v4920_v58, %s8964_s17  ;;  %12867 = vst [vmem:[#allocation34_spill] sm:$0xff] %v9752_v24  ;;  %v9754_v63 = vld [vmem:[#allocation2 + $0x58] sm:$0xf] }
 0x19d   :  { %v9742_v23 = vrot.slane %v1795_v13, 3  ;;  %v9744_v57 = vrot.slane %v1798_v52, 4  ;;  %v9746_v19 = vrot.slane %v1523_v43, 3  ;;  %v1526_v41 = vshll.u32 %v9544_v37, 16  ;;  %v9760_v43 = vld [vmem:[#allocation2 + $0x58] sm:$0xf] }
 0x19e   :  { %v1549_v48 = vshrl.u32 %v1454_v20, 16  ;;  %v1552_v32 = vshll.u32 %v1454_v20, 16  ;;  %v3973_v15 = vor.u32 %v3972_v36, %v3969_v21  ;;  %v3981_v29 = vor.u32 %v3980_v59, %v3977_v39  ;;  %v9762_v14 = vld [vmem:[#allocation2 + $0x50] sm:$0xf0] }
 0x19f   :  { %12864 = vst [vmem:[#allocation31_spill] sm:$0xff] %v9742_v23  ;;  %12865 = vst [vmem:[#allocation32_spill] sm:$0xff] %v9744_v57  ;;  %v681_v3 = vmax.f32 %v469_v42, 0.0  ;;  %v679_v13 = vmax.f32 %v461_v38, 0.0  ;;  %v472_v52 = vadd.f32 %v9430_v56, %v9276_v62  ;;  %v464_v37 = vadd.f32 %v9430_v56, %v9292_v51  ;;  %v1452_v58 = vld [vmem:[#allocation2 + $0x10] sm:$0xf8]  ;;  %v9768_v42 = vpop.permute.xlu1 %5743  ;;  %v9777_v34 = vpop.permute.xlu0 %5649 }
 0x1a0   :  { %12866 = vst [vmem:[#allocation33_spill] sm:$0xff] %v9746_v19  ;;  %v1625_v27 = vshrl.u32 %v9621_v45, 16  ;;  %v1628_v1 = vshll.u32 %v9621_v45, 16  ;;  %v3982_v20 = vsel %vm2283_vm10, %v3973_v15, %v3981_v29  ;;  %v2170_v21 = vrot.slane %v9750_v0, 4 }
 0x1a1   :  { %v9770_v36 = vrot.slane %v1526_v41, 4  ;;  %5873 = vrot.lane.b32.xlu0 %v3982_v20, %s8968_s21  ;;  %v682_v62 = vmax.f32 %v472_v52, 0.0  ;;  %v680_v51 = vmax.f32 %v464_v37, 0.0  ;;  %v2171_v56 = vrot.slane %v9754_v63, 4 }
 0x1a2   :  { %v1551_v39 = vrot.slane %v1549_v48, 3  ;;  %v1554_v59 = vrot.slane %v1552_v32, 4  ;;  %v3544_v38 = vrot.slane %v9762_v14, 4  ;;  %v3545_v45 = vrot.slane %v9760_v43, 4  ;;  %v1110_v48 = vld [vmem:[#allocation2 + $0x80] sm:$0x8] }
 0x1a3   :  { %12868 = vst [vmem:[#allocation35_spill] sm:$0xff] %v9770_v36  ;;  %v1532_v15 = vshrl.u32 %v1452_v58, 16  ;;  %v738_v29 = vpack.c.bf16 %v682_v62, %v681_v3  ;;  %v737_v30 = vpack.c.bf16 %v680_v51, %v679_v13  ;;  %v2172_v24 = vsel %vm2154_vm9, %v2170_v21, %v2171_v56  ;;  %v1337_v32 = vld [vmem:[#allocation2 + $0x88] sm:$0x10] }
 0x1a4   :  { %v9779_v41 = vrot.slane %v1625_v27, 3  ;;  %v9781_v20 = vrot.slane %v1628_v1, 4  ;;  %v1563_v52 = vor.u32 %v9322_v35, %v9210_v50  ;;  %5591 = vrot.lane.b32.xlu1 %v2172_v24, %s8963_s12  ;;  %v3546_v37 = vsel %vm2154_vm9, %v3544_v38, %v3545_v45  ;;  %v4832_v27 = vld [vmem:[#allocation2 + $0x170] sm:$0xf0]  ;;  %v9790_v35 = vpop.permute.xlu1 %5871  ;;  %v1334_v38 = vld [vmem:[#allocation2 + $0x78] sm:$0x10]  ;;  %v9807_v28 = vpop.permute.xlu0 %5933 }
 0x1a5   :  { %v1535_v3 = vshll.u32 %v1452_v58, 16  ;;  %v802_v13 = vrot.slane %v738_v29, 4  ;;  %v955_v21 = vshll.u32 %v738_v29, 16  ;;  %v1206_v62 = vshrl.u32 %v738_v29, 16  ;;  %5781 = vrot.lane.b32.xlu0 %v3546_v37, %s8965_s18  ;;  %12871 = vst [vmem:[#allocation38_spill] sm:$0xff] %v9790_v35  ;;  %12872 = vst [vmem:[#allocation39_spill] sm:$0xff] %v9807_v28 }
 0x1a6   :  { %12869 = vst [vmem:[#allocation36_spill] sm:$0xff] %v9779_v41  ;;  %12870 = vst [vmem:[#allocation37_spill] sm:$0xff] %v9781_v20  ;;  %v1555_v1 = vor.u32 %v1554_v59, %v1551_v39  ;;  %v801_v51 = vrot.slane %v737_v30, 4  ;;  %v951_v56 = vshll.u32 %v737_v30, 16  ;;  %v1107_v20 = vld [vmem:[#allocation2 + $0x70] sm:$0x8] }
 0x1a7   :  { %v1203_v50 = vshrl.u32 %v737_v30, 16  ;;  %v9792_v41 = vrot.slane %v1532_v15, 3  ;;  %876 = vst.msk [vmem:[#allocation2 + $0x80] sm:$0xf0] %vm12820_vm1, %v802_v13  ;;  %v957_v24 = vrot.slane %v955_v21, 5  ;;  %v1208_v58 = vrot.slane %v1206_v62, 3 }
 0x1a8   :  { %877 = vst.msk [vmem:[#allocation2 + $0x88] sm:$0xf] %vm12818_vm2, %v802_v13  ;;  %v1608_v45 = vshrl.u32 %v9754_v63, 16  ;;  %875 = vst.msk [vmem:[#allocation2 + $0x78] sm:$0xf] %vm12818_vm2, %v801_v51  ;;  %v953_v39 = vrot.slane %v951_v56, 5 }
 0x1a9   :  { %874 = vst.msk [vmem:[#allocation2 + $0x70] sm:$0xf0] %vm12820_vm1, %v801_v51  ;;  %v1205_v59 = vrot.slane %v1203_v50, 3  ;;  %v4966_v30 = vrot.slane %v4832_v27, 4  ;;  %v4967_v29 = vrot.slane %v9787_v26, 4  ;;  %v9800_v37 = vrot.slane %v1535_v3, 4  ;;  %v9828_v28 = vpop.permute.xlu0 %6061 }
 0x1aa   :  { %v2267_v15 = vld [vmem:[#allocation2 + $0x128] sm:$0x1f]  ;;  %v1111_v13 = vsel %vm9069_vm7, %v957_v24, %v1110_v48  ;;  %v1338_v21 = vsel %vm9078_vm8, %v1208_v58, %v1337_v32  ;;  %v1486_v62 = vld [vmem:[#allocation2 + $0x140] sm:$0xf8]  ;;  %v2557_v35 = vshrl.u32 %v9511_v25, 16  ;;  %v1108_v27 = vsel %vm9069_vm7, %v953_v39, %v1107_v20 }
 0x1ab   :  { %1112 = vst [vmem:[#allocation2 + $0x80] sm:$0x8] %v1111_v13  ;;  %1339 = vst [vmem:[#allocation2 + $0x88] sm:$0x10] %v1338_v21  ;;  %v1335_v3 = vsel %vm9078_vm8, %v1205_v59, %v1334_v38  ;;  %v4968_v51 = vsel %vm2154_vm9, %v4966_v30, %v4967_v29  ;;  %v2560_v48 = vshll.u32 %v9511_v25, 16  ;;  %v9816_v32 = vsel %vm12827_vm6, %v1555_v1, %v1563_v52  ;;  %v9819_v13 = vpop.permute.xlu1 %5647  ;;  %v12873_v20 = vld [vmem:[#allocation9_spill] sm:$0xff] }
 0x1ac   :  { %v2838_v56 = vld [vmem:[#allocation2 + $0x60] sm:$0xf8]  ;;  %1109 = vst [vmem:[#allocation2 + $0x70] sm:$0x8] %v1108_v27  ;;  %1336 = vst [vmem:[#allocation2 + $0x78] sm:$0x10] %v1335_v3  ;;  %6003 = vrot.lane.b32.xlu1 %v4968_v51, %s8964_s17 }
 0x1ad   :  { %v2559_v50 = vrot.slane %v2557_v35, 4  ;;  %v2565_v24 = vshrl.u32 %v2267_v15, 16  ;;  %v2568_v58 = vshll.u32 %v2267_v15, 16  ;;  %v12874_v39 = vld [vmem:[#allocation10_spill] sm:$0xff]  ;;  %v1821_v30 = vshrl.u32 %v1486_v62, 16 }
 0x1ae   :  { %v2562_v25 = vrot.slane %v2560_v48, 5  ;;  %v9824_v29 = vrot.slane %v1608_v45, 3  ;;  %v2978_v21 = vshrl.u32 %v2838_v56, 16  ;;  %v4213_v27 = vld [vmem:[#allocation2 + $0x60] sm:$0xf8]  ;;  %v1824_v3 = vshll.u32 %v1486_v62, 16 }
 0x1af   :  { %v2567_v52 = vrot.slane %v2565_v24, 4  ;;  %v2570_v1 = vrot.slane %v2568_v58, 5  ;;  %v2981_v51 = vshll.u32 %v2838_v56, 16  ;;  %12876 = vst [vmem:[#allocation10_spill] sm:$0xff] %v9828_v28  ;;  %v2986_v59 = vshrl.u32 %v9597_v2, 16  ;;  %v9832_v45 = vpop.permute.xlu1 %5779  ;;  %v9843_v28 = vpop.permute.xlu0 %5681 }
 0x1b0   :  { %12875 = vst [vmem:[#allocation9_spill] sm:$0xff] %v9824_v29  ;;  %v2563_v15 = vor.u32 %v2562_v25, %v2559_v50  ;;  %v2980_v38 = vrot.slane %v2978_v21, 3  ;;  %v2989_v48 = vshll.u32 %v9597_v2, 16  ;;  %12877 = vst [vmem:[#allocation40_spill] sm:$0xff] %v9832_v45  ;;  %v9834_v24 = vrot.slane %v1821_v30, 3 }
 0x1b1   :  { %v2571_v31 = vor.u32 %v2570_v1, %v2567_v52  ;;  %v9836_v58 = vld [vmem:[#allocation2 + $0x130] sm:$0xf8]  ;;  %v2983_v29 = vrot.slane %v2981_v51, 4  ;;  %v4338_v36 = vshrl.u32 %v4213_v27, 16  ;;  %v4341_v35 = vshll.u32 %v4213_v27, 16 }
 0x1b2   :  { %v2988_v56 = vrot.slane %v2986_v59, 3  ;;  %v2991_v50 = vrot.slane %v2989_v48, 4  ;;  %v4346_v25 = vshrl.u32 %v9663_v55, 16  ;;  %v3633_v52 = vld [vmem:[#allocation2 + $0x68] sm:$0x1f]  ;;  %v9840_v1 = vrot.slane %v1824_v3, 4 }
 0x1b3   :  { %v2572_v62 = vsel %vm2283_vm10, %v2563_v15, %v2571_v31  ;;  %v2984_v2 = vor.u32 %v2983_v29, %v2980_v38  ;;  %v4340_v21 = vrot.slane %v4338_v36, 3  ;;  %v4343_v30 = vrot.slane %v4341_v35, 4  ;;  %v9847_v59 = vpop.permute.xlu1 %5589  ;;  %v4211_v51 = vld [vmem:[#allocation2 + $0x50] sm:$0xf8] }
 0x1b4   :  { %5677 = vrot.lane.b32.xlu0 %v2572_v62, %s8970_s23  ;;  %v2992_v45 = vor.u32 %v2991_v50, %v2988_v56  ;;  %v4348_v27 = vrot.slane %v4346_v25, 3  ;;  %v4349_v31 = vshll.u32 %v9663_v55, 16  ;;  %v3746_v48 = vshrl.u32 %v9600_v17, 16  ;;  %v5009_v62 = vld [vmem:[#allocation2 + $0x68] sm:$0x1f]  ;;  %v9853_v56 = vpop.f32.mrb[24].mxu0 }
 0x1b5   :  { %v4344_v15 = vor.u32 %v4343_v30, %v4340_v21  ;;  %v3749_v3 = vshll.u32 %v9600_v17, 16  ;;  %v3754_v19 = vshrl.u32 %v3633_v52, 16  ;;  %v3757_v29 = vshll.u32 %v3633_v52, 16  ;;  %12878 = vst [vmem:[#allocation41_spill] sm:$0xff] %v9853_v56  ;;  %v9857_v30 = vpop.permute.xlu0 %5709  ;;  %v9859_v7 = vpop.f32.mrb[25].mxu0 }
 0x1b6   :  { %v2993_v36 = vsel %vm12827_vm6, %v2984_v2, %v2992_v45  ;;  %v4351_v38 = vrot.slane %v4349_v31, 4  ;;  %v5106_v35 = vshrl.u32 %v9645_v11, 16  ;;  %v3748_v55 = vrot.slane %v3746_v48, 4  ;;  %12879 = vst [vmem:[#allocation42_spill] sm:$0xff] %v9857_v30  ;;  %v8886_v2 = vld [vmem:[#allocation3 + $0xf0] sm:$0xff]  }
 0x1b7   :  { %5719 = vrot.lane.b32.xlu1 %v2993_v36, %s8966_s19  ;;  %v3751_v50 = vrot.slane %v3749_v3, 5  ;;  %v3756_v25 = vrot.slane %v3754_v19, 4  ;;  %v5109_v21 = vshll.u32 %v9645_v11, 16  ;;  %v3759_v44 = vrot.slane %v3757_v29, 5  ;;  %v2257_v56 = vld [vmem:[#allocation2 + $0x68] sm:$0x1f]  ;;  %v9862_v11 = vpop.permute.xlu1 %5679  ;;  %8700 = vmatprep.mubr.msk.bf16.mxu1 %vm281_vm0, %v8886_v2 }
 0x1b8   :  { %v4352_v17 = vor.u32 %v4351_v38, %v4348_v27  ;;  %v5108_v12 = vrot.slane %v5106_v35, 4  ;;  %v5114_v45 = vshrl.u32 %v5009_v62, 16  ;;  %v5117_v57 = vshll.u32 %v5009_v62, 16  ;;  %v8887_v35 = vld [vmem:[#allocation3 + $0xf8] sm:$0xff]  }
 0x1b9   :  { %v3752_v52 = vor.u32 %v3751_v50, %v3748_v55  ;;  %v5111_v31 = vrot.slane %v5109_v21, 5  ;;  %v4321_v23 = vshrl.u32 %v4211_v51, 16  ;;  %v3760_v48 = vor.u32 %v3759_v44, %v3756_v25  ;;  %v9872_v25 = vpop.f32.mrb[26].mxu0  ;;  %8701 = vmatmul.mubr.msk.bf16.gmra.mrb[28].mxu1 %vm281_vm0, %v8887_v35 }
 0x1ba   :  { %v4353_v36 = vsel %vm12827_vm6, %v4344_v15, %v4352_v17  ;;  %v5116_v3 = vrot.slane %v5114_v45, 4  ;;  %v4324_v19 = vshll.u32 %v4211_v51, 16  ;;  %v5119_v38 = vrot.slane %v5117_v57, 5  ;;  %v9870_v15 = vpop.permute.xlu0 %5837  ;;  %12881 = vst [vmem:[#allocation44_spill] sm:$0xff] %v9872_v25 }
 0x1bb   :  { %5909 = vrot.lane.b32.xlu0 %v4353_v36, %s8967_s20  ;;  %v5112_v27 = vor.u32 %v5111_v31, %v5108_v12  ;;  %v4323_v29 = vrot.slane %v4321_v23, 3  ;;  %v4329_v62 = vshrl.u32 %v9706_v47, 16  ;;  %v3761_v55 = vsel %vm2283_vm10, %v3752_v52, %v3760_v48  ;;  %12880 = vst [vmem:[#allocation43_spill] sm:$0xff] %v9870_v15  ;;  %v2256_v52 = vld [vmem:[#allocation2 + $0x58] sm:$0x1f]  ;;  %v9877_v31 = vpop.permute.xlu1 %5811  ;;  %v9879_v36 = vpop.f32.mrb[27].mxu0 }
 0x1bc   :  { %v4326_v50 = vrot.slane %v4324_v19, 4  ;;  %v4332_v44 = vshll.u32 %v9706_v47, 16  ;;  %v2387_v51 = vshrl.u32 %v9614_v6, 16  ;;  %5847 = vrot.lane.b32.xlu1 %v3761_v55, %s8968_s21  ;;  %v5120_v12 = vor.u32 %v5119_v38, %v5116_v3  ;;  %12882 = vst [vmem:[#allocation45_spill] sm:$0xff] %v9877_v31  ;;  %12883 = vst [vmem:[#allocation46_spill] sm:$0xff] %v9879_v36 }
 0x1bd   :  { %v4331_v57 = vrot.slane %v4329_v62, 3  ;;  %v2390_v23 = vshll.u32 %v9614_v6, 16  ;;  %v2395_v21 = vshrl.u32 %v2257_v56, 16  ;;  %v2398_v47 = vshll.u32 %v2257_v56, 16 }
 0x1be   :  { %v4327_v17 = vor.u32 %v4326_v50, %v4323_v29  ;;  %v4334_v45 = vrot.slane %v4332_v44, 4  ;;  %v2389_v2 = vrot.slane %v2387_v51, 4  ;;  %v1807_v48 = vshll.u32 %v9836_v58, 16  ;;  %v9889_v55 = vpop.permute.xlu0 %5969 }
 0x1bf   :  { %v5121_v19 = vsel %vm2283_vm10, %v5112_v27, %v5120_v12  ;;  %v2392_v3 = vrot.slane %v2390_v23, 5  ;;  %v2397_v38 = vrot.slane %v2395_v21, 4  ;;  %v12884_v6 = vshrl.u32 %v9836_v58, 16  ;;  %12885 = vst [vmem:[#allocation47_spill] sm:$0xff] %v9889_v55  ;;  %v5008_v27 = vld [vmem:[#allocation2 + $0x58] sm:$0x1f] }
 0x1c0   :  { %6037 = vrot.lane.b32.xlu0 %v5121_v19, %s8969_s22  ;;  %v4335_v29 = vor.u32 %v4334_v45, %v4331_v57  ;;  %v2400_v35 = vrot.slane %v2398_v47, 5  ;;  %v2370_v56 = vshrl.u32 %v9750_v0, 16  ;;  %v2373_v44 = vshll.u32 %v9750_v0, 16  ;;  %v8888_v58 = vld [vmem:[%s12791_s2] sm:$0xff]   ;;  %v2836_v47 = vld [vmem:[#allocation2 + $0x50] sm:$0xf8]  ;;  %v9899_v19 = vpop.permute.xlu1 %5967 }
 0x1c1   :  { %v9885_v62 = vrot.slane %v12884_v6, 3  ;;  %v2393_v50 = vor.u32 %v2392_v3, %v2389_v2  ;;  %v2378_v51 = vshrl.u32 %v2256_v52, 16  ;;  %v2381_v31 = vshll.u32 %v2256_v52, 16  ;;  %v9897_v45 = vld [vmem:[#allocation2 + $0x80] sm:$0xf0]  ;;  %8704 = vmatprep.subr.bf16.mxu1 %v8888_v58 }
 0x1c2   :  { %v4336_v12 = vsel %vm12827_vm6, %v4327_v17, %v4335_v29  ;;  %v2401_v23 = vor.u32 %v2400_v35, %v2397_v38  ;;  %v2372_v21 = vrot.slane %v2370_v56, 4  ;;  %v5089_v57 = vshrl.u32 %v9708_v5, 16  ;;  %v9903_v6 = vld [vmem:[#allocation2 + $0x88] sm:$0xf]  ;;  %v9906_v56 = vpop.permute.xlu0 %5741  ;;  %8705 = vmatpush3.bf16.msra.mxu1 %v8888_v58 }
 0x1c3   :  { %5907 = vrot.lane.b32.xlu1 %v4336_v12, %s8967_s20  ;;  %v2375_v0 = vrot.slane %v2373_v44, 5  ;;  %v2380_v2 = vrot.slane %v2378_v51, 4  ;;  %v2383_v52 = vrot.slane %v2381_v31, 5  ;;  %v5092_v3 = vshll.u32 %v9708_v5, 16  ;;  %12886 = vst [vmem:[#allocation48_spill] sm:$0xff] %v9906_v56  ;;  %v8889_v5 = vld [vmem:[%s12791_s2 + $0x8] sm:$0xff]  }
 0x1c4   :  { %v2402_v17 = vsel %vm2283_vm10, %v2393_v50, %v2401_v23  ;;  %v5091_v38 = vrot.slane %v5089_v57, 4  ;;  %v5097_v29 = vshrl.u32 %v5008_v27, 16  ;;  %v5100_v35 = vshll.u32 %v5008_v27, 16  ;;  %v9914_v27 = vpop.permute.xlu1 %5587  ;;  %8706 = vmatprep.subr.bf16.mxu1 %v8889_v5  ;;  %v3632_v56 = vld [vmem:[#allocation2 + $0x58] sm:$0x1f] }
 0x1c5   :  { %5657 = vrot.lane.b32.xlu0 %v2402_v17, %s8970_s23  ;;  %v2376_v55 = vor.u32 %v2375_v0, %v2372_v21  ;;  %v2384_v12 = vor.u32 %v2383_v52, %v2380_v2  ;;  %v5094_v44 = vrot.slane %v5092_v3, 5  ;;  %v3553_v31 = vrot.slane %v9897_v45, 4 }
 0x1c6   :  { %v5099_v51 = vrot.slane %v5097_v29, 4  ;;  %v5102_v15 = vrot.slane %v5100_v35, 5  ;;  %v3554_v50 = vrot.slane %v9903_v6, 4  ;;  %v2961_v23 = vshrl.u32 %v2836_v47, 16  ;;  %v9925_v29 = vld [vmem:[#allocation2 + $0x88] sm:$0xf]  ;;  %8707 = vmatpush3.bf16.msra.mxu1 %v8889_v5 }
 0x1c7   :  { %v2385_v58 = vsel %vm2283_vm10, %v2376_v55, %v2384_v12  ;;  %v5095_v57 = vor.u32 %v5094_v44, %v5091_v38  ;;  %v2964_v17 = vshll.u32 %v2836_v47, 16  ;;  %v2969_v21 = vshrl.u32 %v9760_v43, 16  ;;  %v9927_v35 = vld [vmem:[#allocation2 + $0x80] sm:$0xf0]  ;;  %v9929_v55 = vpop.permute.xlu0 %5869 }
 0x1c8   :  { %v9921_v0 = vsel %vm12811_vm15, %v9816_v32, %v9636_v33  ;;  %5655 = vrot.lane.b32.xlu1 %v2385_v58, %s8970_s23  ;;  %v5103_v2 = vor.u32 %v5102_v15, %v5099_v51  ;;  %v2963_v52 = vrot.slane %v2961_v23, 3  ;;  %v2972_v3 = vshll.u32 %v9760_v43, 16  ;;  %12887 = vst [vmem:[#allocation49_spill] sm:$0xff] %v9929_v55  ;;  %v12890_v15 = vld [vmem:[#allocation11_spill] sm:$0xff]  ;;  %v12891_v51 = vld [vmem:[#allocation13_spill] sm:$0xff]  ;;  %v9941_v30 = vpop.permute.xlu1 %5999 }
 0x1c9   :  { %v9931_v47 = vrot.slane %v1807_v48, 4  ;;  %v3555_v38 = vsel %vm2154_vm9, %v3553_v31, %v3554_v50  ;;  %v2966_v12 = vrot.slane %v2964_v17, 4  ;;  %v2971_v33 = vrot.slane %v2969_v21, 3  ;;  %12892 = vst [vmem:[#allocation11_spill] sm:$0xff] %v9941_v30  ;;  %v10002_v55 = vld [vmem:[#allocation2 + $0x78] sm:$0xf] }
 0x1ca   :  { %v12888_v32 = vshll.u32 %v9754_v63, 16  ;;  %v1835_v43 = vor.u32 %v12891_v51, %v12890_v15  ;;  %v5104_v23 = vsel %vm2283_vm10, %v5095_v57, %v5103_v2  ;;  %v2974_v58 = vrot.slane %v2972_v3, 4  ;;  %v12897_v3 = vld [vmem:[#allocation16_spill] sm:$0xff]  ;;  %v9964_v51 = vld [vmem:[#allocation2 + $0x80] sm:$0xf0] }
 0x1cb   :  { %v12893_v48 = vor.u32 %v12874_v39, %v12873_v20  ;;  %v12894_v31 = vor.u32 %v9800_v37, %v9792_v41  ;;  %6035 = vrot.lane.b32.xlu0 %v5104_v23, %s8969_s22  ;;  %v2967_v63 = vor.u32 %v2966_v12, %v2963_v52  ;;  %v2179_v50 = vrot.slane %v9927_v35, 4  ;;  %v4243_v41 = vld [vmem:[#allocation2 + $0x170] sm:$0xf8]  ;;  %v9958_v37 = vpop.permute.xlu0 %6001  ;;  %v12896_v52 = vld [vmem:[#allocation14_spill] sm:$0xff] }
 0x1cc   :  { %v9936_v44 = vrot.slane %v12888_v32, 4  ;;  %v2180_v17 = vrot.slane %v9925_v29, 4  ;;  %v1827_v57 = vor.u32 %v9840_v1, %v9834_v24  ;;  %5787 = vrot.lane.b32.xlu1 %v3555_v38, %s8965_s18  ;;  %v2975_v21 = vor.u32 %v2974_v58, %v2971_v33  ;;  %12895 = vst [vmem:[#allocation13_spill] sm:$0xff] %v9958_v37  ;;  %v9970_v23 = vpop.permute.xlu1 %5619 }
 0x1cd   :  { %v1547_v5 = vsel %vm12827_vm6, %v12894_v31, %v12893_v48  ;;  %v3729_v20 = vshrl.u32 %v9762_v14, 16  ;;  %v3732_v39 = vshll.u32 %v9762_v14, 16  ;;  %v1810_v2 = vor.u32 %v9931_v47, %v9885_v62  ;;  %v9968_v14 = vld [vmem:[#allocation2 + $0x88] sm:$0xf] }
 0x1ce   :  { %12889 = vst [vmem:[#allocation50_spill] sm:$0xff] %v9936_v44  ;;  %v1818_v12 = vor.u32 %v12897_v3, %v12896_v52  ;;  %v3737_v32 = vshrl.u32 %v3632_v56, 16  ;;  %v3740_v15 = vshll.u32 %v3632_v56, 16  ;;  %v2976_v24 = vsel %vm12827_vm6, %v2967_v63, %v2975_v21  ;;  %v4217_v44 = vld [vmem:[#allocation2 + $0x80] sm:$0xf8] }
 0x1cf   :  { %v2181_v1 = vsel %vm2154_vm9, %v2179_v50, %v2180_v17  ;;  %v3731_v38 = vrot.slane %v3729_v20, 4  ;;  %v3734_v33 = vrot.slane %v3732_v39, 5  ;;  %5717 = vrot.lane.b32.xlu0 %v2976_v24, %s8966_s19  ;;  %v4593_v58 = vshrl.u32 %v4243_v41, 16  ;;  %v9977_v17 = vpop.permute.xlu0 %5777 }
 0x1d0   :  { %v3739_v62 = vrot.slane %v3737_v32, 4  ;;  %v3742_v47 = vrot.slane %v3740_v15, 5  ;;  %v4596_v48 = vshll.u32 %v4243_v41, 16  ;;  %5597 = vrot.lane.b32.xlu1 %v2181_v1, %s8963_s12  ;;  %v4601_v31 = vshrl.u32 %v9787_v26, 16  ;;  %12898 = vst [vmem:[#allocation14_spill] sm:$0xff] %v9977_v17  ;;  %v12899_v15 = vld [vmem:[#allocation17_spill] sm:$0xff] }
 0x1d1   :  { %v3735_v56 = vor.u32 %v3734_v33, %v3731_v38  ;;  %v4604_v63 = vshll.u32 %v9787_v26, 16  ;;  %v4927_v50 = vrot.slane %v9964_v51, 4  ;;  %v4595_v20 = vrot.slane %v4593_v58, 3  ;;  %v9983_v41 = vld [vmem:[%s12793_s4] ss:$0 sm:$0xff]  ;;  %v12900_v26 = vld [vmem:[#allocation18_spill] sm:$0xff]  ;;  %v9989_v38 = vpop.permute.xlu1 %5613 }
 0x1d2   :  { %v3743_v21 = vor.u32 %v3742_v47, %v3739_v62  ;;  %v4598_v39 = vrot.slane %v4596_v48, 4  ;;  %v4928_v52 = vrot.slane %v9968_v14, 4  ;;  %v4603_v3 = vrot.slane %v4601_v31, 3  ;;  %v1458_v48 = vld [vmem:[#allocation2 + $0x40] sm:$0xf8] }
 0x1d3   :  { %v4606_v32 = vrot.slane %v4604_v63, 4  ;;  %v485_v24 = vadd.f32 %v9983_v41, %v12899_v15  ;;  %v477_v1 = vadd.f32 %v9983_v41, %v12900_v26  ;;  %v6099_v33 = vsel %vm12811_vm15, %v1547_v5, %v9649_v49  ;;  %v9995_v31 = vld [vmem:[#allocation2 + $0x78] sm:$0xf]  ;;  %v9997_v63 = vld [vmem:[#allocation2 + $0x70] sm:$0xf0] }
 0x1d4   :  { %v1836_v62 = vsel %vm12827_vm6, %v1827_v57, %v1835_v43  ;;  %v3744_v47 = vsel %vm2283_vm10, %v3735_v56, %v3743_v21  ;;  %v4599_v58 = vor.u32 %v4598_v39, %v4595_v20  ;;  %v1819_v15 = vsel %vm12827_vm6, %v1810_v2, %v1818_v12  ;;  %v10004_v49 = vld [vmem:[#allocation2 + $0x70] sm:$0xf0]  ;;  %v10006_v43 = vpop.permute.xlu0 %5809  ;;  %v2842_v17 = vld [vmem:[#allocation2 + $0x80] sm:$0xf8] }
 0x1d5   :  { %5845 = vrot.lane.b32.xlu0 %v3744_v47, %s8968_s21  ;;  %v4607_v26 = vor.u32 %v4606_v32, %v4603_v3  ;;  %v4929_v37 = vsel %vm2154_vm9, %v4927_v50, %v4928_v52  ;;  %12901 = vst [vmem:[#allocation16_spill] sm:$0xff] %v10006_v43  ;;  %v685_v5 = vmax.f32 %v485_v24, 0.0  ;;  %v683_v57 = vmax.f32 %v477_v1, 0.0  ;;  %v12902_v56 = vld [vmem:[#allocation19_spill] sm:$0xff]  ;;  %v10018_v1 = vpop.permute.xlu1 %5715 }
 0x1d6   :  { %v488_v21 = vadd.f32 %v9983_v41, %v12902_v56  ;;  %v480_v2 = vadd.f32 %v9983_v41, %v9547_v18  ;;  %v1583_v20 = vshrl.u32 %v1458_v48, 16  ;;  %v4924_v39 = vrot.slane %v9997_v63, 4  ;;  %v10034_v56 = vld [vmem:[#allocation2 + $0x70] sm:$0xf0] }
 0x1d7   :  { %v4608_v12 = vsel %vm12827_vm6, %v4599_v58, %v4607_v26  ;;  %v4925_v50 = vrot.slane %v9995_v31, 4  ;;  %v3550_v32 = vrot.slane %v10004_v49, 4  ;;  %v3551_v24 = vrot.slane %v10002_v55, 4 }
 0x1d8   :  { %5939 = vrot.lane.b32.xlu1 %v4608_v12, %s8967_s20  ;;  %v686_v52 = vmax.f32 %v488_v21, 0.0  ;;  %v684_v3 = vmax.f32 %v480_v2, 0.0  ;;  %v10022_v18 = vsel %vm12811_vm15, %v1836_v62, %v9671_v9  ;;  %v10026_v47 = vsel %vm12811_vm15, %v1819_v15, %v9688_v46  ;;  %v10041_v46 = vpop.permute.xlu0 %5581  ;;  %v1343_v9 = vld [vmem:[#allocation2 + $0xa8] sm:$0x10] }
 0x1d9   :  { %v10031_v58 = vsel %vm12828_vm3, %v9921_v0, %v9777_v34  ;;  %5977 = vrot.lane.b32.xlu0 %v4929_v37, %s8964_s17  ;;  %v1586_v26 = vshll.u32 %v1458_v48, 16  ;;  %v10038_v21 = vsel %vm12828_vm3, %v6099_v33, %v9819_v13  ;;  %v10044_v12 = vrot.slane %v1583_v20, 3  ;;  %v1116_v34 = vld [vmem:[#allocation2 + $0xa0] sm:$0x8]  ;;  %v10048_v48 = vld [vmem:[#allocation2 + $0x78] sm:$0xf] }
 0x1da   :  { %v740_v62 = vpack.c.bf16 %v686_v52, %v685_v5  ;;  %v739_v2 = vpack.c.bf16 %v684_v3, %v683_v57  ;;  %v4926_v0 = vsel %vm2154_vm9, %v4924_v39, %v4925_v50  ;;  %v3552_v37 = vsel %vm2154_vm9, %v3550_v32, %v3551_v24  ;;  %v1113_v3 = vld [vmem:[#allocation2 + $0x90] sm:$0x8]  ;;  %v1340_v32 = vld [vmem:[#allocation2 + $0x98] sm:$0x10] }
 0x1db   :  { %v2176_v5 = vrot.slane %v10034_v56, 4  ;;  %v10052_v57 = vrot.slane %v1586_v26, 4  ;;  %v2177_v24 = vrot.slane %v10048_v48, 4  ;;  %v4375_v30 = vshll.u32 %v4217_v44, 16 }
 0x1dc   :  { %v804_v13 = vrot.slane %v740_v62, 4  ;;  %v963_v33 = vshll.u32 %v740_v62, 16  ;;  %v1212_v43 = vshrl.u32 %v740_v62, 16  ;;  %5975 = vrot.lane.b32.xlu1 %v4926_v0, %s8964_s17  ;;  %v803_v20 = vrot.slane %v739_v2, 4  ;;  %v10058_v0 = vpop.permute.xlu1 %5843 }
 0x1dd   :  { %v959_v52 = vshll.u32 %v739_v2, 16  ;;  %v1209_v15 = vshrl.u32 %v739_v2, 16  ;;  %5785 = vrot.lane.b32.xlu0 %v3552_v37, %s8965_s18  ;;  %v4372_v62 = vshrl.u32 %v4217_v44, 16  ;;  %12903 = vst [vmem:[#allocation17_spill] sm:$0xff] %v10058_v0  ;;  %v4380_v37 = vshrl.u32 %v9968_v14, 16  ;;  %v10068_v0 = vpop.permute.xlu0 %5905 }
 0x1de   :  { %880 = vst.msk [vmem:[#allocation2 + $0xa0] sm:$0xf0] %vm12820_vm1, %v804_v13  ;;  %v965_v39 = vrot.slane %v963_v33, 5  ;;  %v1214_v50 = vrot.slane %v1212_v43, 3  ;;  %878 = vst.msk [vmem:[#allocation2 + $0x90] sm:$0xf0] %vm12820_vm1, %v803_v20  ;;  %v2178_v33 = vsel %vm2154_vm9, %v2176_v5, %v2177_v24 }
 0x1df   :  { %881 = vst.msk [vmem:[#allocation2 + $0xa8] sm:$0xf] %vm12818_vm2, %v804_v13  ;;  %879 = vst.msk [vmem:[#allocation2 + $0x98] sm:$0xf] %vm12818_vm2, %v803_v20  ;;  %v961_v26 = vrot.slane %v959_v52, 5  ;;  %v1211_v2 = vrot.slane %v1209_v15, 3 }
 0x1e0   :  { %v1117_v13 = vsel %vm9069_vm7, %v965_v39, %v1116_v34  ;;  %v1344_v43 = vsel %vm9078_vm8, %v1214_v50, %v1343_v9  ;;  %v4374_v36 = vrot.slane %v4372_v62, 3  ;;  %12904 = vst [vmem:[#allocation18_spill] sm:$0xff] %v10068_v0  ;;  %5595 = vrot.lane.b32.xlu1 %v2178_v33, %s8963_s12  ;;  %v4377_v34 = vrot.slane %v4375_v30, 4  ;;  %v5011_v50 = vld [vmem:[#allocation2 + $0x88] sm:$0x1f] }
 0x1e1   :  { %1118 = vst [vmem:[#allocation2 + $0xa0] sm:$0x8] %v1117_v13  ;;  %1345 = vst [vmem:[#allocation2 + $0xa8] sm:$0x10] %v1344_v43  ;;  %v1114_v44 = vsel %vm9069_vm7, %v961_v26, %v1113_v3  ;;  %v1341_v15 = vsel %vm9078_vm8, %v1211_v2, %v1340_v32  ;;  %v4382_v20 = vrot.slane %v4380_v37, 3  ;;  %v4383_v9 = vshll.u32 %v9968_v14, 16  ;;  %v10080_v13 = vpop.permute.xlu1 %5747 }
 0x1e2   :  { %1115 = vst [vmem:[#allocation2 + $0x90] sm:$0x8] %v1114_v44  ;;  %1342 = vst [vmem:[#allocation2 + $0x98] sm:$0x10] %v1341_v15  ;;  %v3012_v5 = vshrl.u32 %v2842_v17, 16  ;;  %v3015_v52 = vshll.u32 %v2842_v17, 16  ;;  %v4378_v24 = vor.u32 %v4377_v34, %v4374_v36  ;;  %v10083_v34 = vpop.permute.xlu0 %6033 }
 0x1e3   :  { %v3020_v39 = vshrl.u32 %v9903_v6, 16  ;;  %v3023_v62 = vshll.u32 %v9903_v6, 16  ;;  %v5140_v3 = vshrl.u32 %v9964_v51, 16  ;;  %v5143_v32 = vshll.u32 %v9964_v51, 16  ;;  %v3635_v44 = vld [vmem:[#allocation2 + $0x88] sm:$0x1f] }
 0x1e4   :  { %v4385_v26 = vrot.slane %v4383_v9, 4  ;;  %v3014_v2 = vrot.slane %v3012_v5, 3  ;;  %v3017_v30 = vrot.slane %v3015_v52, 4  ;;  %v5148_v17 = vshrl.u32 %v5011_v50, 16  ;;  %12905 = vst [vmem:[#allocation19_spill] sm:$0xff] %v10083_v34 }
 0x1e5   :  { %v3022_v37 = vrot.slane %v3020_v39, 3  ;;  %v3025_v43 = vrot.slane %v3023_v62, 4  ;;  %v5142_v14 = vrot.slane %v5140_v3, 4  ;;  %v5145_v33 = vrot.slane %v5143_v32, 5  ;;  %v2259_v52 = vld [vmem:[#allocation2 + $0x88] sm:$0x1f] }
 0x1e6   :  { %v4386_v15 = vor.u32 %v4385_v26, %v4382_v20  ;;  %v3018_v0 = vor.u32 %v3017_v30, %v3014_v2  ;;  %v5151_v36 = vshll.u32 %v5011_v50, 16  ;;  %v3780_v6 = vshrl.u32 %v9897_v45, 16 }
 0x1e7   :  { %v3026_v25 = vor.u32 %v3025_v43, %v3022_v37  ;;  %v5146_v51 = vor.u32 %v5145_v33, %v5142_v14  ;;  %v5150_v9 = vrot.slane %v5148_v17, 4  ;;  %v3783_v5 = vshll.u32 %v9897_v45, 16  ;;  %v10092_v14 = vpop.permute.xlu1 %5875 }
 0x1e8   :  { %v4387_v39 = vsel %vm12827_vm6, %v4378_v24, %v4386_v15  ;;  %v5153_v62 = vrot.slane %v5151_v36, 5  ;;  %v3782_v3 = vrot.slane %v3780_v6, 4  ;;  %v3788_v32 = vshrl.u32 %v3635_v44, 16  ;;  %12906 = vst [vmem:[#allocation51_spill] sm:$0xff] %v10092_v14  ;;  %v4215_v36 = vld [vmem:[#allocation2 + $0x70] sm:$0xf8] }
 0x1e9   :  { %5913 = vrot.lane.b32.xlu0 %v4387_v39, %s8967_s20  ;;  %v3027_v20 = vsel %vm12827_vm6, %v3018_v0, %v3026_v25  ;;  %v3785_v50 = vrot.slane %v3783_v5, 5  ;;  %v3791_v26 = vshll.u32 %v3635_v44, 16  ;;  %v2421_v2 = vshrl.u32 %v9927_v35, 16  ;;  %v10094_v6 = vpop.f32.mrb[28].mxu0 }
 0x1ea   :  { %5723 = vrot.lane.b32.xlu1 %v3027_v20, %s8966_s19  ;;  %v5154_v30 = vor.u32 %v5153_v62, %v5150_v9  ;;  %v3790_v37 = vrot.slane %v3788_v32, 4  ;;  %v2424_v45 = vshll.u32 %v9927_v35, 16  ;;  %v2429_v43 = vshrl.u32 %v2259_v52, 16  ;;  %12907 = vst [vmem:[#allocation52_spill] sm:$0xff] %v10094_v6  ;;  %v10102_v35 = vpop.permute.xlu0 %5653  ;;  %v10104_v5 = vpop.f32.mrb[29].mxu0 }
 0x1eb   :  { %v3786_v24 = vor.u32 %v3785_v50, %v3782_v3  ;;  %v3793_v33 = vrot.slane %v3791_v26, 5  ;;  %v2423_v17 = vrot.slane %v2421_v2, 4  ;;  %v2432_v15 = vshll.u32 %v2259_v52, 16  ;;  %12908 = vst [vmem:[#allocation53_spill] sm:$0xff] %v10104_v5  ;;  %v10117_v26 = vpop.f32.mrb[30].mxu0 }
 0x1ec   :  { %v10099_v25 = vsel %vm6255_vm4, %v10038_v21, %v9701_v16  ;;  %v5155_v0 = vsel %vm2283_vm10, %v5146_v51, %v5154_v30  ;;  %v2426_v44 = vrot.slane %v2424_v45, 5  ;;  %v2431_v9 = vrot.slane %v2429_v43, 4  ;;  %12913 = vst [vmem:[#allocation56_spill] sm:$0xff] %v10117_v26  ;;  %v5010_v43 = vld [vmem:[#allocation2 + $0x78] sm:$0x1f] }
 0x1ed   :  { %v12909_v39 = vshrl.u32 %v9925_v29, 16  ;;  %v12911_v52 = vshll.u32 %v9925_v29, 16  ;;  %6041 = vrot.lane.b32.xlu0 %v5155_v0, %s8969_s22  ;;  %v3794_v16 = vor.u32 %v3793_v33, %v3790_v37  ;;  %v2434_v21 = vrot.slane %v2432_v15, 5  ;;  %v10124_v37 = vld [vmem:[#allocation2 + $0x30] sm:$0xf8]  ;;  %v10128_v0 = vpop.permute.xlu1 %5903 }
 0x1ee   :  { %v2427_v32 = vor.u32 %v2426_v44, %v2423_v17  ;;  %v4355_v20 = vshrl.u32 %v4215_v36, 16  ;;  %v4358_v50 = vshll.u32 %v4215_v36, 16  ;;  %v4363_v45 = vshrl.u32 %v9995_v31, 16  ;;  %v1346_v5 = vld [vmem:[#allocation2 + $0xb8] sm:$0x10] }
 0x1ef   :  { %v10108_v62 = vrot.slane %v12909_v39, 3  ;;  %v10112_v3 = vrot.slane %v12911_v52, 4  ;;  %v3795_v30 = vsel %vm2283_vm10, %v3786_v24, %v3794_v16  ;;  %v2435_v29 = vor.u32 %v2434_v21, %v2431_v9 }
 0x1f0   :  { %5851 = vrot.lane.b32.xlu1 %v3795_v30, %s8968_s21  ;;  %v4357_v33 = vrot.slane %v4355_v20, 3  ;;  %v4360_v15 = vrot.slane %v4358_v50, 4  ;;  %v4366_v17 = vshll.u32 %v9995_v31, 16  ;;  %v5123_v36 = vshrl.u32 %v9997_v63, 16  ;;  %v2258_v20 = vld [vmem:[#allocation2 + $0x78] sm:$0x1f]  ;;  %v10138_v50 = vpop.permute.xlu0 %5937 }
 0x1f1   :  { %12910 = vst [vmem:[#allocation54_spill] sm:$0xff] %v10108_v62  ;;  %12912 = vst [vmem:[#allocation55_spill] sm:$0xff] %v10112_v3  ;;  %v10133_v24 = vsel %vm12828_vm3, %v10026_v47, %v9862_v11  ;;  %v2436_v44 = vsel %vm2283_vm10, %v2427_v32, %v2435_v29  ;;  %v4365_v9 = vrot.slane %v4363_v45, 3  ;;  %v5126_v39 = vshll.u32 %v9997_v63, 16  ;;  %v2840_v47 = vld [vmem:[#allocation2 + $0x70] sm:$0xf8] }
 0x1f2   :  { %5661 = vrot.lane.b32.xlu0 %v2436_v44, %s8970_s23  ;;  %v4361_v52 = vor.u32 %v4360_v15, %v4357_v33  ;;  %v4368_v16 = vrot.slane %v4366_v17, 4  ;;  %v5125_v21 = vrot.slane %v5123_v36, 4  ;;  %v5131_v31 = vshrl.u32 %v5010_v43, 16  ;;  %12914 = vst [vmem:[#allocation57_spill] sm:$0xff] %v10138_v50  ;;  %v10147_v50 = vpop.f32.mrb[31].mxu0 }
 0x1f3   :  { %v1566_v30 = vshrl.u32 %v10124_v37, 16  ;;  %v5128_v2 = vrot.slane %v5126_v39, 5  ;;  %v5134_v51 = vshll.u32 %v5010_v43, 16  ;;  %v2404_v11 = vshrl.u32 %v10034_v56, 16  ;;  %v1488_v39 = vld [vmem:[#allocation2 + $0x150] sm:$0xf8]  ;;  %v10145_v43 = vpop.permute.xlu1 %5651 }
 0x1f4   :  { %v1569_v32 = vshll.u32 %v10124_v37, 16  ;;  %v4369_v29 = vor.u32 %v4368_v16, %v4365_v9  ;;  %v5133_v63 = vrot.slane %v5131_v31, 4  ;;  %v2407_v45 = vshll.u32 %v10034_v56, 16  ;;  %12915 = vst [vmem:[#allocation58_spill] sm:$0xff] %v10147_v50 }
 0x1f5   :  { %v5129_v33 = vor.u32 %v5128_v2, %v5125_v21  ;;  %v5136_v15 = vrot.slane %v5134_v51, 5  ;;  %v2406_v17 = vrot.slane %v2404_v11, 4  ;;  %v2412_v36 = vshrl.u32 %v2258_v20, 16  ;;  %v10151_v51 = vld [vmem:[#allocation2 + $0xa8] sm:$0xf]  ;;  %v10156_v11 = vpop.permute.xlu0 %6031 }
 0x1f6   :  { %v4370_v44 = vsel %vm12827_vm6, %v4361_v52, %v4369_v29  ;;  %v2409_v14 = vrot.slane %v2407_v45, 5  ;;  %v2415_v3 = vshll.u32 %v2258_v20, 16  ;;  %v2995_v62 = vshrl.u32 %v2840_v47, 16  ;;  %v10154_v20 = vld [vmem:[#allocation2 + $0xa0] sm:$0xf0] }
 0x1f7   :  { %5911 = vrot.lane.b32.xlu1 %v4370_v44, %s8967_s20  ;;  %v5137_v37 = vor.u32 %v5136_v15, %v5133_v63  ;;  %v2414_v9 = vrot.slane %v2412_v36, 4  ;;  %v2998_v16 = vshll.u32 %v2840_v47, 16  ;;  %v3003_v56 = vshrl.u32 %v10002_v55, 16 }
 0x1f8   :  { %v2410_v2 = vor.u32 %v2409_v14, %v2406_v17  ;;  %v2417_v21 = vrot.slane %v2415_v3, 5  ;;  %v2997_v52 = vrot.slane %v2995_v62, 3  ;;  %v3006_v31 = vshll.u32 %v10002_v55, 16  ;;  %v3634_v3 = vld [vmem:[#allocation2 + $0x78] sm:$0x1f] }
 0x1f9   :  { %v5138_v29 = vsel %vm2283_vm10, %v5129_v33, %v5137_v37  ;;  %v3000_v45 = vrot.slane %v2998_v16, 4  ;;  %v3005_v44 = vrot.slane %v3003_v56, 3  ;;  %v1838_v63 = vshrl.u32 %v1488_v39, 16  ;;  %v10165_v56 = vpop.permute.xlu1 %5783 }
 0x1fa   :  { %v1642_v47 = vshrl.u32 %v10048_v48, 16  ;;  %6039 = vrot.lane.b32.xlu0 %v5138_v29, %s8969_s22  ;;  %v2418_v15 = vor.u32 %v2417_v21, %v2414_v9  ;;  %v3008_v36 = vrot.slane %v3006_v31, 4  ;;  %v1841_v14 = vshll.u32 %v1488_v39, 16  ;;  %12916 = vst [vmem:[#allocation59_spill] sm:$0xff] %v10165_v56 }
 0x1fb   :  { %v1568_v62 = vrot.slane %v1566_v30, 3  ;;  %v3001_v17 = vor.u32 %v3000_v45, %v2997_v52  ;;  %v3559_v55 = vrot.slane %v10154_v20, 4  ;;  %v3560_v50 = vrot.slane %v10151_v51, 4  ;;  %v10171_v45 = vld [vmem:[#allocation2 + $0x120] sm:$0xf8] }
 0x1fc   :  { %v1571_v26 = vrot.slane %v1569_v32, 4  ;;  %v2419_v33 = vsel %vm2283_vm10, %v2410_v2, %v2418_v15  ;;  %v3009_v37 = vor.u32 %v3008_v36, %v3005_v44  ;;  %v3763_v16 = vshrl.u32 %v10004_v49, 16  ;;  %v10173_v2 = vld [vmem:[#allocation2 + $0xa8] sm:$0xf]  ;;  %v10175_v44 = vpop.permute.xlu0 %5713 }
 0x1fd   :  { %5659 = vrot.lane.b32.xlu1 %v2419_v33, %s8970_s23  ;;  %v1840_v9 = vrot.slane %v1838_v63, 3  ;;  %v3766_v39 = vshll.u32 %v10004_v49, 16  ;;  %v3771_v21 = vshrl.u32 %v3634_v3, 16  ;;  %v3774_v30 = vshll.u32 %v3634_v3, 16  ;;  %v10179_v3 = vld [vmem:[#allocation2 + $0xa0] sm:$0xf0] }
 0x1fe   :  { %v3010_v52 = vsel %vm12827_vm6, %v3001_v17, %v3009_v37  ;;  %v1843_v31 = vrot.slane %v1841_v14, 4  ;;  %v3561_v29 = vsel %vm2154_vm9, %v3559_v55, %v3560_v50  ;;  %v3765_v32 = vrot.slane %v3763_v16, 4 }
 0x1ff   :  { %v1645_v15 = vshll.u32 %v10048_v48, 16  ;;  %5721 = vrot.lane.b32.xlu0 %v3010_v52, %s8966_s19  ;;  %v3768_v63 = vrot.slane %v3766_v39, 5  ;;  %v3773_v49 = vrot.slane %v3771_v21, 4  ;;  %v3776_v36 = vrot.slane %v3774_v30, 5 }
 0x200   :  { %v10184_v50 = vsel %vm12828_vm3, %v10022_v18, %v9843_v28  ;;  %v10189_v14 = vsel %vm6255_vm4, %v10133_v24, %v9768_v42  ;;  %v1572_v17 = vor.u32 %v1571_v26, %v1568_v62  ;;  %v1580_v48 = vor.u32 %v9714_v40, %v9632_v8  ;;  %v10203_v24 = vld [vmem:[#allocation2 + $0xa8] sm:$0xf]  ;;  %v10205_v26 = vld [vmem:[#allocation2 + $0xa0] sm:$0xf0]  ;;  %v10226_v30 = vpop.permute.xlu0 %5841 }
 0x201   :  { %12917 = vst [vmem:[#allocation60_spill] sm:$0xff] %v10184_v50  ;;  %v12918_v55 = vor.u32 %v9560_v10, %v9551_v61  ;;  %v12919_v33 = vor.u32 %v10052_v57, %v10044_v12  ;;  %v1852_v28 = vor.u32 %v9730_v53, %v9718_v22  ;;  %5791 = vrot.lane.b32.xlu1 %v3561_v29, %s8965_s18  ;;  %v1787_v40 = vshrl.u32 %v10171_v45, 16  ;;  %v10210_v12 = vpop.permute.xlu1 %5593 }
 0x202   :  { %v3769_v18 = vor.u32 %v3768_v63, %v3765_v32  ;;  %v3777_v42 = vor.u32 %v3776_v36, %v3773_v49  ;;  %v1844_v8 = vor.u32 %v1843_v31, %v1840_v9  ;;  %v2185_v61 = vrot.slane %v10179_v3, 4  ;;  %v12922_v31 = vld [vmem:[#allocation24_spill] sm:$0xff] }
 0x203   :  { %v1598_v37 = vsel %vm12827_vm6, %v12919_v33, %v12918_v55  ;;  %v2186_v10 = vrot.slane %v10173_v2, 4  ;;  %v10216_v53 = vrot.slane %v1642_v47, 3  ;;  %v10218_v57 = vrot.slane %v1645_v15, 4  ;;  %v10238_v32 = vld [vmem:[#allocation2 + $0x98] sm:$0xf] }
 0x204   :  { %v10214_v22 = vsel %vm12811_vm15, %v1598_v37, %v9847_v59  ;;  %v3778_v62 = vsel %vm2283_vm10, %v3769_v18, %v3777_v42  ;;  %v1581_v16 = vsel %vm12827_vm6, %v1572_v17, %v1580_v48  ;;  %v4933_v39 = vrot.slane %v10205_v26, 4  ;;  %v10240_v15 = vld [vmem:[#allocation2 + $0x90] sm:$0xf0]  ;;  %v12924_v36 = vld [vmem:[#allocation32_spill] sm:$0xff]  ;;  %v12925_v37 = vld [vmem:[#allocation26_spill] sm:$0xff] }
 0x205   :  { %12920 = vst [vmem:[#allocation61_spill] sm:$0xff] %v10216_v53  ;;  %12921 = vst [vmem:[#allocation62_spill] sm:$0xff] %v10218_v57  ;;  %5849 = vrot.lane.b32.xlu0 %v3778_v62, %s8968_s21  ;;  %v2187_v9 = vsel %vm2154_vm9, %v2185_v61, %v2186_v10  ;;  %v4934_v21 = vrot.slane %v10203_v24, 4  ;;  %v10230_v59 = vsel %vm12811_vm15, %v1581_v16, %v9914_v27  ;;  %v1790_v47 = vshll.u32 %v10171_v45, 16  ;;  %v12923_v27 = vld [vmem:[#allocation31_spill] sm:$0xff] }
 0x206   :  { %5601 = vrot.lane.b32.xlu1 %v2187_v9, %s8963_s12  ;;  %v501_v52 = vadd.f32 %v9983_v41, %v9653_v54  ;;  %v493_v29 = vadd.f32 %v9983_v41, %v12922_v31  ;;  %v1853_v63 = vsel %vm12827_vm6, %v1844_v8, %v1852_v28  ;;  %v10243_v49 = vrot.slane %v1787_v40, 3  ;;  %v10248_v48 = vld [vmem:[#allocation2 + $0x98] sm:$0xf]  ;;  %v10250_v55 = vld [vmem:[#allocation2 + $0x90] sm:$0xf0]  ;;  %v10268_v9 = vpop.permute.xlu1 %5935 }
 0x207   :  { %v4935_v45 = vsel %vm2154_vm9, %v4933_v39, %v4934_v21  ;;  %v504_v18 = vadd.f32 %v9983_v41, %v12925_v37  ;;  %v12926_v42 = vld [vmem:[#allocation27_spill] sm:$0xff]  ;;  %v10256_v28 = vld [vmem:[#allocation2 + $0x98] sm:$0xf]  ;;  %v10260_v8 = vsel %vm12811_vm15, %v1853_v63, %v9970_v23  ;;  %v4930_v10 = vrot.slane %v10240_v15, 4  ;;  %v4221_v23 = vld [vmem:[#allocation2 + $0xa0] sm:$0xf8] }
 0x208   :  { %v689_v54 = vmax.f32 %v501_v52, 0.0  ;;  %v687_v33 = vmax.f32 %v493_v29, 0.0  ;;  %v496_v61 = vadd.f32 %v9983_v41, %v12926_v42  ;;  %12927 = vst [vmem:[#allocation24_spill] sm:$0xff] %v10256_v28  ;;  %v4931_v62 = vrot.slane %v10238_v32, 4  ;;  %v10266_v16 = vld [vmem:[#allocation2 + $0x90] sm:$0xf0]  ;;  %v10279_v42 = vpop.permute.xlu0 %5973 }
 0x209   :  { %5981 = vrot.lane.b32.xlu0 %v4935_v45, %s8964_s17  ;;  %v690_v39 = vmax.f32 %v504_v18, 0.0  ;;  %v3556_v21 = vrot.slane %v10250_v55, 4  ;;  %v3557_v52 = vrot.slane %v10248_v48, 4  ;;  %v10272_v31 = vrot.slane %v1790_v47, 4  ;;  %v10276_v45 = vld [vmem:[#allocation2] sm:$0xf8] }
 0x20a   :  { %v688_v41 = vmax.f32 %v496_v61, 0.0  ;;  %v4932_v37 = vsel %vm2154_vm9, %v4930_v10, %v4931_v62  ;;  %12928 = vst [vmem:[#allocation31_spill] sm:$0xff] %v10279_v42  ;;  %v2182_v40 = vrot.slane %v10266_v16, 4  ;;  %v1122_v57 = vld [vmem:[#allocation2 + $0xc0] sm:$0x8]  ;;  %v2183_v63 = vrot.slane %v10256_v28, 4  ;;  %v10289_v42 = vpop.permute.xlu1 %5683 }
 0x20b   :  { %v742_v17 = vpack.c.bf16 %v690_v39, %v689_v54  ;;  %5979 = vrot.lane.b32.xlu1 %v4932_v37, %s8964_s17  ;;  %v3558_v61 = vsel %vm2154_vm9, %v3556_v21, %v3557_v52  ;;  %v1349_v29 = vld [vmem:[#allocation2 + $0xc8] sm:$0x10]  ;;  %v4406_v53 = vshrl.u32 %v4221_v23, 16  ;;  %v4409_v10 = vshll.u32 %v4221_v23, 16  ;;  %v2846_v47 = vld [vmem:[#allocation2 + $0xa0] sm:$0xf8] }
 0x20c   :  { %v741_v18 = vpack.c.bf16 %v688_v41, %v687_v33  ;;  %v1119_v41 = vld [vmem:[#allocation2 + $0xb0] sm:$0x8]  ;;  %v2184_v56 = vsel %vm2154_vm9, %v2182_v40, %v2183_v63  ;;  %v4414_v63 = vshrl.u32 %v10203_v24, 16  ;;  %v4417_v6 = vshll.u32 %v10203_v24, 16  ;;  %v10298_v34 = vpop.permute.xlu0 %6063 }
 0x20d   :  { %5789 = vrot.lane.b32.xlu0 %v3558_v61, %s8965_s18  ;;  %v806_v54 = vrot.slane %v742_v17, 4  ;;  %v971_v33 = vshll.u32 %v742_v17, 16  ;;  %v1218_v39 = vshrl.u32 %v742_v17, 16  ;;  %v4408_v62 = vrot.slane %v4406_v53, 3 }
 0x20e   :  { %v805_v37 = vrot.slane %v741_v18, 4  ;;  %v967_v21 = vshll.u32 %v741_v18, 16  ;;  %v1215_v52 = vshrl.u32 %v741_v18, 16  ;;  %v4411_v17 = vrot.slane %v4409_v10, 4 }
 0x20f   :  { %884 = vst.msk [vmem:[#allocation2 + $0xc0] sm:$0xf0] %vm12820_vm1, %v806_v54  ;;  %v973_v61 = vrot.slane %v971_v33, 5  ;;  %v1220_v23 = vrot.slane %v1218_v39, 3  ;;  %5599 = vrot.lane.b32.xlu1 %v2184_v56, %s8963_s12  ;;  %v3046_v10 = vshrl.u32 %v2846_v47, 16  ;;  %v4416_v24 = vrot.slane %v4414_v63, 3 }
 0x210   :  { %885 = vst.msk [vmem:[#allocation2 + $0xc8] sm:$0xf] %vm12818_vm2, %v806_v54  ;;  %883 = vst.msk [vmem:[#allocation2 + $0xb8] sm:$0xf] %vm12818_vm2, %v805_v37  ;;  %v969_v18 = vrot.slane %v967_v21, 5  ;;  %v1217_v40 = vrot.slane %v1215_v52, 3  ;;  %v4412_v53 = vor.u32 %v4411_v17, %v4408_v62 }
 0x211   :  { %882 = vst.msk [vmem:[#allocation2 + $0xb0] sm:$0xf0] %vm12820_vm1, %v805_v37  ;;  %v1123_v54 = vsel %vm9069_vm7, %v973_v61, %v1122_v57  ;;  %v1350_v56 = vsel %vm9078_vm8, %v1220_v23, %v1349_v29  ;;  %v5013_v33 = vld [vmem:[#allocation2 + $0xa8] sm:$0x1f]  ;;  %v4419_v21 = vrot.slane %v4417_v6, 4  ;;  %v3048_v52 = vrot.slane %v3046_v10, 3 }
 0x212   :  { %1124 = vst [vmem:[#allocation2 + $0xc0] sm:$0x8] %v1123_v54  ;;  %1351 = vst [vmem:[#allocation2 + $0xc8] sm:$0x10] %v1350_v56  ;;  %v1120_v39 = vsel %vm9069_vm7, %v969_v18, %v1119_v41  ;;  %v1347_v37 = vsel %vm9078_vm8, %v1217_v40, %v1346_v5  ;;  %v3049_v57 = vshll.u32 %v2846_v47, 16  ;;  %v3054_v61 = vshrl.u32 %v10151_v51, 16  ;;  %v10312_v41 = vpop.permute.xlu1 %5645 }
 0x213   :  { %1121 = vst [vmem:[#allocation2 + $0xb0] sm:$0x8] %v1120_v39  ;;  %1348 = vst [vmem:[#allocation2 + $0xb8] sm:$0x10] %v1347_v37  ;;  %v3057_v29 = vshll.u32 %v10151_v51, 16  ;;  %v4420_v62 = vor.u32 %v4419_v21, %v4416_v24  ;;  %v5174_v23 = vshrl.u32 %v10205_v26, 16  ;;  %v10315_v37 = vpop.permute.xlu0 %5745 }
 0x214   :  { %v5177_v17 = vshll.u32 %v10205_v26, 16  ;;  %v5182_v54 = vshrl.u32 %v5013_v33, 16  ;;  %v3051_v18 = vrot.slane %v3049_v57, 4  ;;  %v3056_v5 = vrot.slane %v3054_v61, 3  ;;  %v3637_v63 = vld [vmem:[#allocation2 + $0xa8] sm:$0x1f] }
 0x215   :  { %v3059_v40 = vrot.slane %v3057_v29, 4  ;;  %v5185_v6 = vshll.u32 %v5013_v33, 16  ;;  %v4421_v56 = vsel %vm12827_vm6, %v4412_v53, %v4420_v62  ;;  %v5176_v47 = vrot.slane %v5174_v23, 4  ;;  %v2261_v29 = vld [vmem:[#allocation2 + $0xa8] sm:$0x1f] }
 0x216   :  { %v5179_v10 = vrot.slane %v5177_v17, 5  ;;  %v5184_v39 = vrot.slane %v5182_v54, 4  ;;  %v1518_v51 = vshll.u32 %v10276_v45, 16  ;;  %5917 = vrot.lane.b32.xlu0 %v4421_v56, %s8967_s20  ;;  %v3052_v26 = vor.u32 %v3051_v18, %v3048_v52 }
 0x217   :  { %v3060_v24 = vor.u32 %v3059_v40, %v3056_v5  ;;  %v5187_v21 = vrot.slane %v5185_v6, 5  ;;  %v3814_v57 = vshrl.u32 %v10154_v20, 16  ;;  %v3817_v33 = vshll.u32 %v10154_v20, 16  ;;  %v10327_v6 = vpop.permute.xlu1 %5971 }
 0x218   :  { %v5180_v50 = vor.u32 %v5179_v10, %v5176_v47  ;;  %v3822_v61 = vshrl.u32 %v3637_v63, 16  ;;  %v3825_v23 = vshll.u32 %v3637_v63, 16  ;;  %v12929_v17 = vshrl.u32 %v10179_v3, 16  ;;  %v10506_v28 = vld [vmem:[#allocation2 + $0xb0] sm:$0xf0] }
 0x219   :  { %v3061_v53 = vsel %vm12827_vm6, %v3052_v26, %v3060_v24  ;;  %v5188_v62 = vor.u32 %v5187_v21, %v5184_v39  ;;  %v3816_v56 = vrot.slane %v3814_v57, 4  ;;  %v3819_v52 = vrot.slane %v3817_v33, 5  ;;  %v4219_v39 = vld [vmem:[#allocation2 + $0x90] sm:$0xf8] }
 0x21a   :  { %v2457_v54 = vrot.slane %v12929_v17, 4  ;;  %5727 = vrot.lane.b32.xlu1 %v3061_v53, %s8966_s19  ;;  %v3824_v18 = vrot.slane %v3822_v61, 4  ;;  %v12930_v5 = vshll.u32 %v10179_v3, 16  ;;  %v3827_v47 = vrot.slane %v3825_v23, 5  ;;  %v10341_v61 = vpop.permute.xlu0 %5873 }
 0x21b   :  { %v5189_v20 = vsel %vm2283_vm10, %v5180_v50, %v5188_v62  ;;  %v2463_v10 = vshrl.u32 %v2261_v29, 16  ;;  %v2466_v26 = vshll.u32 %v2261_v29, 16  ;;  %v1793_v63 = vor.u32 %v10272_v31, %v10243_v49 }
 0x21c   :  { %v2460_v40 = vrot.slane %v12930_v5, 5  ;;  %v12931_v24 = vshrl.u32 %v10173_v2, 16  ;;  %v12933_v57 = vshll.u32 %v10173_v2, 16  ;;  %6045 = vrot.lane.b32.xlu0 %v5189_v20, %s8969_s22  ;;  %v3820_v3 = vor.u32 %v3819_v52, %v3816_v56  ;;  %v5012_v2 = vld [vmem:[#allocation2 + $0x98] sm:$0x1f] }
 0x21d   :  { %v3828_v50 = vor.u32 %v3827_v47, %v3824_v18  ;;  %v2465_v29 = vrot.slane %v2463_v10, 4  ;;  %v2468_v62 = vrot.slane %v2466_v26, 5  ;;  %v12935_v23 = vshrl.u32 %v10276_v45, 16  ;;  %v10354_v47 = vpop.permute.xlu1 %5591 }
 0x21e   :  { %v10334_v21 = vrot.slane %v12931_v24, 3  ;;  %v10338_v33 = vrot.slane %v12933_v57, 4  ;;  %v2461_v53 = vor.u32 %v2460_v40, %v2457_v54  ;;  %v4389_v31 = vshrl.u32 %v4219_v39, 16 }
 0x21f   :  { %v10345_v49 = vrot.slane %v12935_v23, 3  ;;  %v4392_v17 = vshll.u32 %v4219_v39, 16  ;;  %v4397_v5 = vshrl.u32 %v10238_v32, 16  ;;  %v10348_v24 = vrot.slane %v1518_v51, 4  ;;  %v12937_v23 = vld [vmem:[#allocation33_spill] sm:$0xff] }
 0x220   :  { %12932 = vst [vmem:[#allocation32_spill] sm:$0xff] %v10334_v21  ;;  %12934 = vst [vmem:[#allocation26_spill] sm:$0xff] %v10338_v33  ;;  %v3829_v20 = vsel %vm2283_vm10, %v3820_v3, %v3828_v50  ;;  %v2469_v56 = vor.u32 %v2468_v62, %v2465_v29  ;;  %v4400_v52 = vshll.u32 %v10238_v32, 16  ;;  %v4391_v54 = vrot.slane %v4389_v31, 3  ;;  %v10365_v62 = vpop.permute.xlu0 %5781  ;;  %v12938_v31 = vld [vmem:[#allocation35_spill] sm:$0xff] }
 0x221   :  { %5855 = vrot.lane.b32.xlu1 %v3829_v20, %s8968_s21  ;;  %v4394_v18 = vrot.slane %v4392_v17, 4  ;;  %v4399_v40 = vrot.slane %v4397_v5, 3  ;;  %v5157_v45 = vshrl.u32 %v10240_v15, 16  ;;  %v5160_v51 = vshll.u32 %v10240_v15, 16  ;;  %v2260_v20 = vld [vmem:[#allocation2 + $0x98] sm:$0x1f] }
 0x222   :  { %v2470_v10 = vsel %vm2283_vm10, %v2461_v53, %v2469_v56  ;;  %v4402_v26 = vrot.slane %v4400_v52, 4  ;;  %v5165_v39 = vshrl.u32 %v5012_v2, 16  ;;  %v12936_v57 = vor.u32 %v12924_v36, %v12923_v27  ;;  %v2844_v52 = vld [vmem:[#allocation2 + $0x90] sm:$0xf8] }
 0x223   :  { %5665 = vrot.lane.b32.xlu0 %v2470_v10, %s8970_s23  ;;  %v4395_v3 = vor.u32 %v4394_v18, %v4391_v54  ;;  %v5159_v50 = vrot.slane %v5157_v45, 4  ;;  %v5168_v29 = vshll.u32 %v5012_v2, 16  ;;  %v1529_v53 = vor.u32 %v12938_v31, %v12937_v23  ;;  %v10384_v31 = vld [vmem:[#allocation2 + $0xc8] sm:$0xf] }
 0x224   :  { %v10362_v32 = vsel %vm12827_vm6, %v1793_v63, %v12936_v57  ;;  %v4403_v17 = vor.u32 %v4402_v26, %v4399_v40  ;;  %v5162_v5 = vrot.slane %v5160_v51, 5  ;;  %v5167_v15 = vrot.slane %v5165_v39, 4 }
 0x225   :  { %v1521_v27 = vor.u32 %v10348_v24, %v10345_v49  ;;  %v5170_v63 = vrot.slane %v5168_v29, 5  ;;  %v2438_v56 = vshrl.u32 %v10266_v16, 16  ;;  %v2441_v45 = vshll.u32 %v10266_v16, 16  ;;  %v10377_v49 = vpop.permute.xlu1 %6003  ;;  %v10379_v29 = vld [vmem:[#allocation2 + $0xc0] sm:$0xf0] }
 0x226   :  { %v4404_v54 = vsel %vm12827_vm6, %v4395_v3, %v4403_v17  ;;  %v5163_v18 = vor.u32 %v5162_v5, %v5159_v50  ;;  %v2446_v26 = vshrl.u32 %v2260_v20, 16  ;;  %12939 = vst [vmem:[#allocation27_spill] sm:$0xff] %v10377_v49  ;;  %v2449_v51 = vshll.u32 %v2260_v20, 16  ;;  %v10386_v17 = vpop.permute.xlu0 %5677 }
 0x227   :  { %5915 = vrot.lane.b32.xlu1 %v4404_v54, %s8967_s20  ;;  %v5171_v40 = vor.u32 %v5170_v63, %v5167_v15  ;;  %v2440_v10 = vrot.slane %v2438_v56, 4  ;;  %v2443_v24 = vrot.slane %v2441_v45, 5  ;;  %v3029_v39 = vshrl.u32 %v2844_v52, 16  ;;  %v3636_v56 = vld [vmem:[#allocation2 + $0x98] sm:$0x1f] }
 0x228   :  { %v3032_v57 = vshll.u32 %v2844_v52, 16  ;;  %v2448_v3 = vrot.slane %v2446_v26, 4  ;;  %v3037_v50 = vshrl.u32 %v10248_v48, 16  ;;  %v3040_v16 = vshll.u32 %v10248_v48, 16  ;;  %v12940_v52 = vld [vmem:[#allocation21_spill] sm:$0xff] }
 0x229   :  { %v5172_v23 = vsel %vm2283_vm10, %v5163_v18, %v5171_v40  ;;  %v2444_v5 = vor.u32 %v2443_v24, %v2440_v10  ;;  %v2451_v15 = vrot.slane %v2449_v51, 5  ;;  %v3031_v20 = vrot.slane %v3029_v39, 3  ;;  %v10396_v39 = vpop.permute.xlu1 %5719 }
 0x22a   :  { %6043 = vrot.lane.b32.xlu0 %v5172_v23, %s8969_s22  ;;  %v3034_v63 = vrot.slane %v3032_v57, 4  ;;  %v6323_v54 = vsel %vm281_vm0, %v10099_v25, %v12940_v52  ;;  %v3039_v18 = vrot.slane %v3037_v50, 3  ;;  %v3042_v45 = vrot.slane %v3040_v16, 4  ;;  %12941 = vst [vmem:[#allocation33_spill] sm:$0xff] %v10396_v39  ;;  %v10400_v16 = vld [vmem:[#allocation2 + $0x60] sm:$0xf8] }
 0x22b   :  { %v3565_v40 = vrot.slane %v10379_v29, 4  ;;  %v2452_v48 = vor.u32 %v2451_v15, %v2448_v3  ;;  %v3566_v2 = vrot.slane %v10384_v31, 4  ;;  %v3797_v36 = vshrl.u32 %v10250_v55, 16 }
 0x22c   :  { %v3035_v26 = vor.u32 %v3034_v63, %v3031_v20  ;;  %v3043_v23 = vor.u32 %v3042_v45, %v3039_v18  ;;  %v3800_v10 = vshll.u32 %v10250_v55, 16  ;;  %v3805_v24 = vshrl.u32 %v3636_v56, 16  ;;  %v10404_v55 = vld [vmem:[#allocation2 + $0xc0] sm:$0xf0]  ;;  %v10421_v18 = vld [vmem:[#allocation2 + $0xc8] sm:$0xf] }
 0x22d   :  { %v3808_v51 = vshll.u32 %v3636_v56, 16  ;;  %v1530_v57 = vsel %vm12827_vm6, %v1521_v27, %v1529_v53  ;;  %v2453_v25 = vsel %vm2283_vm10, %v2444_v5, %v2452_v48  ;;  %v3799_v50 = vrot.slane %v3797_v36, 4  ;;  %v10406_v56 = vpop.permute.xlu0 %5909  ;;  %v12942_v36 = vld [vmem:[#allocation30_spill] sm:$0xff]  ;;  %12943 = vst [vmem:[#allocation35_spill] sm:$0xff] %v10421_v18  ;;  %v10425_v48 = vld [vmem:[#allocation2 + $0xc0] sm:$0xf0] }
 0x22e   :  { %5663 = vrot.lane.b32.xlu1 %v2453_v25, %s8970_s23  ;;  %v3044_v3 = vsel %vm12827_vm6, %v3035_v26, %v3043_v23  ;;  %v3802_v15 = vrot.slane %v3800_v10, 5  ;;  %v3807_v20 = vrot.slane %v3805_v24, 4  ;;  %v10411_v53 = vsel %vm12811_vm15, %v10362_v32, %v9989_v38  ;;  %v10423_v45 = vld [vmem:[#allocation2 + $0xc8] sm:$0xf]  ;;  %v10439_v24 = vpop.permute.xlu1 %5847 }
 0x22f   :  { %v3810_v63 = vrot.slane %v3808_v51, 5  ;;  %v10415_v27 = vsel %vm12811_vm15, %v1530_v57, %v10041_v46  ;;  %v6388_v5 = vsel %vm6384_vm5, %v6323_v54, %v12942_v36  ;;  %5725 = vrot.lane.b32.xlu0 %v3044_v3, %s8966_s19  ;;  %v3567_v52 = vsel %vm2154_vm9, %v3565_v40, %v3566_v2  ;;  %12944 = vst [vmem:[#allocation21_spill] sm:$0xff] %v10439_v24  ;;  %v10452_v51 = vld [vmem:[%s12793_s4] ss:$0 sm:$0xff]  ;;  %v10458_v3 = vld [vmem:[#allocation2 + $0xb8] sm:$0xf] }
 0x230   :  { %v6453_v38 = vsel %vm6449_vm11, %v6388_v5, %v10128_v0  ;;  %v3803_v32 = vor.u32 %v3802_v15, %v3799_v50  ;;  %v6198_v54 = vsel %vm12828_vm3, %v10230_v59, %v10145_v43  ;;  %vm12821_vm15 = vcmask 261120   ;;  %v12945_v57 = vld [vmem:[#allocation41_spill] sm:$0xff]  ;;  %v10477_v36 = vld [vmem:[#allocation2 + $0xb8] sm:$0xf]  ;;  %v10479_v5 = vld [vmem:[#allocation2 + $0xb0] sm:$0xf0] }
 0x231   :  { %v3811_v46 = vor.u32 %v3810_v63, %v3807_v20  ;;  %v1617_v26 = vshrl.u32 %v10400_v16, 16  ;;  %v2191_v2 = vrot.slane %v10404_v55, 4  ;;  %v2192_v23 = vrot.slane %v10421_v18, 4  ;;  %v12946_v63 = vld [vmem:[#allocation44_spill] sm:$0xff]  ;;  %v1355_v24 = vld [vmem:[#allocation2 + $0xe8] sm:$0x10] }
 0x232   :  { %5795 = vrot.lane.b32.xlu1 %v3567_v52, %s8965_s18  ;;  %v4939_v0 = vrot.slane %v10425_v48, 4  ;;  %v4940_v10 = vrot.slane %v10423_v45, 4  ;;  %v10444_v43 = vsel %vm12828_vm3, %v10214_v22, %v10102_v35  ;;  %v6518_v59 = vsel %vm6514_vm12, %v6453_v38, %v9899_v19  ;;  %v10460_v35 = vld [vmem:[#allocation2 + $0xb0] sm:$0xf0]  ;;  %v10462_v22 = vpop.permute.xlu0 %6037  ;;  %v10481_v52 = vpop.f32.mrb[12].mxu1 }
 0x233   :  { %v3812_v40 = vsel %vm2283_vm10, %v3803_v32, %v3811_v46  ;;  %v517_v25 = vadd.f32 %v10452_v51, %v12945_v57  ;;  %v509_v50 = vadd.f32 %v10452_v51, %v9859_v7  ;;  %v10466_v19 = vsel %vm6255_vm4, %v6198_v54, %v10018_v1  ;;  %12947 = vst [vmem:[#allocation30_spill] sm:$0xff] %v10481_v52  ;;  %v10487_v46 = vpop.f32.mrb[13].mxu1  ;;  %v12949_v54 = vld [vmem:[#allocation46_spill] sm:$0xff]  ;;  %v12961_v18 = vld [vmem:[#allocation43_spill] sm:$0xff] }
 0x234   :  { %5853 = vrot.lane.b32.xlu0 %v3812_v40, %s8968_s21  ;;  %v10470_v15 = vsel %vm12821_vm15, %v6518_v59, %v10156_v11  ;;  %v6261_v20 = vsel %vm6255_vm4, %v10031_v58, %v10175_v44  ;;  %v520_v7 = vadd.f32 %v10452_v51, %v12946_v63  ;;  %v10483_v38 = vrot.slane %v1617_v26, 3  ;;  %12948 = vst [vmem:[#allocation41_spill] sm:$0xff] %v10487_v46  ;;  %v10493_v57 = vpop.f32.mrb[14].mxu1 }
 0x235   :  { %v2193_v1 = vsel %vm2154_vm9, %v2191_v2, %v2192_v23  ;;  %v4941_v11 = vsel %vm2154_vm9, %v4939_v0, %v4940_v10  ;;  %v693_v32 = vmax.f32 %v517_v25, 0.0  ;;  %v691_v58 = vmax.f32 %v509_v50, 0.0  ;;  %12950 = vst [vmem:[#allocation44_spill] sm:$0xff] %v10493_v57  ;;  %v10500_v10 = vld [vmem:[#allocation2 + $0xb8] sm:$0xf]  ;;  %v12952_v50 = vld [vmem:[#allocation37_spill] sm:$0xff] }
 0x236   :  { %5605 = vrot.lane.b32.xlu1 %v2193_v1, %s8963_s12  ;;  %v694_v44 = vmax.f32 %v520_v7, 0.0  ;;  %v512_v40 = vadd.f32 %v10452_v51, %v12949_v54  ;;  %v4936_v59 = vrot.slane %v10460_v35, 4  ;;  %v1620_v26 = vshll.u32 %v10400_v16, 16  ;;  %v12951_v25 = vld [vmem:[#allocation36_spill] sm:$0xff]  ;;  %v12953_v7 = vld [vmem:[#allocation14_spill] sm:$0xff] }
 0x237   :  { %v4937_v2 = vrot.slane %v10458_v3, 4  ;;  %v3562_v23 = vrot.slane %v10479_v5, 4  ;;  %v3563_v0 = vrot.slane %v10477_v36, 4  ;;  %v6325_v1 = vsel %vm281_vm0, %v6261_v20, %v12953_v7  ;;  %v4225_v16 = vld [vmem:[#allocation2 + $0xc0] sm:$0xf8]  ;;  %v10515_v63 = vpop.permute.xlu0 %5657 }
 0x238   :  { %5985 = vrot.lane.b32.xlu0 %v4941_v11, %s8964_s17  ;;  %v744_v54 = vpack.c.bf16 %v694_v44, %v693_v32  ;;  %v692_v49 = vmax.f32 %v512_v40, 0.0  ;;  %v10508_v11 = vpop.permute.xlu1 %5907  ;;  %v6390_v33 = vsel %vm6384_vm5, %v6325_v1, %v10226_v30  ;;  %12954 = vst [vmem:[#allocation46_spill] sm:$0xff] %v10515_v63  ;;  %v1128_v32 = vld [vmem:[#allocation2 + $0xe0] sm:$0x8]  ;;  %v10518_v7 = vrot.slane %v1620_v26, 4 }
 0x239   :  { %v4938_v57 = vsel %vm2154_vm9, %v4936_v59, %v4937_v2  ;;  %v3564_v46 = vsel %vm2154_vm9, %v3562_v23, %v3563_v0  ;;  %v2188_v30 = vrot.slane %v10506_v28, 4  ;;  %v2189_v59 = vrot.slane %v10500_v10, 4 }
 0x23a   :  { %v808_v52 = vrot.slane %v744_v54, 4  ;;  %v979_v20 = vshll.u32 %v744_v54, 16  ;;  %v1224_v44 = vshrl.u32 %v744_v54, 16  ;;  %v743_v40 = vpack.c.bf16 %v692_v49, %v691_v58  ;;  %5983 = vrot.lane.b32.xlu1 %v4938_v57, %s8964_s17  ;;  %v10525_v58 = vpop.f32.mrb[15].mxu1  ;;  %v1125_v57 = vld [vmem:[#allocation2 + $0xd0] sm:$0x8] }
 0x23b   :  { %v4440_v2 = vshrl.u32 %v4225_v16, 16  ;;  %12955 = vst [vmem:[#allocation36_spill] sm:$0xff] %v10525_v58  ;;  %v2190_v54 = vsel %vm2154_vm9, %v2188_v30, %v2189_v59  ;;  %v4443_v21 = vshll.u32 %v4225_v16, 16  ;;  %v2850_v59 = vld [vmem:[#allocation2 + $0xc0] sm:$0xf8] }
 0x23c   :  { %5793 = vrot.lane.b32.xlu0 %v3564_v46, %s8965_s18  ;;  %888 = vst.msk [vmem:[#allocation2 + $0xe0] sm:$0xf0] %vm12820_vm1, %v808_v52  ;;  %v981_v23 = vrot.slane %v979_v20, 5  ;;  %v1226_v0 = vrot.slane %v1224_v44, 3  ;;  %v807_v1 = vrot.slane %v743_v40, 4  ;;  %v975_v49 = vshll.u32 %v743_v40, 16 }
 0x23d   :  { %889 = vst.msk [vmem:[#allocation2 + $0xe8] sm:$0xf] %vm12818_vm2, %v808_v52  ;;  %v1221_v26 = vshrl.u32 %v743_v40, 16  ;;  %v4442_v46 = vrot.slane %v4440_v2, 3  ;;  %v1352_v20 = vld [vmem:[#allocation2 + $0xd8] sm:$0x10]  ;;  %v10536_v40 = vpop.permute.xlu1 %5655  ;;  %v10542_v2 = vpop.permute.xlu0 %6035 }
 0x23e   :  { %v1129_v39 = vsel %vm9069_vm7, %v981_v23, %v1128_v32  ;;  %v1356_v63 = vsel %vm9078_vm8, %v1226_v0, %v1355_v24  ;;  %886 = vst.msk [vmem:[#allocation2 + $0xd0] sm:$0xf0] %vm12820_vm1, %v807_v1  ;;  %v977_v52 = vrot.slane %v975_v49, 5  ;;  %5603 = vrot.lane.b32.xlu1 %v2190_v54, %s8963_s12  ;;  %v4448_v44 = vshrl.u32 %v10423_v45, 16  ;;  %v12956_v23 = vld [vmem:[#allocation18_spill] sm:$0xff]  ;;  %v12958_v54 = vld [vmem:[#allocation25_spill] sm:$0xff] }
 0x23f   :  { %887 = vst.msk [vmem:[#allocation2 + $0xd8] sm:$0xf] %vm12818_vm2, %v807_v1  ;;  %1130 = vst [vmem:[#allocation2 + $0xe0] sm:$0x8] %v1129_v39  ;;  %v1223_v16 = vrot.slane %v1221_v26, 3  ;;  %v4445_v30 = vrot.slane %v4443_v21, 4  ;;  %v6192_v24 = vsel %vm12828_vm3, %v10415_v27, %v10312_v41  ;;  %v10546_v0 = vsel %vm6449_vm11, %v6390_v33, %v12956_v23 }
 0x240   :  { %1357 = vst [vmem:[#allocation2 + $0xe8] sm:$0x10] %v1356_v63  ;;  %v4451_v32 = vshll.u32 %v10423_v45, 16  ;;  %v1126_v1 = vsel %vm9069_vm7, %v977_v52, %v1125_v57  ;;  %v4450_v39 = vrot.slane %v4448_v44, 3  ;;  %v12957_v63 = vld [vmem:[#allocation42_spill] sm:$0xff]  ;;  %v3080_v23 = vshrl.u32 %v2850_v59, 16 }
 0x241   :  { %v6257_v21 = vsel %vm6255_vm4, %v6192_v24, %v12957_v63  ;;  %1127 = vst [vmem:[#allocation2 + $0xd0] sm:$0x8] %v1126_v1  ;;  %v1353_v41 = vsel %vm9078_vm8, %v1223_v16, %v1352_v20  ;;  %v4446_v27 = vor.u32 %v4445_v30, %v4442_v46  ;;  %v5015_v26 = vld [vmem:[#allocation2 + $0xc8] sm:$0x1f]  ;;  %v3083_v58 = vshll.u32 %v2850_v59, 16  ;;  %v10564_v63 = vpop.permute.xlu1 %5787 }
 0x242   :  { %v4453_v49 = vrot.slane %v4451_v32, 4  ;;  %1354 = vst [vmem:[#allocation2 + $0xd8] sm:$0x10] %v1353_v41  ;;  %v6321_v33 = vsel %vm281_vm0, %v6257_v21, %v12958_v54  ;;  %v3088_v57 = vshrl.u32 %v10384_v31, 16  ;;  %v3091_v44 = vshll.u32 %v10384_v31, 16  ;;  %12959 = vst [vmem:[#allocation37_spill] sm:$0xff] %v10564_v63  ;;  %v10567_v31 = vpop.permute.xlu0 %5717 }
 0x243   :  { %v5208_v24 = vshrl.u32 %v10425_v48, 16  ;;  %v5211_v1 = vshll.u32 %v10425_v48, 16  ;;  %v8890_v46 = vld [vmem:[%s12791_s2 + $0x10] ss:$0 sps:$4 sm:$0x33]   ;;  %v3082_v20 = vrot.slane %v3080_v23, 3  ;;  %v1623_v48 = vor.u32 %v10518_v7, %v10483_v38 }
 0x244   :  { %v4454_v52 = vor.u32 %v4453_v49, %v4450_v39  ;;  %v3085_v16 = vrot.slane %v3083_v58, 4  ;;  %v3090_v30 = vrot.slane %v3088_v57, 3  ;;  %v5216_v32 = vshrl.u32 %v5015_v26, 16  ;;  %v3639_v58 = vld [vmem:[#allocation2 + $0xc8] sm:$0x1f]  ;;  %v12960_v57 = vld [vmem:[#allocation23_spill] sm:$0xff] }
 0x245   :  { %v3093_v21 = vrot.slane %v3091_v44, 4  ;;  %v5210_v39 = vrot.slane %v5208_v24, 4  ;;  %v5213_v41 = vrot.slane %v5211_v1, 5  ;;  %v5219_v23 = vshll.u32 %v5015_v26, 16  ;;  %v2263_v1 = vld [vmem:[#allocation2 + $0xc8] sm:$0x1f] }
 0x246   :  { %v4455_v59 = vsel %vm12827_vm6, %v4446_v27, %v4454_v52  ;;  %v3086_v49 = vor.u32 %v3085_v16, %v3082_v20  ;;  %v5218_v54 = vrot.slane %v5216_v32, 4  ;;  %v6355_v45 = vsel %vm281_vm0, %v10189_v14, %v12960_v57 }
 0x247   :  { %5921 = vrot.lane.b32.xlu0 %v4455_v59, %s8967_s20  ;;  %v6386_v27 = vsel %vm6384_vm5, %v6321_v33, %v12961_v18  ;;  %v3094_v52 = vor.u32 %v3093_v21, %v3090_v30  ;;  %vm12819_vm2 = vcmask 1041408   ;;  %v5214_v44 = vor.u32 %v5213_v41, %v5210_v39  ;;  %v10585_v59 = vpop.permute.xlu1 %5597 }
 0x248   :  { %v5221_v24 = vrot.slane %v5219_v23, 5  ;;  %8842 = vmatprep.subr.msk.bf16.mxu1 %vm12819_vm2, %v8890_v46  ;;  %v6738_v38 = vsel %vm12819_vm2, %v8890_v46, 0  ;;  %v3848_v7 = vshrl.u32 %v10379_v29, 16  ;;  %v3851_v20 = vshll.u32 %v10379_v29, 16 }
 0x249   :  { %v3095_v26 = vsel %vm12827_vm6, %v3086_v49, %v3094_v52  ;;  %8709 = vmatpush3.bf16.msra.mxu1 %v6738_v38  ;;  %v3856_v14 = vshrl.u32 %v3639_v58, 16  ;;  %v3859_v16 = vshll.u32 %v3639_v58, 16  ;;  %v2489_v30 = vshrl.u32 %v10404_v55, 16  ;;  %v10587_v49 = vpop.permute.xlu0 %5845  ;;  %v12962_v52 = vld [vmem:[#allocation38_spill] sm:$0xff] }
 0x24a   :  { %5731 = vrot.lane.b32.xlu1 %v3095_v26, %s8966_s19  ;;  %v5222_v18 = vor.u32 %v5221_v24, %v5218_v54  ;;  %v3850_v33 = vrot.slane %v3848_v7, 4  ;;  %v2492_v32 = vshll.u32 %v10404_v55, 16  ;;  %v3853_v46 = vrot.slane %v3851_v20, 5  ;;  %v4223_v7 = vld [vmem:[#allocation2 + $0xb0] sm:$0xf8] }
 0x24b   :  { %v3858_v21 = vrot.slane %v3856_v14, 4  ;;  %v3861_v39 = vrot.slane %v3859_v16, 5  ;;  %v2497_v41 = vshrl.u32 %v2263_v1, 16  ;;  %v2491_v23 = vrot.slane %v2489_v30, 4 }
 0x24c   :  { %v5223_v29 = vsel %vm2283_vm10, %v5214_v44, %v5222_v18  ;;  %v2494_v58 = vrot.slane %v2492_v32, 5  ;;  %v2500_v57 = vshll.u32 %v2263_v1, 16  ;;  %v6420_v54 = vsel %vm6384_vm5, %v6355_v45, %v12962_v52  ;;  %v12964_v18 = vld [vmem:[#allocation29_spill] sm:$0xff]  ;;  %v10612_v32 = vpop.permute.xlu1 %5939 }
 0x24d   :  { %6049 = vrot.lane.b32.xlu0 %v5223_v29, %s8969_s22  ;;  %v3854_v24 = vor.u32 %v3853_v46, %v3850_v33  ;;  %v3862_v55 = vor.u32 %v3861_v39, %v3858_v21  ;;  %v2499_v38 = vrot.slane %v2497_v41, 4  ;;  %v12963_v26 = vor.u32 %v12952_v50, %v12951_v25  ;;  %12967 = vst [vmem:[#allocation14_spill] sm:$0xff] %v10612_v32  ;;  %v5014_v39 = vld [vmem:[#allocation2 + $0xb8] sm:$0x1f]  ;;  %v12983_v32 = vld [vmem:[#allocation58_spill] sm:$0xff] }
 0x24e   :  { %v6485_v44 = vsel %vm6449_vm11, %v6420_v54, %v10268_v9  ;;  %v2495_v14 = vor.u32 %v2494_v58, %v2491_v23  ;;  %v2502_v16 = vrot.slane %v2500_v57, 5  ;;  %v6230_v45 = vsel %vm12828_vm3, %v10260_v8, %v10289_v42  ;;  %v12966_v9 = vld [vmem:[#allocation20_spill] sm:$0xff]  ;;  %v12968_v8 = vld [vmem:[#allocation34_spill] sm:$0xff] }
 0x24f   :  { %v1632_v20 = vsel %vm12827_vm6, %v1623_v48, %v12963_v26  ;;  %v3863_v1 = vsel %vm2283_vm10, %v3854_v24, %v3862_v55  ;;  %v6451_v33 = vsel %vm6449_vm11, %v6386_v27, %v12964_v18  ;;  %vm12826_vm2 = vcmask 293888   ;;  %v12969_v24 = vld [vmem:[#allocation11_spill] sm:$0xff] }
 0x250   :  { %vm12965_vm1 = vcmask 31744   ;;  %5859 = vrot.lane.b32.xlu1 %v3863_v1, %s8968_s21  ;;  %v2503_v50 = vor.u32 %v2502_v16, %v2499_v38  ;;  %v6516_v48 = vsel %vm6514_vm12, %v6451_v33, %v12966_v9  ;;  %v4423_v30 = vshrl.u32 %v4223_v7, 16  ;;  %v12971_v33 = vld [vmem:[#allocation47_spill] sm:$0xff]  ;;  %v10643_v9 = vpop.permute.xlu1 %5975 }
 0x251   :  { %v10607_v25 = vsel %vm12965_vm1, %v1632_v20, %v10210_v12  ;;  %v6581_v42 = vsel %vm12821_vm15, %v6516_v48, %v12968_v8  ;;  %v4426_v46 = vshll.u32 %v4223_v7, 16  ;;  %v4431_v27 = vshrl.u32 %v10458_v3, 16  ;;  %v10618_v12 = vpop.permute.xlu0 %5977  ;;  %v10637_v20 = vld [vmem:[#allocation2 + $0x50] sm:$0xf8] }
 0x252   :  { %v4434_v21 = vshll.u32 %v10458_v3, 16  ;;  %v10622_v41 = vsel %vm6255_vm4, %v6230_v45, %v10080_v13  ;;  %v2504_v29 = vsel %vm2283_vm10, %v2495_v14, %v2503_v50  ;;  %8710 = vmatprep.mubr.msk.bf16.mxu1 %vm12826_vm2, %v6581_v42  ;;  %v4425_v23 = vrot.slane %v4423_v30, 3  ;;  %v2262_v45 = vld [vmem:[#allocation2 + $0xb8] sm:$0x1f]  ;;  %v2848_v50 = vld [vmem:[#allocation2 + $0xb0] sm:$0xf8] }
 0x253   :  { %v5191_v58 = vshrl.u32 %v10460_v35, 16  ;;  %5669 = vrot.lane.b32.xlu0 %v2504_v29, %s8970_s23  ;;  %8711 = vmatmul.mubr.msk.bf16.vlgmr.msra.gmra.mrb[32].mxu1 %vm12826_vm2, %v10470_v15  ;;  %v4428_v3 = vrot.slane %v4426_v46, 4  ;;  %v4433_v57 = vrot.slane %v4431_v27, 3  ;;  %v5194_v54 = vshll.u32 %v10460_v35, 16  ;;  %v12973_v42 = vld [vmem:[#allocation19_spill] sm:$0xff] }
 0x254   :  { %v4436_v52 = vrot.slane %v4434_v21, 4  ;;  %v6550_v13 = vsel %vm6514_vm12, %v6485_v44, %v12969_v24  ;;  %v5199_v38 = vshrl.u32 %v5014_v39, 16  ;;  %v5202_v7 = vshll.u32 %v5014_v39, 16 }
 0x255   :  { %v5193_v55 = vrot.slane %v5191_v58, 4  ;;  %v10635_v26 = vsel %vm12821_vm15, %v6550_v13, %v10298_v34  ;;  %v4429_v14 = vor.u32 %v4428_v3, %v4425_v23  ;;  %v5196_v15 = vrot.slane %v5194_v54, 5  ;;  %v12972_v34 = vld [vmem:[#allocation60_spill] sm:$0xff]  ;;  %v10651_v27 = vpop.permute.xlu0 %5785 }
 0x256   :  { %12970 = vst [vmem:[#allocation18_spill] sm:$0xff] %v10635_v26  ;;  %v4437_v16 = vor.u32 %v4436_v52, %v4433_v57  ;;  %v5201_v18 = vrot.slane %v5199_v38, 4  ;;  %v5204_v35 = vrot.slane %v5202_v7, 5  ;;  %v6520_v44 = vsel %vm6514_vm12, %v10546_v0, %v12971_v33  ;;  %v10659_v57 = vld [vmem:[#allocation2 + $0xe0] sm:$0xf0] }
 0x257   :  { %v6293_v48 = vsel %vm6255_vm4, %v12972_v34, %v10315_v37  ;;  %v5197_v8 = vor.u32 %v5196_v15, %v5193_v55  ;;  %v6585_v46 = vsel %vm12821_vm15, %v6520_v44, %v12973_v42  ;;  %v1600_v21 = vshrl.u32 %v10637_v20, 16  ;;  %v10662_v55 = vld [vmem:[#allocation2 + $0xe8] sm:$0xf] }
 0x258   :  { %v4438_v30 = vsel %vm12827_vm6, %v4429_v14, %v4437_v16  ;;  %v5205_v0 = vor.u32 %v5204_v35, %v5201_v18  ;;  %8714 = vmatprep.mubr.msk.bf16.mxu1 %vm12826_vm2, %v6585_v46  ;;  %v2472_v39 = vshrl.u32 %v10506_v28, 16  ;;  %v2475_v29 = vshll.u32 %v10506_v28, 16  ;;  %v10668_v35 = vpop.permute.xlu1 %5595 }
 0x259   :  { %5919 = vrot.lane.b32.xlu1 %v4438_v30, %s8967_s20  ;;  %v1603_v37 = vshll.u32 %v10637_v20, 16  ;;  %v2480_v23 = vshrl.u32 %v2262_v45, 16  ;;  %v2483_v58 = vshll.u32 %v2262_v45, 16  ;;  %v3063_v3 = vshrl.u32 %v2848_v50, 16  ;;  %v3638_v20 = vld [vmem:[#allocation2 + $0xb8] sm:$0x1f] }
 0x25a   :  { %v5206_v52 = vsel %vm2283_vm10, %v5197_v8, %v5205_v0  ;;  %v2474_v54 = vrot.slane %v2472_v39, 4  ;;  %v2477_v24 = vrot.slane %v2475_v29, 5  ;;  %v3066_v13 = vshll.u32 %v2848_v50, 16  ;;  %v12974_v39 = vld [vmem:[#allocation16_spill] sm:$0xff] }
 0x25b   :  { %6047 = vrot.lane.b32.xlu0 %v5206_v52, %s8969_s22  ;;  %v2482_v38 = vrot.slane %v2480_v23, 4  ;;  %v2485_v7 = vrot.slane %v2483_v58, 5  ;;  %v3065_v14 = vrot.slane %v3063_v3, 3  ;;  %v3071_v28 = vshrl.u32 %v10477_v36, 16  ;;  %v10672_v30 = vpop.permute.xlu0 %5913  ;;  %v10678_v3 = vld [vmem:[#allocation2 + $0xe0] sm:$0xf0] }
 0x25c   :  { %v2478_v16 = vor.u32 %v2477_v24, %v2474_v54  ;;  %v3068_v15 = vrot.slane %v3066_v13, 4  ;;  %v3074_v45 = vshll.u32 %v10477_v36, 16  ;;  %v3571_v18 = vrot.slane %v10659_v57, 4 }
 0x25d   :  { %v2486_v33 = vor.u32 %v2485_v7, %v2482_v38  ;;  %v3073_v44 = vrot.slane %v3071_v28, 3  ;;  %v3572_v50 = vrot.slane %v10662_v55, 4  ;;  %v3831_v34 = vshrl.u32 %v10479_v5, 16  ;;  %v12977_v7 = vld [vmem:[#allocation50_spill] sm:$0xff] }
 0x25e   :  { %v3069_v8 = vor.u32 %v3068_v15, %v3065_v14  ;;  %v3076_v42 = vrot.slane %v3074_v45, 4  ;;  %v3834_v46 = vshll.u32 %v10479_v5, 16  ;;  %v3839_v0 = vshrl.u32 %v3638_v20, 16  ;;  %v10685_v5 = vld [vmem:[#allocation2 + $0xe8] sm:$0xf] }
 0x25f   :  { %v6357_v36 = vsel %vm281_vm0, %v6293_v48, %v12974_v39  ;;  %v2487_v29 = vsel %vm2283_vm10, %v2478_v16, %v2486_v33  ;;  %v3833_v23 = vrot.slane %v3831_v34, 4  ;;  %v3842_v58 = vshll.u32 %v3638_v20, 16  ;;  %12975 = vst [vmem:[#allocation42_spill] sm:$0xff] %v10685_v5  ;;  %v12976_v48 = vld [vmem:[#allocation9_spill] sm:$0xff]  ;;  %v10692_v16 = vld [vmem:[#allocation2 + $0xe8] sm:$0xf]  ;;  %v10700_v34 = vpop.permute.xlu1 %5723 }
 0x260   :  { %v10682_v52 = vsel %vm6384_vm5, %v6357_v36, %v10341_v61  ;;  %5667 = vrot.lane.b32.xlu1 %v2487_v29, %s8970_s23  ;;  %v3077_v54 = vor.u32 %v3076_v42, %v3073_v44  ;;  %v3836_v24 = vrot.slane %v3834_v46, 5  ;;  %v3841_v13 = vrot.slane %v3839_v0, 4  ;;  %v10694_v15 = vld [vmem:[#allocation2 + $0xe0] sm:$0xf0]  ;;  %v10710_v39 = vld [vmem:[#allocation2 + $0xd0] sm:$0xf0] }
 0x261   :  { %v10687_v38 = vrot.slane %v1600_v21, 3  ;;  %v3573_v28 = vsel %vm2154_vm9, %v3571_v18, %v3572_v50  ;;  %v3844_v20 = vrot.slane %v3842_v58, 5  ;;  %v10696_v61 = vrot.slane %v1603_v37, 4  ;;  %v12978_v18 = vld [vmem:[#allocation52_spill] sm:$0xff]  ;;  %v12979_v46 = vld [vmem:[#allocation53_spill] sm:$0xff] }
 0x262   :  { %v3078_v45 = vsel %vm12827_vm6, %v3069_v8, %v3077_v54  ;;  %v3837_v33 = vor.u32 %v3836_v24, %v3833_v23  ;;  %v2197_v44 = vrot.slane %v10678_v3, 4  ;;  %v2198_v42 = vrot.slane %v10685_v5, 4  ;;  %v10708_v37 = vld [vmem:[#allocation2 + $0xd8] sm:$0xf]  ;;  %v10712_v8 = vpop.permute.xlu0 %6041 }
 0x263   :  { %5729 = vrot.lane.b32.xlu0 %v3078_v45, %s8966_s19  ;;  %v3845_v21 = vor.u32 %v3844_v20, %v3841_v13  ;;  %v533_v50 = vadd.f32 %v10452_v51, %v12978_v18  ;;  %v525_v0 = vadd.f32 %v10452_v51, %v12979_v46  ;;  %v4945_v36 = vrot.slane %v10694_v15, 4  ;;  %v12980_v23 = vld [vmem:[#allocation40_spill] sm:$0xff]  ;;  %v10724_v20 = vld [vmem:[#allocation2 + $0xd0] sm:$0xf0] }
 0x264   :  { %5799 = vrot.lane.b32.xlu1 %v3573_v28, %s8965_s18  ;;  %v4946_v29 = vrot.slane %v10692_v16, 4  ;;  %v6327_v58 = vsel %vm281_vm0, %v10466_v19, %v12980_v23  ;;  %v12981_v54 = vld [vmem:[#allocation56_spill] sm:$0xff]  ;;  %v12982_v28 = vld [vmem:[#allocation17_spill] sm:$0xff]  ;;  %v528_v19 = vadd.f32 %v10452_v51, %v12983_v32  ;;  %v4942_v23 = vrot.slane %v10710_v39, 4 }
 0x265   :  { %v536_v24 = vadd.f32 %v10452_v51, %v12981_v54  ;;  %v10722_v13 = vld [vmem:[#allocation2 + $0xd8] sm:$0xf]  ;;  %v3846_v45 = vsel %vm2283_vm10, %v3837_v33, %v3845_v21  ;;  %v697_v18 = vmax.f32 %v533_v50, 0.0  ;;  %v695_v46 = vmax.f32 %v525_v0, 0.0  ;;  %v10734_v54 = vpop.f32.mrb[16].mxu1 }
 0x266   :  { %v6392_v1 = vsel %vm6384_vm5, %v6327_v58, %v12982_v28  ;;  %12984 = vst [vmem:[#allocation25_spill] sm:$0xff] %v10734_v54  ;;  %v2199_v33 = vsel %vm2154_vm9, %v2197_v44, %v2198_v42  ;;  %v4943_v21 = vrot.slane %v10708_v37, 4  ;;  %v3568_v50 = vrot.slane %v10724_v20, 4  ;;  %v10741_v58 = vld [vmem:[#allocation2 + $0xd8] sm:$0xf] }
 0x267   :  { %v6457_v14 = vsel %vm6449_vm11, %v6392_v1, %v10508_v11  ;;  %v698_v26 = vmax.f32 %v536_v24, 0.0  ;;  %5857 = vrot.lane.b32.xlu0 %v3846_v45, %s8968_s21  ;;  %v3569_v0 = vrot.slane %v10722_v13, 4  ;;  %12985 = vst [vmem:[#allocation23_spill] sm:$0xff] %v10741_v58  ;;  %v10743_v11 = vpop.f32.mrb[17].mxu1  ;;  %v696_v1 = vmax.f32 %v528_v19, 0.0  ;;  %v10752_v45 = vpop.permute.xlu1 %5851 }
 0x268   :  { %12986 = vst [vmem:[#allocation43_spill] sm:$0xff] %v10743_v11  ;;  %5609 = vrot.lane.b32.xlu1 %v2199_v33, %s8963_s12  ;;  %v6522_v44 = vsel %vm6514_vm12, %v6457_v14, %v10327_v6  ;;  %v10750_v42 = vld [vmem:[#allocation2 + $0xd0] sm:$0xf0]  ;;  %v4229_v24 = vld [vmem:[#allocation2 + $0xe0] sm:$0xf8]  ;;  %12987 = vst [vmem:[#allocation38_spill] sm:$0xff] %v10752_v45  ;;  %v10759_v11 = vsel %vm12828_vm3, %v10411_v53, %v10386_v17  ;;  %v4947_v51 = vsel %vm2154_vm9, %v4945_v36, %v4946_v29  ;;  %v10765_v6 = vpop.permute.xlu0 %5661 }
 0x269   :  { %v746_v32 = vpack.c.bf16 %v698_v26, %v697_v18  ;;  %v10754_v28 = vpop.f32.mrb[18].mxu1  ;;  %v4944_v26 = vsel %vm2154_vm9, %v4942_v23, %v4943_v21  ;;  %v6587_v18 = vsel %vm12821_vm15, %v6522_v44, %v10542_v2  ;;  %v1134_v33 = vld [vmem:[#allocation2 + $0x100] sm:$0x8]  ;;  %v745_v45 = vpack.c.bf16 %v696_v1, %v695_v46  ;;  %v1361_v17 = vld [vmem:[#allocation2 + $0x108] sm:$0x10] }
 0x26a   :  { %12988 = vst [vmem:[#allocation29_spill] sm:$0xff] %v10754_v28  ;;  %8715 = vmatmul.mubr.msk.bf16.gmra.mrb[36].mxu1 %vm12826_vm2, %v6587_v18  ;;  %v3570_v53 = vsel %vm2154_vm9, %v3568_v50, %v3569_v0  ;;  %v2194_v36 = vrot.slane %v10750_v42, 4  ;;  %v2195_v29 = vrot.slane %v10741_v58, 4  ;;  %v4474_v23 = vshrl.u32 %v4229_v24, 16  ;;  %v1131_v1 = vld [vmem:[#allocation2 + $0xf0] sm:$0x8] }
 0x26b   :  { %v810_v14 = vrot.slane %v746_v32, 4  ;;  %v987_v19 = vshll.u32 %v746_v32, 16  ;;  %v1230_v54 = vshrl.u32 %v746_v32, 16  ;;  %5989 = vrot.lane.b32.xlu0 %v4947_v51, %s8964_s17  ;;  %vm12989_vm1 = vcmask 31748   ;;  %v2854_v18 = vld [vmem:[#allocation2 + $0xe0] sm:$0xf8] }
 0x26c   :  { %vm12990_vm15 = vcmask 27648   ;;  %v809_v32 = vrot.slane %v745_v45, 4  ;;  %v983_v46 = vshll.u32 %v745_v45, 16  ;;  %5987 = vrot.lane.b32.xlu1 %v4944_v26, %s8964_s17  ;;  %v1227_v51 = vshrl.u32 %v745_v45, 16  ;;  %v10776_v28 = vpop.f32.mrb[19].mxu1 }
 0x26d   :  { %892 = vst.msk [vmem:[#allocation2 + $0x100] sm:$0xf0] %vm12989_vm1, %v810_v14  ;;  %v989_v2 = vrot.slane %v987_v19, 5  ;;  %v1232_v21 = vrot.slane %v1230_v54, 3  ;;  %v2196_v44 = vsel %vm2154_vm9, %v2194_v36, %v2195_v29  ;;  %v4476_v50 = vrot.slane %v4474_v23, 3  ;;  %12991 = vst [vmem:[#allocation20_spill] sm:$0xff] %v10776_v28  ;;  %v10785_v19 = vpop.permute.xlu1 %5911  ;;  %v10792_v29 = vpop.permute.xlu0 %6039 }
 0x26e   :  { %893 = vst.msk [vmem:[#allocation2 + $0x108] sm:$0xf] %vm12990_vm15, %v810_v14  ;;  %v4477_v0 = vshll.u32 %v4229_v24, 16  ;;  %vm12992_vm15 = vmmov %vm12989_vm1  ;;  %vm12993_vm1 = vcmask 27648   ;;  %v985_v54 = vrot.slane %v983_v46, 5  ;;  %v4482_v45 = vshrl.u32 %v10692_v16, 16 }
 0x26f   :  { %v1135_v63 = vsel %vm9069_vm7, %v989_v2, %v1134_v33  ;;  %v1362_v14 = vsel %vm9078_vm8, %v1232_v21, %v1361_v17  ;;  %890 = vst.msk [vmem:[#allocation2 + $0xf0] sm:$0xf0] %vm12992_vm15, %v809_v32  ;;  %v1358_v26 = vld [vmem:[#allocation2 + $0xf8] sm:$0x10]  ;;  %v1229_v24 = vrot.slane %v1227_v51, 3  ;;  %5797 = vrot.lane.b32.xlu0 %v3570_v53, %s8965_s18  ;;  %v4485_v33 = vshll.u32 %v10692_v16, 16 }
 0x270   :  { %891 = vst.msk [vmem:[#allocation2 + $0xf8] sm:$0xf] %vm12993_vm1, %v809_v32  ;;  %1136 = vst [vmem:[#allocation2 + $0x100] sm:$0x8] %v1135_v63  ;;  %v4479_v36 = vrot.slane %v4477_v0, 4  ;;  %v6265_v17 = vsel %vm6255_vm4, %v10444_v43, %v10567_v31  ;;  %v1132_v23 = vsel %vm9069_vm7, %v985_v54, %v1131_v1  ;;  %5607 = vrot.lane.b32.xlu1 %v2196_v44, %s8963_s12  ;;  %v4484_v2 = vrot.slane %v4482_v45, 3 }
 0x271   :  { %1363 = vst [vmem:[#allocation2 + $0x108] sm:$0x10] %v1362_v14  ;;  %v3114_v63 = vshrl.u32 %v2854_v18, 16  ;;  %v3117_v21 = vshll.u32 %v2854_v18, 16  ;;  %v5017_v32 = vld [vmem:[#allocation2 + $0xe8] sm:$0x1f]  ;;  %v1359_v53 = vsel %vm9078_vm8, %v1229_v24, %v1358_v26 }
 0x272   :  { %1133 = vst [vmem:[#allocation2 + $0xf0] sm:$0x8] %v1132_v23  ;;  %v4480_v16 = vor.u32 %v4479_v36, %v4476_v50  ;;  %v4487_v46 = vrot.slane %v4485_v33, 4  ;;  %v3122_v51 = vshrl.u32 %v10662_v55, 16  ;;  %1360 = vst [vmem:[#allocation2 + $0xf8] sm:$0x10] %v1359_v53  ;;  %v10803_v50 = vpop.permute.xlu1 %5659 }
 0x273   :  { %v3116_v43 = vrot.slane %v3114_v63, 3  ;;  %v3119_v31 = vrot.slane %v3117_v21, 4  ;;  %v3125_v0 = vshll.u32 %v10662_v55, 16  ;;  %v5242_v1 = vshrl.u32 %v10694_v15, 16  ;;  %v10807_v55 = vpop.permute.xlu0 %5721  ;;  %v12994_v21 = vld [vmem:[#allocation57_spill] sm:$0xff] }
 0x274   :  { %v4488_v44 = vor.u32 %v4487_v46, %v4484_v2  ;;  %v3124_v14 = vrot.slane %v3122_v51, 3  ;;  %v5245_v18 = vshll.u32 %v10694_v15, 16  ;;  %v5250_v54 = vshrl.u32 %v5017_v32, 16  ;;  %v12996_v15 = vld [vmem:[#allocation48_spill] sm:$0xff]  ;;  %v3641_v51 = vld [vmem:[#allocation2 + $0xe8] sm:$0x1f] }
 0x275   :  { %v3120_v45 = vor.u32 %v3119_v31, %v3116_v43  ;;  %v3127_v23 = vrot.slane %v3125_v0, 4  ;;  %v5244_v28 = vrot.slane %v5242_v1, 4  ;;  %v5253_v26 = vshll.u32 %v5017_v32, 16 }
 0x276   :  { %v4489_v36 = vsel %vm12827_vm6, %v4480_v16, %v4488_v44  ;;  %v5247_v33 = vrot.slane %v5245_v18, 5  ;;  %v5252_v63 = vrot.slane %v5250_v54, 4  ;;  %v10812_v2 = vsel %vm6449_vm11, %v10682_v52, %v12994_v21  ;;  %v13000_v18 = vld [vmem:[#allocation28_spill] sm:$0xff]  ;;  %v13002_v21 = vld [vmem:[#allocation49_spill] sm:$0xff] }
 0x277   :  { %12995 = vst [vmem:[#allocation34_spill] sm:$0xff] %v10812_v2  ;;  %v6289_v53 = vsel %vm6255_vm4, %v10759_v11, %v12996_v15  ;;  %5925 = vrot.lane.b32.xlu0 %v4489_v36, %s8967_s20  ;;  %v3128_v32 = vor.u32 %v3127_v23, %v3124_v14  ;;  %v5255_v46 = vrot.slane %v5253_v26, 5  ;;  %v12997_v16 = vor.u32 %v12977_v7, %v12976_v48  ;;  %v2265_v7 = vld [vmem:[#allocation2 + $0xe8] sm:$0x1f]  ;;  %v10841_v23 = vpop.permute.xlu1 %5791  ;;  %v4233_v2 = vld [vmem:[#allocation2 + $0x100] sm:$0xf8] }
 0x278   :  { %v12998_v43 = vor.u32 %v10696_v61, %v10687_v38  ;;  %v5248_v0 = vor.u32 %v5247_v33, %v5244_v28  ;;  %v6329_v52 = vsel %vm281_vm0, %v6265_v17, %v10365_v62  ;;  %v3882_v1 = vshrl.u32 %v10659_v57, 16  ;;  %13001 = vst [vmem:[#allocation11_spill] sm:$0xff] %v10841_v23 }
 0x279   :  { %vm12999_vm15 = vcmask 31744   ;;  %v3129_v44 = vsel %vm12827_vm6, %v3120_v45, %v3128_v32  ;;  %v5256_v14 = vor.u32 %v5255_v46, %v5252_v63  ;;  %v6394_v48 = vsel %vm6384_vm5, %v6329_v52, %v10587_v49  ;;  %v10844_v49 = vld [vmem:[#allocation2 + $0x80] sm:$0xf8]  ;;  %v10847_v63 = vpop.permute.xlu0 %5849  ;;  %v4227_v46 = vld [vmem:[#allocation2 + $0xd0] sm:$0xf8] }
 0x27a   :  { %v1615_v31 = vsel %vm12827_vm6, %v12998_v43, %v12997_v16  ;;  %v6353_v38 = vsel %vm281_vm0, %v6289_v53, %v13000_v18  ;;  %5735 = vrot.lane.b32.xlu1 %v3129_v44, %s8966_s19  ;;  %v3884_v61 = vrot.slane %v3882_v1, 4  ;;  %v3885_v62 = vshll.u32 %v10659_v57, 16  ;;  %v13004_v1 = vld [vmem:[#allocation31_spill] sm:$0xff] }
 0x27b   :  { %v6111_v11 = vsel %vm12999_vm15, %v1615_v31, %v10354_v47  ;;  %v3890_v28 = vshrl.u32 %v3641_v51, 16  ;;  %v5257_v17 = vsel %vm2283_vm10, %v5248_v0, %v5256_v14  ;;  %v6459_v47 = vsel %vm6449_vm11, %v6394_v48, %v10406_v56 }
 0x27c   :  { %v3893_v54 = vshll.u32 %v3641_v51, 16  ;;  %v2523_v45 = vshrl.u32 %v10678_v3, 16  ;;  %6053 = vrot.lane.b32.xlu0 %v5257_v17, %s8969_s22  ;;  %v3887_v26 = vrot.slane %v3885_v62, 5  ;;  %v2526_v33 = vshll.u32 %v10678_v3, 16 }
 0x27d   :  { %v3892_v36 = vrot.slane %v3890_v28, 4  ;;  %v2531_v57 = vshrl.u32 %v2265_v7, 16  ;;  %v10851_v15 = vsel %vm6384_vm5, %v6353_v38, %v13002_v21  ;;  %v2534_v32 = vshll.u32 %v2265_v7, 16  ;;  %v5016_v38 = vld [vmem:[#allocation2 + $0xd8] sm:$0x1f] }
 0x27e   :  { %13003 = vst [vmem:[#allocation47_spill] sm:$0xff] %v10851_v15  ;;  %v3895_v56 = vrot.slane %v3893_v54, 5  ;;  %v2525_v53 = vrot.slane %v2523_v45, 4  ;;  %v3888_v16 = vor.u32 %v3887_v26, %v3884_v61  ;;  %v2528_v43 = vrot.slane %v2526_v33, 5  ;;  %v10872_v45 = vpop.permute.xlu0 %5981  ;;  %v2264_v21 = vld [vmem:[#allocation2 + $0xd8] sm:$0x1f] }
 0x27f   :  { %v2533_v31 = vrot.slane %v2531_v57, 4  ;;  %v10856_v0 = vsel %vm12828_vm3, %v6111_v11, %v10536_v40  ;;  %v2536_v52 = vrot.slane %v2534_v32, 5  ;;  %v6524_v44 = vsel %vm6514_vm12, %v6459_v47, %v13004_v1  ;;  %v10866_v11 = vpop.permute.xlu1 %5601 }
 0x280   :  { %v3896_v3 = vor.u32 %v3895_v56, %v3892_v36  ;;  %v1651_v14 = vshrl.u32 %v10844_v49, 16  ;;  %v2529_v48 = vor.u32 %v2528_v43, %v2525_v53  ;;  %vm13005_vm1 = vcmask 261120  }
 0x281   :  { %v6589_v7 = vsel %vm13005_vm1, %v6524_v44, %v10462_v22  ;;  %v4457_v18 = vshrl.u32 %v4227_v46, 16  ;;  %v1654_v61 = vshll.u32 %v10844_v49, 16  ;;  %v2537_v28 = vor.u32 %v2536_v52, %v2533_v31  ;;  %v10924_v49 = vld [vmem:[#allocation2 + $0x100] sm:$0xf0]  ;;  %vm13014_vm15 = vmmov %vm13005_vm1 }
 0x282   :  { %v3897_v62 = vsel %vm2283_vm10, %v3888_v16, %v3896_v3  ;;  %8718 = vmatprep.mubr.msk.bf16.mxu1 %vm12826_vm2, %v6589_v7  ;;  %v4460_v40 = vshll.u32 %v4227_v46, 16  ;;  %v4465_v47 = vshrl.u32 %v10708_v37, 16  ;;  %v4468_v54 = vshll.u32 %v10708_v37, 16  ;;  %v2852_v16 = vld [vmem:[#allocation2 + $0xd0] sm:$0xf8] }
 0x283   :  { %5863 = vrot.lane.b32.xlu1 %v3897_v62, %s8968_s21  ;;  %v4459_v17 = vrot.slane %v4457_v18, 3  ;;  %v5225_v22 = vshrl.u32 %v10710_v39, 16  ;;  %v2538_v26 = vsel %vm2283_vm10, %v2529_v48, %v2537_v28  ;;  %v5228_v33 = vshll.u32 %v10710_v39, 16  ;;  %v10879_v28 = vpop.permute.xlu1 %5979 }
 0x284   :  { %v4462_v36 = vrot.slane %v4460_v40, 4  ;;  %v5233_v57 = vshrl.u32 %v5016_v38, 16  ;;  %5673 = vrot.lane.b32.xlu0 %v2538_v26, %s8970_s23  ;;  %v4467_v56 = vrot.slane %v4465_v47, 3  ;;  %v4470_v53 = vrot.slane %v4468_v54, 4  ;;  %v10882_v54 = vpop.permute.xlu0 %5789 }
 0x285   :  { %v5227_v32 = vrot.slane %v5225_v22, 4  ;;  %v5236_v46 = vshll.u32 %v5016_v38, 16  ;;  %v5230_v37 = vrot.slane %v5228_v33, 5  ;;  %v2506_v3 = vshrl.u32 %v10750_v42, 16  ;;  %v10886_v33 = vld [vmem:[#allocation2 + $0x100] sm:$0xf0] }
 0x286   :  { %v4463_v43 = vor.u32 %v4462_v36, %v4459_v17  ;;  %v5235_v31 = vrot.slane %v5233_v57, 4  ;;  %v4471_v52 = vor.u32 %v4470_v53, %v4467_v56  ;;  %v2509_v44 = vshll.u32 %v10750_v42, 16 }
 0x287   :  { %v5238_v1 = vrot.slane %v5236_v46, 5  ;;  %v2514_v48 = vshrl.u32 %v2264_v21, 16  ;;  %v5231_v39 = vor.u32 %v5230_v37, %v5227_v32  ;;  %v2508_v7 = vrot.slane %v2506_v3, 4  ;;  %v10891_v32 = vld [vmem:[#allocation2 + $0x108] sm:$0xf] }
 0x288   :  { %v2517_v18 = vshll.u32 %v2264_v21, 16  ;;  %v3097_v62 = vshrl.u32 %v2852_v16, 16  ;;  %v4472_v40 = vsel %vm12827_vm6, %v4463_v43, %v4471_v52  ;;  %v2511_v47 = vrot.slane %v2509_v44, 5  ;;  %v13006_v46 = vld [vmem:[#allocation46_spill] sm:$0xff]  ;;  %v10899_v3 = vld [vmem:[#allocation2 + $0x70] sm:$0xf8] }
 0x289   :  { %v5239_v38 = vor.u32 %v5238_v1, %v5235_v31  ;;  %v2516_v17 = vrot.slane %v2514_v48, 4  ;;  %5923 = vrot.lane.b32.xlu1 %v4472_v40, %s8967_s20  ;;  %v3100_v36 = vshll.u32 %v2852_v16, 16  ;;  %v3105_v42 = vshrl.u32 %v10722_v13, 16  ;;  %v3640_v52 = vld [vmem:[#allocation2 + $0xd8] sm:$0x1f]  ;;  %v13007_v1 = vld [vmem:[#allocation33_spill] sm:$0xff] }
 0x28a   :  { %v2519_v22 = vrot.slane %v2517_v18, 5  ;;  %v3099_v26 = vrot.slane %v3097_v62, 3  ;;  %v2512_v56 = vor.u32 %v2511_v47, %v2508_v7  ;;  %v3108_v53 = vshll.u32 %v10722_v13, 16 }
 0x28b   :  { %v5240_v21 = vsel %vm2283_vm10, %v5231_v39, %v5239_v38  ;;  %v10896_v43 = vsel %vm12828_vm3, %v10607_v25, %v13006_v46  ;;  %v3102_v37 = vrot.slane %v3100_v36, 4  ;;  %v3107_v31 = vrot.slane %v3105_v42, 3  ;;  %v10909_v39 = vld [vmem:[#allocation2 + $0xf0] sm:$0xf0]  ;;  %v10917_v38 = vld [vmem:[#allocation2 + $0xf8] sm:$0xf] }
 0x28c   :  { %6051 = vrot.lane.b32.xlu0 %v5240_v21, %s8969_s22  ;;  %v2520_v16 = vor.u32 %v2519_v22, %v2516_v17  ;;  %v6267_v44 = vsel %vm6255_vm4, %v10856_v0, %v13007_v1  ;;  %v10906_v13 = vrot.slane %v1651_v14, 3  ;;  %v3110_v48 = vrot.slane %v3108_v53, 4  ;;  %v10919_v0 = vpop.permute.xlu1 %5599 }
 0x28d   :  { %v3577_v25 = vrot.slane %v10886_v33, 4  ;;  %v10913_v7 = vrot.slane %v1654_v61, 4  ;;  %v3103_v62 = vor.u32 %v3102_v37, %v3099_v26  ;;  %v3578_v40 = vrot.slane %v10891_v32, 4  ;;  %v10926_v61 = vpop.permute.xlu0 %5917 }
 0x28e   :  { %v2521_v18 = vsel %vm2283_vm10, %v2512_v56, %v2520_v16  ;;  %v3111_v14 = vor.u32 %v3110_v48, %v3107_v31  ;;  %v3865_v47 = vshrl.u32 %v10724_v20, 16  ;;  %v3868_v17 = vshll.u32 %v10724_v20, 16  ;;  %v10931_v56 = vld [vmem:[#allocation2 + $0x108] sm:$0xf]  ;;  %v10934_v20 = vld [vmem:[#allocation2 + $0xf8] sm:$0xf] }
 0x28f   :  { %5671 = vrot.lane.b32.xlu1 %v2521_v18, %s8970_s23  ;;  %v3873_v22 = vshrl.u32 %v3640_v52, 16  ;;  %v1634_v26 = vshrl.u32 %v10899_v3, 16  ;;  %v3579_v36 = vsel %vm2154_vm9, %v3577_v25, %v3578_v40  ;;  %v3876_v42 = vshll.u32 %v3640_v52, 16  ;;  %v10940_v25 = vld [vmem:[#allocation2 + $0xf0] sm:$0xf0]  ;;  %v13008_v40 = vld [vmem:[#allocation54_spill] sm:$0xff] }
 0x290   :  { %v4948_v21 = vrot.slane %v10909_v39, 4  ;;  %v3112_v53 = vsel %vm12827_vm6, %v3103_v62, %v3111_v14  ;;  %v3867_v46 = vrot.slane %v3865_v47, 4  ;;  %v3870_v16 = vrot.slane %v3868_v17, 5  ;;  %v13009_v62 = vld [vmem:[#allocation55_spill] sm:$0xff]  ;;  %v10954_v18 = vld [vmem:[#allocation2 + $0xf8] sm:$0xf]  ;;  %v10956_v24 = vpop.permute.xlu1 %5727 }
 0x291   :  { %v3875_v37 = vrot.slane %v3873_v22, 4  ;;  %5733 = vrot.lane.b32.xlu0 %v3112_v53, %s8966_s19  ;;  %v3878_v1 = vrot.slane %v3876_v42, 5  ;;  %v4949_v48 = vrot.slane %v10917_v38, 4  ;;  %v4951_v52 = vrot.slane %v10924_v49, 4  ;;  %v10947_v22 = vld [vmem:[#allocation2 + $0xf0] sm:$0xf0]  ;;  %v10962_v15 = vpop.permute.xlu0 %6045 }
 0x292   :  { %v3871_v47 = vor.u32 %v3870_v16, %v3867_v46  ;;  %v4952_v17 = vrot.slane %v10931_v56, 4  ;;  %v2858_v53 = vld [vmem:[#allocation2 + $0x100] sm:$0xf8]  ;;  %v10951_v31 = vrot.slane %v1634_v26, 3  ;;  %v1637_v57 = vshll.u32 %v10899_v3, 16  ;;  %13010 = vst [vmem:[#allocation60_spill] sm:$0xff] %v10956_v24 }
 0x293   :  { %5803 = vrot.lane.b32.xlu1 %v3579_v36, %s8965_s18  ;;  %v3879_v51 = vor.u32 %v3878_v1, %v3875_v37  ;;  %v4950_v36 = vsel %vm2154_vm9, %v4948_v21, %v4949_v48  ;;  %v2200_v16 = vrot.slane %v10940_v25, 4  ;;  %v2201_v14 = vrot.slane %v10934_v20, 4  ;;  %v13011_v3 = vld [vmem:[#allocation59_spill] sm:$0xff]  ;;  %v13012_v48 = vld [vmem:[#allocation21_spill] sm:$0xff]  ;;  %v10980_v24 = vpop.f32.mrb[20].mxu1 }
 0x294   :  { %v4953_v46 = vsel %vm2154_vm9, %v4951_v52, %v4952_v17  ;;  %v3574_v42 = vrot.slane %v10947_v22, 4  ;;  %v6331_v37 = vsel %vm281_vm0, %v6267_v44, %v13011_v3  ;;  %v3148_v1 = vshrl.u32 %v2858_v53, 16  ;;  %13013 = vst [vmem:[#allocation19_spill] sm:$0xff] %v10980_v24 }
 0x295   :  { %v3880_v26 = vsel %vm2283_vm10, %v3871_v47, %v3879_v51  ;;  %v3575_v21 = vrot.slane %v10954_v18, 4  ;;  %v6396_v52 = vsel %vm6384_vm5, %v6331_v37, %v13012_v48  ;;  %v3151_v17 = vshll.u32 %v2858_v53, 16 }
 0x296   :  { %5861 = vrot.lane.b32.xlu0 %v3880_v26, %s8968_s21  ;;  %v3156_v58 = vshrl.u32 %v10891_v32, 16  ;;  %v2202_v51 = vsel %vm2154_vm9, %v2200_v16, %v2201_v14  ;;  %v6461_v47 = vsel %vm6449_vm11, %v6396_v52, %v10785_v19  ;;  %v3150_v44 = vrot.slane %v3148_v1, 3  ;;  %v10985_v16 = vpop.permute.xlu1 %5855  ;;  %v10987_v19 = vpop.f32.mrb[21].mxu1  ;;  %v3643_v52 = vld [vmem:[#allocation2 + $0x108] sm:$0x1f] }
 0x297   :  { %5991 = vrot.lane.b32.xlu1 %v4950_v36, %s8964_s17  ;;  %v3159_v3 = vshll.u32 %v10891_v32, 16  ;;  %v6526_v26 = vsel %vm6514_vm12, %v6461_v47, %v10643_v9  ;;  %v3153_v36 = vrot.slane %v3151_v17, 4  ;;  %v4508_v23 = vshrl.u32 %v4233_v2, 16  ;;  %13015 = vst [vmem:[#allocation16_spill] sm:$0xff] %v10987_v19 }
 0x298   :  { %v3158_v5 = vrot.slane %v3156_v58, 3  ;;  %v6591_v53 = vsel %vm13014_vm15, %v6526_v26, %v10792_v29  ;;  %v4511_v48 = vshll.u32 %v4233_v2, 16  ;;  %v4516_v14 = vshrl.u32 %v10931_v56, 16  ;;  %v10994_v29 = vpop.permute.xlu0 %5665  ;;  %v10996_v2 = vpop.f32.mrb[22].mxu1 }
 0x299   :  { %v3161_v37 = vrot.slane %v3159_v3, 4  ;;  %v10989_v32 = vrot.slane %v1637_v57, 4  ;;  %v3154_v9 = vor.u32 %v3153_v36, %v3150_v44  ;;  %v4510_v58 = vrot.slane %v4508_v23, 3  ;;  %13016 = vst [vmem:[#allocation9_spill] sm:$0xff] %v10996_v2  ;;  %8719 = vmatmul.mubr.msk.bf16.gmra.mrb[40].mxu1 %vm12826_vm2, %v6591_v53 }
 0x29a   :  { %5993 = vrot.lane.b32.xlu0 %v4953_v46, %s8964_s17  ;;  %v4519_v1 = vshll.u32 %v10931_v56, 16  ;;  %v3576_v17 = vsel %vm2154_vm9, %v3574_v42, %v3575_v21  ;;  %v4513_v3 = vrot.slane %v4511_v48, 4  ;;  %v4518_v26 = vrot.slane %v4516_v14, 3 }
 0x29b   :  { %5611 = vrot.lane.b32.xlu1 %v2202_v51, %s8963_s12  ;;  %v3162_v47 = vor.u32 %v3161_v37, %v3158_v5  ;;  %v6269_v46 = vsel %vm6255_vm4, %v10896_v43, %v10807_v55  ;;  %v3916_v23 = vshrl.u32 %v10886_v33, 16  ;;  %v3919_v56 = vshll.u32 %v10886_v33, 16  ;;  %v5019_v51 = vld [vmem:[#allocation2 + $0x108] sm:$0x1f]  ;;  %v11006_v5 = vpop.f32.mrb[23].mxu1 }
 0x29c   :  { %v4521_v57 = vrot.slane %v4519_v1, 4  ;;  %v4514_v36 = vor.u32 %v4513_v3, %v4510_v58  ;;  %v3924_v2 = vshrl.u32 %v3643_v52, 16  ;;  %v3927_v42 = vshll.u32 %v3643_v52, 16  ;;  %13017 = vst [vmem:[#allocation50_spill] sm:$0xff] %v11006_v5  ;;  %v11012_v58 = vpop.permute.xlu1 %5915  ;;  %v11015_v3 = vpop.permute.xlu0 %6043 }
 0x29d   :  { %v3163_v44 = vsel %vm12827_vm6, %v3154_v9, %v3162_v47  ;;  %v3918_v53 = vrot.slane %v3916_v23, 4  ;;  %v3921_v37 = vrot.slane %v3919_v56, 5  ;;  %v5276_v55 = vshrl.u32 %v10924_v49, 16  ;;  %v4231_v9 = vld [vmem:[#allocation2 + $0xf0] sm:$0xf8] }
 0x29e   :  { %5801 = vrot.lane.b32.xlu0 %v3576_v17, %s8965_s18  ;;  %v4522_v21 = vor.u32 %v4521_v57, %v4518_v26  ;;  %v3926_v43 = vrot.slane %v3924_v2, 4  ;;  %v3929_v48 = vrot.slane %v3927_v42, 5  ;;  %v5279_v33 = vshll.u32 %v10924_v49, 16 }
 0x29f   :  { %5739 = vrot.lane.b32.xlu1 %v3163_v44, %s8966_s19  ;;  %v5284_v14 = vshrl.u32 %v5019_v51, 16  ;;  %v3922_v52 = vor.u32 %v3921_v37, %v3918_v53  ;;  %v5278_v47 = vrot.slane %v5276_v55, 4  ;;  %v5287_v17 = vshll.u32 %v5019_v51, 16 }
 0x2a0   :  { %v4523_v1 = vsel %vm12827_vm6, %v4514_v36, %v4522_v21  ;;  %v3930_v26 = vor.u32 %v3929_v48, %v3926_v43  ;;  %v5281_v57 = vrot.slane %v5279_v33, 5  ;;  %v6333_v2 = vsel %vm281_vm0, %v6269_v46, %v10651_v27  ;;  %v5018_v36 = vld [vmem:[#allocation2 + $0xf8] sm:$0x1f] }
 0x2a1   :  { %v5286_v23 = vrot.slane %v5284_v14, 4  ;;  %v5289_v49 = vrot.slane %v5287_v17, 5  ;;  %v6398_v56 = vsel %vm6384_vm5, %v6333_v2, %v10847_v63  ;;  %v4491_v44 = vshrl.u32 %v4231_v9, 16  ;;  %v11033_v17 = vpop.permute.xlu0 %5725 }
 0x2a2   :  { %5929 = vrot.lane.b32.xlu0 %v4523_v1, %s8967_s20  ;;  %v4494_v42 = vshll.u32 %v4231_v9, 16  ;;  %v3931_v21 = vsel %vm2283_vm10, %v3922_v52, %v3930_v26  ;;  %v5282_v51 = vor.u32 %v5281_v57, %v5278_v47  ;;  %v6463_v53 = vsel %vm6449_vm11, %v6398_v56, %v10672_v30  ;;  %v11030_v9 = vpop.permute.xlu1 %5663  ;;  %v13021_v56 = vld [vmem:[#allocation45_spill] sm:$0xff] }
 0x2a3   :  { %v4499_v37 = vshrl.u32 %v10917_v38, 16  ;;  %5867 = vrot.lane.b32.xlu1 %v3931_v21, %s8968_s21  ;;  %v5290_v27 = vor.u32 %v5289_v49, %v5286_v23  ;;  %v4493_v46 = vrot.slane %v4491_v44, 3  ;;  %v4502_v43 = vshll.u32 %v10917_v38, 16  ;;  %v13023_v21 = vld [vmem:[#allocation62_spill] sm:$0xff] }
 0x2a4   :  { %v4496_v55 = vrot.slane %v4494_v42, 4  ;;  %v5259_v63 = vshrl.u32 %v10909_v39, 16  ;;  %v5262_v33 = vshll.u32 %v10909_v39, 16  ;;  %v5267_v14 = vshrl.u32 %v5018_v36, 16 }
 0x2a5   :  { %v4501_v48 = vrot.slane %v4499_v37, 3  ;;  %v5291_v1 = vsel %vm2283_vm10, %v5282_v51, %v5290_v27  ;;  %v4504_v52 = vrot.slane %v4502_v43, 4  ;;  %v5270_v47 = vshll.u32 %v5018_v36, 16  ;;  %v2856_v27 = vld [vmem:[#allocation2 + $0xf0] sm:$0xf8] }
 0x2a6   :  { %v4497_v30 = vor.u32 %v4496_v55, %v4493_v46  ;;  %v13018_v26 = vor.u32 %v13009_v62, %v13008_v40  ;;  %v13019_v38 = vor.u32 %v10913_v7, %v10906_v13  ;;  %6057 = vrot.lane.b32.xlu0 %v5291_v1, %s8969_s22  ;;  %v5261_v39 = vrot.slane %v5259_v63, 4  ;;  %v2266_v40 = vld [vmem:[#allocation2 + $0xf8] sm:$0x1f]  ;;  %v13022_v62 = vld [vmem:[#allocation61_spill] sm:$0xff]  ;;  %v11061_v63 = vpop.permute.xlu1 %5795 }
 0x2a7   :  { %v5264_v23 = vrot.slane %v5262_v33, 5  ;;  %v5269_v2 = vrot.slane %v5267_v14, 4  ;;  %vm13020_vm1 = vcmask 31744   ;;  %v6359_v44 = vsel %vm281_vm0, %v10622_v41, %v13021_v56  ;;  %13024 = vst [vmem:[#allocation52_spill] sm:$0xff] %v11061_v63  ;;  %v13025_v33 = vld [vmem:[#allocation51_spill] sm:$0xff] }
 0x2a8   :  { %v1666_v57 = vsel %vm12827_vm6, %v13019_v38, %v13018_v26  ;;  %v4505_v42 = vor.u32 %v4504_v52, %v4501_v48  ;;  %v5272_v36 = vrot.slane %v5270_v47, 5  ;;  %v1648_v13 = vor.u32 %v13023_v21, %v13022_v62  ;;  %v11083_v62 = vld [vmem:[%s12793_s4] ss:$0 sm:$0xff]  ;;  %v13027_v21 = vld [vmem:[#allocation30_spill] sm:$0xff] }
 0x2a9   :  { %v6120_v49 = vsel %vm13020_vm1, %v1666_v57, %v10585_v59  ;;  %v5265_v7 = vor.u32 %v5264_v23, %v5261_v39  ;;  %v6528_v51 = vsel %vm6514_vm12, %v6463_v53, %v10618_v12  ;;  %v2540_v37 = vshrl.u32 %v10940_v25, 16 }
 0x2aa   :  { %v1640_v59 = vor.u32 %v10989_v32, %v10951_v31  ;;  %v4506_v46 = vsel %vm12827_vm6, %v4497_v30, %v4505_v42  ;;  %v5273_v55 = vor.u32 %v5272_v36, %v5269_v2  ;;  %v6593_v41 = vsel %vm13014_vm15, %v6528_v51, %v10712_v8  ;;  %v11068_v8 = vpop.permute.xlu0 %5853  ;;  %v11078_v2 = vld [vmem:[#allocation2 + $0xa0] sm:$0xf8] }
 0x2ab   :  { %5927 = vrot.lane.b32.xlu1 %v4506_v46, %s8967_s20  ;;  %8722 = vmatprep.mubr.msk.bf16.mxu1 %vm12826_vm2, %v6593_v41  ;;  %v2542_v43 = vrot.slane %v2540_v37, 4  ;;  %v2543_v48 = vshll.u32 %v10940_v25, 16  ;;  %v2548_v12 = vshrl.u32 %v2266_v40, 16  ;;  %v2551_v53 = vshll.u32 %v2266_v40, 16  ;;  %v11091_v51 = vld [vmem:[#allocation2 + $0x160] sm:$0xf0] }
 0x2ac   :  { %v11065_v31 = vsel %vm6384_vm5, %v6359_v44, %v13025_v33  ;;  %v5274_v32 = vsel %vm2283_vm10, %v5265_v7, %v5273_v55  ;;  %v3131_v14 = vshrl.u32 %v2856_v27, 16  ;;  %v3134_v1 = vshll.u32 %v2856_v27, 16  ;;  %v13030_v55 = vld [vmem:[#allocation36_spill] sm:$0xff] }
 0x2ad   :  { %13026 = vst [vmem:[#allocation53_spill] sm:$0xff] %v11065_v31  ;;  %6055 = vrot.lane.b32.xlu0 %v5274_v32, %s8969_s22  ;;  %v2545_v30 = vrot.slane %v2543_v48, 5  ;;  %v2550_v52 = vrot.slane %v2548_v12, 4  ;;  %v2553_v47 = vrot.slane %v2551_v53, 5  ;;  %v3139_v25 = vshrl.u32 %v10954_v18, 16  ;;  %v11102_v48 = vpop.permute.xlu1 %5605 }
 0x2ae   :  { %v1649_v26 = vsel %vm12827_vm6, %v1640_v59, %v1648_v13  ;;  %v3133_v38 = vrot.slane %v3131_v14, 3  ;;  %v3136_v57 = vrot.slane %v3134_v1, 4  ;;  %v3142_v39 = vshll.u32 %v10954_v18, 16  ;;  %v13028_v18 = vld [vmem:[#allocation41_spill] sm:$0xff]  ;;  %v13029_v59 = vld [vmem:[#allocation44_spill] sm:$0xff]  ;;  %13031 = vst [vmem:[#allocation40_spill] sm:$0xff] %v11102_v48 }
 0x2af   :  { %v11076_v23 = vsel %vm13020_vm1, %v1649_v26, %v10668_v35  ;;  %v2546_v56 = vor.u32 %v2545_v30, %v2542_v43  ;;  %v2554_v44 = vor.u32 %v2553_v47, %v2550_v52  ;;  %v3141_v42 = vrot.slane %v3139_v25, 3  ;;  %v11089_v35 = vld [vmem:[#allocation2 + $0x168] sm:$0xf]  ;;  %v3642_v43 = vld [vmem:[#allocation2 + $0xf8] sm:$0x1f] }
 0x2b0   :  { %v3137_v36 = vor.u32 %v3136_v57, %v3133_v38  ;;  %v3144_v40 = vrot.slane %v3142_v39, 4  ;;  %v597_v13 = vadd.f32 %v11083_v62, %v13027_v21  ;;  %v589_v7 = vadd.f32 %v11083_v62, %v13028_v18  ;;  %v1468_v18 = vld [vmem:[#allocation2 + $0x90] sm:$0xf8] }
 0x2b1   :  { %v11095_v37 = vsel %vm12828_vm3, %v6120_v49, %v10765_v6  ;;  %v2555_v27 = vsel %vm2283_vm10, %v2546_v56, %v2554_v44  ;;  %v600_v46 = vadd.f32 %v11083_v62, %v13029_v59  ;;  %v592_v41 = vadd.f32 %v11083_v62, %v13030_v55  ;;  %v11106_v6 = vpop.permute.xlu0 %5985  ;;  %v1382_v55 = vld [vmem:[#allocation2 + $0x198] sm:$0x10] }
 0x2b2   :  { %v1685_v12 = vshrl.u32 %v11078_v2, 16  ;;  %5675 = vrot.lane.b32.xlu1 %v2555_v27, %s8970_s23  ;;  %v3145_v53 = vor.u32 %v3144_v40, %v3141_v42  ;;  %v713_v33 = vmax.f32 %v597_v13, 0.0  ;;  %v711_v32 = vmax.f32 %v589_v7, 0.0  ;;  %13032 = vst [vmem:[#allocation56_spill] sm:$0xff] %v11106_v6  ;;  %v1158_v42 = vld [vmem:[#allocation2 + $0x1a0] sm:$0x8] }
 0x2b3   :  { %v714_v49 = vmax.f32 %v600_v46, 0.0  ;;  %v712_v14 = vmax.f32 %v592_v41, 0.0  ;;  %v2215_v1 = vrot.slane %v11091_v51, 4  ;;  %v2216_v30 = vrot.slane %v11089_v35, 4  ;;  %v1385_v40 = vld [vmem:[#allocation2 + $0x1a8] sm:$0x10]  ;;  %v11117_v41 = vpop.permute.xlu1 %5983 }
 0x2b4   :  { %v3146_v52 = vsel %vm12827_vm6, %v3137_v36, %v3145_v53  ;;  %v3899_v47 = vshrl.u32 %v10947_v22, 16  ;;  %v3902_v25 = vshll.u32 %v10947_v22, 16  ;;  %v3907_v26 = vshrl.u32 %v3642_v43, 16  ;;  %v1155_v46 = vld [vmem:[#allocation2 + $0x190] sm:$0x8] }
 0x2b5   :  { %5737 = vrot.lane.b32.xlu0 %v3146_v52, %s8966_s19  ;;  %v754_v38 = vpack.c.bf16 %v714_v49, %v713_v33  ;;  %v753_v57 = vpack.c.bf16 %v712_v14, %v711_v32  ;;  %v2217_v39 = vsel %vm2154_vm9, %v2215_v1, %v2216_v30  ;;  %v3910_v56 = vshll.u32 %v3642_v43, 16  ;;  %v1438_v32 = vld [vmem:[#allocation2 + $0x110] sm:$0xf8]  ;;  %v11119_v49 = vpop.permute.xlu0 %5793  ;;  %v1433_v14 = vld [vmem:[#allocation2 + $0x100] sm:$0xf8] }
 0x2b6   :  { %v1688_v44 = vshll.u32 %v11078_v2, 16  ;;  %5621 = vrot.lane.b32.xlu1 %v2217_v39, %s8963_s12  ;;  %v3901_v21 = vrot.slane %v3899_v47, 4  ;;  %v3904_v36 = vrot.slane %v3902_v25, 5  ;;  %v3909_v13 = vrot.slane %v3907_v26, 4  ;;  %v1434_v25 = vld [vmem:[#allocation2 + $0x108] sm:$0x1f] }
 0x2b7   :  { %v818_v7 = vrot.slane %v754_v38, 4  ;;  %v1019_v22 = vshll.u32 %v754_v38, 16  ;;  %v1254_v27 = vshrl.u32 %v754_v38, 16  ;;  %v817_v59 = vrot.slane %v753_v57, 4 }
 0x2b8   :  { %v1015_v53 = vshll.u32 %v753_v57, 16  ;;  %v1251_v43 = vshrl.u32 %v753_v57, 16  ;;  %v3905_v33 = vor.u32 %v3904_v36, %v3901_v21  ;;  %v3912_v2 = vrot.slane %v3910_v56, 5  ;;  %v1441_v56 = vld [vmem:[#allocation2 + $0x118] sm:$0x1f] }
 0x2b9   :  { %vm13033_vm15 = vcmask 31748   ;;  %vm13034_vm1 = vcmask 27648   ;;  %v1021_v1 = vrot.slane %v1019_v22, 5  ;;  %v1256_v30 = vrot.slane %v1254_v27, 3 }
 0x2ba   :  { %908 = vst.msk [vmem:[#allocation2 + $0x1a0] sm:$0xf0] %vm13033_vm15, %v818_v7  ;;  %vm13035_vm2 = vmmov %vm13033_vm15  ;;  %v1668_v52 = vshrl.u32 %v1468_v18, 16  ;;  %v1671_v47 = vshll.u32 %v1468_v18, 16  ;;  %v6206_v26 = vsel %vm12828_vm3, %v11076_v23, %v10803_v50  ;;  %v1017_v38 = vrot.slane %v1015_v53, 5 }
 0x2bb   :  { %909 = vst.msk [vmem:[#allocation2 + $0x1a8] sm:$0xf] %vm13034_vm1, %v818_v7  ;;  %vm13036_vm6 = vmmov %vm13034_vm1  ;;  %v1253_v57 = vrot.slane %v1251_v43, 3  ;;  %v3913_v39 = vor.u32 %v3912_v2, %v3909_v13  ;;  %v11128_v21 = vrot.slane %v1685_v12, 3  ;;  %v11130_v36 = vrot.slane %v1688_v44, 4 }
 0x2bc   :  { %906 = vst.msk [vmem:[#allocation2 + $0x190] sm:$0xf0] %vm13035_vm2, %v817_v59  ;;  %v1159_v7 = vsel %vm9069_vm7, %v1021_v1, %v1158_v42  ;;  %v1386_v22 = vsel %vm9078_vm8, %v1256_v30, %v1385_v40  ;;  %v5023_v18 = vld [vmem:[#allocation2 + $0x168] sm:$0x1f]  ;;  %v1156_v50 = vsel %vm9069_vm7, %v1017_v38, %v1155_v46  ;;  %v1439_v44 = vsel %vm9423_vm13, %v1433_v14, %v1438_v32  ;;  %v8895_v46 = vld [vmem:[#allocation2 + $0x160] sm:$0xf0]  ;;  %v11153_v14 = vpop.permute.xlu0 %5921 }
 0x2bd   :  { %907 = vst.msk [vmem:[#allocation2 + $0x198] sm:$0xf] %vm13036_vm6, %v817_v59  ;;  %1160 = vst [vmem:[#allocation2 + $0x1a0] sm:$0x8] %v1159_v7  ;;  %v1383_v23 = vsel %vm9078_vm8, %v1253_v57, %v1382_v55  ;;  %v3914_v12 = vsel %vm2283_vm10, %v3905_v33, %v3913_v39  ;;  %v11144_v42 = vrot.slane %v1668_v52, 3  ;;  %v11146_v40 = vrot.slane %v1671_v47, 4  ;;  %v11150_v55 = vpop.permute.xlu1 %5603 }
 0x2be   :  { %1387 = vst [vmem:[#allocation2 + $0x1a8] sm:$0x10] %v1386_v22  ;;  %1157 = vst [vmem:[#allocation2 + $0x190] sm:$0x8] %v1156_v50  ;;  %5865 = vrot.lane.b32.xlu0 %v3914_v12, %s8968_s21  ;;  %v1442_v59 = vsel %vm9449_vm14, %v1434_v25, %v1441_v56  ;;  %v5344_v53 = vshrl.u32 %v8895_v46, 16  ;;  %v5347_v33 = vshll.u32 %v8895_v46, 16  ;;  %v6271_v1 = vsel %vm6255_vm4, %v6206_v26, %v10700_v34 }
 0x2bf   :  { %1384 = vst [vmem:[#allocation2 + $0x198] sm:$0x10] %v1383_v23  ;;  %1440 = vst [vmem:[#allocation2 + $0x110] sm:$0xf8] %v1439_v44  ;;  %v5352_v2 = vshrl.u32 %v5023_v18, 16  ;;  %v5355_v32 = vshll.u32 %v5023_v18, 16 }
 0x2c0   :  { %13039 = vst [vmem:[#allocation17_spill] sm:$0xff] %v11150_v55  ;;  %1443 = vst [vmem:[#allocation2 + $0x118] sm:$0x1f] %v1442_v59  ;;  %v13040_v52 = vld [vmem:[#allocation32_spill] sm:$0xff]  ;;  %v13041_v47 = vld [vmem:[#allocation26_spill] sm:$0xff]  ;;  %v5346_v38 = vrot.slane %v5344_v53, 4 }
 0x2c1   :  { %v11161_v57 = vld [vmem:[#allocation2 + $0x178] sm:$0xf]  ;;  %v5349_v18 = vrot.slane %v5347_v33, 5  ;;  %v5354_v50 = vrot.slane %v5352_v2, 4  ;;  %v5357_v23 = vrot.slane %v5355_v32, 5  ;;  %v11181_v34 = vpop.permute.xlu1 %5731  ;;  %v13048_v55 = vld [vmem:[#allocation38_spill] sm:$0xff] }
 0x2c2   :  { %v5024_v39 = vld [vmem:[#allocation2 + $0x178] sm:$0x1f]  ;;  %v11167_v12 = vld [vmem:[#allocation2 + $0x170] sm:$0xf0]  ;;  %13045 = vst [vmem:[#allocation58_spill] sm:$0xff] %v11181_v34  ;;  %vm13050_vm6 = vcmask 261120  }
 0x2c3   :  { %v13042_v56 = vld [vmem:[#allocation24_spill] sm:$0xff]  ;;  %v8896_v59 = vld [vmem:[#allocation2 + $0x170] sm:$0xf0]  ;;  %v5350_v43 = vor.u32 %v5349_v18, %v5346_v38  ;;  %v5358_v30 = vor.u32 %v5357_v23, %v5354_v50  ;;  %v5369_v25 = vshrl.u32 %v5024_v39, 16  ;;  %v13046_v18 = vld [vmem:[#allocation37_spill] sm:$0xff]  ;;  %v11190_v50 = vpop.permute.xlu0 %6049  ;;  %vm13051_vm15 = vcmask 293888  }
 0x2c4   :  { %v13043_v7 = vshrl.u32 %v13042_v56, 16  ;;  %v13044_v26 = vshll.u32 %v13042_v56, 16  ;;  %v5361_v46 = vshrl.u32 %v8896_v59, 16  ;;  %v5364_v53 = vshll.u32 %v8896_v59, 16  ;;  %13047 = vst [vmem:[#allocation57_spill] sm:$0xff] %v11190_v50  ;;  %v11194_v50 = vpop.f32.mrb[24].mxu1 }
 0x2c5   :  { %v11184_v63 = vrot.slane %v5369_v25, 4  ;;  %vm13049_vm2 = vsmask.f32 4352 }
 0x2c6   :  { %v11165_v22 = vrot.slane %v13043_v7, 3  ;;  %v11173_v44 = vrot.slane %v13044_v26, 4  ;;  %v5372_v7 = vshll.u32 %v5024_v39, 16  ;;  %v11177_v32 = vrot.slane %v5361_v46, 4  ;;  %v4828_v56 = vld [vmem:[#allocation2 + $0x110] sm:$0xf0]  ;;  %vm13056_vm1 = vmmov %vm13049_vm2 }
 0x2c7   :  { %v11179_v13 = vrot.slane %v5364_v53, 5  ;;  %v5359_v26 = vsel %vm2283_vm10, %v5350_v43, %v5358_v30  ;;  %v4235_v27 = vld [vmem:[#allocation2 + $0x110] sm:$0xf8]  ;;  %v6335_v39 = vsel %vm281_vm0, %v6271_v1, %v13046_v18  ;;  %v4236_v23 = vld [vmem:[#allocation2 + $0x118] sm:$0xf]  ;;  %v4954_v59 = vrot.slane %v4828_v56, 4 }
 0x2c8   :  { %v11186_v38 = vrot.slane %v5372_v7, 5  ;;  %6065 = vrot.lane.b32.xlu0 %v5359_v26, %s8969_s22  ;;  %v4525_v46 = vshrl.u32 %v4235_v27, 16  ;;  %v4528_v53 = vshll.u32 %v4235_v27, 16  ;;  %v5293_v33 = vshrl.u32 %v4828_v56, 16  ;;  %v5020_v30 = vld [vmem:[#allocation2 + $0x118] sm:$0x1f] }
 0x2c9   :  { %v4955_v2 = vrot.slane %v4236_v23, 4  ;;  %v4533_v34 = vshrl.u32 %v4236_v23, 16  ;;  %v4536_v43 = vshll.u32 %v4236_v23, 16  ;;  %v5296_v25 = vshll.u32 %v4828_v56, 16  ;;  %v2272_v56 = vld [vmem:[#allocation2 + $0x178] sm:$0x1f] }
 0x2ca   :  { %v4527_v48 = vrot.slane %v4525_v46, 3  ;;  %v4530_v7 = vrot.slane %v4528_v53, 4  ;;  %v5295_v31 = vrot.slane %v5293_v33, 4  ;;  %v5301_v5 = vshrl.u32 %v5020_v30, 16  ;;  %v11199_v46 = vpop.permute.xlu1 %5859 }
 0x2cb   :  { %v4956_v1 = vsel %vm2154_vm9, %v4954_v59, %v4955_v2  ;;  %v4535_v18 = vrot.slane %v4533_v34, 3  ;;  %v4538_v19 = vrot.slane %v4536_v43, 4  ;;  %v5298_v24 = vrot.slane %v5296_v25, 5  ;;  %v11205_v59 = vpop.permute.xlu0 %5669 }
 0x2cc   :  { %5995 = vrot.lane.b32.xlu1 %v4956_v1, %s8964_s17  ;;  %v4531_v27 = vor.u32 %v4530_v7, %v4527_v48  ;;  %v5303_v26 = vrot.slane %v5301_v5, 4  ;;  %v5304_v6 = vshll.u32 %v5020_v30, 16  ;;  %v6400_v23 = vsel %vm6384_vm5, %v6335_v39, %v13048_v55  ;;  %v2271_v39 = vld [vmem:[#allocation2 + $0x168] sm:$0x1f]  ;;  %v11211_v30 = vpop.f32.mrb[25].mxu1 }
 0x2cd   :  { %v4539_v33 = vor.u32 %v4538_v19, %v4535_v18  ;;  %v5299_v53 = vor.u32 %v5298_v24, %v5295_v31  ;;  %v5367_v34 = vor.u32 %v11179_v13, %v11177_v32  ;;  %v6465_v2 = vsel %vm6449_vm11, %v6400_v23, %v11012_v58 }
 0x2ce   :  { %v5306_v43 = vrot.slane %v5304_v6, 5  ;;  %v6530_v5 = vsel %vm6514_vm12, %v6465_v2, %v10879_v28  ;;  %v2642_v48 = vshrl.u32 %v11167_v12, 16  ;;  %v2645_v55 = vshll.u32 %v11167_v12, 16  ;;  %v11218_v6 = vpop.f32.mrb[26].mxu1  ;;  %v2870_v2 = vld [vmem:[#allocation2 + $0x180] sm:$0xf8] }
 0x2cf   :  { %v4540_v24 = vsel %vm13049_vm2, %v4531_v27, %v4539_v33  ;;  %v5375_v19 = vor.u32 %v11186_v38, %v11184_v63  ;;  %v6595_v58 = vsel %vm13050_vm6, %v6530_v5, %v11015_v3  ;;  %v2650_v31 = vshrl.u32 %v2272_v56, 16  ;;  %v11222_v7 = vpop.f32.mrb[27].mxu1  ;;  %vm13057_vm2 = vmmov %vm13056_vm1 }
 0x2d0   :  { %5931 = vrot.lane.b32.xlu1 %v4540_v24, %s8967_s20  ;;  %v5307_v28 = vor.u32 %v5306_v43, %v5303_v26  ;;  %v2644_v13 = vrot.slane %v2642_v48, 4  ;;  %v2647_v32 = vrot.slane %v2645_v55, 5  ;;  %v2653_v25 = vshll.u32 %v2272_v56, 16  ;;  %8723 = vmatmul.mubr.msk.bf16.gmra.mrb[44].mxu1 %vm13051_vm15, %v6595_v58  ;;  %v11227_v26 = vld [vmem:[#allocation2 + $0x188] sm:$0xf]  ;;  %v11229_v43 = vpop.permute.xlu1 %5919  ;;  %v11237_v58 = vpop.permute.xlu0 %6047  ;;  %vm13060_vm15 = vmmov %vm13056_vm1 }
 0x2d1   :  { %v2652_v1 = vrot.slane %v2650_v31, 4  ;;  %v2625_v18 = vshrl.u32 %v11091_v51, 16  ;;  %v2628_v63 = vshll.u32 %v11091_v51, 16  ;;  %v2633_v38 = vshrl.u32 %v2271_v39, 16 }
 0x2d2   :  { %v5308_v3 = vsel %vm2283_vm10, %v5299_v53, %v5307_v28  ;;  %v2648_v27 = vor.u32 %v2647_v32, %v2644_v13  ;;  %v2655_v23 = vrot.slane %v2653_v25, 5  ;;  %v2636_v33 = vshll.u32 %v2271_v39, 16  ;;  %v2868_v53 = vld [vmem:[#allocation2 + $0x170] sm:$0xf8] }
 0x2d3   :  { %6059 = vrot.lane.b32.xlu0 %v5308_v3, %s8969_s22  ;;  %v13052_v56 = vrot.slane %v11161_v57, 4  ;;  %v13053_v5 = vrot.slane %v11167_v12, 4  ;;  %v2627_v51 = vrot.slane %v2625_v18, 4  ;;  %v2630_v55 = vrot.slane %v2628_v63, 5  ;;  %v11245_v18 = vld [vmem:[#allocation2 + $0x178] sm:$0xf] }
 0x2d4   :  { %v2635_v24 = vrot.slane %v2633_v38, 4  ;;  %v5376_v39 = vsel %vm2283_vm10, %v5367_v34, %v5375_v19  ;;  %v2656_v31 = vor.u32 %v2655_v23, %v2652_v1  ;;  %v2638_v28 = vrot.slane %v2636_v33, 5 }
 0x2d5   :  { %v2220_v48 = vsel %vm2154_vm9, %v13053_v5, %v13052_v56  ;;  %v6273_v57 = vsel %vm6255_vm4, %v11095_v37, %v11033_v17  ;;  %v2631_v13 = vor.u32 %v2630_v55, %v2627_v51  ;;  %v3250_v12 = vshrl.u32 %v2870_v2, 16 }
 0x2d6   :  { %5623 = vrot.lane.b32.xlu1 %v2220_v48, %s8963_s12  ;;  %v3253_v32 = vshll.u32 %v2870_v2, 16  ;;  %v3258_v25 = vshrl.u32 %v11227_v26, 16  ;;  %v2657_v63 = vsel %vm2283_vm10, %v2648_v27, %v2656_v31  ;;  %v2639_v38 = vor.u32 %v2638_v28, %v2635_v24  ;;  %v11254_v27 = vpop.permute.xlu1 %5667  ;;  %v3457_v24 = vld [vmem:[#allocation2 + $0x180] sm:$0xf0] }
 0x2d7   :  { %v3261_v3 = vshll.u32 %v11227_v26, 16  ;;  %v3233_v56 = vshrl.u32 %v2868_v53, 16  ;;  %6067 = vrot.lane.b32.xlu0 %v5376_v39, %s8969_s22  ;;  %v3252_v34 = vrot.slane %v3250_v12, 3  ;;  %v3236_v23 = vshll.u32 %v2868_v53, 16  ;;  %v11259_v53 = vpop.permute.xlu0 %5729 }
 0x2d8   :  { %v3255_v19 = vrot.slane %v3253_v32, 4  ;;  %v3260_v1 = vrot.slane %v3258_v25, 3  ;;  %v1682_v17 = vor.u32 %v11173_v44, %v11165_v22  ;;  %v3241_v2 = vshrl.u32 %v11245_v18, 16 }
 0x2d9   :  { %v3263_v37 = vrot.slane %v3261_v3, 4  ;;  %v3235_v33 = vrot.slane %v3233_v56, 3  ;;  %v3238_v48 = vrot.slane %v3236_v23, 4  ;;  %v3244_v51 = vshll.u32 %v11245_v18, 16 }
 0x2da   :  { %5687 = vrot.lane.b32.xlu1 %v2657_v63, %s8970_s23  ;;  %v3256_v5 = vor.u32 %v3255_v19, %v3252_v34  ;;  %v6337_v55 = vsel %vm281_vm0, %v6273_v57, %v10882_v54  ;;  %v2640_v22 = vsel %vm2283_vm10, %v2631_v13, %v2639_v38  ;;  %v3243_v39 = vrot.slane %v3241_v2, 3  ;;  %v3456_v54 = vld [vmem:[#allocation2 + $0x170] sm:$0xf0] }
 0x2db   :  { %v3264_v44 = vor.u32 %v3263_v37, %v3260_v1  ;;  %v6402_v31 = vsel %vm6384_vm5, %v6337_v55, %v11068_v8  ;;  %5685 = vrot.lane.b32.xlu0 %v2640_v22, %s8970_s23  ;;  %v3239_v12 = vor.u32 %v3238_v48, %v3235_v33  ;;  %v3246_v32 = vrot.slane %v3244_v51, 4  ;;  %v11293_v1 = vpop.permute.xlu1 %5799  ;;  %v3648_v37 = vld [vmem:[#allocation2 + $0x178] sm:$0x1f] }
 0x2dc   :  { %v6467_v25 = vsel %vm6449_vm11, %v6402_v31, %v10926_v61  ;;  %v13054_v57 = vor.u32 %v13041_v47, %v13040_v52  ;;  %v13055_v13 = vor.u32 %v11130_v36, %v11128_v21  ;;  %v3595_v38 = vrot.slane %v3457_v24, 4  ;;  %v3649_v36 = vld [vmem:[#allocation2 + $0x188] sm:$0x1f] }
 0x2dd   :  { %v3265_v8 = vsel %vm13057_vm2, %v3256_v5, %v3264_v44  ;;  %v3596_v3 = vrot.slane %v11227_v26, 4  ;;  %vm13058_vm6 = vcmask 31744   ;;  %v13059_v61 = vor.u32 %v11146_v40, %v11144_v42 }
 0x2de   :  { %v1700_v63 = vsel %vm13056_vm1, %v13055_v13, %v13054_v57  ;;  %5751 = vrot.lane.b32.xlu1 %v3265_v8, %s8966_s19  ;;  %v3247_v21 = vor.u32 %v3246_v32, %v3243_v39  ;;  %vm13061_vm1 = vmmov %vm13058_vm6  ;;  %v3592_v19 = vrot.slane %v3456_v54, 4  ;;  %v3593_v40 = vrot.slane %v11245_v18, 4 }
 0x2df   :  { %v6126_v56 = vsel %vm13058_vm6, %v1700_v63, %v10866_v11  ;;  %v1683_v52 = vsel %vm13060_vm15, %v13059_v61, %v1682_v17  ;;  %v6532_v11 = vsel %vm6514_vm12, %v6467_v25, %v10872_v45  ;;  %vm13062_vm6 = vcmask 261120   ;;  %v4247_v25 = vld [vmem:[#allocation2 + $0x190] sm:$0xf8]  ;;  %v11314_v8 = vpop.permute.xlu1 %5609 }
 0x2e0   :  { %v6123_v47 = vsel %vm13061_vm1, %v1683_v52, %v10919_v0  ;;  %v11289_v26 = vsel %vm12828_vm3, %v6126_v56, %v10994_v29  ;;  %v3248_v42 = vsel %vm13057_vm2, %v3239_v12, %v3247_v21  ;;  %v6597_v23 = vsel %vm13062_vm6, %v6532_v11, %v10962_v15  ;;  %v11299_v0 = vpop.permute.xlu0 %5857  ;;  %v11309_v15 = vld [vmem:[#allocation2 + $0xc0] sm:$0xf8]  ;;  %v13065_v61 = vld [vmem:[#allocation43_spill] sm:$0xff]  ;;  %v11320_v21 = vld [vmem:[#allocation2 + $0x198] sm:$0xf] }
 0x2e1   :  { %v4018_v17 = vshrl.u32 %v3457_v24, 16  ;;  %5749 = vrot.lane.b32.xlu0 %v3248_v42, %s8966_s19  ;;  %v3597_v29 = vsel %vm2154_vm9, %v3595_v38, %v3596_v3  ;;  %vm13063_vm15 = vcmask 293888   ;;  %v4021_v45 = vshll.u32 %v3457_v24, 16  ;;  %v13064_v3 = vld [vmem:[#allocation25_spill] sm:$0xff]  ;;  %v13067_v42 = vld [vmem:[#allocation20_spill] sm:$0xff] }
 0x2e2   :  { %8726 = vmatprep.mubr.msk.bf16.mxu1 %vm13063_vm15, %v6597_v23  ;;  %v4026_v33 = vshrl.u32 %v3649_v36, 16  ;;  %v4029_v2 = vshll.u32 %v3649_v36, 16  ;;  %v11306_v5 = vsel %vm12828_vm3, %v6123_v47, %v11030_v9  ;;  %5815 = vrot.lane.b32.xlu1 %v3597_v29, %s8965_s18  ;;  %v4001_v48 = vshrl.u32 %v3456_v54, 16 }
 0x2e3   :  { %v4020_v18 = vrot.slane %v4018_v17, 4  ;;  %v4004_v51 = vshll.u32 %v3456_v54, 16  ;;  %v4023_v55 = vrot.slane %v4021_v45, 5  ;;  %v4009_v39 = vshrl.u32 %v3648_v37, 16  ;;  %v4245_v17 = vld [vmem:[#allocation2 + $0x180] sm:$0xf8] }
 0x2e4   :  { %v4028_v22 = vrot.slane %v4026_v33, 4  ;;  %v4031_v44 = vrot.slane %v4029_v2, 5  ;;  %v3594_v31 = vsel %vm2154_vm9, %v3592_v19, %v3593_v40  ;;  %v4003_v24 = vrot.slane %v4001_v48, 4  ;;  %v11322_v36 = vpop.permute.xlu0 %5989  ;;  %v13066_v19 = vld [vmem:[#allocation29_spill] sm:$0xff] }
 0x2e5   :  { %v4006_v12 = vrot.slane %v4004_v51, 5  ;;  %v4012_v32 = vshll.u32 %v3648_v37, 16  ;;  %5813 = vrot.lane.b32.xlu0 %v3594_v31, %s8965_s18  ;;  %v1719_v9 = vshrl.u32 %v11309_v15, 16  ;;  %v4024_v57 = vor.u32 %v4023_v55, %v4020_v18  ;;  %v11331_v55 = vld [vmem:[#allocation2 + $0x188] sm:$0xf] }
 0x2e6   :  { %v4032_v13 = vor.u32 %v4031_v44, %v4028_v22  ;;  %v4011_v63 = vrot.slane %v4009_v39, 4  ;;  %v613_v56 = vadd.f32 %v11083_v62, %v13064_v3  ;;  %v605_v52 = vadd.f32 %v11083_v62, %v13065_v61 }
 0x2e7   :  { %v4007_v54 = vor.u32 %v4006_v12, %v4003_v24  ;;  %v4014_v38 = vrot.slane %v4012_v32, 5  ;;  %v616_v11 = vadd.f32 %v11083_v62, %v13066_v19  ;;  %v608_v40 = vadd.f32 %v11083_v62, %v13067_v42 }
 0x2e8   :  { %v4033_v47 = vsel %vm2283_vm10, %v4024_v57, %v4032_v13  ;;  %v4627_v23 = vshrl.u32 %v4247_v25, 16  ;;  %v717_v29 = vmax.f32 %v613_v56, 0.0  ;;  %v715_v45 = vmax.f32 %v605_v52, 0.0  ;;  %v1164_v57 = vld [vmem:[#allocation2 + $0x1c0] sm:$0x8] }
 0x2e9   :  { %5879 = vrot.lane.b32.xlu1 %v4033_v47, %s8968_s21  ;;  %v4015_v37 = vor.u32 %v4014_v38, %v4011_v63  ;;  %v4630_v33 = vshll.u32 %v4247_v25, 16  ;;  %v718_v2 = vmax.f32 %v616_v11, 0.0  ;;  %v716_v18 = vmax.f32 %v608_v40, 0.0  ;;  %v11336_v25 = vpop.permute.xlu1 %5987  ;;  %v1391_v13 = vld [vmem:[#allocation2 + $0x1c8] sm:$0x10] }
 0x2ea   :  { %v4629_v48 = vrot.slane %v4627_v23, 3  ;;  %v4635_v51 = vshrl.u32 %v11320_v21, 16  ;;  %v4638_v62 = vshll.u32 %v11320_v21, 16  ;;  %v4610_v39 = vshrl.u32 %v4245_v17, 16  ;;  %v1161_v11 = vld [vmem:[#allocation2 + $0x1b0] sm:$0x8] }
 0x2eb   :  { %v4016_v22 = vsel %vm2283_vm10, %v4007_v54, %v4015_v37  ;;  %v4632_v44 = vrot.slane %v4630_v33, 4  ;;  %v756_v31 = vpack.c.bf16 %v718_v2, %v717_v29  ;;  %v755_v24 = vpack.c.bf16 %v716_v18, %v715_v45  ;;  %v11339_v54 = vpop.permute.xlu0 %5797  ;;  %v1472_v37 = vld [vmem:[#allocation2 + $0xb0] sm:$0xf8]  ;;  %v1388_v33 = vld [vmem:[#allocation2 + $0x1b8] sm:$0x10] }
 0x2ec   :  { %5877 = vrot.lane.b32.xlu0 %v4016_v22, %s8968_s21  ;;  %v4637_v12 = vrot.slane %v4635_v51, 3  ;;  %v4613_v32 = vshll.u32 %v4245_v17, 16  ;;  %v4640_v38 = vrot.slane %v4638_v62, 4  ;;  %v4612_v3 = vrot.slane %v4610_v39, 3  ;;  %v11347_v62 = vld [vmem:[#allocation2 + $0x190] sm:$0xf0] }
 0x2ed   :  { %v4633_v63 = vor.u32 %v4632_v44, %v4629_v48  ;;  %v4618_v56 = vshrl.u32 %v11331_v55, 16  ;;  %v820_v61 = vrot.slane %v756_v31, 4  ;;  %v1027_v52 = vshll.u32 %v756_v31, 16 }
 0x2ee   :  { %v1260_v47 = vshrl.u32 %v756_v31, 16  ;;  %v819_v19 = vrot.slane %v755_v24, 4  ;;  %v1023_v42 = vshll.u32 %v755_v24, 16  ;;  %v1257_v40 = vshrl.u32 %v755_v24, 16 }
 0x2ef   :  { %v4641_v23 = vor.u32 %v4640_v38, %v4637_v12  ;;  %v4615_v17 = vrot.slane %v4613_v32, 4  ;;  %vm13068_vm1 = vcmask 31748   ;;  %vm13069_vm2 = vcmask 27648   ;;  %v11354_v32 = vpop.permute.xlu1 %5607 }
 0x2f0   :  { %912 = vst.msk [vmem:[#allocation2 + $0x1c0] sm:$0xf0] %vm13068_vm1, %v820_v61  ;;  %v1029_v29 = vrot.slane %v1027_v52, 5  ;;  %v1262_v45 = vrot.slane %v1260_v47, 3  ;;  %vm13070_vm6 = vmmov %vm13068_vm1  ;;  %v4620_v2 = vrot.slane %v4618_v56, 3  ;;  %v4621_v18 = vshll.u32 %v11331_v55, 16 }
 0x2f1   :  { %913 = vst.msk [vmem:[#allocation2 + $0x1c8] sm:$0xf] %vm13069_vm2, %v820_v61  ;;  %vm13071_vm15 = vmmov %vm13069_vm2  ;;  %v1025_v48 = vrot.slane %v1023_v42, 5  ;;  %v1259_v51 = vrot.slane %v1257_v40, 3  ;;  %vm13072_vm3 = vsmask.f32 4352  ;;  %v4616_v44 = vor.u32 %v4615_v17, %v4612_v3 }
 0x2f2   :  { %910 = vst.msk [vmem:[#allocation2 + $0x1b0] sm:$0xf0] %vm13070_vm6, %v819_v19  ;;  %v4642_v22 = vsel %vm13072_vm3, %v4633_v63, %v4641_v23  ;;  %v1165_v39 = vsel %vm9069_vm7, %v1029_v29, %v1164_v57  ;;  %v1392_v31 = vsel %vm9078_vm8, %v1262_v45, %v1391_v13  ;;  %v4623_v24 = vrot.slane %v4621_v18, 4  ;;  %v4833_v56 = vld [vmem:[#allocation2 + $0x180] sm:$0xf0]  ;;  %v11361_v13 = vpop.permute.xlu0 %5925  ;;  %v13073_v52 = vld [vmem:[#allocation35_spill] sm:$0xff]  ;;  %vm13086_vm6 = vmmov %vm13072_vm3 }
 0x2f3   :  { %911 = vst.msk [vmem:[#allocation2 + $0x1b8] sm:$0xf] %vm13071_vm15, %v819_v19  ;;  %5943 = vrot.lane.b32.xlu1 %v4642_v22, %s8967_s20  ;;  %v1702_v12 = vshrl.u32 %v1472_v37, 16  ;;  %v1722_v38 = vshll.u32 %v11309_v15, 16  ;;  %1166 = vst [vmem:[#allocation2 + $0x1c0] sm:$0x8] %v1165_v39  ;;  %v1162_v63 = vsel %vm9069_vm7, %v1025_v48, %v1161_v11  ;;  %v1389_v3 = vsel %vm9078_vm8, %v1259_v51, %v1388_v33 }
 0x2f4   :  { %1393 = vst [vmem:[#allocation2 + $0x1c8] sm:$0x10] %v1392_v31  ;;  %v1705_v57 = vshll.u32 %v1472_v37, 16  ;;  %v1495_v61 = vld [vmem:[#allocation2 + $0x188] sm:$0xf]  ;;  %v13074_v47 = vshrl.u32 %v13073_v52, 16  ;;  %v4624_v23 = vor.u32 %v4623_v24, %v4620_v2  ;;  %vm13088_vm15 = vmmov %vm13072_vm3 }
 0x2f5   :  { %v13075_v42 = vshll.u32 %v13073_v52, 16  ;;  %1163 = vst [vmem:[#allocation2 + $0x1b0] sm:$0x8] %v1162_v63  ;;  %1390 = vst [vmem:[#allocation2 + $0x1b8] sm:$0x10] %v1389_v3  ;;  %v4972_v11 = vrot.slane %v11347_v62, 4 }
 0x2f6   :  { %v11365_v19 = vrot.slane %v13074_v47, 3  ;;  %v11372_v17 = vld [vmem:[#allocation2 + $0x180] sm:$0xf0]  ;;  %v11374_v37 = vrot.slane %v1702_v12, 3  ;;  %v13076_v29 = vshrl.u32 %v10500_v10, 16  ;;  %v13077_v33 = vshll.u32 %v10500_v10, 16  ;;  %v11400_v47 = vpop.permute.xlu1 %5735 }
 0x2f7   :  { %v11369_v40 = vrot.slane %v13075_v42, 4  ;;  %v4973_v48 = vrot.slane %v11320_v21, 4  ;;  %v5025_v51 = vld [vmem:[#allocation2 + $0x188] sm:$0x1f]  ;;  %v4625_v22 = vsel %vm13072_vm3, %v4616_v44, %v4624_v23  ;;  %v11386_v2 = vrot.slane %v1705_v57, 4  ;;  %v13078_v24 = vld [vmem:[#allocation60_spill] sm:$0xff] }
 0x2f8   :  { %v11378_v45 = vrot.slane %v13076_v29, 3  ;;  %v11382_v18 = vrot.slane %v13077_v33, 4  ;;  %v4969_v39 = vrot.slane %v4833_v56, 4  ;;  %v4970_v31 = vrot.slane %v11331_v55, 4  ;;  %5941 = vrot.lane.b32.xlu0 %v4625_v22, %s8967_s20  ;;  %v2081_v52 = vld [vmem:[#allocation2 + $0x190] sm:$0xf0] }
 0x2f9   :  { %v6275_v12 = vsel %vm6255_vm4, %v11306_v5, %v13078_v24  ;;  %v11394_v63 = vrot.slane %v1719_v9, 3  ;;  %v4974_v10 = vsel %vm2154_vm9, %v4972_v11, %v4973_v48  ;;  %v2221_v21 = vrot.slane %v11372_v17, 4  ;;  %v1497_v23 = vld [vmem:[#allocation2 + $0x198] sm:$0xf]  ;;  %v11408_v11 = vpop.permute.xlu0 %6053 }
 0x2fa   :  { %6007 = vrot.lane.b32.xlu1 %v4974_v10, %s8964_s17  ;;  %v2222_v44 = vrot.slane %v1495_v61, 4  ;;  %v5378_v3 = vshrl.u32 %v4833_v56, 16  ;;  %v5381_v57 = vshll.u32 %v4833_v56, 16  ;;  %v5386_v55 = vshrl.u32 %v5025_v51, 16  ;;  %v5026_v48 = vld [vmem:[#allocation2 + $0x198] sm:$0x1f] }
 0x2fb   :  { %v11402_v5 = vrot.slane %v1722_v38, 4  ;;  %v1716_v9 = vor.u32 %v11382_v18, %v11378_v45  ;;  %v5389_v42 = vshll.u32 %v5025_v51, 16  ;;  %v4971_v56 = vsel %vm2154_vm9, %v4969_v39, %v4970_v31  ;;  %v11418_v61 = vpop.f32.mrb[28].mxu1 }
 0x2fc   :  { %v5380_v29 = vrot.slane %v5378_v3, 4  ;;  %v5383_v33 = vrot.slane %v5381_v57, 5  ;;  %6005 = vrot.lane.b32.xlu0 %v4971_v56, %s8964_s17  ;;  %v2223_v38 = vsel %vm2154_vm9, %v2221_v21, %v2222_v44  ;;  %v5388_v22 = vrot.slane %v5386_v55, 4  ;;  %13079 = vst [vmem:[#allocation48_spill] sm:$0xff] %v11418_v61  ;;  %v13080_v57 = vld [vmem:[#allocation11_spill] sm:$0xff] }
 0x2fd   :  { %v5391_v24 = vrot.slane %v5389_v42, 5  ;;  %v2224_v10 = vrot.slane %v2081_v52, 4  ;;  %v2225_v34 = vrot.slane %v1497_v23, 4  ;;  %v5395_v28 = vshrl.u32 %v11347_v62, 16  ;;  %v2274_v23 = vld [vmem:[#allocation2 + $0x198] sm:$0x1f] }
 0x2fe   :  { %5625 = vrot.lane.b32.xlu1 %v2223_v38, %s8963_s12  ;;  %v5384_v51 = vor.u32 %v5383_v33, %v5380_v29  ;;  %v5398_v15 = vshll.u32 %v11347_v62, 16  ;;  %v5403_v31 = vshrl.u32 %v5026_v48, 16  ;;  %v5406_v3 = vshll.u32 %v5026_v48, 16  ;;  %v11425_v29 = vpop.permute.xlu1 %5863 }
 0x2ff   :  { %v5392_v39 = vor.u32 %v5391_v24, %v5388_v22  ;;  %v6339_v56 = vsel %vm281_vm0, %v6275_v12, %v13080_v57  ;;  %v2226_v21 = vsel %vm2154_vm9, %v2224_v10, %v2225_v34  ;;  %v5397_v44 = vrot.slane %v5395_v28, 4  ;;  %v11430_v22 = vpop.permute.xlu0 %5673 }
 0x300   :  { %v5400_v55 = vrot.slane %v5398_v15, 5  ;;  %v6404_v42 = vsel %vm6384_vm5, %v6339_v56, %v10985_v16  ;;  %v5405_v33 = vrot.slane %v5403_v31, 4  ;;  %v5408_v38 = vrot.slane %v5406_v3, 5  ;;  %v2273_v15 = vld [vmem:[#allocation2 + $0x188] sm:$0x1f] }
 0x301   :  { %v5393_v62 = vsel %vm2283_vm10, %v5384_v51, %v5392_v39  ;;  %v6469_v48 = vsel %vm6449_vm11, %v6404_v42, %v11229_v43  ;;  %v2676_v34 = vshrl.u32 %v2081_v52, 16  ;;  %v2679_v12 = vshll.u32 %v2081_v52, 16 }
 0x302   :  { %6069 = vrot.lane.b32.xlu0 %v5393_v62, %s8969_s22  ;;  %5627 = vrot.lane.b32.xlu1 %v2226_v21, %s8963_s12  ;;  %v5401_v28 = vor.u32 %v5400_v55, %v5397_v44  ;;  %v6534_v16 = vsel %vm6514_vm12, %v6469_v48, %v11117_v41  ;;  %v5409_v24 = vor.u32 %v5408_v38, %v5405_v33  ;;  %vm13081_vm1 = vcmask 261120   ;;  %v2874_v44 = vld [vmem:[#allocation2 + $0x1a0] sm:$0xf8]  ;;  %v11442_v55 = vpop.f32.mrb[29].mxu1  ;;  %v11445_v33 = vld [vmem:[#allocation2 + $0x1a8] sm:$0xf]  ;;  %v11447_v38 = vpop.permute.xlu1 %5923 }
 0x303   :  { %v6599_v10 = vsel %vm13081_vm1, %v6534_v16, %v11237_v58  ;;  %v2684_v51 = vshrl.u32 %v2274_v23, 16  ;;  %v2687_v39 = vshll.u32 %v2274_v23, 16  ;;  %v2678_v43 = vrot.slane %v2676_v34, 4  ;;  %13083 = vst [vmem:[#allocation28_spill] sm:$0xff] %v11442_v55  ;;  %vm13092_vm1 = vmmov %vm13086_vm6 }
 0x304   :  { %v2681_v31 = vrot.slane %v2679_v12, 5  ;;  %v2659_v3 = vshrl.u32 %v11372_v17, 16  ;;  %v2662_v57 = vshll.u32 %v11372_v17, 16  ;;  %vm13082_vm2 = vcmask 293888   ;;  %v11449_v17 = vpop.f32.mrb[30].mxu1 }
 0x305   :  { %8727 = vmatmul.mubr.msk.bf16.gmra.mrb[48].mxu1 %vm13082_vm2, %v6599_v10  ;;  %v5410_v56 = vsel %vm2283_vm10, %v5401_v28, %v5409_v24  ;;  %v2686_v41 = vrot.slane %v2684_v51, 4  ;;  %v2689_v21 = vrot.slane %v2687_v39, 5  ;;  %v2667_v52 = vshrl.u32 %v2273_v15, 16  ;;  %13084 = vst [vmem:[#allocation49_spill] sm:$0xff] %v11449_v17  ;;  %v11460_v24 = vpop.permute.xlu0 %6051 }
 0x306   :  { %6071 = vrot.lane.b32.xlu0 %v5410_v56, %s8969_s22  ;;  %v2682_v58 = vor.u32 %v2681_v31, %v2678_v43  ;;  %v2661_v42 = vrot.slane %v2659_v3, 4  ;;  %v2664_v23 = vrot.slane %v2662_v57, 5  ;;  %v2670_v62 = vshll.u32 %v2273_v15, 16  ;;  %v2872_v15 = vld [vmem:[#allocation2 + $0x190] sm:$0xf8] }
 0x307   :  { %v1725_v48 = vor.u32 %v11402_v5, %v11394_v63  ;;  %v13085_v28 = vor.u32 %v11386_v2, %v11374_v37  ;;  %v2690_v34 = vor.u32 %v2689_v21, %v2686_v41  ;;  %v2669_v12 = vrot.slane %v2667_v52, 4  ;;  %v2873_v5 = vld [vmem:[#allocation2 + $0x198] sm:$0xf] }
 0x308   :  { %v2665_v10 = vor.u32 %v2664_v23, %v2661_v42  ;;  %v2672_v51 = vrot.slane %v2670_v62, 5  ;;  %v6277_v39 = vsel %vm6255_vm4, %v11289_v26, %v11259_v53  ;;  %v3284_v63 = vshrl.u32 %v2874_v44, 16  ;;  %v3459_v53 = vld [vmem:[#allocation2 + $0x1a0] sm:$0xf0]  ;;  %v3458_v42 = vld [vmem:[#allocation2 + $0x190] sm:$0xf0]  ;;  %v11470_v23 = vpop.permute.xlu1 %5671 }
 0x309   :  { %v1717_v16 = vsel %vm13086_vm6, %v13085_v28, %v1716_v9  ;;  %v2691_v45 = vsel %vm2283_vm10, %v2682_v58, %v2690_v34  ;;  %v3287_v18 = vshll.u32 %v2874_v44, 16  ;;  %v3292_v37 = vshrl.u32 %v11445_v33, 16  ;;  %vm13095_vm6 = vmmov %vm13092_vm1 }
 0x30a   :  { %v3295_v2 = vshll.u32 %v11445_v33, 16  ;;  %5691 = vrot.lane.b32.xlu1 %v2691_v45, %s8970_s23  ;;  %v2673_v9 = vor.u32 %v2672_v51, %v2669_v12  ;;  %v3286_v43 = vrot.slane %v3284_v63, 3  ;;  %v3267_v31 = vshrl.u32 %v2872_v15, 16  ;;  %v11475_v51 = vpop.permute.xlu0 %5733 }
 0x30b   :  { %v3270_v3 = vshll.u32 %v2872_v15, 16  ;;  %v3289_v57 = vrot.slane %v3287_v18, 4  ;;  %v3294_v56 = vrot.slane %v3292_v37, 3  ;;  %v3275_v21 = vshrl.u32 %v2873_v5, 16  ;;  %v1478_v15 = vld [vmem:[#allocation2 + $0xe0] sm:$0xf8] }
 0x30c   :  { %v3297_v41 = vrot.slane %v3295_v2, 4  ;;  %v2674_v26 = vsel %vm2283_vm10, %v2665_v10, %v2673_v9  ;;  %v3269_v52 = vrot.slane %v3267_v31, 3  ;;  %v3278_v44 = vshll.u32 %v2873_v5, 16  ;;  %v11479_v37 = vpop.f32.mrb[31].mxu1 }
 0x30d   :  { %v3272_v58 = vrot.slane %v3270_v3, 4  ;;  %5689 = vrot.lane.b32.xlu0 %v2674_v26, %s8970_s23  ;;  %v3290_v62 = vor.u32 %v3289_v57, %v3286_v43  ;;  %v3277_v34 = vrot.slane %v3275_v21, 3  ;;  %v6341_v12 = vsel %vm281_vm0, %v6277_v39, %v11119_v49  ;;  %13087 = vst [vmem:[#allocation31_spill] sm:$0xff] %v11479_v37  ;;  %v13089_v49 = vld [vmem:[#allocation17_spill] sm:$0xff]  ;;  %v13094_v21 = vld [vmem:[#allocation56_spill] sm:$0xff] }
 0x30e   :  { %v3298_v28 = vor.u32 %v3297_v41, %v3294_v56  ;;  %v3280_v45 = vrot.slane %v3278_v44, 4  ;;  %v6406_v10 = vsel %vm6384_vm5, %v6341_v12, %v11299_v0  ;;  %v3601_v18 = vrot.slane %v3459_v53, 4 }
 0x30f   :  { %v3273_v63 = vor.u32 %v3272_v58, %v3269_v52  ;;  %v6471_v9 = vsel %vm6449_vm11, %v6406_v10, %v11153_v14  ;;  %v3602_v43 = vrot.slane %v11445_v33, 4  ;;  %v3598_v31 = vrot.slane %v3458_v42, 4  ;;  %v13096_v58 = vld [vmem:[#allocation42_spill] sm:$0xff] }
 0x310   :  { %v3299_v2 = vsel %vm13088_vm15, %v3290_v62, %v3298_v28  ;;  %vm13090_vm3 = vcmask 31744   ;;  %v3281_v3 = vor.u32 %v3280_v45, %v3277_v34  ;;  %v3599_v57 = vrot.slane %v2873_v5, 4  ;;  %v13100_v34 = vld [vmem:[#allocation57_spill] sm:$0xff]  ;;  %v11516_v45 = vpop.permute.xlu0 %5861 }
 0x311   :  { %v6129_v39 = vsel %vm13090_vm3, %v1717_v16, %v13089_v49  ;;  %5755 = vrot.lane.b32.xlu1 %v3299_v2, %s8966_s19  ;;  %v1753_v56 = vshrl.u32 %v1478_v15, 16  ;;  %v13091_v0 = vor.u32 %v11369_v40, %v11365_v19  ;;  %vm13093_vm2 = vcmask 64512   ;;  %v3651_v16 = vld [vmem:[#allocation2 + $0x1a8] sm:$0x1f] }
 0x312   :  { %v11496_v14 = vsel %vm13093_vm2, %v6129_v39, %v11254_v27  ;;  %v1756_v33 = vshll.u32 %v1478_v15, 16  ;;  %v6536_v26 = vsel %vm6514_vm12, %v6471_v9, %v13094_v21  ;;  %v3282_v52 = vsel %vm13095_vm6, %v3273_v63, %v3281_v3  ;;  %v11510_v27 = vpop.permute.xlu1 %5803  ;;  %v4251_v21 = vld [vmem:[#allocation2 + $0x1b0] sm:$0xf8] }
 0x313   :  { %v11492_v41 = vsel %vm13092_vm1, %v1725_v48, %v13091_v0  ;;  %v3603_v5 = vsel %vm2154_vm9, %v3601_v18, %v3602_v43  ;;  %v13097_v44 = vshrl.u32 %v13096_v58, 16  ;;  %v13098_v19 = vshll.u32 %v13096_v58, 16  ;;  %v3650_v48 = vld [vmem:[#allocation2 + $0x198] sm:$0x1f]  ;;  %13099 = vst [vmem:[#allocation46_spill] sm:$0xff] %v11510_v27  ;;  %5753 = vrot.lane.b32.xlu0 %v3282_v52, %s8966_s19 }
 0x314   :  { %v3600_v28 = vsel %vm2154_vm9, %v3598_v31, %v3599_v57  ;;  %vm13101_vm15 = vcmask 261120   ;;  %v4052_v15 = vshrl.u32 %v3459_v53, 16  ;;  %v4055_v63 = vshll.u32 %v3459_v53, 16 }
 0x315   :  { %v11504_v62 = vrot.slane %v13097_v44, 3  ;;  %v11508_v40 = vrot.slane %v13098_v19, 4  ;;  %v6601_v12 = vsel %vm13101_vm15, %v6536_v26, %v13100_v34  ;;  %5819 = vrot.lane.b32.xlu1 %v3603_v5, %s8965_s18  ;;  %v11519_v10 = vrot.slane %v1753_v56, 3  ;;  %v13104_v19 = vld [vmem:[#allocation16_spill] sm:$0xff] }
 0x316   :  { %vm13102_vm3 = vcmask 293888   ;;  %v4060_v18 = vshrl.u32 %v3651_v16, 16  ;;  %v4063_v2 = vshll.u32 %v3651_v16, 16  ;;  %v4035_v9 = vshrl.u32 %v3458_v42, 16 }
 0x317   :  { %8730 = vmatprep.mubr.msk.bf16.mxu1 %vm13102_vm3, %v6601_v12  ;;  %v4054_v43 = vrot.slane %v4052_v15, 4  ;;  %v4057_v49 = vrot.slane %v4055_v63, 5  ;;  %v4038_v39 = vshll.u32 %v3458_v42, 16  ;;  %v4043_v31 = vshrl.u32 %v3650_v48, 16  ;;  %5817 = vrot.lane.b32.xlu0 %v3600_v28, %s8965_s18  ;;  %v11530_v42 = vld [vmem:[%s12793_s4] ss:$0 sm:$0xff]  ;;  %v11536_v28 = vpop.permute.xlu1 %5991 }
 0x318   :  { %v11522_v3 = vrot.slane %v1756_v33, 4  ;;  %v4062_v57 = vrot.slane %v4060_v18, 4  ;;  %v4065_v0 = vrot.slane %v4063_v2, 5  ;;  %v4037_v53 = vrot.slane %v4035_v9, 4  ;;  %v13103_v33 = vld [vmem:[#allocation19_spill] sm:$0xff]  ;;  %v13105_v15 = vld [vmem:[#allocation9_spill] sm:$0xff] }
 0x319   :  { %v4058_v26 = vor.u32 %v4057_v49, %v4054_v43  ;;  %v4040_v52 = vrot.slane %v4038_v39, 5  ;;  %v4045_v5 = vrot.slane %v4043_v31, 4  ;;  %v4046_v58 = vshll.u32 %v3650_v48, 16  ;;  %v13106_v18 = vld [vmem:[#allocation50_spill] sm:$0xff]  ;;  %v11542_v2 = vld [vmem:[#allocation2 + $0x1b8] sm:$0xf]  ;;  %v11544_v49 = vpop.permute.xlu0 %5993 }
 0x31a   :  { %v4066_v16 = vor.u32 %v4065_v0, %v4062_v57  ;;  %v629_v44 = vadd.f32 %v11530_v42, %v13103_v33  ;;  %v621_v34 = vadd.f32 %v11530_v42, %v13104_v19  ;;  %v632_v63 = vadd.f32 %v11530_v42, %v13105_v15  ;;  %v4249_v43 = vld [vmem:[#allocation2 + $0x1a0] sm:$0xf8]  ;;  %13107 = vst [vmem:[#allocation33_spill] sm:$0xff] %v11544_v49 }
 0x31b   :  { %v4041_v12 = vor.u32 %v4040_v52, %v4037_v53  ;;  %v624_v48 = vadd.f32 %v11530_v42, %v13106_v18  ;;  %v4661_v9 = vshrl.u32 %v4251_v21, 16  ;;  %v4048_v31 = vrot.slane %v4046_v58, 5 }
 0x31c   :  { %v4067_v39 = vsel %vm2283_vm10, %v4058_v26, %v4066_v16  ;;  %v721_v57 = vmax.f32 %v629_v44, 0.0  ;;  %v719_v0 = vmax.f32 %v621_v34, 0.0  ;;  %v722_v53 = vmax.f32 %v632_v63, 0.0  ;;  %v11551_v44 = vld [vmem:[#allocation2 + $0x1a8] sm:$0xf]  ;;  %v11555_v63 = vpop.permute.xlu1 %5611 }
 0x31d   :  { %5883 = vrot.lane.b32.xlu1 %v4067_v39, %s8968_s21  ;;  %v720_v52 = vmax.f32 %v624_v48, 0.0  ;;  %v4663_v33 = vrot.slane %v4661_v9, 3  ;;  %v4664_v19 = vshll.u32 %v4251_v21, 16  ;;  %v4049_v15 = vor.u32 %v4048_v31, %v4045_v5  ;;  %v1170_v48 = vld [vmem:[#allocation2 + $0x1e0] sm:$0x8]  ;;  %v11558_v31 = vpop.permute.xlu0 %5801 }
 0x31e   :  { %v4669_v18 = vshrl.u32 %v11542_v2, 16  ;;  %v4672_v56 = vshll.u32 %v11542_v2, 16  ;;  %v4644_v37 = vshrl.u32 %v4249_v43, 16  ;;  %v758_v17 = vpack.c.bf16 %v722_v53, %v721_v57 }
 0x31f   :  { %v757_v55 = vpack.c.bf16 %v720_v52, %v719_v0  ;;  %v4666_v61 = vrot.slane %v4664_v19, 4  ;;  %v4647_v27 = vshll.u32 %v4249_v43, 16  ;;  %v4050_v26 = vsel %vm2283_vm10, %v4041_v12, %v4049_v15  ;;  %v1397_v43 = vld [vmem:[#allocation2 + $0x1e8] sm:$0x10]  ;;  %v1167_v12 = vld [vmem:[#allocation2 + $0x1d0] sm:$0x8] }
 0x320   :  { %v4671_v16 = vrot.slane %v4669_v18, 3  ;;  %v4674_v58 = vrot.slane %v4672_v56, 4  ;;  %v11553_v34 = vrot.slane %v4644_v37, 3  ;;  %5881 = vrot.lane.b32.xlu0 %v4050_v26, %s8968_s21  ;;  %v822_v21 = vrot.slane %v758_v17, 4 }
 0x321   :  { %v1035_v5 = vshll.u32 %v758_v17, 16  ;;  %v1266_v9 = vshrl.u32 %v758_v17, 16  ;;  %v821_v39 = vrot.slane %v757_v55, 4  ;;  %v1031_v57 = vshll.u32 %v757_v55, 16  ;;  %v1394_v17 = vld [vmem:[#allocation2 + $0x1d8] sm:$0x10] }
 0x322   :  { %v1263_v0 = vshrl.u32 %v757_v55, 16  ;;  %v4667_v56 = vor.u32 %v4666_v61, %v4663_v33  ;;  %v4675_v53 = vor.u32 %v4674_v58, %v4671_v16  ;;  %vm13108_vm1 = vcmask 31748   ;;  %v11567_v33 = vld [vmem:[#allocation2 + $0x1b0] sm:$0xf0] }
 0x323   :  { %916 = vst.msk [vmem:[#allocation2 + $0x1e0] sm:$0xf0] %vm13108_vm1, %v822_v21  ;;  %vm13109_vm2 = vcmask 27648   ;;  %v1037_v37 = vrot.slane %v1035_v5, 5  ;;  %v1268_v52 = vrot.slane %v1266_v9, 3  ;;  %vm13110_vm6 = vmmov %vm13108_vm1  ;;  %v4649_v19 = vrot.slane %v4647_v27, 4 }
 0x324   :  { %917 = vst.msk [vmem:[#allocation2 + $0x1e8] sm:$0xf] %vm13109_vm2, %v822_v21  ;;  %vm13111_vm15 = vmmov %vm13109_vm2  ;;  %v4652_v15 = vshrl.u32 %v11551_v44, 16  ;;  %v1033_v18 = vrot.slane %v1031_v57, 5  ;;  %v1265_v26 = vrot.slane %v1263_v0, 3  ;;  %v4655_v61 = vshll.u32 %v11551_v44, 16 }
 0x325   :  { %914 = vst.msk [vmem:[#allocation2 + $0x1d0] sm:$0xf0] %vm13110_vm6, %v821_v39  ;;  %vm13112_vm3 = vsmask.f32 4352  ;;  %v1759_v16 = vor.u32 %v11522_v3, %v11519_v10  ;;  %v1171_v58 = vsel %vm9069_vm7, %v1037_v37, %v1170_v48  ;;  %v1398_v21 = vsel %vm9078_vm8, %v1268_v52, %v1397_v43  ;;  %v1476_v3 = vld [vmem:[#allocation2 + $0xd0] sm:$0xf8]  ;;  %v11581_v48 = vpop.permute.xlu1 %5739 }
 0x326   :  { %915 = vst.msk [vmem:[#allocation2 + $0x1d8] sm:$0xf] %vm13111_vm15, %v821_v39  ;;  %v4676_v55 = vsel %vm13112_vm3, %v4667_v56, %v4675_v53  ;;  %v4654_v27 = vrot.slane %v4652_v15, 3  ;;  %1172 = vst [vmem:[#allocation2 + $0x1e0] sm:$0x8] %v1171_v58  ;;  %v1168_v5 = vsel %vm9069_vm7, %v1033_v18, %v1167_v12  ;;  %v1395_v9 = vsel %vm9078_vm8, %v1265_v26, %v1394_v17  ;;  %v13113_v0 = vld [vmem:[#allocation14_spill] sm:$0xff] }
 0x327   :  { %5947 = vrot.lane.b32.xlu1 %v4676_v55, %s8967_s20  ;;  %1399 = vst [vmem:[#allocation2 + $0x1e8] sm:$0x10] %v1398_v21  ;;  %v4650_v39 = vor.u32 %v4649_v19, %v11553_v34  ;;  %v4657_v10 = vrot.slane %v4655_v61, 4  ;;  %v4835_v57 = vld [vmem:[#allocation2 + $0x1a0] sm:$0xf0]  ;;  %v13116_v12 = vld [vmem:[#allocation40_spill] sm:$0xff]  ;;  %v11597_v19 = vpop.permute.xlu0 %5929  ;;  %v13121_v26 = vor.u32 %v11508_v40, %v11504_v62  ;;  %vm13122_vm15 = vmmov %vm13112_vm3 }
 0x328   :  { %v13114_v43 = vld [vmem:[#allocation53_spill] sm:$0xff]  ;;  %v11588_v53 = vld [vmem:[#allocation2 + $0x168] sm:$0xf]  ;;  %vm13117_vm1 = vcmask 31744   ;;  %1169 = vst [vmem:[#allocation2 + $0x1d0] sm:$0x8] %v1168_v5 }
 0x329   :  { %v11586_v56 = vsel %vm6449_vm11, %v13114_v43, %v13113_v0  ;;  %v6132_v52 = vsel %vm13117_vm1, %v11492_v41, %v13116_v12  ;;  %1396 = vst [vmem:[#allocation2 + $0x1d8] sm:$0x10] %v1395_v9  ;;  %v4978_v34 = vrot.slane %v11567_v33, 4  ;;  %v11595_v17 = vld [vmem:[#allocation2 + $0x1a0] sm:$0xf0]  ;;  %vm13118_vm2 = vcmask 64512  }
 0x32a   :  { %13115 = vst [vmem:[#allocation54_spill] sm:$0xff] %v11586_v56  ;;  %v7125_v15 = vld [vmem:[%s12792_s3] sm:$0x3]  ;;  %v11602_v18 = vld [vmem:[#allocation2 + $0x178] sm:$0xf]  ;;  %v11607_v55 = vsel %vm13118_vm2, %v6132_v52, %v11205_v59  ;;  %v4658_v41 = vor.u32 %v4657_v10, %v4654_v27  ;;  %v4979_v61 = vrot.slane %v11542_v2, 4  ;;  %v1768_v59 = vsel %vm13122_vm15, %v1759_v16, %v13121_v26  ;;  %vm13132_vm15 = vmmov %vm13112_vm3 }
 0x32b   :  { %v1499_v58 = vld [vmem:[#allocation2 + $0x1a8] sm:$0xf]  ;;  %vm13119_vm6 = vcmask 1041408   ;;  %v1736_v9 = vshrl.u32 %v1476_v3, 16  ;;  %v4975_v0 = vrot.slane %v4835_v57, 4  ;;  %v4976_v43 = vrot.slane %v11551_v44, 4  ;;  %v11641_v37 = vpop.permute.xlu0 %6057 }
 0x32c   :  { %8843 = vmatprep.subr.msk.bf16.mxu0 %vm13119_vm6, %v7125_v15  ;;  %v13120_v21 = vld [vmem:[#allocation58_spill] sm:$0xff]  ;;  %v4659_v27 = vsel %vm13112_vm3, %v4650_v39, %v4658_v41  ;;  %v4980_v2 = vsel %vm2154_vm9, %v4978_v34, %v4979_v61  ;;  %v2227_v10 = vrot.slane %v11595_v17, 4  ;;  %v11624_v52 = vsel %vm13117_vm1, %v1768_v59, %v11314_v8  ;;  %v1501_v62 = vld [vmem:[#allocation2 + $0x1b8] sm:$0xf]  ;;  %v13123_v40 = vld [vmem:[#allocation23_spill] sm:$0xff]  ;;  %13127 = vst [vmem:[#allocation59_spill] sm:$0xff] %v11641_v37 }
 0x32d   :  { %v6279_v5 = vsel %vm6255_vm4, %v11496_v14, %v13120_v21  ;;  %v5027_v12 = vld [vmem:[#allocation2 + $0x1a8] sm:$0x1f]  ;;  %5945 = vrot.lane.b32.xlu0 %v4659_v27, %s8967_s20  ;;  %v1739_v14 = vshll.u32 %v1476_v3, 16  ;;  %6011 = vrot.lane.b32.xlu1 %v4980_v2, %s8964_s17  ;;  %v2228_v44 = vrot.slane %v1499_v58, 4  ;;  %v5412_v15 = vshrl.u32 %v4835_v57, 16  ;;  %v11632_v21 = vpop.permute.xlu1 %5867 }
 0x32e   :  { %v13124_v16 = vshrl.u32 %v13123_v40, 16  ;;  %v5415_v39 = vshll.u32 %v4835_v57, 16  ;;  %v5420_v34 = vshrl.u32 %v5027_v12, 16  ;;  %v5423_v41 = vshll.u32 %v5027_v12, 16  ;;  %v2083_v61 = vld [vmem:[#allocation2 + $0x1b0] sm:$0xf0] }
 0x32f   :  { %13125 = vst [vmem:[#allocation55_spill] sm:$0xff] %v11632_v21  ;;  %v11634_v8 = vrot.slane %v1736_v9, 3  ;;  %v13126_v59 = vshll.u32 %v13123_v40, 16  ;;  %v4977_v58 = vsel %vm2154_vm9, %v4975_v0, %v4976_v43  ;;  %v5414_v27 = vrot.slane %v5412_v15, 4  ;;  %v5028_v2 = vld [vmem:[#allocation2 + $0x1b8] sm:$0x1f] }
 0x330   :  { %v11630_v26 = vrot.slane %v13124_v16, 3  ;;  %v2229_v16 = vsel %vm2154_vm9, %v2227_v10, %v2228_v44  ;;  %v5417_v57 = vrot.slane %v5415_v39, 5  ;;  %v5422_v56 = vrot.slane %v5420_v34, 4  ;;  %v13128_v34 = vld [vmem:[#allocation52_spill] sm:$0xff]  ;;  %v12034_v4 = vld [vmem:[#allocation2 + $0x1e0] sm:$0xf0] }
 0x331   :  { %v11638_v3 = vrot.slane %v13126_v59, 4  ;;  %v5425_v12 = vrot.slane %v5423_v41, 5  ;;  %v11644_v49 = vrot.slane %v1739_v14, 4  ;;  %6009 = vrot.lane.b32.xlu0 %v4977_v58, %s8964_s17  ;;  %5629 = vrot.lane.b32.xlu1 %v2229_v16, %s8963_s12  ;;  %v2230_v9 = vrot.slane %v2083_v61, 4  ;;  %v2276_v41 = vld [vmem:[#allocation2 + $0x1b8] sm:$0x1f] }
 0x332   :  { %v2231_v40 = vrot.slane %v1501_v62, 4  ;;  %v5429_v59 = vshrl.u32 %v11567_v33, 16  ;;  %v5418_v0 = vor.u32 %v5417_v57, %v5414_v27  ;;  %v5432_v15 = vshll.u32 %v11567_v33, 16  ;;  %v11656_v27 = vpop.permute.xlu1 %5927  ;;  %v11662_v57 = vpop.permute.xlu0 %6055 }
 0x333   :  { %v5426_v43 = vor.u32 %v5425_v12, %v5422_v56  ;;  %v5437_v21 = vshrl.u32 %v5028_v2, 16  ;;  %v5440_v39 = vshll.u32 %v5028_v2, 16  ;;  %v6343_v14 = vsel %vm281_vm0, %v6279_v5, %v13128_v34  ;;  %v11664_v12 = vpop.f32.mrb[32].mxu1 }
 0x334   :  { %v2232_v10 = vsel %vm2154_vm9, %v2230_v9, %v2231_v40  ;;  %v5431_v44 = vrot.slane %v5429_v59, 4  ;;  %v5434_v16 = vrot.slane %v5432_v15, 5  ;;  %v6408_v62 = vsel %vm6384_vm5, %v6343_v14, %v11199_v46  ;;  %v2275_v59 = vld [vmem:[#allocation2 + $0x1a8] sm:$0x1f] }
 0x335   :  { %v5427_v58 = vsel %vm2283_vm10, %v5418_v0, %v5426_v43  ;;  %v5439_v37 = vrot.slane %v5437_v21, 4  ;;  %5631 = vrot.lane.b32.xlu1 %v2232_v10, %s8963_s12  ;;  %v5442_v33 = vrot.slane %v5440_v39, 5  ;;  %v6473_v56 = vsel %vm6449_vm11, %v6408_v62, %v11447_v38 }
 0x336   :  { %6073 = vrot.lane.b32.xlu0 %v5427_v58, %s8969_s22  ;;  %v2710_v2 = vshrl.u32 %v2083_v61, 16  ;;  %v2713_v5 = vshll.u32 %v2083_v61, 16  ;;  %v5435_v21 = vor.u32 %v5434_v16, %v5431_v44  ;;  %v6538_v46 = vsel %vm6514_vm12, %v6473_v56, %v11336_v25  ;;  %v2879_v44 = vld [vmem:[#allocation2 + $0x1c8] sm:$0xf]  ;;  %v11674_v16 = vpop.f32.mrb[33].mxu1 }
 0x337   :  { %v2718_v9 = vshrl.u32 %v2276_v41, 16  ;;  %v2721_v40 = vshll.u32 %v2276_v41, 16  ;;  %v5443_v0 = vor.u32 %v5442_v33, %v5439_v37  ;;  %vm13129_vm2 = vcmask 261120   ;;  %v2878_v37 = vld [vmem:[#allocation2 + $0x1c0] sm:$0xf8] }
 0x338   :  { %v6603_v43 = vsel %vm13129_vm2, %v6538_v46, %v11460_v24  ;;  %v2712_v15 = vrot.slane %v2710_v2, 4  ;;  %v2715_v10 = vrot.slane %v2713_v5, 5  ;;  %v2693_v61 = vshrl.u32 %v11595_v17, 16  ;;  %v11679_v2 = vpop.permute.xlu1 %5675  ;;  %v11681_v5 = vpop.f32.mrb[34].mxu1  ;;  %vm13133_vm1 = vmmov %vm13129_vm2 }
 0x339   :  { %v2720_v38 = vrot.slane %v2718_v9, 4  ;;  %v2723_v39 = vrot.slane %v2721_v40, 5  ;;  %v2696_v34 = vshll.u32 %v11595_v17, 16  ;;  %vm13130_vm6 = vcmask 293888   ;;  %v2876_v17 = vld [vmem:[#allocation2 + $0x1b0] sm:$0xf8]  ;;  %vm13134_vm2 = vmmov %vm13112_vm3 }
 0x33a   :  { %8731 = vmatmul.mubr.msk.bf16.gmra.mrb[52].mxu1 %vm13130_vm6, %v6603_v43  ;;  %v5444_v25 = vsel %vm2283_vm10, %v5435_v21, %v5443_v0  ;;  %v2716_v14 = vor.u32 %v2715_v10, %v2712_v15  ;;  %v2701_v41 = vshrl.u32 %v2275_v59, 16  ;;  %v2704_v58 = vshll.u32 %v2275_v59, 16  ;;  %v11692_v59 = vpop.f32.mrb[35].mxu1 }
 0x33b   :  { %v1750_v24 = vor.u32 %v11638_v3, %v11630_v26  ;;  %6075 = vrot.lane.b32.xlu0 %v5444_v25, %s8969_s22  ;;  %v2724_v62 = vor.u32 %v2723_v39, %v2720_v38  ;;  %v2695_v33 = vrot.slane %v2693_v61, 4  ;;  %v2698_v56 = vrot.slane %v2696_v34, 5  ;;  %v11688_v26 = vld [vmem:[#allocation2 + $0x1b8] sm:$0xf]  ;;  %v11690_v3 = vpop.permute.xlu0 %5737  ;;  %13131 = vst [vmem:[#allocation21_spill] sm:$0xff] %v11692_v59 }
 0x33c   :  { %v1742_v21 = vor.u32 %v11644_v49, %v11634_v8  ;;  %v2703_v46 = vrot.slane %v2701_v41, 4  ;;  %v2706_v9 = vrot.slane %v2704_v58, 5  ;;  %v6281_v40 = vsel %vm6255_vm4, %v11607_v55, %v11475_v51  ;;  %v3461_v25 = vld [vmem:[#allocation2 + $0x1c0] sm:$0xf0] }
 0x33d   :  { %v2725_v0 = vsel %vm2283_vm10, %v2716_v14, %v2724_v62  ;;  %v2699_v43 = vor.u32 %v2698_v56, %v2695_v33  ;;  %v3318_v15 = vshrl.u32 %v2878_v37, 16  ;;  %v3321_v10 = vshll.u32 %v2878_v37, 16 }
 0x33e   :  { %5695 = vrot.lane.b32.xlu1 %v2725_v0, %s8970_s23  ;;  %v2707_v49 = vor.u32 %v2706_v9, %v2703_v46  ;;  %v3326_v8 = vshrl.u32 %v2879_v44, 16  ;;  %v3329_v38 = vshll.u32 %v2879_v44, 16  ;;  %v3301_v39 = vshrl.u32 %v2876_v17, 16  ;;  %v3460_v46 = vld [vmem:[#allocation2 + $0x1b0] sm:$0xf0]  ;;  %v11700_v9 = vpop.permute.xlu1 %5621 }
 0x33f   :  { %v3320_v61 = vrot.slane %v3318_v15, 3  ;;  %v3323_v34 = vrot.slane %v3321_v10, 4  ;;  %v3304_v51 = vshll.u32 %v2876_v17, 16  ;;  %v3309_v55 = vshrl.u32 %v11688_v26, 16 }
 0x340   :  { %v2708_v41 = vsel %vm2283_vm10, %v2699_v43, %v2707_v49  ;;  %v3328_v58 = vrot.slane %v3326_v8, 3  ;;  %v3331_v59 = vrot.slane %v3329_v38, 4  ;;  %v3303_v14 = vrot.slane %v3301_v39, 3  ;;  %v11704_v43 = vpop.permute.xlu0 %5865 }
 0x341   :  { %5693 = vrot.lane.b32.xlu0 %v2708_v41, %s8970_s23  ;;  %v3324_v37 = vor.u32 %v3323_v34, %v3320_v61  ;;  %v3306_v62 = vrot.slane %v3304_v51, 4  ;;  %v3311_v33 = vrot.slane %v3309_v55, 3  ;;  %v3312_v56 = vshll.u32 %v11688_v26, 16  ;;  %v3653_v61 = vld [vmem:[#allocation2 + $0x1c8] sm:$0x1f] }
 0x342   :  { %v3332_v0 = vor.u32 %v3331_v59, %v3328_v58  ;;  %v6345_v17 = vsel %vm281_vm0, %v6281_v40, %v11339_v54  ;;  %v3607_v15 = vrot.slane %v3461_v25, 4  ;;  %v3608_v10 = vrot.slane %v2879_v44, 4  ;;  %v3652_v55 = vld [vmem:[#allocation2 + $0x1b8] sm:$0x1f] }
 0x343   :  { %v1751_v49 = vsel %vm13132_vm15, %v1742_v21, %v1750_v24  ;;  %v3307_v8 = vor.u32 %v3306_v62, %v3303_v14  ;;  %v3314_v38 = vrot.slane %v3312_v56, 4  ;;  %v6410_v39 = vsel %vm6384_vm5, %v6345_v17, %v11516_v45  ;;  %v11721_v56 = vpop.permute.xlu1 %5995  ;;  %v1480_v17 = vld [vmem:[#allocation2 + $0xf0] sm:$0xf8] }
 0x344   :  { %v3333_v34 = vsel %vm13112_vm3, %v3324_v37, %v3332_v0  ;;  %v6475_v59 = vsel %vm6449_vm11, %v6410_v39, %v11361_v13  ;;  %v3609_v51 = vsel %vm2154_vm9, %v3607_v15, %v3608_v10  ;;  %v3604_v54 = vrot.slane %v3460_v46, 4  ;;  %v11724_v15 = vpop.permute.xlu0 %6065 }
 0x345   :  { %5759 = vrot.lane.b32.xlu1 %v3333_v34, %s8966_s19  ;;  %v3315_v44 = vor.u32 %v3314_v38, %v3311_v33  ;;  %v6540_v24 = vsel %vm6514_vm12, %v6475_v59, %v11322_v36  ;;  %v4086_v21 = vshrl.u32 %v3461_v25, 16  ;;  %v4089_v40 = vshll.u32 %v3461_v25, 16 }
 0x346   :  { %v3605_v45 = vrot.slane %v11688_v26, 4  ;;  %v6605_v41 = vsel %vm13133_vm1, %v6540_v24, %v11408_v11  ;;  %v4094_v58 = vshrl.u32 %v3653_v61, 16  ;;  %v4097_v14 = vshll.u32 %v3653_v61, 16 }
 0x347   :  { %v3316_v13 = vsel %vm13134_vm2, %v3307_v8, %v3315_v44  ;;  %8734 = vmatprep.mubr.msk.bf16.mxu1 %vm13130_vm6, %v6605_v41  ;;  %v4088_v37 = vrot.slane %v4086_v21, 4  ;;  %v4091_v62 = vrot.slane %v4089_v40, 5  ;;  %v4069_v33 = vshrl.u32 %v3460_v46, 16  ;;  %v11731_v44 = vpop.f32.mrb[36].mxu1  ;;  %v11734_v41 = vpop.permute.xlu1 %5931 }
 0x348   :  { %5757 = vrot.lane.b32.xlu0 %v3316_v13, %s8966_s19  ;;  %v4096_v36 = vrot.slane %v4094_v58, 4  ;;  %v4099_v25 = vrot.slane %v4097_v14, 5  ;;  %v4072_v0 = vshll.u32 %v3460_v46, 16  ;;  %v4077_v26 = vshrl.u32 %v3652_v55, 16  ;;  %13135 = vst [vmem:[#allocation45_spill] sm:$0xff] %v11731_v44 }
 0x349   :  { %5823 = vrot.lane.b32.xlu1 %v3609_v51, %s8965_s18  ;;  %v4092_v11 = vor.u32 %v4091_v62, %v4088_v37  ;;  %v4071_v10 = vrot.slane %v4069_v33, 4  ;;  %v4080_v8 = vshll.u32 %v3652_v55, 16  ;;  %v645_v38 = vadd.f32 %v11530_v42, %v11194_v50  ;;  %v4255_v51 = vld [vmem:[#allocation2 + $0x1d0] sm:$0xf8]  ;;  %v11736_v55 = vpop.f32.mrb[37].mxu1 }
 0x34a   :  { %v4100_v39 = vor.u32 %v4099_v25, %v4096_v36  ;;  %v4074_v61 = vrot.slane %v4072_v0, 5  ;;  %v4079_v34 = vrot.slane %v4077_v26, 4  ;;  %v637_v59 = vadd.f32 %v11530_v42, %v11211_v30  ;;  %13136 = vst [vmem:[#allocation61_spill] sm:$0xff] %v11736_v55  ;;  %v11742_v13 = vld [vmem:[#allocation2 + $0x1d8] sm:$0xf] }
 0x34b   :  { %v3606_v46 = vsel %vm2154_vm9, %v3604_v54, %v3605_v45  ;;  %v4082_v24 = vrot.slane %v4080_v8, 5  ;;  %v1770_v21 = vshrl.u32 %v1480_v17, 16  ;;  %v1773_v40 = vshll.u32 %v1480_v17, 16  ;;  %v11744_v54 = vpop.f32.mrb[38].mxu1  ;;  %v4253_v26 = vld [vmem:[#allocation2 + $0x1c0] sm:$0xf8]  ;;  %v11757_v17 = vpop.permute.xlu0 %6059 }
 0x34c   :  { %vm13137_vm15 = vcmask 31744   ;;  %5821 = vrot.lane.b32.xlu0 %v3606_v46, %s8965_s18  ;;  %v4101_v58 = vsel %vm2283_vm10, %v4092_v11, %v4100_v39  ;;  %v4075_v30 = vor.u32 %v4074_v61, %v4071_v10  ;;  %v725_v14 = vmax.f32 %v645_v38, 0.0  ;;  %13138 = vst [vmem:[#allocation62_spill] sm:$0xff] %v11744_v54  ;;  %v11751_v36 = vpop.f32.mrb[39].mxu1 }
 0x34d   :  { %v6135_v50 = vsel %vm13137_vm15, %v1751_v49, %v11354_v32  ;;  %5887 = vrot.lane.b32.xlu1 %v4101_v58, %s8968_s21  ;;  %v4083_v45 = vor.u32 %v4082_v24, %v4079_v34  ;;  %v723_v37 = vmax.f32 %v637_v59, 0.0  ;;  %v11747_v62 = vrot.slane %v1770_v21, 3  ;;  %13139 = vst [vmem:[#allocation51_spill] sm:$0xff] %v11751_v36  ;;  %v11770_v34 = vld [vmem:[#allocation2 + $0x1c8] sm:$0xf]  ;;  %v11772_v59 = vpop.permute.xlu1 %5623 }
 0x34e   :  { %v11749_v33 = vrot.slane %v1773_v40, 4  ;;  %v648_v32 = vadd.f32 %v11530_v42, %v11218_v6  ;;  %v640_v49 = vadd.f32 %v11530_v42, %v11222_v7  ;;  %v4695_v25 = vshrl.u32 %v4255_v51, 16  ;;  %v1173_v36 = vld [vmem:[#allocation2 + $0x1f0] sm:$0x8] }
 0x34f   :  { %v4698_v0 = vshll.u32 %v4255_v51, 16  ;;  %vm13140_vm3 = vcmask 64512   ;;  %v4084_v10 = vsel %vm2283_vm10, %v4075_v30, %v4083_v45  ;;  %v13141_v8 = vshrl.u32 %v10934_v20, 16  ;;  %v1176_v45 = vld [vmem:[#allocation2 + $0x200] sm:$0x8]  ;;  %v11782_v54 = vpop.permute.xlu0 %6067 }
 0x350   :  { %v11761_v11 = vsel %vm13140_vm3, %v6135_v50, %v11470_v23  ;;  %v4703_v6 = vshrl.u32 %v11742_v13, 16  ;;  %5885 = vrot.lane.b32.xlu0 %v4084_v10, %s8968_s21  ;;  %v726_v7 = vmax.f32 %v648_v32, 0.0  ;;  %v724_v42 = vmax.f32 %v640_v49, 0.0  ;;  %v1403_v32 = vld [vmem:[#allocation2 + $0x208] sm:$0x10] }
 0x351   :  { %v11766_v38 = vrot.slane %v13141_v8, 3  ;;  %v4697_v39 = vrot.slane %v4695_v25, 3  ;;  %v4700_v61 = vrot.slane %v4698_v0, 4  ;;  %v13142_v23 = vshll.u32 %v10934_v20, 16 }
 0x352   :  { %v4705_v24 = vrot.slane %v4703_v6, 3  ;;  %v4706_v21 = vshll.u32 %v11742_v13, 16  ;;  %v4678_v40 = vshrl.u32 %v4253_v26, 16  ;;  %v760_v50 = vpack.c.bf16 %v726_v7, %v725_v14 }
 0x353   :  { %v11776_v46 = vrot.slane %v13142_v23, 4  ;;  %v759_v58 = vpack.c.bf16 %v724_v42, %v723_v37  ;;  %v4701_v30 = vor.u32 %v4700_v61, %v4697_v39  ;;  %v4681_v0 = vshll.u32 %v4253_v26, 16  ;;  %v11784_v37 = vld [vmem:[#allocation2 + $0x1d0] sm:$0xf0]  ;;  %v1400_v42 = vld [vmem:[#allocation2 + $0x1f8] sm:$0x10] }
 0x354   :  { %v4708_v49 = vrot.slane %v4706_v21, 4  ;;  %v4680_v25 = vrot.slane %v4678_v40, 3  ;;  %v4686_v10 = vshrl.u32 %v11770_v34, 16  ;;  %v824_v20 = vrot.slane %v760_v50, 4  ;;  %v11791_v21 = vpop.permute.xlu1 %5687 }
 0x355   :  { %v1043_v8 = vshll.u32 %v760_v50, 16  ;;  %v1272_v23 = vshrl.u32 %v760_v50, 16  ;;  %v823_v6 = vrot.slane %v759_v58, 4  ;;  %v1039_v55 = vshll.u32 %v759_v58, 16 }
 0x356   :  { %v1269_v44 = vshrl.u32 %v759_v58, 16  ;;  %v4709_v51 = vor.u32 %v4708_v49, %v4705_v24  ;;  %v4683_v14 = vrot.slane %v4681_v0, 4  ;;  %vm13143_vm1 = vcmask 31748   ;;  %v4837_v49 = vld [vmem:[#allocation2 + $0x1c0] sm:$0xf0] }
 0x357   :  { %920 = vst.msk [vmem:[#allocation2 + $0x200] sm:$0xf0] %vm13143_vm1, %v824_v20  ;;  %vm13144_vm2 = vcmask 27648   ;;  %v1045_v26 = vrot.slane %v1043_v8, 5  ;;  %v1274_v7 = vrot.slane %v1272_v23, 3  ;;  %vm13145_vm6 = vmmov %vm13143_vm1  ;;  %v4688_v39 = vrot.slane %v4686_v10, 3 }
 0x358   :  { %921 = vst.msk [vmem:[#allocation2 + $0x208] sm:$0xf] %vm13144_vm2, %v824_v20  ;;  %vm13146_vm15 = vmmov %vm13144_vm2  ;;  %v4689_v61 = vshll.u32 %v11770_v34, 16  ;;  %v1041_v24 = vrot.slane %v1039_v55, 5  ;;  %v1271_v40 = vrot.slane %v1269_v44, 3  ;;  %v4684_v58 = vor.u32 %v4683_v14, %v4680_v25 }
 0x359   :  { %918 = vst.msk [vmem:[#allocation2 + $0x1f0] sm:$0xf0] %vm13145_vm6, %v823_v6  ;;  %vm13147_vm3 = vsmask.f32 4352  ;;  %v1177_v0 = vsel %vm9069_vm7, %v1045_v26, %v1176_v45  ;;  %v1404_v20 = vsel %vm9078_vm8, %v1274_v7, %v1403_v32  ;;  %v4984_v10 = vrot.slane %v11784_v37, 4 }
 0x35a   :  { %919 = vst.msk [vmem:[#allocation2 + $0x1f8] sm:$0xf] %vm13146_vm15, %v823_v6  ;;  %v4710_v50 = vsel %vm13147_vm3, %v4701_v30, %v4709_v51  ;;  %v4691_v8 = vrot.slane %v4689_v61, 4  ;;  %v1503_v23 = vld [vmem:[#allocation2 + $0x1c8] sm:$0xf]  ;;  %v1784_v44 = vor.u32 %v11776_v46, %v11766_v38  ;;  %v1174_v55 = vsel %vm9069_vm7, %v1041_v24, %v1173_v36  ;;  %v11813_v46 = vpop.permute.xlu0 %5685  ;;  %vm13149_vm2 = vmmov %vm13147_vm3 }
 0x35b   :  { %5951 = vrot.lane.b32.xlu1 %v4710_v50, %s8967_s20  ;;  %v11800_v6 = vld [vmem:[#allocation2 + $0x1c0] sm:$0xf0]  ;;  %1178 = vst [vmem:[#allocation2 + $0x200] sm:$0x8] %v1177_v0  ;;  %1405 = vst [vmem:[#allocation2 + $0x208] sm:$0x10] %v1404_v20  ;;  %v1401_v51 = vsel %vm9078_vm8, %v1271_v40, %v1400_v42  ;;  %v6283_v32 = vsel %vm6255_vm4, %v11761_v11, %v11400_v47  ;;  %v13150_v24 = vor.u32 %v11749_v33, %v11747_v62 }
 0x35c   :  { %v4985_v30 = vrot.slane %v11742_v13, 4  ;;  %v5029_v45 = vld [vmem:[#allocation2 + $0x1c8] sm:$0x1f]  ;;  %1175 = vst [vmem:[#allocation2 + $0x1f0] sm:$0x8] %v1174_v55  ;;  %v4692_v25 = vor.u32 %v4691_v8, %v4688_v39  ;;  %v4981_v14 = vrot.slane %v4837_v49, 4  ;;  %vm13151_vm6 = vmmov %vm13149_vm2 }
 0x35d   :  { %1402 = vst [vmem:[#allocation2 + $0x1f8] sm:$0x10] %v1401_v51  ;;  %v4982_v38 = vrot.slane %v11770_v34, 4  ;;  %v2233_v26 = vrot.slane %v11800_v6, 4  ;;  %v2234_v7 = vrot.slane %v1503_v23, 4  ;;  %v5446_v42 = vshrl.u32 %v4837_v49, 16  ;;  %v11822_v34 = vpop.permute.xlu1 %5751 }
 0x35e   :  { %v4986_v36 = vsel %vm2154_vm9, %v4984_v10, %v4985_v30  ;;  %vm13148_vm1 = vcmask 64512   ;;  %v4693_v47 = vsel %vm13149_vm2, %v4684_v58, %v4692_v25  ;;  %v5449_v11 = vshll.u32 %v4837_v49, 16  ;;  %v2085_v61 = vld [vmem:[#allocation2 + $0x1d0] sm:$0xf0]  ;;  %v5030_v10 = vld [vmem:[#allocation2 + $0x1d8] sm:$0x1f] }
 0x35f   :  { %v6220_v13 = vsel %vm13148_vm1, %v11624_v52, %v11430_v22  ;;  %6015 = vrot.lane.b32.xlu1 %v4986_v36, %s8964_s17  ;;  %v5454_v39 = vshrl.u32 %v5029_v45, 16  ;;  %v1785_v40 = vsel %vm13151_vm6, %v13150_v24, %v1784_v44  ;;  %5949 = vrot.lane.b32.xlu0 %v4693_v47, %s8967_s20  ;;  %v5448_v50 = vrot.slane %v5446_v42, 4  ;;  %v1505_v52 = vld [vmem:[#allocation2 + $0x1d8] sm:$0xf] }
 0x360   :  { %v5457_v0 = vshll.u32 %v5029_v45, 16  ;;  %v6347_v22 = vsel %vm281_vm0, %v6283_v32, %v11293_v1  ;;  %v4983_v58 = vsel %vm2154_vm9, %v4981_v14, %v4982_v38  ;;  %v5451_v49 = vrot.slane %v5449_v11, 5  ;;  %v11841_v45 = vpop.permute.xlu0 %5749 }
 0x361   :  { %v5456_v20 = vrot.slane %v5454_v39, 4  ;;  %v6412_v8 = vsel %vm6384_vm5, %v6347_v22, %v11425_v29  ;;  %v2235_v62 = vsel %vm2154_vm9, %v2233_v26, %v2234_v7  ;;  %v2236_v44 = vrot.slane %v2085_v61, 4  ;;  %v2278_v26 = vld [vmem:[#allocation2 + $0x1d8] sm:$0x1f]  ;;  %v11851_v7 = vpop.permute.xlu1 %5815 }
 0x362   :  { %v5459_v33 = vrot.slane %v5457_v0, 5  ;;  %v6477_v23 = vsel %vm6449_vm11, %v6412_v8, %v11656_v27  ;;  %v5452_v55 = vor.u32 %v5451_v49, %v5448_v50  ;;  %v2237_v51 = vrot.slane %v1505_v52, 4 }
 0x363   :  { %5633 = vrot.lane.b32.xlu1 %v2235_v62, %s8963_s12  ;;  %v6542_v1 = vsel %vm6514_vm12, %v6477_v23, %v11536_v28  ;;  %v5463_v30 = vshrl.u32 %v11784_v37, 16  ;;  %6013 = vrot.lane.b32.xlu0 %v4983_v58, %s8964_s17  ;;  %vm13152_vm15 = vcmask 261120   ;;  %v5466_v27 = vshll.u32 %v11784_v37, 16 }
 0x364   :  { %v5460_v29 = vor.u32 %v5459_v33, %v5456_v20  ;;  %v6607_v32 = vsel %vm13152_vm15, %v6542_v1, %v11662_v57  ;;  %v5471_v25 = vshrl.u32 %v5030_v10, 16  ;;  %vm13153_vm3 = vcmask 31744   ;;  %v11862_v8 = vpop.permute.xlu0 %5813  ;;  %vm13160_vm6 = vmmov %vm13152_vm15 }
 0x365   :  { %v6141_v14 = vsel %vm13153_vm3, %v1785_v40, %v11555_v63  ;;  %v2238_v38 = vsel %vm2154_vm9, %v2236_v44, %v2237_v51  ;;  %v5465_v28 = vrot.slane %v5463_v30, 4  ;;  %v5474_v36 = vshll.u32 %v5030_v10, 16  ;;  %v2277_v40 = vld [vmem:[#allocation2 + $0x1c8] sm:$0x1f]  ;;  %v11865_v1 = vpop.permute.xlu1 %5879 }
 0x366   :  { %vm13154_vm1 = vcmask 293888   ;;  %v5461_v42 = vsel %vm2283_vm10, %v5452_v55, %v5460_v29  ;;  %v5468_v47 = vrot.slane %v5466_v27, 5  ;;  %v5473_v11 = vrot.slane %v5471_v25, 4  ;;  %v1490_v55 = vld [vmem:[#allocation2 + $0x160] sm:$0xf8] }
 0x367   :  { %8735 = vmatmul.mubr.msk.bf16.gmra.mrb[56].mxu1 %vm13154_vm1, %v6607_v32  ;;  %vm13155_vm2 = vcmask 64512   ;;  %5635 = vrot.lane.b32.xlu1 %v2238_v38, %s8963_s12  ;;  %v5476_v37 = vrot.slane %v5474_v36, 5  ;;  %v6285_v63 = vsel %vm6255_vm4, %v6220_v13, %v11690_v3  ;;  %v2744_v39 = vshrl.u32 %v2085_v61, 16  ;;  %v11868_v30 = vld [vmem:[#allocation2 + $0x188] sm:$0xf]  ;;  %vm13162_vm3 = vmmov %vm13154_vm1 }
 0x368   :  { %v6222_v57 = vsel %vm13155_vm2, %v6141_v14, %v11679_v2  ;;  %v2747_v24 = vshll.u32 %v2085_v61, 16  ;;  %6077 = vrot.lane.b32.xlu0 %v5461_v42, %s8969_s22  ;;  %v5469_v50 = vor.u32 %v5468_v47, %v5465_v28  ;;  %v2752_v0 = vshrl.u32 %v2278_v26, 16  ;;  %v2882_v27 = vld [vmem:[#allocation2 + $0x1e0] sm:$0xf8]  ;;  %v11873_v14 = vld [vmem:[#allocation2 + $0x198] sm:$0xf]  ;;  %vm13166_vm2 = vmmov %vm13160_vm6 }
 0x369   :  { %v2755_v22 = vshll.u32 %v2278_v26, 16  ;;  %v2727_v52 = vshrl.u32 %v11800_v6, 16  ;;  %v5477_v58 = vor.u32 %v5476_v37, %v5473_v11  ;;  %v2746_v49 = vrot.slane %v2744_v39, 4  ;;  %v2883_v26 = vld [vmem:[#allocation2 + $0x1e8] sm:$0xf] }
 0x36a   :  { %v2749_v20 = vrot.slane %v2747_v24, 5  ;;  %v2730_v2 = vshll.u32 %v11800_v6, 16  ;;  %v2754_v10 = vrot.slane %v2752_v0, 4  ;;  %v2735_v13 = vshrl.u32 %v2277_v40, 16  ;;  %v2880_v39 = vld [vmem:[#allocation2 + $0x1d0] sm:$0xf8] }
 0x36b   :  { %v2757_v62 = vrot.slane %v2755_v22, 5  ;;  %v2729_v3 = vrot.slane %v2727_v52, 4  ;;  %v5478_v61 = vsel %vm2283_vm10, %v5469_v50, %v5477_v58  ;;  %v2738_v44 = vshll.u32 %v2277_v40, 16  ;;  %v11884_v22 = vpop.permute.xlu0 %5877 }
 0x36c   :  { %v2750_v33 = vor.u32 %v2749_v20, %v2746_v49  ;;  %v2732_v23 = vrot.slane %v2730_v2, 5  ;;  %v1883_v51 = vshll.u32 %v11602_v18, 16  ;;  %6079 = vrot.lane.b32.xlu0 %v5478_v61, %s8969_s22  ;;  %v2737_v32 = vrot.slane %v2735_v13, 4  ;;  %v2881_v49 = vld [vmem:[#allocation2 + $0x1d8] sm:$0xf] }
 0x36d   :  { %v2758_v29 = vor.u32 %v2757_v62, %v2754_v10  ;;  %v2740_v36 = vrot.slane %v2738_v44, 5  ;;  %v6287_v42 = vsel %vm6255_vm4, %v6222_v57, %v11581_v48  ;;  %v1855_v11 = vshrl.u32 %v1490_v55, 16 }
 0x36e   :  { %v2733_v28 = vor.u32 %v2732_v23, %v2729_v3  ;;  %v6349_v37 = vsel %vm281_vm0, %v6285_v63, %v11558_v31  ;;  %v1858_v40 = vshll.u32 %v1490_v55, 16  ;;  %v3352_v0 = vshrl.u32 %v2882_v27, 16  ;;  %v3463_v55 = vld [vmem:[#allocation2 + $0x1e0] sm:$0xf0] }
 0x36f   :  { %v2759_v47 = vsel %vm2283_vm10, %v2750_v33, %v2758_v29  ;;  %v2741_v24 = vor.u32 %v2740_v36, %v2737_v32  ;;  %v6414_v50 = vsel %vm6384_vm5, %v6349_v37, %v11704_v43  ;;  %v13156_v52 = vshrl.u32 %v11089_v35, 16  ;;  %v11895_v43 = vpop.permute.xlu1 %5943  ;;  %v3462_v36 = vld [vmem:[#allocation2 + $0x1d0] sm:$0xf0] }
 0x370   :  { %5699 = vrot.lane.b32.xlu1 %v2759_v47, %s8970_s23  ;;  %v13157_v57 = vshll.u32 %v11588_v53, 16  ;;  %v3355_v31 = vshll.u32 %v2882_v27, 16  ;;  %v3360_v63 = vshrl.u32 %v2883_v26, 16  ;;  %v3354_v2 = vrot.slane %v3352_v0, 3 }
 0x371   :  { %v11888_v48 = vrot.slane %v13156_v52, 3  ;;  %v2742_v20 = vsel %vm2283_vm10, %v2733_v28, %v2741_v24  ;;  %v3363_v10 = vshll.u32 %v2883_v26, 16  ;;  %v3335_v62 = vshrl.u32 %v2880_v39, 16  ;;  %v13158_v24 = vld [vmem:[#allocation33_spill] sm:$0xff]  ;;  %v13159_v52 = vld [vmem:[#allocation59_spill] sm:$0xff] }
 0x372   :  { %v11892_v58 = vrot.slane %v13157_v57, 4  ;;  %5697 = vrot.lane.b32.xlu0 %v2742_v20, %s8970_s23  ;;  %v6479_v35 = vsel %vm6449_vm11, %v6414_v50, %v11597_v19  ;;  %v3357_v3 = vrot.slane %v3355_v31, 4  ;;  %v3362_v13 = vrot.slane %v3360_v63, 3  ;;  %v3655_v31 = vld [vmem:[#allocation2 + $0x1e8] sm:$0x1f] }
 0x373   :  { %v3338_v53 = vshll.u32 %v2880_v39, 16  ;;  %v11900_v61 = vrot.slane %v1855_v11, 3  ;;  %v3365_v33 = vrot.slane %v3363_v10, 4  ;;  %v3337_v23 = vrot.slane %v3335_v62, 3  ;;  %v11908_v11 = vpop.permute.xlu0 %5941  ;;  %v11914_v62 = vpop.permute.xlu1 %6007 }
 0x374   :  { %v3343_v44 = vshrl.u32 %v2881_v49, 16  ;;  %v11902_v29 = vrot.slane %v1858_v40, 4  ;;  %v3358_v32 = vor.u32 %v3357_v3, %v3354_v2  ;;  %v3346_v28 = vshll.u32 %v2881_v49, 16  ;;  %v13163_v3 = vld [vmem:[#allocation46_spill] sm:$0xff] }
 0x375   :  { %v3340_v27 = vrot.slane %v3338_v53, 4  ;;  %v3366_v37 = vor.u32 %v3365_v33, %v3362_v13  ;;  %v6544_v39 = vsel %vm6514_vm12, %v6479_v35, %v13158_v24  ;;  %v3613_v57 = vrot.slane %v3463_v55, 4 }
 0x376   :  { %v3345_v19 = vrot.slane %v3343_v44, 3  ;;  %v3348_v0 = vrot.slane %v3346_v28, 4  ;;  %v6609_v40 = vsel %vm13160_vm6, %v6544_v39, %v13159_v52  ;;  %vm13161_vm15 = vsmask.f32 4352  ;;  %v3654_v28 = vld [vmem:[#allocation2 + $0x1d8] sm:$0x1f]  ;;  %vm13168_vm6 = vmmov %vm13162_vm3 }
 0x377   :  { %v3341_v50 = vor.u32 %v3340_v27, %v3337_v23  ;;  %v3367_v63 = vsel %vm13161_vm15, %v3358_v32, %v3366_v37  ;;  %8738 = vmatprep.mubr.msk.bf16.mxu1 %vm13162_vm3, %v6609_v40  ;;  %v3614_v20 = vrot.slane %v2883_v26, 4  ;;  %v3610_v2 = vrot.slane %v3462_v36, 4  ;;  %v13164_v32 = vld [vmem:[#allocation55_spill] sm:$0xff]  ;;  %vm13165_vm1 = vmmov %vm13161_vm15  ;;  %v11929_v40 = vpop.permute.xlu0 %6005 }
 0x378   :  { %v3611_v10 = vrot.slane %v2881_v49, 4  ;;  %5763 = vrot.lane.b32.xlu1 %v3367_v63, %s8966_s19  ;;  %v3349_v35 = vor.u32 %v3348_v0, %v3345_v19  ;;  %v6351_v13 = vsel %vm281_vm0, %v6287_v42, %v13163_v3  ;;  %v4120_v53 = vshrl.u32 %v3463_v55, 16  ;;  %v1492_v52 = vld [vmem:[#allocation2 + $0x170] sm:$0xf8]  ;;  %v11939_v3 = vpop.permute.xlu1 %5625  ;;  %vm13179_vm15 = vmmov %vm13166_vm2 }
 0x379   :  { %v4123_v33 = vshll.u32 %v3463_v55, 16  ;;  %v3615_v23 = vsel %vm2154_vm9, %v3613_v57, %v3614_v20  ;;  %v6416_v27 = vsel %vm6384_vm5, %v6351_v13, %v13164_v32  ;;  %v4128_v26 = vshrl.u32 %v3655_v31, 16  ;;  %v11941_v13 = vpop.f32.mrb[40].mxu1  ;;  %vm13184_vm3 = vmmov %vm13166_vm2 }
 0x37a   :  { %v3612_v44 = vsel %vm2154_vm9, %v3610_v2, %v3611_v10  ;;  %v3350_v49 = vsel %vm13165_vm1, %v3341_v50, %v3349_v35  ;;  %v6481_v37 = vsel %vm6449_vm11, %v6416_v27, %v11734_v41  ;;  %v4122_v19 = vrot.slane %v4120_v53, 4  ;;  %v11944_v32 = vpop.f32.mrb[41].mxu1  ;;  %v13171_v27 = vld [vmem:[#allocation13_spill] sm:$0xff]  ;;  %vm13185_vm1 = vmmov %vm13168_vm6 }
 0x37b   :  { %v4125_v24 = vrot.slane %v4123_v33, 5  ;;  %5761 = vrot.lane.b32.xlu0 %v3350_v49, %s8966_s19  ;;  %v6546_v42 = vsel %vm6514_vm12, %v6481_v37, %v11721_v56  ;;  %v4130_v55 = vrot.slane %v4128_v26, 4  ;;  %v4131_v39 = vshll.u32 %v3655_v31, 16  ;;  %v8902_v56 = vld [vmem:[%s12793_s4] ss:$0 sm:$0xff]  ;;  %v13167_v31 = vld [vmem:[#allocation48_spill] sm:$0xff] }
 0x37c   :  { %v4103_v0 = vshrl.u32 %v3462_v36, 16  ;;  %5827 = vrot.lane.b32.xlu1 %v3615_v23, %s8965_s18  ;;  %v6611_v50 = vsel %vm13166_vm2, %v6546_v42, %v11757_v17  ;;  %v4106_v41 = vshll.u32 %v3462_v36, 16  ;;  %v4111_v63 = vshrl.u32 %v3654_v28, 16  ;;  %v13169_v33 = vld [vmem:[#allocation28_spill] sm:$0xff]  ;;  %13170 = vst [vmem:[#allocation30_spill] sm:$0xff] %v11944_v32  ;;  %v13172_v26 = vld [vmem:[#allocation34_spill] sm:$0xff]  ;;  %vm13187_vm2 = vmmov %vm13185_vm1 }
 0x37d   :  { %v4126_v57 = vor.u32 %v4125_v24, %v4122_v19  ;;  %v4133_v20 = vrot.slane %v4131_v39, 5  ;;  %v4114_v10 = vshll.u32 %v3654_v28, 16  ;;  %v661_v35 = vadd.f32 %v8902_v56, %v13167_v31  ;;  %8739 = vmatmul.mubr.msk.bf16.gmra.mrb[60].mxu1 %vm13168_vm6, %v6611_v50  ;;  %v11950_v24 = vpop.f32.mrb[42].mxu1  ;;  %vm13188_vm6 = vmmov %vm13185_vm1 }
 0x37e   :  { %v4105_v2 = vrot.slane %v4103_v0, 4  ;;  %v4108_v53 = vrot.slane %v4106_v41, 5  ;;  %v4113_v17 = vrot.slane %v4111_v63, 4  ;;  %v653_v36 = vadd.f32 %v8902_v56, %v13169_v33  ;;  %v11954_v41 = vpop.f32.mrb[43].mxu1 }
 0x37f   :  { %v1872_v23 = vshrl.u32 %v1492_v52, 16  ;;  %v6552_v28 = vsel %vm6514_vm12, %v13172_v26, %v13171_v27  ;;  %5825 = vrot.lane.b32.xlu0 %v3612_v44, %s8965_s18  ;;  %v4134_v49 = vor.u32 %v4133_v20, %v4130_v55  ;;  %v4116_v37 = vrot.slane %v4114_v10, 5  ;;  %13173 = vst [vmem:[#allocation41_spill] sm:$0xff] %v11954_v41  ;;  %v4259_v55 = vld [vmem:[#allocation2 + $0x1f0] sm:$0xf8]  ;;  %v13186_v26 = vld [vmem:[#allocation18_spill] sm:$0xff] }
 0x380   :  { %v1875_v19 = vshll.u32 %v1492_v52, 16  ;;  %v4109_v42 = vor.u32 %v4108_v53, %v4105_v2  ;;  %v729_v39 = vmax.f32 %v661_v35, 0.0  ;;  %v727_v0 = vmax.f32 %v653_v36, 0.0  ;;  %v11963_v52 = vpop.permute.xlu0 %6069  ;;  %v13175_v2 = vld [vmem:[#allocation49_spill] sm:$0xff]  ;;  %v13176_v35 = vld [vmem:[#allocation39_spill] sm:$0xff] }
 0x381   :  { %v11952_v50 = vrot.slane %v1872_v23, 3  ;;  %v4135_v63 = vsel %vm2283_vm10, %v4126_v57, %v4134_v49  ;;  %v4117_v31 = vor.u32 %v4116_v37, %v4113_v17  ;;  %v13174_v27 = vshrl.u32 %v11602_v18, 16  ;;  %v13177_v57 = vld [vmem:[#allocation47_spill] sm:$0xff]  ;;  %v11975_v23 = vld [vmem:[#allocation2 + $0x1f8] sm:$0xf]  ;;  %v13181_v37 = vld [vmem:[#allocation54_spill] sm:$0xff] }
 0x382   :  { %v11957_v33 = vrot.slane %v1875_v19, 4  ;;  %5891 = vrot.lane.b32.xlu1 %v4135_v63, %s8968_s21  ;;  %v11968_v20 = vrot.slane %v1883_v51, 4  ;;  %v664_v10 = vadd.f32 %v8902_v56, %v13175_v2  ;;  %v6483_v53 = vsel %vm6449_vm11, %v13177_v57, %v13176_v35  ;;  %v13178_v17 = vld [vmem:[#allocation31_spill] sm:$0xff]  ;;  %v11987_v63 = vpop.permute.xlu1 %5627 }
 0x383   :  { %v11961_v44 = vrot.slane %v13174_v27, 3  ;;  %v656_v36 = vadd.f32 %v8902_v56, %v13178_v17  ;;  %v6617_v49 = vsel %vm13179_vm15, %v6552_v28, %v11724_v15  ;;  %v4118_v18 = vsel %vm2283_vm10, %v4109_v42, %v4117_v31  ;;  %v13180_v51 = vld [vmem:[#allocation27_spill] sm:$0xff]  ;;  %v13182_v27 = vld [vmem:[#allocation22_spill] sm:$0xff]  ;;  %v4257_v17 = vld [vmem:[#allocation2 + $0x1e0] sm:$0xf8] }
 0x384   :  { %v11985_v19 = vsel %vm6514_vm12, %v13181_v37, %v13180_v51  ;;  %5889 = vrot.lane.b32.xlu0 %v4118_v18, %s8968_s21  ;;  %v730_v56 = vmax.f32 %v664_v10, 0.0  ;;  %v6548_v2 = vsel %vm6514_vm12, %v6483_v53, %v13182_v27  ;;  %v4729_v57 = vshrl.u32 %v4259_v55, 16  ;;  %v13183_v28 = vld [vmem:[#allocation10_spill] sm:$0xff] }
 0x385   :  { %v728_v35 = vmax.f32 %v656_v36, 0.0  ;;  %v6613_v42 = vsel %vm13184_vm3, %v6548_v2, %v13183_v28  ;;  %v4732_v31 = vshll.u32 %v4259_v55, 16  ;;  %v4737_v51 = vshrl.u32 %v11975_v23, 16  ;;  %v1182_v36 = vld [vmem:[#allocation2 + $0x220] sm:$0x8]  ;;  %v12003_v55 = vpop.permute.xlu0 %6071 }
 0x386   :  { %v1886_v37 = vor.u32 %v11968_v20, %v11961_v44  ;;  %v762_v18 = vpack.c.bf16 %v730_v56, %v729_v39  ;;  %8742 = vmatprep.mubr.msk.bf16.mxu1 %vm13185_vm1, %v6613_v42  ;;  %v4731_v53 = vrot.slane %v4729_v57, 3  ;;  %v1409_v27 = vld [vmem:[#allocation2 + $0x228] sm:$0x10]  ;;  %v4740_v6 = vshll.u32 %v11975_v23, 16  ;;  %v12005_v20 = vld [vmem:[#allocation2 + $0x1e8] sm:$0xf] }
 0x387   :  { %v761_v10 = vpack.c.bf16 %v728_v35, %v727_v0  ;;  %v4734_v38 = vrot.slane %v4732_v31, 4  ;;  %v4739_v25 = vrot.slane %v4737_v51, 3  ;;  %v4712_v15 = vshrl.u32 %v4257_v17, 16  ;;  %8743 = vmatmul.mubr.msk.bf16.gmra.mrb[64].mxu1 %vm13187_vm2, %v13186_v26  ;;  %v1179_v56 = vld [vmem:[#allocation2 + $0x210] sm:$0x8]  ;;  %v12008_v31 = vpop.permute.xlu1 %5691 }
 0x388   :  { %v826_v2 = vrot.slane %v762_v18, 4  ;;  %v1051_v28 = vshll.u32 %v762_v18, 16  ;;  %v1278_v44 = vshrl.u32 %v762_v18, 16  ;;  %8746 = vmatprep.mubr.msk.bf16.mxu1 %vm13188_vm6, %v6617_v49  ;;  %v4742_v42 = vrot.slane %v4740_v6, 4  ;;  %v1406_v18 = vld [vmem:[#allocation2 + $0x218] sm:$0x10] }
 0x389   :  { %v825_v39 = vrot.slane %v761_v10, 4  ;;  %v1047_v0 = vshll.u32 %v761_v10, 16  ;;  %v1275_v35 = vshrl.u32 %v761_v10, 16  ;;  %v4735_v57 = vor.u32 %v4734_v38, %v4731_v53 }
 0x38a   :  { %vm13189_vm15 = vcmask 31748   ;;  %vm13190_vm3 = vcmask 27648   ;;  %v1053_v26 = vrot.slane %v1051_v28, 5  ;;  %v1280_v51 = vrot.slane %v1278_v44, 3  ;;  %v12020_v44 = vld [vmem:[#allocation2 + $0x1f0] sm:$0xf0] }
 0x38b   :  { %924 = vst.msk [vmem:[#allocation2 + $0x220] sm:$0xf0] %vm13189_vm15, %v826_v2  ;;  %vm13191_vm1 = vmmov %vm13189_vm15  ;;  %v4714_v47 = vrot.slane %v4712_v15, 3  ;;  %v4715_v49 = vshll.u32 %v4257_v17, 16  ;;  %v1049_v41 = vrot.slane %v1047_v0, 5  ;;  %v1277_v32 = vrot.slane %v1275_v35, 3 }
 0x38c   :  { %925 = vst.msk [vmem:[#allocation2 + $0x228] sm:$0xf] %vm13190_vm3, %v826_v2  ;;  %vm13192_vm2 = vmmov %vm13190_vm3  ;;  %v4743_v10 = vor.u32 %v4742_v42, %v4739_v25  ;;  %v4720_v6 = vshrl.u32 %v12005_v20, 16  ;;  %v1183_v38 = vsel %vm9069_vm7, %v1053_v26, %v1182_v36  ;;  %v1410_v53 = vsel %vm9078_vm8, %v1280_v51, %v1409_v27  ;;  %v12027_v36 = vpop.permute.xlu0 %5689  ;;  %v1507_v26 = vld [vmem:[#allocation2 + $0x1e8] sm:$0xf]  ;;  %v12050_v51 = vpop.permute.xlu1 %5755 }
 0x38d   :  { %922 = vst.msk [vmem:[#allocation2 + $0x210] sm:$0xf0] %vm13191_vm1, %v825_v39  ;;  %v4717_v2 = vrot.slane %v4715_v49, 4  ;;  %v4723_v28 = vshll.u32 %v12005_v20, 16  ;;  %1184 = vst [vmem:[#allocation2 + $0x220] sm:$0x8] %v1183_v38  ;;  %v1180_v17 = vsel %vm9069_vm7, %v1049_v41, %v1179_v56  ;;  %v1407_v25 = vsel %vm9078_vm8, %v1277_v32, %v1406_v18 }
 0x38e   :  { %923 = vst.msk [vmem:[#allocation2 + $0x218] sm:$0xf] %vm13192_vm2, %v825_v39  ;;  %1411 = vst [vmem:[#allocation2 + $0x228] sm:$0x10] %v1410_v53  ;;  %vm13193_vm6 = vsmask.f32 4352  ;;  %v13195_v32 = vor.u32 %v11892_v58, %v11888_v48  ;;  %v13196_v35 = vor.u32 %v11902_v29, %v11900_v61 }
 0x38f   :  { %v4744_v15 = vsel %vm13193_vm6, %v4735_v57, %v4743_v10  ;;  %v4722_v39 = vrot.slane %v4720_v6, 3  ;;  %v1917_v27 = vshll.u32 %v11873_v14, 16  ;;  %vm13194_vm15 = vcmask 261120   ;;  %1181 = vst [vmem:[#allocation2 + $0x210] sm:$0x8] %v1180_v17  ;;  %vm13197_vm7 = vmmov %vm13193_vm6 }
 0x390   :  { %v6619_v0 = vsel %vm13194_vm15, %v11985_v19, %v11782_v54  ;;  %1408 = vst [vmem:[#allocation2 + $0x218] sm:$0x10] %v1407_v25  ;;  %5955 = vrot.lane.b32.xlu1 %v4744_v15, %s8967_s20  ;;  %v4718_v60 = vor.u32 %v4717_v2, %v4714_v47  ;;  %v4725_v41 = vrot.slane %v4723_v28, 4  ;;  %v4839_v56 = vld [vmem:[#allocation2 + $0x1e0] sm:$0xf0]  ;;  %v1870_v57 = vsel %vm13197_vm7, %v13196_v35, %v13195_v32  ;;  %vm13199_vm8 = vmmov %vm13193_vm6  ;;  %v12069_v15 = vpop.permute.xlu0 %5753 }
 0x391   :  { %v13198_v54 = vor.u32 %v11957_v33, %v11952_v50  ;;  %v4990_v42 = vrot.slane %v12020_v44, 4  ;;  %v4991_v47 = vrot.slane %v11975_v23, 4  ;;  %vm13200_vm3 = vcmask 293888   ;;  %v12052_v48 = vld [vmem:[#allocation2 + $0x1a8] sm:$0xf] }
 0x392   :  { %8747 = vmatmul.mubr.msk.bf16.gmra.mrb[68].mxu1 %vm13200_vm3, %v6619_v0  ;;  %v1931_v58 = vshrl.u32 %v12052_v48, 16  ;;  %vm13201_vm1 = vcmask 31744   ;;  %v4726_v50 = vor.u32 %v4725_v41, %v4722_v39  ;;  %v5031_v33 = vld [vmem:[#allocation2 + $0x1e8] sm:$0x1f]  ;;  %v4987_v23 = vrot.slane %v4839_v56, 4  ;;  %vm13209_vm3 = vmmov %vm13193_vm6 }
 0x393   :  { %v1887_v19 = vsel %vm13199_vm8, %v13198_v54, %v1886_v37  ;;  %v6156_v61 = vsel %vm13201_vm1, %v1870_v57, %v11700_v9  ;;  %vm13202_vm2 = vmmov %vm13201_vm1  ;;  %v4992_v37 = vsel %vm2154_vm9, %v4990_v42, %v4991_v47  ;;  %v4988_v18 = vrot.slane %v12005_v20, 4  ;;  %v1447_v10 = vld [vmem:[#allocation2 + $0x238] sm:$0x1f]  ;;  %v2087_v25 = vld [vmem:[#allocation2 + $0x1f0] sm:$0xf0] }
 0x394   :  { %v6159_v29 = vsel %vm13202_vm2, %v1887_v19, %v11772_v59  ;;  %v2239_v49 = vrot.slane %v12034_v4, 4  ;;  %v4727_v6 = vsel %vm13193_vm6, %v4718_v60, %v4726_v50  ;;  %6019 = vrot.lane.b32.xlu1 %v4992_v37, %s8964_s17  ;;  %v2240_v38 = vrot.slane %v1507_v26, 4  ;;  %v1509_v17 = vld [vmem:[#allocation2 + $0x1f8] sm:$0xf]  ;;  %v12078_v19 = vpop.permute.xlu1 %5819  ;;  %vm13208_vm8 = vmmov %vm13201_vm1 }
 0x395   :  { %v5480_v53 = vshrl.u32 %v4839_v56, 16  ;;  %v5483_v9 = vshll.u32 %v4839_v56, 16  ;;  %5953 = vrot.lane.b32.xlu0 %v4727_v6, %s8967_s20  ;;  %vm13203_vm15 = vcmask 64512   ;;  %v5488_v28 = vshrl.u32 %v5031_v33, 16  ;;  %v1436_v39 = vld [vmem:[#allocation2 + $0x228] sm:$0x1f]  ;;  %vm13211_vm6 = vmmov %vm13209_vm3 }
 0x396   :  { %v6234_v59 = vsel %vm13203_vm15, %v6159_v29, %v11791_v21  ;;  %vm13204_vm7 = vmmov %vm13203_vm15  ;;  %v5491_v20 = vshll.u32 %v5031_v33, 16  ;;  %v5032_v32 = vld [vmem:[#allocation2 + $0x1f8] sm:$0x1f]  ;;  %v1448_v35 = vsel %vm9449_vm14, %v1436_v39, %v1447_v10  ;;  %v4989_v42 = vsel %vm2154_vm9, %v4987_v23, %v4988_v18  ;;  %v12088_v33 = vld [vmem:[%s12794_s5] ss:$0 sm:$0xff] }
 0x397   :  { %v6232_v2 = vsel %vm13204_vm7, %v6156_v61, %v11813_v46  ;;  %v6299_v0 = vsel %vm6255_vm4, %v6234_v59, %v11822_v34  ;;  %v5482_v41 = vrot.slane %v5480_v53, 4  ;;  %v5485_v56 = vrot.slane %v5483_v9, 5  ;;  %1449 = vst [vmem:[#allocation2 + $0x238] sm:$0x1f] %v1448_v35  ;;  %v2280_v10 = vld [vmem:[#allocation2 + $0x1f8] sm:$0x1f]  ;;  %v12101_v9 = vpop.permute.xlu0 %5817 }
 0x398   :  { %v6297_v60 = vsel %vm6255_vm4, %v6232_v2, %v11841_v45  ;;  %v2241_v46 = vsel %vm2154_vm9, %v2239_v49, %v2240_v38  ;;  %v5490_v57 = vrot.slane %v5488_v28, 4  ;;  %v5493_v54 = vrot.slane %v5491_v20, 5 }
 0x399   :  { %5637 = vrot.lane.b32.xlu1 %v2241_v46, %s8963_s12  ;;  %v5486_v34 = vor.u32 %v5485_v56, %v5482_v41  ;;  %v2242_v47 = vrot.slane %v2087_v25, 4  ;;  %v2243_v45 = vrot.slane %v1509_v17, 4  ;;  %6017 = vrot.lane.b32.xlu0 %v4989_v42, %s8964_s17  ;;  %v5497_v61 = vshrl.u32 %v12020_v44, 16 }
 0x39a   :  { %v5494_v26 = vor.u32 %v5493_v54, %v5490_v57  ;;  %v5500_v29 = vshll.u32 %v12020_v44, 16  ;;  %v5505_v50 = vshrl.u32 %v5032_v32, 16  ;;  %v12092_v37 = vsel %vm281_vm0, %v6299_v0, %v11851_v7  ;;  %v2279_v0 = vld [vmem:[#allocation2 + $0x1e8] sm:$0x1f] }
 0x39b   :  { %v6361_v23 = vsel %vm281_vm0, %v6297_v60, %v11862_v8  ;;  %v2244_v18 = vsel %vm2154_vm9, %v2242_v47, %v2243_v45  ;;  %v5508_v49 = vshll.u32 %v5032_v32, 16  ;;  %v5499_v6 = vrot.slane %v5497_v61, 4  ;;  %v12118_v61 = vld [vmem:[#allocation2 + $0x208] sm:$0xf] }
 0x39c   :  { %v5502_v38 = vrot.slane %v5500_v29, 5  ;;  %v5507_v44 = vrot.slane %v5505_v50, 4  ;;  %v12099_v53 = vsel %vm6384_vm5, %v6361_v23, %v11884_v22  ;;  %v5495_v59 = vsel %vm2283_vm10, %v5486_v34, %v5494_v26  ;;  %v12108_v22 = vpop.permute.xlu1 %5883  ;;  %v2886_v26 = vld [vmem:[#allocation2 + $0x200] sm:$0xf8]  ;;  %v12120_v29 = vpop.permute.xlu0 %5881 }
 0x39d   :  { %5639 = vrot.lane.b32.xlu1 %v2244_v18, %s8963_s12  ;;  %v5510_v7 = vrot.slane %v5508_v49, 5  ;;  %v6783_v8 = vadd.f32 %v11664_v12, %v12088_v33  ;;  %v2778_v2 = vshrl.u32 %v2087_v25, 16  ;;  %6081 = vrot.lane.b32.xlu0 %v5495_v59, %s8969_s22  ;;  %v2781_v20 = vshll.u32 %v2087_v25, 16  ;;  %v13206_v18 = vld [vmem:[#allocation21_spill] sm:$0xff] }
 0x39e   :  { %v5503_v28 = vor.u32 %v5502_v38, %v5499_v6  ;;  %v2786_v17 = vshrl.u32 %v2280_v10, 16  ;;  %v2789_v39 = vshll.u32 %v2280_v10, 16  ;;  %v6775_v41 = vadd.f32 %v12088_v33, %v11674_v16  ;;  %v2884_v10 = vld [vmem:[#allocation2 + $0x1f0] sm:$0xf8] }
 0x39f   :  { %v5511_v60 = vor.u32 %v5510_v7, %v5507_v44  ;;  %v2780_v56 = vrot.slane %v2778_v2, 4  ;;  %v2761_v32 = vshrl.u32 %v12034_v4, 16  ;;  %v2783_v21 = vrot.slane %v2781_v20, 5 }
 0x3a0   :  { %v2788_v35 = vrot.slane %v2786_v17, 4  ;;  %v2791_v12 = vrot.slane %v2789_v39, 5  ;;  %v2764_v46 = vshll.u32 %v12034_v4, 16  ;;  %v2769_v54 = vshrl.u32 %v2279_v0, 16  ;;  %v12125_v7 = vpop.permute.xlu1 %5947 }
 0x3a1   :  { %v5512_v57 = vsel %vm2283_vm10, %v5503_v28, %v5511_v60  ;;  %v2763_v25 = vrot.slane %v2761_v32, 4  ;;  %v2772_v42 = vshll.u32 %v2279_v0, 16  ;;  %v2784_v34 = vor.u32 %v2783_v21, %v2780_v56  ;;  %v2885_v0 = vld [vmem:[#allocation2 + $0x1f8] sm:$0xf] }
 0x3a2   :  { %6083 = vrot.lane.b32.xlu0 %v5512_v57, %s8969_s22  ;;  %v2792_v47 = vor.u32 %v2791_v12, %v2788_v35  ;;  %v2766_v45 = vrot.slane %v2764_v46, 5  ;;  %v6786_v16 = vadd.f32 %v11681_v5, %v12088_v33  ;;  %v7031_v50 = vmax.f32 %v6783_v8, 0.0 }
 0x3a3   :  { %v2771_v4 = vrot.slane %v2769_v54, 4  ;;  %v2774_v23 = vrot.slane %v2772_v42, 5  ;;  %v6778_v49 = vadd.f32 %v12088_v33, %v13206_v18  ;;  %v7029_v6 = vmax.f32 %v6775_v41, 0.0  ;;  %v12132_v54 = vpop.permute.xlu0 %5945 }
 0x3a4   :  { %v2793_v38 = vsel %vm2283_vm10, %v2784_v34, %v2792_v47  ;;  %v2767_v44 = vor.u32 %v2766_v45, %v2763_v25  ;;  %v7032_v59 = vmax.f32 %v6786_v16, 0.0  ;;  %v3386_v28 = vshrl.u32 %v2886_v26, 16  ;;  %v3465_v25 = vld [vmem:[#allocation2 + $0x200] sm:$0xf0]  ;;  %v8904_v45 = vld [vmem:[%s12792_s3] sm:$0x3] }
 0x3a5   :  { %5703 = vrot.lane.b32.xlu1 %v2793_v38, %s8970_s23  ;;  %v2775_v5 = vor.u32 %v2774_v23, %v2771_v4  ;;  %v7030_v2 = vmax.f32 %v6778_v49, 0.0  ;;  %v3389_v20 = vshll.u32 %v2886_v26, 16  ;;  %v3394_v17 = vshrl.u32 %v12118_v61, 16  ;;  %v3464_v26 = vld [vmem:[#allocation2 + $0x1f0] sm:$0xf0] }
 0x3a6   :  { %v7094_v8 = vpack.c.bf16 %v7032_v59, %v7031_v50  ;;  %v3397_v39 = vshll.u32 %v12118_v61, 16  ;;  %v3369_v60 = vshrl.u32 %v2884_v10, 16  ;;  %v3388_v32 = vrot.slane %v3386_v28, 3  ;;  %v1494_v49 = vld [vmem:[#allocation2 + $0x180] sm:$0xf8] }
 0x3a7   :  { %v2776_v41 = vsel %vm2283_vm10, %v2767_v44, %v2775_v5  ;;  %v7093_v56 = vpack.c.bf16 %v7030_v2, %v7029_v6  ;;  %v3391_v21 = vrot.slane %v3389_v20, 4  ;;  %v3396_v35 = vrot.slane %v3394_v17, 3  ;;  %v3657_v17 = vld [vmem:[#allocation2 + $0x208] sm:$0x1f] }
 0x3a8   :  { %5701 = vrot.lane.b32.xlu0 %v2776_v41, %s8970_s23  ;;  %v3399_v12 = vrot.slane %v3397_v39, 4  ;;  %v3371_v46 = vrot.slane %v3369_v60, 3  ;;  %v3372_v57 = vshll.u32 %v2884_v10, 16  ;;  %v3377_v34 = vshrl.u32 %v2885_v0, 16  ;;  %v12145_v10 = vpop.permute.xlu1 %6011 }
 0x3a9   :  { %v3392_v42 = vor.u32 %v3391_v21, %v3388_v32  ;;  %v3380_v47 = vshll.u32 %v2885_v0, 16  ;;  %vm13207_vm14 = vcmask 1041408   ;;  %8776 = vmatprep.mubr.msk.bf16.mxu0 %vm13208_vm8, %v7093_v56  ;;  %v6428_v50 = vsel %vm6384_vm5, %v12092_v37, %v11865_v1  ;;  %v3656_v21 = vld [vmem:[#allocation2 + $0x1f8] sm:$0x1f]  ;;  %vm13218_vm8 = vmmov %vm13209_vm3 }
 0x3aa   :  { %v7230_v16 = vsel %vm13207_vm14, %v8904_v45, 0  ;;  %v6491_v4 = vsel %vm6449_vm11, %v12099_v53, %v11908_v11  ;;  %v3400_v23 = vor.u32 %v3399_v12, %v3396_v35  ;;  %v3374_v18 = vrot.slane %v3372_v57, 4 }
 0x3ab   :  { %8775 = vmatpush3.bf16.msra.mxu0 %v7230_v16  ;;  %v3379_v6 = vrot.slane %v3377_v34, 3  ;;  %v3382_v38 = vrot.slane %v3380_v47, 4  ;;  %v3619_v44 = vrot.slane %v3465_v25, 4  ;;  %v3620_v59 = vrot.slane %v12118_v61, 4  ;;  %v1496_v16 = vld [vmem:[#allocation2 + $0x190] sm:$0xf8] }
 0x3ac   :  { %v3401_v5 = vsel %vm13209_vm3, %v3392_v42, %v3400_v23  ;;  %v3375_v2 = vor.u32 %v3374_v18, %v3371_v46  ;;  %v3616_v28 = vrot.slane %v3464_v26, 4  ;;  %v3617_v1 = vrot.slane %v2885_v0, 4  ;;  %v12174_v57 = vpop.permute.xlu1 %5629 }
 0x3ad   :  { %v6493_v37 = vsel %vm6449_vm11, %v6428_v50, %v11895_v43  ;;  %5767 = vrot.lane.b32.xlu1 %v3401_v5, %s8966_s19  ;;  %v3383_v11 = vor.u32 %v3382_v38, %v3379_v6  ;;  %v6556_v53 = vsel %vm6514_vm12, %v6491_v4, %v11929_v40  ;;  %v1889_v20 = vshrl.u32 %v1494_v49, 16  ;;  %v12160_v43 = vpop.permute.xlu0 %6009 }
 0x3ae   :  { %8777 = vmatmul.mubr.msk.bf16.vlgmr.msra.gmra.mrb[32].mxu0 %vm13201_vm1, %v7094_v8  ;;  %v6558_v61 = vsel %vm6514_vm12, %v6493_v37, %v11914_v62  ;;  %v3621_v39 = vsel %vm2154_vm9, %v3619_v44, %v3620_v59  ;;  %v1892_v60 = vshll.u32 %v1494_v49, 16  ;;  %vm13210_vm2 = vcmask 261120   ;;  %vm13220_vm1 = vmmov %vm13209_vm3 }
 0x3af   :  { %v6621_v0 = vsel %vm13210_vm2, %v6556_v53, %v11963_v52  ;;  %v3384_v41 = vsel %vm13211_vm6, %v3375_v2, %v3383_v11  ;;  %v3618_v56 = vsel %vm2154_vm9, %v3616_v28, %v3617_v1  ;;  %v13212_v40 = vshrl.u32 %v11868_v30, 16  ;;  %v4263_v28 = vld [vmem:[#allocation2 + $0x210] sm:$0xf8]  ;;  %vm13216_vm7 = vmmov %vm13210_vm2 }
 0x3b0   :  { %v4154_v32 = vshrl.u32 %v3465_v25, 16  ;;  %vm13213_vm15 = vcmask 293888   ;;  %5765 = vrot.lane.b32.xlu0 %v3384_v41, %s8966_s19  ;;  %v13214_v62 = vshll.u32 %v11868_v30, 16  ;;  %v4157_v52 = vshll.u32 %v3465_v25, 16  ;;  %v12179_v30 = vpop.f32.mrb[44].mxu1 }
 0x3b1   :  { %v12166_v8 = vrot.slane %v13212_v40, 3  ;;  %8750 = vmatprep.mubr.msk.bf16.mxu1 %vm13213_vm15, %v6621_v0  ;;  %v4162_v12 = vshrl.u32 %v3657_v17, 16  ;;  %v4165_v46 = vshll.u32 %v3657_v17, 16  ;;  %5831 = vrot.lane.b32.xlu1 %v3621_v39, %s8965_s18  ;;  %v12177_v42 = vrot.slane %v1889_v20, 3  ;;  %v12183_v44 = vpop.f32.mrb[45].mxu1  ;;  %v12188_v1 = vpop.permute.xlu0 %6073  ;;  %vm13217_vm14 = vmmov %vm13213_vm15 }
 0x3b2   :  { %v12172_v35 = vrot.slane %v13214_v62, 4  ;;  %v4156_v34 = vrot.slane %v4154_v32, 4  ;;  %v4137_v47 = vshrl.u32 %v3464_v26, 16  ;;  %v4140_v45 = vshll.u32 %v3464_v26, 16  ;;  %v12190_v37 = vpop.f32.mrb[46].mxu1  ;;  %vm13225_vm15 = vmmov %vm13220_vm1 }
 0x3b3   :  { %v4159_v50 = vrot.slane %v4157_v52, 5  ;;  %v4164_v4 = vrot.slane %v4162_v12, 4  ;;  %v4167_v23 = vrot.slane %v4165_v46, 5  ;;  %v4145_v18 = vshrl.u32 %v3656_v21, 16  ;;  %v12192_v39 = vld [vmem:[#allocation2 + $0x218] sm:$0xf] }
 0x3b4   :  { %v12181_v49 = vrot.slane %v1892_v60, 4  ;;  %v4139_v25 = vrot.slane %v4137_v47, 4  ;;  %v4142_v6 = vrot.slane %v4140_v45, 5  ;;  %v4148_v38 = vshll.u32 %v3656_v21, 16  ;;  %5829 = vrot.lane.b32.xlu0 %v3618_v56, %s8965_s18  ;;  %v12194_v60 = vpop.f32.mrb[47].mxu1  ;;  %v12203_v21 = vpop.permute.xlu1 %5631 }
 0x3b5   :  { %v1903_v59 = vor.u32 %v12172_v35, %v12166_v8  ;;  %v4160_v26 = vor.u32 %v4159_v50, %v4156_v34  ;;  %v4168_v5 = vor.u32 %v4167_v23, %v4164_v4  ;;  %v4147_v2 = vrot.slane %v4145_v18, 4  ;;  %v4261_v32 = vld [vmem:[#allocation2 + $0x200] sm:$0xf8] }
 0x3b6   :  { %v4143_v11 = vor.u32 %v4142_v6, %v4139_v25  ;;  %v4150_v53 = vrot.slane %v4148_v38, 5  ;;  %v1906_v20 = vshrl.u32 %v1496_v16, 16  ;;  %v1909_v17 = vshll.u32 %v1496_v16, 16  ;;  %v12215_v25 = vpop.permute.xlu0 %6075 }
 0x3b7   :  { %v4169_v0 = vsel %vm2283_vm10, %v4160_v26, %v4168_v5  ;;  %v13215_v41 = vshrl.u32 %v11873_v14, 16  ;;  %v1919_v40 = vrot.slane %v1917_v27, 4  ;;  %v6623_v8 = vsel %vm13216_vm7, %v6558_v61, %v12003_v55  ;;  %v12211_v55 = vld [vmem:[#allocation2 + $0x208] sm:$0xf]  ;;  %v12219_v26 = vld [vmem:[#allocation2 + $0x210] sm:$0xf0] }
 0x3b8   :  { %5895 = vrot.lane.b32.xlu1 %v4169_v0, %s8968_s21  ;;  %v4151_v62 = vor.u32 %v4150_v53, %v4147_v2  ;;  %v1908_v35 = vrot.slane %v1906_v20, 3  ;;  %v1911_v52 = vrot.slane %v1909_v17, 4  ;;  %v4763_v12 = vshrl.u32 %v4263_v28, 16  ;;  %8751 = vmatmul.mubr.msk.bf16.gmra.mrb[72].mxu1 %vm13217_vm14, %v6623_v8  ;;  %v12222_v53 = vpop.permute.xlu1 %5695  ;;  %v12224_v20 = vld [vmem:[#allocation2 + $0x1b8] sm:$0xf] }
 0x3b9   :  { %v1916_v56 = vrot.slane %v13215_v41, 3  ;;  %v1895_v46 = vor.u32 %v12181_v49, %v12177_v42  ;;  %v4766_v34 = vshll.u32 %v4263_v28, 16  ;;  %v4771_v14 = vshrl.u32 %v12192_v39, 16 }
 0x3ba   :  { %v4774_v27 = vshll.u32 %v12192_v39, 16  ;;  %v4152_v61 = vsel %vm2283_vm10, %v4143_v11, %v4151_v62  ;;  %v4765_v45 = vrot.slane %v4763_v12, 3  ;;  %v4746_v16 = vshrl.u32 %v4261_v32, 16 }
 0x3bb   :  { %v1920_v47 = vor.u32 %v1919_v40, %v1916_v56  ;;  %5893 = vrot.lane.b32.xlu0 %v4152_v61, %s8968_s21  ;;  %v4768_v50 = vrot.slane %v4766_v34, 4  ;;  %v4773_v4 = vrot.slane %v4771_v14, 3  ;;  %v4749_v18 = vshll.u32 %v4261_v32, 16  ;;  %v13219_v32 = vld [vmem:[#allocation45_spill] sm:$0xff] }
 0x3bc   :  { %v4776_v23 = vrot.slane %v4774_v27, 4  ;;  %v1912_v42 = vor.u32 %v1911_v52, %v1908_v35  ;;  %v4748_v49 = vrot.slane %v4746_v16, 3  ;;  %v4754_v6 = vshrl.u32 %v12211_v55, 16  ;;  %v4841_v52 = vld [vmem:[#allocation2 + $0x200] sm:$0xf0] }
 0x3bd   :  { %v4757_v38 = vshll.u32 %v12211_v55, 16  ;;  %v1934_v5 = vshll.u32 %v12052_v48, 16  ;;  %v4769_v2 = vor.u32 %v4768_v50, %v4765_v45  ;;  %v4751_v11 = vrot.slane %v4749_v18, 4  ;;  %v13223_v16 = vld [vmem:[#allocation61_spill] sm:$0xff] }
 0x3be   :  { %v4777_v28 = vor.u32 %v4776_v23, %v4773_v4  ;;  %v1948_v17 = vshrl.u32 %v12224_v20, 16  ;;  %v1951_v0 = vshll.u32 %v12224_v20, 16  ;;  %v4756_v41 = vrot.slane %v4754_v6, 3  ;;  %v13224_v4 = vld [vmem:[#allocation62_spill] sm:$0xff] }
 0x3bf   :  { %v4759_v56 = vrot.slane %v4757_v38, 4  ;;  %v4752_v8 = vor.u32 %v4751_v11, %v4748_v49  ;;  %v6799_v62 = vadd.f32 %v13219_v32, %v12088_v33  ;;  %v4996_v35 = vrot.slane %v12219_v26, 4  ;;  %v12258_v11 = vpop.permute.xlu1 %5759 }
 0x3c0   :  { %v4778_v40 = vsel %vm13218_vm8, %v4769_v2, %v4777_v28  ;;  %v1904_v12 = vsel %vm13209_vm3, %v1895_v46, %v1903_v59  ;;  %v1921_v34 = vsel %vm13220_vm1, %v1912_v42, %v1920_v47  ;;  %v4997_v27 = vrot.slane %v12192_v39, 4  ;;  %v12244_v59 = vld [vmem:[#allocation2 + $0x208] sm:$0xf]  ;;  %v12246_v46 = vld [vmem:[#allocation2 + $0x200] sm:$0xf0]  ;;  %v12248_v47 = vpop.permute.xlu0 %5693  ;;  %v13227_v2 = vld [vmem:[#allocation51_spill] sm:$0xff] }
 0x3c1   :  { %5959 = vrot.lane.b32.xlu1 %v4778_v40, %s8967_s20  ;;  %v4760_v14 = vor.u32 %v4759_v56, %v4756_v41  ;;  %vm13221_vm2 = vcmask 31744   ;;  %v6791_v50 = vadd.f32 %v12088_v33, %v13223_v16  ;;  %v6802_v23 = vadd.f32 %v13224_v4, %v12088_v33  ;;  %v5033_v42 = vld [vmem:[#allocation2 + $0x208] sm:$0x1f] }
 0x3c2   :  { %v6162_v61 = vsel %vm13221_vm2, %v1904_v12, %v11939_v3  ;;  %vm13222_vm6 = vmmov %vm13221_vm2  ;;  %vm13226_vm7 = vcmask 64512   ;;  %v4993_v18 = vrot.slane %v4841_v52, 4  ;;  %v7035_v49 = vmax.f32 %v6799_v62, 0.0  ;;  %v2089_v12 = vld [vmem:[#allocation2 + $0x210] sm:$0xf0] }
 0x3c3   :  { %v6165_v45 = vsel %vm13222_vm6, %v1921_v34, %v11987_v63  ;;  %v4761_v39 = vsel %vm13225_vm15, %v4752_v8, %v4760_v14  ;;  %v4994_v63 = vrot.slane %v12211_v55, 4  ;;  %v4998_v6 = vsel %vm2154_vm9, %v4996_v35, %v4997_v27  ;;  %vm13228_vm14 = vmmov %vm13226_vm7 }
 0x3c4   :  { %v6238_v3 = vsel %vm13226_vm7, %v6165_v45, %v12008_v31  ;;  %5957 = vrot.lane.b32.xlu0 %v4761_v39, %s8967_s20  ;;  %v7036_v38 = vmax.f32 %v6802_v23, 0.0  ;;  %v6794_v28 = vadd.f32 %v12088_v33, %v13227_v2  ;;  %v7033_v41 = vmax.f32 %v6791_v50, 0.0  ;;  %v12266_v45 = vld [vmem:[#allocation2 + $0x218] sm:$0xf]  ;;  %vm13229_vm8 = vmmov %vm13221_vm2  ;;  %v12281_v2 = vpop.permute.xlu1 %5823 }
 0x3c5   :  { %6023 = vrot.lane.b32.xlu1 %v4998_v6, %s8964_s17  ;;  %v2245_v31 = vrot.slane %v12246_v46, 4  ;;  %v2246_v56 = vrot.slane %v12244_v59, 4  ;;  %v5514_v55 = vshrl.u32 %v4841_v52, 16  ;;  %v5517_v32 = vshll.u32 %v4841_v52, 16  ;;  %v5034_v39 = vld [vmem:[#allocation2 + $0x218] sm:$0x1f]  ;;  %v12270_v52 = vpop.permute.xlu0 %5757  ;;  %vm13230_vm3 = vmmov %vm13221_vm2 }
 0x3c6   :  { %v7096_v40 = vpack.c.bf16 %v7036_v38, %v7035_v49  ;;  %v7034_v8 = vmax.f32 %v6794_v28, 0.0  ;;  %v5522_v62 = vshrl.u32 %v5033_v42, 16  ;;  %v6236_v35 = vsel %vm13228_vm14, %v6162_v61, %v12027_v36  ;;  %vm13232_vm6 = vmmov %vm13220_vm1 }
 0x3c7   :  { %v4995_v34 = vsel %vm2154_vm9, %v4993_v18, %v4994_v63  ;;  %v5516_v14 = vrot.slane %v5514_v55, 4  ;;  %v5525_v27 = vshll.u32 %v5033_v42, 16  ;;  %v2247_v50 = vsel %vm2154_vm9, %v2245_v31, %v2246_v56 }
 0x3c8   :  { %6021 = vrot.lane.b32.xlu0 %v4995_v34, %s8964_s17  ;;  %v7095_v16 = vpack.c.bf16 %v7034_v8, %v7033_v41  ;;  %v5519_v4 = vrot.slane %v5517_v32, 5  ;;  %v5524_v23 = vrot.slane %v5522_v62, 4  ;;  %v6303_v49 = vsel %vm6255_vm4, %v6238_v3, %v12050_v51  ;;  %v2282_v41 = vld [vmem:[#allocation2 + $0x218] sm:$0x1f] }
 0x3c9   :  { %v6301_v36 = vsel %vm6255_vm4, %v6236_v35, %v12069_v15  ;;  %5641 = vrot.lane.b32.xlu1 %v2247_v50, %s8963_s12  ;;  %v5527_v61 = vrot.slane %v5525_v27, 5  ;;  %v2248_v18 = vrot.slane %v2089_v12, 4  ;;  %v2249_v42 = vrot.slane %v12266_v45, 4 }
 0x3ca   :  { %v5520_v63 = vor.u32 %v5519_v4, %v5516_v14  ;;  %v5531_v6 = vshrl.u32 %v12219_v26, 16  ;;  %v5534_v38 = vshll.u32 %v12219_v26, 16  ;;  %8780 = vmatprep.mubr.msk.bf16.mxu0 %vm13229_vm8, %v7095_v16  ;;  %v6367_v51 = vsel %vm281_vm0, %v6303_v49, %v12078_v19  ;;  %v2281_v19 = vld [vmem:[#allocation2 + $0x208] sm:$0x1f]  ;;  %v12292_v16 = vpop.permute.xlu0 %5821  ;;  %vm13238_vm8 = vmmov %vm13230_vm3 }
 0x3cb   :  { %v5528_v28 = vor.u32 %v5527_v61, %v5524_v23  ;;  %v5539_v15 = vshrl.u32 %v5034_v39, 16  ;;  %v5542_v3 = vshll.u32 %v5034_v39, 16  ;;  %8781 = vmatmul.mubr.msk.bf16.gmra.mrb[36].mxu0 %vm13230_vm3, %v7096_v40  ;;  %v6365_v31 = vsel %vm281_vm0, %v6301_v36, %v12101_v9  ;;  %vm13239_vm3 = vmmov %vm13220_vm1 }
 0x3cc   :  { %v2250_v56 = vsel %vm2154_vm9, %v2248_v18, %v2249_v42  ;;  %v5533_v55 = vrot.slane %v5531_v6, 4  ;;  %v5536_v26 = vrot.slane %v5534_v38, 5  ;;  %v2812_v35 = vshrl.u32 %v2089_v12, 16  ;;  %v2890_v18 = vld [vmem:[#allocation2 + $0x220] sm:$0xf8] }
 0x3cd   :  { %v5529_v8 = vsel %vm2283_vm10, %v5520_v63, %v5528_v28  ;;  %5643 = vrot.lane.b32.xlu1 %v2250_v56, %s8963_s12  ;;  %v5541_v32 = vrot.slane %v5539_v15, 4  ;;  %v5544_v62 = vrot.slane %v5542_v3, 5  ;;  %v2815_v40 = vshll.u32 %v2089_v12, 16  ;;  %v12296_v63 = vpop.permute.xlu1 %5887  ;;  %v2891_v28 = vld [vmem:[#allocation2 + $0x228] sm:$0xf] }
 0x3ce   :  { %6085 = vrot.lane.b32.xlu0 %v5529_v8, %s8969_s22  ;;  %v5537_v34 = vor.u32 %v5536_v26, %v5533_v55  ;;  %v2820_v14 = vshrl.u32 %v2282_v41, 16  ;;  %v2823_v27 = vshll.u32 %v2282_v41, 16  ;;  %v2814_v50 = vrot.slane %v2812_v35, 4  ;;  %v2888_v56 = vld [vmem:[#allocation2 + $0x210] sm:$0xf8] }
 0x3cf   :  { %v5545_v9 = vor.u32 %v5544_v62, %v5541_v32  ;;  %v2795_v4 = vshrl.u32 %v12246_v46, 16  ;;  %v2798_v23 = vshll.u32 %v12246_v46, 16  ;;  %v2817_v39 = vrot.slane %v2815_v40, 5  ;;  %v2889_v62 = vld [vmem:[#allocation2 + $0x218] sm:$0xf] }
 0x3d0   :  { %v2822_v49 = vrot.slane %v2820_v14, 4  ;;  %v2825_v36 = vrot.slane %v2823_v27, 5  ;;  %v2803_v61 = vshrl.u32 %v2281_v19, 16  ;;  %v2806_v38 = vshll.u32 %v2281_v19, 16  ;;  %v12305_v14 = vpop.permute.xlu0 %5885 }
 0x3d1   :  { %v5546_v42 = vsel %vm2283_vm10, %v5537_v34, %v5545_v9  ;;  %v2797_v12 = vrot.slane %v2795_v4, 4  ;;  %v2800_v6 = vrot.slane %v2798_v23, 5  ;;  %v6432_v15 = vsel %vm6384_vm5, %v6367_v51, %v12108_v22  ;;  %v3467_v23 = vld [vmem:[#allocation2 + $0x220] sm:$0xf0] }
 0x3d2   :  { %6087 = vrot.lane.b32.xlu0 %v5546_v42, %s8969_s22  ;;  %v2818_v3 = vor.u32 %v2817_v39, %v2814_v50  ;;  %v2826_v46 = vor.u32 %v2825_v36, %v2822_v49  ;;  %v2805_v41 = vrot.slane %v2803_v61, 4  ;;  %v6430_v55 = vsel %vm6384_vm5, %v6365_v31, %v12120_v29  ;;  %v12308_v39 = vpop.permute.xlu1 %5951  ;;  %v3466_v42 = vld [vmem:[#allocation2 + $0x210] sm:$0xf0] }
 0x3d3   :  { %v2801_v26 = vor.u32 %v2800_v6, %v2797_v12  ;;  %v2808_v8 = vrot.slane %v2806_v38, 5  ;;  %v3420_v32 = vshrl.u32 %v2890_v18, 16  ;;  %v3423_v19 = vshll.u32 %v2890_v18, 16 }
 0x3d4   :  { %v2827_v35 = vsel %vm2283_vm10, %v2818_v3, %v2826_v46  ;;  %v3428_v34 = vshrl.u32 %v2891_v28, 16  ;;  %v3431_v40 = vshll.u32 %v2891_v28, 16  ;;  %v3403_v27 = vshrl.u32 %v2888_v56, 16  ;;  %v1498_v46 = vld [vmem:[#allocation2 + $0x1a0] sm:$0xf8] }
 0x3d5   :  { %5707 = vrot.lane.b32.xlu1 %v2827_v35, %s8970_s23  ;;  %v2809_v22 = vor.u32 %v2808_v8, %v2805_v41  ;;  %v3422_v51 = vrot.slane %v3420_v32, 3  ;;  %v3406_v9 = vshll.u32 %v2888_v56, 16  ;;  %v3425_v50 = vrot.slane %v3423_v19, 4 }
 0x3d6   :  { %v3430_v4 = vrot.slane %v3428_v34, 3  ;;  %v3433_v29 = vrot.slane %v3431_v40, 4  ;;  %v3411_v31 = vshrl.u32 %v2889_v62, 16  ;;  %v3405_v36 = vrot.slane %v3403_v27, 3  ;;  %v12319_v40 = vpop.permute.xlu0 %5949  ;;  %v3659_v27 = vld [vmem:[#allocation2 + $0x228] sm:$0x1f] }
 0x3d7   :  { %v2810_v49 = vsel %vm2283_vm10, %v2801_v26, %v2809_v22  ;;  %v3408_v61 = vrot.slane %v3406_v9, 4  ;;  %v3414_v18 = vshll.u32 %v2889_v62, 16  ;;  %v6497_v12 = vsel %vm6449_vm11, %v6432_v15, %v12125_v7 }
 0x3d8   :  { %5705 = vrot.lane.b32.xlu0 %v2810_v49, %s8970_s23  ;;  %v3426_v6 = vor.u32 %v3425_v50, %v3422_v51  ;;  %v3434_v38 = vor.u32 %v3433_v29, %v3430_v4  ;;  %v3413_v3 = vrot.slane %v3411_v31, 3  ;;  %v6495_v41 = vsel %vm6449_vm11, %v6430_v55, %v12132_v54  ;;  %v3658_v29 = vld [vmem:[#allocation2 + $0x218] sm:$0x1f] }
 0x3d9   :  { %v3409_v56 = vor.u32 %v3408_v61, %v3405_v36  ;;  %v3416_v8 = vrot.slane %v3414_v18, 4  ;;  %v3625_v32 = vrot.slane %v3467_v23, 4  ;;  %v6560_v35 = vsel %vm6514_vm12, %v6495_v41, %v12160_v43 }
 0x3da   :  { %v3435_v26 = vsel %vm13220_vm1, %v3426_v6, %v3434_v38  ;;  %v3626_v19 = vrot.slane %v2891_v28, 4  ;;  %v3622_v34 = vrot.slane %v3466_v42, 4  ;;  %v3623_v15 = vrot.slane %v2889_v62, 4  ;;  %v12331_v28 = vpop.permute.xlu1 %6015 }
 0x3db   :  { %5771 = vrot.lane.b32.xlu1 %v3435_v26, %s8966_s19  ;;  %v3417_v7 = vor.u32 %v3416_v8, %v3413_v3  ;;  %v1923_v22 = vshrl.u32 %v1498_v46, 16  ;;  %v1926_v51 = vshll.u32 %v1498_v46, 16  ;;  %v6562_v54 = vsel %vm6514_vm12, %v6497_v12, %v12145_v10  ;;  %v1500_v3 = vld [vmem:[#allocation2 + $0x1b0] sm:$0xf8]  ;;  %v12344_v46 = vpop.permute.xlu0 %6013  ;;  %v1435_v26 = vld [vmem:[#allocation2 + $0x220] sm:$0xf8] }
 0x3dc   :  { %v3627_v55 = vsel %vm2154_vm9, %v3625_v32, %v3626_v19  ;;  %v12327_v9 = vrot.slane %v1931_v58, 3  ;;  %vm13231_vm2 = vcmask 261120   ;;  %v12338_v4 = vrot.slane %v1934_v5, 4  ;;  %v1444_v32 = vld [vmem:[#allocation2 + $0x230] sm:$0xf8] }
 0x3dd   :  { %v6625_v43 = vsel %vm13231_vm2, %v6560_v35, %v12188_v1  ;;  %v3418_v50 = vsel %vm13232_vm6, %v3409_v56, %v3417_v7  ;;  %v12334_v62 = vrot.slane %v1923_v22, 3  ;;  %v4188_v10 = vshrl.u32 %v3467_v23, 16  ;;  %v12350_v7 = vld [vmem:[#allocation2 + $0x238] sm:$0xf]  ;;  %vm13234_vm7 = vmmov %vm13231_vm2 }
 0x3de   :  { %vm13233_vm15 = vcmask 293888   ;;  %5769 = vrot.lane.b32.xlu0 %v3418_v50, %s8966_s19  ;;  %v1928_v58 = vrot.slane %v1926_v51, 4  ;;  %v4191_v31 = vshll.u32 %v3467_v23, 16  ;;  %v4196_v49 = vshrl.u32 %v3659_v27, 16 }
 0x3df   :  { %8754 = vmatprep.mubr.msk.bf16.mxu1 %vm13233_vm15, %v6625_v43  ;;  %v4199_v1 = vshll.u32 %v3659_v27, 16  ;;  %5835 = vrot.lane.b32.xlu1 %v3627_v55, %s8965_s18  ;;  %v3624_v36 = vsel %vm2154_vm9, %v3622_v34, %v3623_v15  ;;  %v4190_v61 = vrot.slane %v4188_v10, 4  ;;  %v4171_v18 = vshrl.u32 %v3466_v42, 16  ;;  %v12352_v15 = vpop.permute.xlu1 %5633  ;;  %v4266_v10 = vld [vmem:[#allocation2 + $0x228] sm:$0xf]  ;;  %vm13236_vm14 = vmmov %vm13233_vm15 }
 0x3e0   :  { %v4174_v12 = vshll.u32 %v3466_v42, 16  ;;  %v4193_v48 = vrot.slane %v4191_v31, 5  ;;  %v4198_v5 = vrot.slane %v4196_v49, 4  ;;  %v4179_v38 = vshrl.u32 %v3658_v29, 16  ;;  %vm13243_vm15 = vmmov %vm13239_vm3 }
 0x3e1   :  { %v4201_v6 = vrot.slane %v4199_v1, 5  ;;  %v1937_v41 = vor.u32 %v12338_v4, %v12327_v9  ;;  %v4173_v23 = vrot.slane %v4171_v18, 4  ;;  %v4182_v8 = vshll.u32 %v3658_v29, 16  ;;  %v4265_v9 = vld [vmem:[#allocation2 + $0x220] sm:$0xf8]  ;;  %v12361_v29 = vpop.f32.mrb[48].mxu1 }
 0x3e2   :  { %v4176_v56 = vrot.slane %v4174_v12, 5  ;;  %5833 = vrot.lane.b32.xlu0 %v3624_v36, %s8965_s18  ;;  %v1929_v35 = vor.u32 %v1928_v58, %v12334_v62  ;;  %v4194_v42 = vor.u32 %v4193_v48, %v4190_v61  ;;  %v4181_v34 = vrot.slane %v4179_v38, 4  ;;  %v12371_v61 = vpop.permute.xlu0 %6077 }
 0x3e3   :  { %v4202_v19 = vor.u32 %v4201_v6, %v4198_v5  ;;  %v4184_v51 = vrot.slane %v4182_v8, 5  ;;  %v1940_v27 = vshrl.u32 %v1500_v3, 16  ;;  %v1943_v55 = vshll.u32 %v1500_v3, 16  ;;  %v4843_v8 = vld [vmem:[#allocation2 + $0x220] sm:$0xf0] }
 0x3e4   :  { %v4177_v22 = vor.u32 %v4176_v56, %v4173_v23  ;;  %v1950_v50 = vrot.slane %v1948_v17, 3  ;;  %v1953_v62 = vrot.slane %v1951_v0, 4  ;;  %v6627_v4 = vsel %vm13234_vm7, %v6562_v54, %v12215_v25  ;;  %v12367_v17 = vpop.f32.mrb[49].mxu1  ;;  %vm13246_vm7 = vmmov %vm13239_vm3 }
 0x3e5   :  { %v4203_v43 = vsel %vm2283_vm10, %v4194_v42, %v4202_v19  ;;  %v4185_v58 = vor.u32 %v4184_v51, %v4181_v34  ;;  %v1942_v31 = vrot.slane %v1940_v27, 3  ;;  %v1945_v49 = vrot.slane %v1943_v55, 4  ;;  %8755 = vmatmul.mubr.msk.bf16.gmra.mrb[76].mxu1 %vm13236_vm14, %v6627_v4  ;;  %v12373_v18 = vpop.f32.mrb[50].mxu1 }
 0x3e6   :  { %5899 = vrot.lane.b32.xlu1 %v4203_v43, %s8968_s21  ;;  %v1445_v36 = vsel %vm9423_vm13, %v1435_v26, %v1444_v32  ;;  %v1954_v20 = vor.u32 %v1953_v62, %v1950_v50  ;;  %v4805_v0 = vshrl.u32 %v12350_v7, 16  ;;  %v4808_v25 = vshll.u32 %v12350_v7, 16  ;;  %v12376_v38 = vpop.f32.mrb[51].mxu1  ;;  %vm13237_vm13 = vmmov %vm13220_vm1  ;;  %v12380_v32 = vpop.permute.xlu1 %5635 }
 0x3e7   :  { %1446 = vst [vmem:[#allocation2 + $0x230] sm:$0xf8] %v1445_v36  ;;  %v4780_v54 = vshrl.u32 %v4265_v9, 16  ;;  %v4186_v12 = vsel %vm2283_vm10, %v4177_v22, %v4185_v58  ;;  %v1946_v48 = vor.u32 %v1945_v49, %v1942_v31  ;;  %v4783_v5 = vshll.u32 %v4265_v9, 16  ;;  %vm13240_vm1 = vmmov %vm13238_vm8  ;;  %v12391_v58 = vpop.permute.xlu0 %6079 }
 0x3e8   :  { %v4788_v6 = vshrl.u32 %v4266_v10, 16  ;;  %v1938_v3 = vsel %vm13237_vm13, %v1929_v35, %v1937_v41  ;;  %5897 = vrot.lane.b32.xlu0 %v4186_v12, %s8968_s21  ;;  %v4791_v56 = vshll.u32 %v4266_v10, 16  ;;  %v4807_v26 = vrot.slane %v4805_v0, 3  ;;  %v5036_v35 = vld [vmem:[#allocation2 + $0x238] sm:$0x1f]  ;;  %vm13248_vm14 = vmmov %vm13240_vm1 }
 0x3e9   :  { %v4782_v23 = vrot.slane %v4780_v54, 3  ;;  %v4810_v42 = vrot.slane %v4808_v25, 4  ;;  %v4785_v19 = vrot.slane %v4783_v5, 4  ;;  %v6168_v22 = vsel %vm13238_vm8, %v1938_v3, %v12174_v57  ;;  %v5035_v3 = vld [vmem:[#allocation2 + $0x228] sm:$0x1f] }
 0x3ea   :  { %v4790_v34 = vrot.slane %v4788_v6, 3  ;;  %v4793_v51 = vrot.slane %v4791_v56, 4  ;;  %v1955_v27 = vsel %vm13239_vm3, %v1946_v48, %v1954_v20  ;;  %v4999_v9 = vrot.slane %v4843_v8, 4  ;;  %v12399_v25 = vpop.permute.xlu1 %5699 }
 0x3eb   :  { %v4786_v55 = vor.u32 %v4785_v19, %v4782_v23  ;;  %v5000_v41 = vrot.slane %v4266_v10, 4  ;;  %v6171_v43 = vsel %vm13240_vm1, %v1955_v27, %v12203_v21  ;;  %vm13241_vm2 = vcmask 64512   ;;  %v12405_v27 = vpop.permute.xlu0 %5697 }
 0x3ec   :  { %v4794_v50 = vor.u32 %v4793_v51, %v4790_v34  ;;  %v6240_v62 = vsel %vm13241_vm2, %v6168_v22, %v12248_v47  ;;  %v6815_v4 = vadd.f32 %v11941_v13, %v12088_v33  ;;  %v4811_v31 = vor.u32 %v4810_v42, %v4807_v26  ;;  %vm13242_vm6 = vmmov %vm13241_vm2 }
 0x3ed   :  { %v6242_v49 = vsel %vm13242_vm6, %v6171_v43, %v12222_v53  ;;  %v5003_v10 = vrot.slane %v12350_v7, 4  ;;  %v6818_v21 = vadd.f32 %v11950_v24, %v12088_v33  ;;  %v5573_v0 = vshrl.u32 %v5036_v35, 16  ;;  %v13244_v7 = vld [vmem:[#allocation30_spill] sm:$0xff]  ;;  %v13245_v43 = vld [vmem:[#allocation41_spill] sm:$0xff]  ;;  %vm13255_vm6 = vmmov %vm13246_vm7 }
 0x3ee   :  { %v4267_v57 = vld [vmem:[#allocation2 + $0x230] sm:$0xf8]  ;;  %v4795_v47 = vsel %vm13243_vm15, %v4786_v55, %v4794_v50  ;;  %v5001_v13 = vsel %vm2154_vm9, %v4999_v9, %v5000_v41  ;;  %v7039_v54 = vmax.f32 %v6815_v4, 0.0  ;;  %v6807_v6 = vadd.f32 %v12088_v33, %v13244_v7 }
 0x3ef   :  { %v4844_v1 = vld [vmem:[#allocation2 + $0x230] sm:$0xf0]  ;;  %v4797_v36 = vshrl.u32 %v4267_v57, 16  ;;  %v4800_v20 = vshll.u32 %v4267_v57, 16  ;;  %5961 = vrot.lane.b32.xlu0 %v4795_v47, %s8967_s20  ;;  %v7040_v12 = vmax.f32 %v6818_v21, 0.0  ;;  %v5576_v42 = vshll.u32 %v5036_v35, 16  ;;  %v12411_v35 = vpop.permute.xlu1 %5763 }
 0x3f0   :  { %v5565_v53 = vshrl.u32 %v4844_v1, 16  ;;  %v5568_v24 = vshll.u32 %v4844_v1, 16  ;;  %v5002_v23 = vrot.slane %v4844_v1, 4  ;;  %v5575_v34 = vrot.slane %v5573_v0, 4 }
 0x3f1   :  { %v4799_v48 = vrot.slane %v4797_v36, 3  ;;  %v4802_v5 = vrot.slane %v4800_v20, 4  ;;  %v7098_v56 = vpack.c.bf16 %v7040_v12, %v7039_v54  ;;  %v5548_v22 = vshrl.u32 %v4843_v8, 16 }
 0x3f2   :  { %v5567_v26 = vrot.slane %v5565_v53, 4  ;;  %v5551_v51 = vshll.u32 %v4843_v8, 16  ;;  %v5570_v55 = vrot.slane %v5568_v24, 5  ;;  %v5556_v9 = vshrl.u32 %v5035_v3, 16 }
 0x3f3   :  { %v4803_v19 = vor.u32 %v4802_v5, %v4799_v48  ;;  %6025 = vrot.lane.b32.xlu0 %v5001_v13, %s8964_s17  ;;  %v5559_v41 = vshll.u32 %v5035_v3, 16  ;;  %v6810_v50 = vadd.f32 %v12088_v33, %v13245_v43  ;;  %v5578_v57 = vrot.slane %v5576_v42, 5 }
 0x3f4   :  { %v5550_v1 = vrot.slane %v5548_v22, 4  ;;  %v5553_v21 = vrot.slane %v5551_v51, 5  ;;  %v7037_v8 = vmax.f32 %v6807_v6, 0.0  ;;  %v5558_v36 = vrot.slane %v5556_v9, 4  ;;  %v1504_v22 = vld [vmem:[#allocation2 + $0x1d0] sm:$0xf8] }
 0x3f5   :  { %v4812_v4 = vsel %vm13246_vm7, %v4803_v19, %v4811_v31  ;;  %v5561_v20 = vrot.slane %v5559_v41, 5  ;;  %v7038_v47 = vmax.f32 %v6810_v50, 0.0  ;;  %v6307_v0 = vsel %vm6255_vm4, %v6242_v49, %v12258_v11  ;;  %v12425_v11 = vpop.permute.xlu0 %5761  ;;  %v12440_v49 = vpop.permute.xlu1 %5827  ;;  %v8907_v19 = vld [vmem:[#allocation2 + $0x1c8] sm:$0xf]  ;;  %v8908_v41 = vld [vmem:[#allocation2 + $0x1d8] sm:$0xf] }
 0x3f6   :  { %5963 = vrot.lane.b32.xlu1 %v4812_v4, %s8967_s20  ;;  %v6305_v13 = vsel %vm6255_vm4, %v6240_v62, %v12270_v52  ;;  %v5554_v54 = vor.u32 %v5553_v21, %v5550_v1  ;;  %v5004_v31 = vsel %vm2154_vm9, %v5002_v23, %v5003_v10  ;;  %v5571_v5 = vor.u32 %v5570_v55, %v5567_v26  ;;  %vm13247_vm9 = vmmov %vm13240_vm1  ;;  %v1502_v10 = vld [vmem:[#allocation2 + $0x1c0] sm:$0xf8] }
 0x3f7   :  { %v5562_v12 = vor.u32 %v5561_v20, %v5558_v36  ;;  %v7097_v53 = vpack.c.bf16 %v7038_v47, %v7037_v8  ;;  %v6369_v48 = vsel %vm281_vm0, %v6305_v13, %v12292_v16  ;;  %v5579_v7 = vor.u32 %v5578_v57, %v5575_v34  ;;  %vm13254_vm2 = vmmov %vm13247_vm9 }
 0x3f8   :  { %v6371_v6 = vsel %vm281_vm0, %v6307_v0, %v12281_v2  ;;  %v6434_v24 = vsel %vm6384_vm5, %v6369_v48, %v12305_v14  ;;  %vm13249_vm13 = vcmask 261120   ;;  %vm13250_vm8 = vcmask 293888   ;;  %vm13256_vm15 = vmmov %vm13254_vm2 }
 0x3f9   :  { %v5563_v52 = vsel %vm2283_vm10, %v5554_v54, %v5562_v12  ;;  %v6436_v62 = vsel %vm6384_vm5, %v6371_v6, %v12296_v63  ;;  %8784 = vmatprep.mubr.msk.bf16.mxu0 %vm13247_vm9, %v7097_v53  ;;  %v6499_v16 = vsel %vm6449_vm11, %v6434_v24, %v12319_v40  ;;  %v5580_v40 = vsel %vm2283_vm10, %v5571_v5, %v5579_v7  ;;  %vm13251_vm3 = vmmov %vm13249_vm13  ;;  %v5826_v42 = vpop.permute.xlu0 %5825  ;;  %v5892_v9 = vpop.permute.xlu1 %5891 }
 0x3fa   :  { %6027 = vrot.lane.b32.xlu1 %v5004_v31, %s8964_s17  ;;  %6089 = vrot.lane.b32.xlu0 %v5563_v52, %s8969_s22  ;;  %v6501_v2 = vsel %vm6449_vm11, %v6436_v62, %v12308_v39  ;;  %v6564_v14 = vsel %vm6514_vm12, %v6499_v16, %v12344_v46  ;;  %vm13252_vm1 = vmmov %vm13250_vm8  ;;  %v6831_v39 = vadd.f32 %v12179_v30, %v12088_v33  ;;  %v1957_v46 = vshrl.u32 %v1502_v10, 16 }
 0x3fb   :  { %8785 = vmatmul.mubr.msk.bf16.gmra.mrb[40].mxu0 %vm13248_vm14, %v7098_v56  ;;  %v6566_v63 = vsel %vm6514_vm12, %v6501_v2, %v12331_v28  ;;  %v6629_v3 = vsel %vm13249_vm13, %v6564_v14, %v12371_v61  ;;  %v6823_v28 = vadd.f32 %v12088_v33, %v12183_v44  ;;  %v1960_v56 = vshll.u32 %v1502_v10, 16  ;;  %v12459_v61 = vld [vmem:[%s12794_s5] ss:$0 sm:$0xff]  ;;  %vm13253_vm10 = vmmov %vm13247_vm9 }
 0x3fc   :  { %8758 = vmatprep.mubr.msk.bf16.mxu1 %vm13250_vm8, %v6629_v3  ;;  %v6631_v23 = vsel %vm13251_vm3, %v6566_v63, %v12391_v58  ;;  %v6834_v58 = vadd.f32 %v12459_v61, %v12190_v37  ;;  %v6826_v26 = vadd.f32 %v12459_v61, %v12194_v60  ;;  %v1965_v34 = vshrl.u32 %v8907_v19, 16  ;;  %vm13258_vm9 = vmmov %vm13254_vm2 }
 0x3fd   :  { %8759 = vmatmul.mubr.msk.bf16.gmra.mrb[80].mxu1 %vm13252_vm1, %v6631_v23  ;;  %v1968_v30 = vshll.u32 %v8907_v19, 16  ;;  %v7043_v51 = vmax.f32 %v6831_v39, 0.0  ;;  %v7041_v33 = vmax.f32 %v6823_v28, 0.0  ;;  %v1982_v43 = vshrl.u32 %v8908_v41, 16  ;;  %v5890_v20 = vpop.permute.xlu0 %5889  ;;  %vm13259_vm14 = vmmov %vm13255_vm6 }
 0x3fe   :  { %6091 = vrot.lane.b32.xlu1 %v5580_v40, %s8969_s22  ;;  %v7044_v44 = vmax.f32 %v6834_v58, 0.0  ;;  %v7042_v55 = vmax.f32 %v6826_v26, 0.0  ;;  %v1985_v50 = vshll.u32 %v8908_v41, 16  ;;  %v1959_v4 = vrot.slane %v1957_v46, 3  ;;  %vm13260_vm13 = vmmov %vm13254_vm2 }
 0x3ff   :  { %v1962_v57 = vrot.slane %v1960_v56, 4  ;;  %v1967_v21 = vrot.slane %v1965_v34, 3  ;;  %v1970_v8 = vrot.slane %v1968_v30, 4  ;;  %v1974_v60 = vshrl.u32 %v1504_v22, 16  ;;  %vm13261_vm8 = vmmov %vm13254_vm2 }
 0x400   :  { %v7100_v1 = vpack.c.bf16 %v7044_v44, %v7043_v51  ;;  %v7099_v37 = vpack.c.bf16 %v7042_v55, %v7041_v33  ;;  %v1977_v36 = vshll.u32 %v1504_v22, 16  ;;  %v1984_v0 = vrot.slane %v1982_v43, 3 }
 0x401   :  { %v1963_v47 = vor.u32 %v1962_v57, %v1959_v4  ;;  %v1987_v13 = vrot.slane %v1985_v50, 4  ;;  %v6847_v31 = vadd.f32 %v12459_v61, %v12361_v29  ;;  %v1971_v12 = vor.u32 %v1970_v8, %v1967_v21 }
 0x402   :  { %8788 = vmatprep.mubr.msk.bf16.mxu0 %vm13253_vm10, %v7099_v37  ;;  %v5956_v54 = vpop.permute.xlu1 %5955  ;;  %v1976_v53 = vrot.slane %v1974_v60, 3  ;;  %v1979_v48 = vrot.slane %v1977_v36, 4  ;;  %v6839_v5 = vadd.f32 %v12459_v61, %v12367_v17  ;;  %v6850_v7 = vadd.f32 %v12459_v61, %v12373_v18 }
 0x403   :  { %8789 = vmatmul.mubr.msk.bf16.gmra.mrb[44].mxu0 %vm13254_vm2, %v7100_v1  ;;  %v6842_v6 = vadd.f32 %v12459_v61, %v12376_v38  ;;  %v7047_v52 = vmax.f32 %v6847_v31, 0.0  ;;  %v1972_v14 = vsel %vm13255_vm6, %v1963_v47, %v1971_v12  ;;  %v1988_v63 = vor.u32 %v1987_v13, %v1984_v0  ;;  %v1506_v0 = vld [vmem:[#allocation2 + $0x1e0] sm:$0xf8] }
 0x404   :  { %v7045_v62 = vmax.f32 %v6839_v5, 0.0  ;;  %v7048_v16 = vmax.f32 %v6850_v7, 0.0  ;;  %v1980_v29 = vor.u32 %v1979_v48, %v1976_v53  ;;  %v6174_v10 = vsel %vm13256_vm15, %v1972_v14, %v12352_v15  ;;  %vm13267_vm15 = vmmov %vm13261_vm8  ;;  %v8909_v53 = vld [vmem:[#allocation2 + $0x1e8] sm:$0xf]  ;;  %v1508_v7 = vld [vmem:[#allocation2 + $0x1f0] sm:$0xf8] }
 0x405   :  { %v7046_v2 = vmax.f32 %v6842_v6, 0.0  ;;  %vm13257_vm7 = vcmask 64512   ;;  %vm13263_vm1 = vcmask 261120   ;;  %vm13264_vm10 = vcmask 293888   ;;  %v8910_v6 = vld [vmem:[#allocation2 + $0x1f8] sm:$0xf] }
 0x406   :  { %v6020_v3 = vpop.permute.xlu1 %6019  ;;  %v7102_v17 = vpack.c.bf16 %v7048_v16, %v7047_v52  ;;  %v6244_v18 = vsel %vm13257_vm7, %v6174_v10, %v12405_v27  ;;  %v1989_v39 = vsel %vm13259_vm14, %v1980_v29, %v1988_v63  ;;  %vm13262_vm3 = vmmov %vm13257_vm7  ;;  %v1991_v31 = vshrl.u32 %v1506_v0, 16 }
 0x407   :  { %v5954_v24 = vpop.permute.xlu0 %5953  ;;  %v7101_v40 = vpack.c.bf16 %v7046_v2, %v7045_v62  ;;  %v6309_v38 = vsel %vm6255_vm4, %v6244_v18, %v12425_v11  ;;  %v6177_v15 = vsel %vm13261_vm8, %v1989_v39, %v12380_v32  ;;  %vm13265_vm2 = vmmov %vm13263_vm1  ;;  %v1994_v12 = vshll.u32 %v1506_v0, 16 }
 0x408   :  { %v6373_v28 = vsel %vm281_vm0, %v6309_v38, %v5826_v42  ;;  %v6246_v27 = vsel %vm13262_vm3, %v6177_v15, %v12399_v25  ;;  %vm13266_vm6 = vmmov %vm13264_vm10  ;;  %v1999_v48 = vshrl.u32 %v8909_v53, 16  ;;  %v2002_v5 = vshll.u32 %v8909_v53, 16 }
 0x409   :  { %8792 = vmatprep.mubr.msk.bf16.mxu0 %vm13258_vm9, %v7101_v40  ;;  %v6438_v46 = vsel %vm6384_vm5, %v6373_v28, %v5890_v20  ;;  %v6311_v11 = vsel %vm6255_vm4, %v6246_v27, %v12411_v35  ;;  %vm13268_vm7 = vmmov %vm13261_vm8  ;;  %v2019_v52 = vshll.u32 %v8910_v6, 16  ;;  %v1993_v62 = vrot.slane %v1991_v31, 3 }
 0x40a   :  { %v6503_v56 = vsel %vm6449_vm11, %v6438_v46, %v5954_v24  ;;  %v6375_v19 = vsel %vm281_vm0, %v6311_v11, %v12440_v49  ;;  %v2016_v24 = vshrl.u32 %v8910_v6, 16  ;;  %v1996_v16 = vrot.slane %v1994_v12, 4  ;;  %vm13269_vm9 = vmmov %vm13259_vm14 }
 0x40b   :  { %v6018_v23 = vpop.permute.xlu0 %6017  ;;  %8793 = vmatmul.mubr.msk.bf16.gmra.mrb[48].mxu0 %vm13260_vm13, %v7102_v17  ;;  %v12495_v26 = vpop.permute.xlu1 %5637  ;;  %v6440_v34 = vsel %vm6384_vm5, %v6375_v19, %v5892_v9  ;;  %v2001_v29 = vrot.slane %v1999_v48, 3  ;;  %v2004_v63 = vrot.slane %v2002_v5, 4  ;;  %v2008_v10 = vshrl.u32 %v1508_v7, 16  ;;  %vm13270_vm14 = vmmov %vm13268_vm7 }
 0x40c   :  { %v6568_v58 = vsel %vm6514_vm12, %v6503_v56, %v6018_v23  ;;  %v6505_v30 = vsel %vm6449_vm11, %v6440_v34, %v5956_v54  ;;  %v1997_v17 = vor.u32 %v1996_v16, %v1993_v62  ;;  %v2018_v40 = vrot.slane %v2016_v24, 3  ;;  %vm13271_vm13 = vmmov %vm13262_vm3  ;;  %v1510_v16 = vld [vmem:[#allocation2 + $0x200] sm:$0xf8] }
 0x40d   :  { %v8732_v25 = vpop.f32.mrb[52].mxu1  ;;  %v6570_v51 = vsel %vm6514_vm12, %v6505_v30, %v6020_v3  ;;  %v2011_v3 = vshll.u32 %v1508_v7, 16  ;;  %v2005_v18 = vor.u32 %v2004_v63, %v2001_v29  ;;  %v2010_v38 = vrot.slane %v2008_v10, 3  ;;  %vm13272_vm8 = vmmov %vm13269_vm9 }
 0x40e   :  { %v6863_v22 = vadd.f32 %v12459_v61, %v8732_v25  ;;  %v6854_v35 = vpop.f32.mrb[53].mxu1  ;;  %v2021_v39 = vrot.slane %v2019_v52, 4  ;;  %vm13273_vm3 = vmmov %vm13268_vm7  ;;  %v2033_v10 = vshrl.u32 %v12244_v59, 16 }
 0x40f   :  { %v6082_v42 = vpop.permute.xlu0 %6081  ;;  %v6855_v44 = vadd.f32 %v12459_v61, %v6854_v35  ;;  %v8733_v55 = vpop.f32.mrb[54].mxu1  ;;  %v2013_v23 = vrot.slane %v2011_v3, 4  ;;  %v2006_v46 = vsel %vm13269_vm9, %v1997_v17, %v2005_v18  ;;  %vm13280_vm9 = vmmov %vm13273_vm3  ;;  %v2025_v18 = vshrl.u32 %v1510_v16, 16 }
 0x410   :  { %v6633_v32 = vsel %vm13263_vm1, %v6568_v58, %v6082_v42  ;;  %v6866_v41 = vadd.f32 %v12459_v61, %v8733_v55  ;;  %v6857_v43 = vpop.f32.mrb[55].mxu1  ;;  %v5640_v9 = vpop.permute.xlu1 %5639  ;;  %v7051_v4 = vmax.f32 %v6863_v22, 0.0  ;;  %v2022_v56 = vor.u32 %v2021_v39, %v2018_v40  ;;  %vm13274_vm1 = vmmov %vm13271_vm13 }
 0x411   :  { %8762 = vmatprep.mubr.msk.bf16.mxu1 %vm13264_vm10, %v6633_v32  ;;  %v6858_v50 = vadd.f32 %v12459_v61, %v6857_v43  ;;  %v7049_v1 = vmax.f32 %v6855_v44, 0.0  ;;  %v2014_v27 = vor.u32 %v2013_v23, %v2010_v38  ;;  %v6180_v11 = vsel %vm13270_vm14, %v2006_v46, %v12495_v26  ;;  %vm13275_vm10 = vmmov %vm13265_vm2  ;;  %v1512_v23 = vld [vmem:[#allocation2 + $0x210] sm:$0xf8] }
 0x412   :  { %v7052_v57 = vmax.f32 %v6866_v41, 0.0  ;;  %v2036_v40 = vshll.u32 %v12244_v59, 16  ;;  %v2028_v38 = vshll.u32 %v1510_v16, 16  ;;  %vm13281_vm14 = vmmov %vm13273_vm3 }
 0x413   :  { %v7050_v37 = vmax.f32 %v6858_v50, 0.0  ;;  %v2023_v34 = vsel %vm13272_vm8, %v2014_v27, %v2022_v56  ;;  %v2050_v27 = vshrl.u32 %v12266_v45, 16  ;;  %v2053_v56 = vshll.u32 %v12266_v45, 16 }
 0x414   :  { %v6084_v33 = vpop.permute.xlu0 %6083  ;;  %v7104_v21 = vpack.c.bf16 %v7052_v57, %v7051_v4  ;;  %v6183_v22 = vsel %vm13273_vm3, %v2023_v34, %v5640_v9  ;;  %v2045_v34 = vshll.u32 %v1512_v23, 16 }
 0x415   :  { %v6635_v49 = vsel %vm13265_vm2, %v6570_v51, %v6084_v33  ;;  %v7103_v8 = vpack.c.bf16 %v7050_v37, %v7049_v1  ;;  %vm13276_vm2 = vmmov %vm13266_vm6 }
 0x416   :  { %8763 = vmatmul.mubr.msk.bf16.gmra.mrb[84].mxu1 %vm13266_vm6, %v6635_v49  ;;  %vm13277_vm6 = vmmov %vm13275_vm10 }
 0x417   :  { %v5704_v60 = vpop.permute.xlu1 %5703  ;;  %8796 = vmatprep.mubr.msk.bf16.mxu0 %vm13267_vm15, %v7103_v8  ;;  %vm13278_vm15 = vmmov %vm13276_vm2 }
 0x418   :  { %8797 = vmatmul.mubr.msk.bf16.gmra.mrb[52].mxu0 %vm13268_vm7, %v7104_v21  ;;  %v6250_v26 = vsel %vm13274_vm1, %v6183_v22, %v5704_v60  ;;  %vm13279_vm7 = vmmov %vm13273_vm3  ;;  %v2038_v22 = vrot.slane %v2036_v40, 4 }
 0x41a   :  { %v5702_v36 = vpop.permute.xlu0 %5701 }
 0x41b   :  { %v6248_v42 = vsel %vm13271_vm13, %v6180_v11, %v5702_v36  ;;  %vm13282_vm13 = vmmov %vm13273_vm3 }
 0x41f   :  { %v5768_v20 = vpop.permute.xlu1 %5767 }
 0x420   :  { %v6315_v41 = vsel %vm6255_vm4, %v6250_v26, %v5768_v20 }
 0x422   :  { %v5766_v47 = vpop.permute.xlu0 %5765 }
 0x423   :  { %v5832_v13 = vpop.permute.xlu1 %5831  ;;  %v6313_v19 = vsel %vm6255_vm4, %v6248_v42, %v5766_v47 }
 0x424   :  { %v6379_v57 = vsel %vm281_vm0, %v6315_v41, %v5832_v13 }
 0x426   :  { %v5830_v54 = vpop.permute.xlu0 %5829 }
 0x427   :  { %v6377_v25 = vsel %vm281_vm0, %v6313_v19, %v5830_v54  ;;  %v2035_v19 = vrot.slane %v2033_v10, 3 }
 0x42a   :  { %v5896_v2 = vpop.permute.xlu1 %5895 }
 0x42b   :  { %v6444_v21 = vsel %vm6384_vm5, %v6379_v57, %v5896_v2 }
 0x42d   :  { %v5894_v14 = vpop.permute.xlu0 %5893 }
 0x42e   :  { %v6442_v35 = vsel %vm6384_vm5, %v6377_v25, %v5894_v14  ;;  %v2027_v25 = vrot.slane %v2025_v18, 3 }
 0x433   :  { %v5960_v28 = vpop.permute.xlu1 %5959 }
 0x434   :  { %v6509_v20 = vsel %vm6449_vm11, %v6444_v21, %v5960_v28 }
 0x436   :  { %v5958_v15 = vpop.permute.xlu0 %5957 }
 0x437   :  { %v6024_v32 = vpop.permute.xlu1 %6023  ;;  %v6507_v44 = vsel %vm6449_vm11, %v6442_v35, %v5958_v15 }
 0x438   :  { %v6574_v54 = vsel %vm6514_vm12, %v6509_v20, %v6024_v32  ;;  %v2042_v32 = vshrl.u32 %v1512_v23, 16 }
 0x43a   :  { %v6022_v58 = vpop.permute.xlu0 %6021  ;;  %v8736_v30 = vpop.f32.mrb[56].mxu1  ;;  %v2044_v26 = vrot.slane %v2042_v32, 3 }
 0x43b   :  { %v6879_v51 = vadd.f32 %v12459_v61, %v8736_v30  ;;  %v6870_v33 = vpop.f32.mrb[57].mxu1  ;;  %v6572_v43 = vsel %vm6514_vm12, %v6507_v44, %v6022_v58  ;;  %v12532_v8 = vpop.permute.xlu1 %5641  ;;  %v2030_v30 = vrot.slane %v2028_v38, 4  ;;  %v2047_v44 = vrot.slane %v2045_v34, 4 }
 0x43c   :  { %v6871_v55 = vadd.f32 %v12459_v61, %v6870_v33  ;;  %v8737_v49 = vpop.f32.mrb[58].mxu1 }
 0x43d   :  { %v6882_v4 = vadd.f32 %v12459_v61, %v8737_v49  ;;  %v6873_v9 = vpop.f32.mrb[59].mxu1  ;;  %v7055_v60 = vmax.f32 %v6879_v51, 0.0  ;;  %v2052_v51 = vrot.slane %v2050_v27, 3 }
 0x43e   :  { %v6874_v37 = vadd.f32 %v12459_v61, %v6873_v9  ;;  %v7053_v47 = vmax.f32 %v6871_v55, 0.0  ;;  %v2055_v55 = vrot.slane %v2053_v56, 4 }
 0x43f   :  { %v7056_v36 = vmax.f32 %v6882_v4, 0.0  ;;  %v12540_v48 = vpop.permute.xlu1 %5643 }
 0x440   :  { %v6086_v50 = vpop.permute.xlu0 %6085  ;;  %v7054_v0 = vmax.f32 %v6874_v37, 0.0 }
 0x441   :  { %v6637_v1 = vsel %vm13275_vm10, %v6572_v43, %v6086_v50  ;;  %v7106_v13 = vpack.c.bf16 %v7056_v36, %v7055_v60  ;;  %v2031_v43 = vor.u32 %v2030_v30, %v2027_v25  ;;  %v2039_v50 = vor.u32 %v2038_v22, %v2035_v19  ;;  %vm13283_vm10 = vmmov %vm13272_vm8  ;;  %v8506_v22 = vld [vmem:[#allocation3 + $0x8] sm:$0xff]  }
 0x442   :  { %8766 = vmatprep.mubr.msk.bf16.mxu1 %vm13276_vm2, %v6637_v1  ;;  %v7105_v53 = vpack.c.bf16 %v7054_v0, %v7053_v47  ;;  %v2048_v60 = vor.u32 %v2047_v44, %v2044_v26  ;;  %v2056_v36 = vor.u32 %v2055_v55, %v2052_v51  ;;  %vm13284_vm2 = vmmov %vm13273_vm3  ;;  %v12608_v51 = vld [vmem:[%s12795_s6] ss:$0 sm:$0xff] }
 0x443   :  { %v2040_v0 = vsel %vm13272_vm8, %v2031_v43, %v2039_v50  ;;  %vm13295_vm8 = vmmov %vm13284_vm2 }
 0x444   :  { %v6088_v31 = vpop.permute.xlu0 %6087  ;;  %8800 = vmatprep.mubr.msk.bf16.mxu0 %vm13279_vm7, %v7105_v53  ;;  %vm13287_vm7 = vmmov %vm13284_vm2 }
 0x445   :  { %v6639_v12 = vsel %vm13277_vm6, %v6574_v54, %v6088_v31  ;;  %8801 = vmatmul.mubr.msk.bf16.gmra.mrb[56].mxu0 %vm13280_vm9, %v7106_v13  ;;  %v6186_v13 = vsel %vm13273_vm3, %v2040_v0, %v12532_v8  ;;  %vm13285_vm6 = vmmov %vm13284_vm2  ;;  %vm13288_vm9 = vcmask 261120  }
 0x446   :  { %8767 = vmatmul.mubr.msk.bf16.gmra.mrb[88].mxu1 %vm13278_vm15, %v6639_v12  ;;  %vm13286_vm15 = vmmov %vm13274_vm1 }
 0x447   :  { %v12545_v7 = vpop.permute.xlu1 %5707  ;;  %vm13296_vm3 = vmmov %vm13284_vm2 }
 0x44a   :  { %v12543_v5 = vpop.permute.xlu0 %5705 }
 0x44d   :  { %v12549_v24 = vpop.permute.xlu1 %5771 }
 0x450   :  { %v12547_v6 = vpop.permute.xlu0 %5769  ;;  %v8740_v62 = vpop.f32.mrb[60].mxu1 }
 0x451   :  { %v6895_v2 = vadd.f32 %v12459_v61, %v8740_v62  ;;  %v6886_v14 = vpop.f32.mrb[61].mxu1  ;;  %v12559_v28 = vpop.permute.xlu1 %5835  ;;  %v6252_v62 = vsel %vm13274_vm1, %v6186_v13, %v12543_v5  ;;  %vm13297_vm1 = vmmov %vm13284_vm2 }
 0x452   :  { %v6887_v29 = vadd.f32 %v12459_v61, %v6886_v14  ;;  %v8741_v63 = vpop.f32.mrb[62].mxu1 }
 0x453   :  { %v6898_v3 = vadd.f32 %v12459_v61, %v8741_v63  ;;  %v6889_v17 = vpop.f32.mrb[63].mxu1  ;;  %v7059_v15 = vmax.f32 %v6895_v2, 0.0  ;;  %v6317_v63 = vsel %vm6255_vm4, %v6252_v62, %v12547_v6 }
 0x454   :  { %v12551_v52 = vpop.permute.xlu0 %5833  ;;  %v6890_v39 = vadd.f32 %v12459_v61, %v6889_v17  ;;  %v7057_v58 = vmax.f32 %v6887_v29, 0.0  ;;  %v2057_v29 = vsel %vm13283_vm10, %v2048_v60, %v2056_v36  ;;  %vm13298_vm10 = vmmov %vm13297_vm1 }
 0x455   :  { %v7060_v46 = vmax.f32 %v6898_v3, 0.0  ;;  %v6189_v17 = vsel %vm13284_vm2, %v2057_v29, %v12540_v48  ;;  %v6381_v8 = vsel %vm281_vm0, %v6317_v63, %v12551_v52 }
 0x456   :  { %v7058_v42 = vmax.f32 %v6890_v39, 0.0  ;;  %v6254_v18 = vsel %vm13286_vm15, %v6189_v17, %v12545_v7  ;;  %vm13301_vm15 = vmmov %vm13297_vm1 }
 0x457   :  { %v7108_v59 = vpack.c.bf16 %v7060_v46, %v7059_v15  ;;  %v6319_v48 = vsel %vm6255_vm4, %v6254_v18, %v12549_v24  ;;  %vm13289_vm4 = vcmask 293888  }
 0x458   :  { %v7107_v35 = vpack.c.bf16 %v7058_v42, %v7057_v58  ;;  %v5900_v49 = vpop.permute.xlu1 %5899  ;;  %v6383_v46 = vsel %vm281_vm0, %v6319_v48, %v12559_v28  ;;  %vm13290_vm0 = vmmov %vm13288_vm9 }
 0x459   :  { %v6448_v58 = vsel %vm6384_vm5, %v6383_v46, %v5900_v49 }
 0x45a   :  { %v5898_v11 = vpop.permute.xlu0 %5897  ;;  %v8744_v33 = vpop.f32.mrb[64].mxu1  ;;  %8804 = vmatprep.mubr.msk.bf16.mxu0 %vm13281_vm14, %v7107_v35  ;;  %vm13291_vm14 = vmmov %vm13289_vm4  ;;  %v8379_v35 = vld [vmem:[#allocation3] sm:$0xff]  }
 0x45b   :  { %v6911_v45 = vadd.f32 %v12459_v61, %v8744_v33  ;;  %v6902_v41 = vpop.f32.mrb[65].mxu1  ;;  %8805 = vmatmul.mubr.msk.bf16.gmra.mrb[60].mxu0 %vm13282_vm13, %v7108_v59  ;;  %v6446_v38 = vsel %vm6384_vm5, %v6381_v8, %v5898_v11  ;;  %vm13292_vm13 = vmmov %vm13284_vm2  ;;  %v8384_v33 = vunpack.c.l.bf16 %v8506_v22  ;;  %v8380_v44 = vunpack.c.l.bf16 %v8379_v35 }
 0x45c   :  { %v6903_v9 = vadd.f32 %v12459_v61, %v6902_v41  ;;  %v8745_v57 = vpop.f32.mrb[66].mxu1  ;;  %vm13293_vm5 = vmmov %vm13284_vm2  ;;  %v8381_v50 = vunpack.c.h.bf16 %v8379_v35 }
 0x45d   :  { %v6914_v1 = vadd.f32 %v12459_v61, %v8745_v57  ;;  %v6905_v37 = vpop.f32.mrb[67].mxu1  ;;  %v7063_v20 = vmax.f32 %v6911_v45, 0.0  ;;  %v8385_v45 = vunpack.c.h.bf16 %v8506_v22 }
 0x45e   :  { %v6906_v21 = vadd.f32 %v12459_v61, %v6905_v37  ;;  %v7061_v54 = vmax.f32 %v6903_v9, 0.0 }
 0x45f   :  { %v7064_v47 = vmax.f32 %v6914_v1, 0.0 }
 0x460   :  { %v7062_v31 = vmax.f32 %v6906_v21, 0.0 }
 0x461   :  { %v5962_v4 = vpop.permute.xlu0 %5961  ;;  %v7110_v53 = vpack.c.bf16 %v7064_v47, %v7063_v20 }
 0x462   :  { %v7109_v2 = vpack.c.bf16 %v7062_v31, %v7061_v54  ;;  %v6511_v52 = vsel %vm6449_vm11, %v6446_v38, %v5962_v4  ;;  %v8508_v38 = vld [vmem:[#allocation3 + $0x18] sm:$0xff]  }
 0x463   :  { %v8393_v46 = vunpack.c.h.bf16 %v8508_v38 }
 0x464   :  { %8808 = vmatprep.mubr.msk.bf16.mxu0 %vm13285_vm6, %v7109_v2  ;;  %vm13300_vm6 = vmmov %vm13297_vm1 }
 0x465   :  { %v6026_v12 = vpop.permute.xlu0 %6025  ;;  %v8748_v14 = vpop.f32.mrb[68].mxu1  ;;  %8809 = vmatmul.mubr.msk.bf16.gmra.mrb[64].mxu0 %vm13287_vm7, %v7110_v53  ;;  %vm13302_vm7 = vmmov %vm13297_vm1 }
 0x466   :  { %v6927_v10 = vadd.f32 %v12459_v61, %v8748_v14  ;;  %v6918_v3 = vpop.f32.mrb[69].mxu1  ;;  %v6576_v7 = vsel %vm6514_vm12, %v6511_v52, %v6026_v12 }
 0x467   :  { %v6919_v40 = vadd.f32 %v12459_v61, %v6918_v3  ;;  %v8749_v5 = vpop.f32.mrb[70].mxu1 }
 0x468   :  { %v5964_v16 = vpop.permute.xlu1 %5963  ;;  %v6930_v6 = vadd.f32 %v12459_v61, %v8749_v5  ;;  %v6921_v23 = vpop.f32.mrb[71].mxu1  ;;  %v7067_v56 = vmax.f32 %v6927_v10, 0.0 }
 0x469   :  { %v6922_v15 = vadd.f32 %v12459_v61, %v6921_v23  ;;  %v7065_v19 = vmax.f32 %v6919_v40, 0.0  ;;  %v6513_v24 = vsel %vm6449_vm11, %v6448_v58, %v5964_v16  ;;  %vm8033_vm11 = vcmask 125952  }
 0x46a   :  { %v7068_v11 = vmax.f32 %v6930_v6, 0.0  ;;  %v8507_v6 = vld [vmem:[#allocation3 + $0x10] sm:$0xff]   ;;  %v8392_v23 = vunpack.c.l.bf16 %v8508_v38 }
 0x46b   :  { %v7066_v32 = vmax.f32 %v6922_v15, 0.0  ;;  %v8388_v52 = vunpack.c.l.bf16 %v8507_v6 }
 0x46c   :  { %v6028_v39 = vpop.permute.xlu1 %6027  ;;  %v6090_v27 = vpop.permute.xlu0 %6089  ;;  %v7112_v34 = vpack.c.bf16 %v7068_v11, %v7067_v56  ;;  %v8389_v56 = vunpack.c.h.bf16 %v8507_v6 }
 0x46d   :  { %v6641_v42 = vsel %vm13288_vm9, %v6576_v7, %v6090_v27  ;;  %v6578_v59 = vsel %vm6514_vm12, %v6513_v24, %v6028_v39  ;;  %v7111_v28 = vpack.c.bf16 %v7066_v32, %v7065_v19  ;;  %vm13294_vm12 = vmmov %vm13284_vm2 }
 0x46e   :  { %8770 = vmatprep.mubr.msk.bf16.mxu1 %vm13289_vm4, %v6641_v42  ;;  %vm13299_vm2 = vmmov %vm13297_vm1 }
 0x46f   :  { %8812 = vmatprep.mubr.msk.bf16.mxu0 %vm13292_vm13, %v7111_v28  ;;  %vm13303_vm9 = vmmov %vm13297_vm1 }
 0x470   :  { %v6092_v25 = vpop.permute.xlu1 %6091  ;;  %8813 = vmatmul.mubr.msk.bf16.gmra.mrb[68].mxu0 %vm13293_vm5, %v7112_v34  ;;  %vm13304_vm4 = vmmov %vm13297_vm1 }
 0x471   :  { %v6643_v30 = vsel %vm13290_vm0, %v6578_v59, %v6092_v25  ;;  %vm13305_vm0 = vmmov %vm13297_vm1 }
 0x472   :  { %8771 = vmatmul.mubr.msk.bf16.gmra.mrb[92].mxu1 %vm13291_vm14, %v6643_v30 }
 0x481   :  { %v8778_v26 = vpop.f32.mrb[32].mxu0 }
 0x482   :  { %v7275_v55 = vadd.f32 %v8778_v26, %v12608_v51  ;;  %v7266_v49 = vpop.f32.mrb[33].mxu0 }
 0x483   :  { %v7267_v41 = vadd.f32 %v12608_v51, %v7266_v49  ;;  %v8779_v43 = vpop.f32.mrb[34].mxu0 }
 0x484   :  { %v7651_v4 = vadd.f32 %v8384_v33, %v7275_v55  ;;  %v7278_v9 = vadd.f32 %v8779_v43, %v12608_v51  ;;  %v7269_v57 = vpop.f32.mrb[35].mxu0 }
 0x485   :  { %v7649_v1 = vadd.f32 %v8380_v44, %v7267_v41  ;;  %v7270_v37 = vadd.f32 %v12608_v51, %v7269_v57 }
 0x486   :  { %v7715_v21 = vmax.f32 %v7651_v4, 0.0  ;;  %v7652_v60 = vadd.f32 %v8385_v45, %v7278_v9 }
 0x487   :  { %v7713_v36 = vmax.f32 %v7649_v1, 0.0  ;;  %v7650_v20 = vadd.f32 %v8381_v50, %v7270_v37 }
 0x488   :  { %v8316_v47 = vpack.c.bf16 %v7715_v21, %v7715_v21  ;;  %v7716_v0 = vmax.f32 %v7652_v60, 0.0 }
 0x489   :  { %v8314_v54 = vpack.c.bf16 %v7713_v36, %v7713_v36  ;;  %v7714_v31 = vmax.f32 %v7650_v20, 0.0  ;;  %v8510_v36 = vld [vmem:[#allocation3 + $0x28] sm:$0xff]   ;;  %v8509_v20 = vld [vmem:[#allocation3 + $0x20] sm:$0xff]  }
 0x48a   :  { %8036 = vst.msk [vmem:[#allocation6 + $0x8] sm:$0xf] %vm8033_vm11, %v8316_v47  ;;  %v8317_v13 = vpack.c.bf16 %v7716_v0, %v7716_v0  ;;  %v8400_v47 = vunpack.c.l.bf16 %v8510_v36 }
 0x48b   :  { %8034 = vst.msk [vmem:[#allocation6] sm:$0xf] %vm8033_vm11, %v8314_v54  ;;  %v8315_v12 = vpack.c.bf16 %v7714_v31, %v7714_v31  ;;  %v8752_v53 = vpop.f32.mrb[72].mxu1  ;;  %v8396_v54 = vunpack.c.l.bf16 %v8509_v20 }
 0x48c   :  { %8037 = vst.msk [vmem:[#allocation6 + $0xc] sm:$0xf] %vm8033_vm11, %v8317_v13  ;;  %v6943_v62 = vadd.f32 %v12459_v61, %v8752_v53  ;;  %v6934_v16 = vpop.f32.mrb[73].mxu1 }
 0x48d   :  { %8035 = vst.msk [vmem:[#allocation6 + $0x4] sm:$0xf] %vm8033_vm11, %v8315_v12  ;;  %v6935_v2 = vadd.f32 %v12459_v61, %v6934_v16  ;;  %v8753_v14 = vpop.f32.mrb[74].mxu1  ;;  %v8401_v12 = vunpack.c.h.bf16 %v8510_v36  ;;  %v8397_v16 = vunpack.c.h.bf16 %v8509_v20  ;;  %v8513_v20 = vld [vmem:[#allocation3 + $0x40] sm:$0xff]  }
 0x48e   :  { %v6946_v29 = vadd.f32 %v12459_v61, %v8753_v14  ;;  %v6937_v63 = vpop.f32.mrb[75].mxu1  ;;  %v7071_v3 = vmax.f32 %v6943_v62, 0.0 }
 0x48f   :  { %v6938_v10 = vadd.f32 %v12459_v61, %v6937_v63  ;;  %v7069_v8 = vmax.f32 %v6935_v2, 0.0 }
 0x490   :  { %v7072_v17 = vmax.f32 %v6946_v29, 0.0 }
 0x491   :  { %v7070_v40 = vmax.f32 %v6938_v10, 0.0 }
 0x492   :  { %v7114_v5 = vpack.c.bf16 %v7072_v17, %v7071_v3 }
 0x493   :  { %v7113_v18 = vpack.c.bf16 %v7070_v40, %v7069_v8 }
 0x495   :  { %8816 = vmatprep.mubr.msk.bf16.mxu0 %vm13294_vm12, %v7113_v18 }
 0x496   :  { %8817 = vmatmul.mubr.msk.bf16.gmra.mrb[72].mxu0 %vm13295_vm8, %v7114_v5 }
 0x49e   :  { %v8782_v48 = vpop.f32.mrb[36].mxu0 }
 0x49f   :  { %v7291_v39 = vadd.f32 %v8782_v48, %v12608_v51  ;;  %v7282_v15 = vpop.f32.mrb[37].mxu0 }
 0x4a0   :  { %v7283_v7 = vadd.f32 %v12608_v51, %v7282_v15  ;;  %v8783_v27 = vpop.f32.mrb[38].mxu0 }
 0x4a1   :  { %v7655_v11 = vadd.f32 %v8392_v23, %v7291_v39  ;;  %v7294_v58 = vadd.f32 %v8783_v27, %v12608_v51  ;;  %v7285_v42 = vpop.f32.mrb[39].mxu0 }
 0x4a2   :  { %v7653_v19 = vadd.f32 %v8388_v52, %v7283_v7  ;;  %v7286_v32 = vadd.f32 %v12608_v51, %v7285_v42  ;;  %v8512_v7 = vld [vmem:[#allocation3 + $0x38] sm:$0xff]   ;;  %v8511_v42 = vld [vmem:[#allocation3 + $0x30] sm:$0xff]  }
 0x4a3   :  { %v7719_v24 = vmax.f32 %v7655_v11, 0.0  ;;  %v7656_v34 = vadd.f32 %v8393_v46, %v7294_v58 }
 0x4a4   :  { %v7717_v59 = vmax.f32 %v7653_v19, 0.0  ;;  %v7654_v25 = vadd.f32 %v8389_v56, %v7286_v32 }
 0x4a5   :  { %v8320_v28 = vpack.c.bf16 %v7719_v24, %v7719_v24  ;;  %v7720_v30 = vmax.f32 %v7656_v34, 0.0 }
 0x4a6   :  { %v8318_v22 = vpack.c.bf16 %v7717_v59, %v7717_v59  ;;  %v7718_v35 = vmax.f32 %v7654_v25, 0.0  ;;  %v8408_v25 = vunpack.c.l.bf16 %v8512_v7 }
 0x4a7   :  { %8040 = vst.msk [vmem:[#allocation6 + $0x18] sm:$0xf] %vm8033_vm11, %v8320_v28  ;;  %v8321_v33 = vpack.c.bf16 %v7720_v30, %v7720_v30 }
 0x4a8   :  { %8038 = vst.msk [vmem:[#allocation6 + $0x10] sm:$0xf] %vm8033_vm11, %v8318_v22  ;;  %v8319_v26 = vpack.c.bf16 %v7718_v35, %v7718_v35  ;;  %v8404_v22 = vunpack.c.l.bf16 %v8511_v42 }
 0x4a9   :  { %8041 = vst.msk [vmem:[#allocation6 + $0x1c] sm:$0xf] %vm8033_vm11, %v8321_v33 }
 0x4aa   :  { %8039 = vst.msk [vmem:[#allocation6 + $0x14] sm:$0xf] %vm8033_vm11, %v8319_v26  ;;  %v8409_v26 = vunpack.c.h.bf16 %v8512_v7 }
 0x4b8   :  { %v8756_v44 = vpop.f32.mrb[76].mxu1 }
 0x4b9   :  { %v6959_v55 = vadd.f32 %v12459_v61, %v8756_v44  ;;  %v6950_v49 = vpop.f32.mrb[77].mxu1 }
 0x4ba   :  { %v6951_v45 = vadd.f32 %v12459_v61, %v6950_v49  ;;  %v8757_v41 = vpop.f32.mrb[78].mxu1  ;;  %v8405_v49 = vunpack.c.h.bf16 %v8511_v42 }
 0x4bb   :  { %v6962_v43 = vadd.f32 %v12459_v61, %v8757_v41  ;;  %v6953_v50 = vpop.f32.mrb[79].mxu1  ;;  %v7075_v9 = vmax.f32 %v6959_v55, 0.0 }
 0x4bc   :  { %v6954_v4 = vadd.f32 %v12459_v61, %v6953_v50  ;;  %v7073_v1 = vmax.f32 %v6951_v45, 0.0 }
 0x4bd   :  { %v7076_v57 = vmax.f32 %v6962_v43, 0.0 }
 0x4be   :  { %v7074_v37 = vmax.f32 %v6954_v4, 0.0 }
 0x4bf   :  { %v7116_v21 = vpack.c.bf16 %v7076_v57, %v7075_v9 }
 0x4c0   :  { %v7115_v60 = vpack.c.bf16 %v7074_v37, %v7073_v1 }
 0x4c2   :  { %8820 = vmatprep.mubr.msk.bf16.mxu0 %vm13296_vm3, %v7115_v60 }
 0x4c3   :  { %8821 = vmatmul.mubr.msk.bf16.gmra.mrb[76].mxu0 %vm13297_vm1, %v7116_v21  ;;  %v8514_v21 = vld [vmem:[#allocation3 + $0x48] sm:$0xff]  }
 0x4ce   :  { %v8786_v0 = vpop.f32.mrb[40].mxu0 }
 0x4cf   :  { %v7307_v31 = vadd.f32 %v8786_v0, %v12608_v51  ;;  %v7298_v13 = vpop.f32.mrb[41].mxu0 }
 0x4d0   :  { %v7299_v53 = vadd.f32 %v12608_v51, %v7298_v13  ;;  %v8787_v62 = vpop.f32.mrb[42].mxu0  ;;  %v8760_v63 = vpop.f32.mrb[80].mxu1 }
 0x4d1   :  { %v7659_v2 = vadd.f32 %v8400_v47, %v7307_v31  ;;  %v7310_v14 = vadd.f32 %v8787_v62, %v12608_v51  ;;  %v7301_v29 = vpop.f32.mrb[43].mxu0  ;;  %v6975_v17 = vadd.f32 %v12459_v61, %v8760_v63  ;;  %v6966_v8 = vpop.f32.mrb[81].mxu1  ;;  %v8416_v31 = vunpack.c.l.bf16 %v8514_v21 }
 0x4d2   :  { %v7657_v10 = vadd.f32 %v8396_v54, %v7299_v53  ;;  %v7302_v3 = vadd.f32 %v12608_v51, %v7301_v29  ;;  %v6967_v18 = vadd.f32 %v12459_v61, %v6966_v8  ;;  %v8761_v38 = vpop.f32.mrb[82].mxu1  ;;  %v8412_v53 = vunpack.c.l.bf16 %v8513_v20 }
 0x4d3   :  { %v7723_v40 = vmax.f32 %v7659_v2, 0.0  ;;  %v7660_v5 = vadd.f32 %v8401_v12, %v7310_v14  ;;  %v6978_v48 = vadd.f32 %v12459_v61, %v8761_v38  ;;  %v6969_v52 = vpop.f32.mrb[83].mxu1  ;;  %v7079_v11 = vmax.f32 %v6975_v17, 0.0 }
 0x4d4   :  { %v7721_v6 = vmax.f32 %v7657_v10, 0.0  ;;  %v7658_v23 = vadd.f32 %v8397_v16, %v7302_v3  ;;  %v6970_v46 = vadd.f32 %v12459_v61, %v6969_v52  ;;  %v7077_v32 = vmax.f32 %v6967_v18, 0.0 }
 0x4d5   :  { %v8324_v39 = vpack.c.bf16 %v7723_v40, %v7723_v40  ;;  %v7724_v15 = vmax.f32 %v7660_v5, 0.0  ;;  %v7080_v58 = vmax.f32 %v6978_v48, 0.0  ;;  %v8417_v2 = vunpack.c.h.bf16 %v8514_v21 }
 0x4d6   :  { %v8322_v27 = vpack.c.bf16 %v7721_v6, %v7721_v6  ;;  %v7722_v56 = vmax.f32 %v7658_v23, 0.0  ;;  %v7078_v24 = vmax.f32 %v6970_v46, 0.0  ;;  %v8790_v30 = vpop.f32.mrb[44].mxu0  ;;  %v8413_v63 = vunpack.c.h.bf16 %v8513_v20 }
 0x4d7   :  { %8044 = vst.msk [vmem:[#allocation6 + $0x28] sm:$0xf] %vm8033_vm11, %v8324_v39  ;;  %v8325_v19 = vpack.c.bf16 %v7724_v15, %v7724_v15  ;;  %v7118_v59 = vpack.c.bf16 %v7080_v58, %v7079_v11  ;;  %v7323_v35 = vadd.f32 %v8790_v30, %v12608_v51  ;;  %v7314_v33 = vpop.f32.mrb[45].mxu0 }
 0x4d8   :  { %8042 = vst.msk [vmem:[#allocation6 + $0x20] sm:$0xf] %vm8033_vm11, %v8322_v27  ;;  %v8323_v34 = vpack.c.bf16 %v7722_v56, %v7722_v56  ;;  %v7117_v28 = vpack.c.bf16 %v7078_v24, %v7077_v32  ;;  %v7315_v44 = vadd.f32 %v12608_v51, %v7314_v33  ;;  %v8791_v55 = vpop.f32.mrb[46].mxu0  ;;  %v8516_v32 = vld [vmem:[#allocation3 + $0x58] sm:$0xff]  }
 0x4d9   :  { %8045 = vst.msk [vmem:[#allocation6 + $0x2c] sm:$0xf] %vm8033_vm11, %v8325_v19  ;;  %v7663_v45 = vadd.f32 %v8408_v25, %v7323_v35  ;;  %v7326_v41 = vadd.f32 %v8791_v55, %v12608_v51  ;;  %v7317_v43 = vpop.f32.mrb[47].mxu0 }
 0x4da   :  { %8043 = vst.msk [vmem:[#allocation6 + $0x24] sm:$0xf] %vm8033_vm11, %v8323_v34  ;;  %8824 = vmatprep.mubr.msk.bf16.mxu0 %vm13298_vm10, %v7117_v28  ;;  %v7661_v50 = vadd.f32 %v8404_v22, %v7315_v44  ;;  %v7318_v4 = vadd.f32 %v12608_v51, %v7317_v43  ;;  %v8515_v34 = vld [vmem:[#allocation3 + $0x50] sm:$0xff]   ;;  %v8424_v22 = vunpack.c.l.bf16 %v8516_v32 }
 0x4db   :  { %8825 = vmatmul.mubr.msk.bf16.gmra.mrb[80].mxu0 %vm13299_vm2, %v7118_v59  ;;  %v7727_v9 = vmax.f32 %v7663_v45, 0.0  ;;  %v7664_v57 = vadd.f32 %v8409_v26, %v7326_v41  ;;  %v8420_v26 = vunpack.c.l.bf16 %v8515_v34  ;;  %v8425_v45 = vunpack.c.h.bf16 %v8516_v32 }
 0x4dc   :  { %v7725_v1 = vmax.f32 %v7661_v50, 0.0  ;;  %v7662_v37 = vadd.f32 %v8405_v49, %v7318_v4  ;;  %v8421_v50 = vunpack.c.h.bf16 %v8515_v34 }
 0x4dd   :  { %v8328_v60 = vpack.c.bf16 %v7727_v9, %v7727_v9  ;;  %v7728_v36 = vmax.f32 %v7664_v57, 0.0 }
 0x4de   :  { %v8326_v47 = vpack.c.bf16 %v7725_v1, %v7725_v1  ;;  %v7726_v0 = vmax.f32 %v7662_v37, 0.0  ;;  %v8794_v12 = vpop.f32.mrb[48].mxu0 }
 0x4df   :  { %8048 = vst.msk [vmem:[#allocation6 + $0x38] sm:$0xf] %vm8033_vm11, %v8328_v60  ;;  %v8329_v54 = vpack.c.bf16 %v7728_v36, %v7728_v36  ;;  %v7339_v62 = vadd.f32 %v8794_v12, %v12608_v51  ;;  %v7330_v16 = vpop.f32.mrb[49].mxu0  ;;  %v8518_v12 = vld [vmem:[#allocation3 + $0x68] sm:$0xff]  }
 0x4e0   :  { %8046 = vst.msk [vmem:[#allocation6 + $0x30] sm:$0xf] %vm8033_vm11, %v8326_v47  ;;  %v8327_v13 = vpack.c.bf16 %v7726_v0, %v7726_v0  ;;  %v7331_v14 = vadd.f32 %v12608_v51, %v7330_v16  ;;  %v8795_v29 = vpop.f32.mrb[50].mxu0  ;;  %v12685_v16 = vld [vmem:[%s12794_s5] ss:$0 sm:$0xff] }
 0x4e1   :  { %8049 = vst.msk [vmem:[#allocation6 + $0x3c] sm:$0xf] %vm8033_vm11, %v8329_v54  ;;  %v7667_v10 = vadd.f32 %v8416_v31, %v7339_v62  ;;  %v7342_v3 = vadd.f32 %v8795_v29, %v12608_v51  ;;  %v7333_v17 = vpop.f32.mrb[51].mxu0  ;;  %v8432_v29 = vunpack.c.l.bf16 %v8518_v12 }
 0x4e2   :  { %8047 = vst.msk [vmem:[#allocation6 + $0x34] sm:$0xf] %vm8033_vm11, %v8327_v13  ;;  %v7665_v8 = vadd.f32 %v8412_v53, %v7331_v14  ;;  %v7334_v40 = vadd.f32 %v12608_v51, %v7333_v17  ;;  %v8517_v53 = vld [vmem:[#allocation3 + $0x60] sm:$0xff]  }
 0x4e3   :  { %v7731_v5 = vmax.f32 %v7667_v10, 0.0  ;;  %v7668_v18 = vadd.f32 %v8417_v2, %v7342_v3  ;;  %v8428_v17 = vunpack.c.l.bf16 %v8517_v53 }
 0x4e4   :  { %v7729_v38 = vmax.f32 %v7665_v8, 0.0  ;;  %v7666_v6 = vadd.f32 %v8413_v63, %v7334_v40 }
 0x4e5   :  { %v8332_v23 = vpack.c.bf16 %v7731_v5, %v7731_v5  ;;  %v7732_v48 = vmax.f32 %v7668_v18, 0.0 }
 0x4e6   :  { %v8330_v52 = vpack.c.bf16 %v7729_v38, %v7729_v38  ;;  %v7730_v39 = vmax.f32 %v7666_v6, 0.0  ;;  %v8433_v38 = vunpack.c.h.bf16 %v8518_v12 }
 0x4e7   :  { %8052 = vst.msk [vmem:[#allocation6 + $0x48] sm:$0xf] %vm8033_vm11, %v8332_v23  ;;  %v8333_v46 = vpack.c.bf16 %v7732_v48, %v7732_v48 }
 0x4e8   :  { %8050 = vst.msk [vmem:[#allocation6 + $0x40] sm:$0xf] %vm8033_vm11, %v8330_v52  ;;  %v8331_v56 = vpack.c.bf16 %v7730_v39, %v7730_v39  ;;  %v8429_v52 = vunpack.c.h.bf16 %v8517_v53  ;;  %v8521_v53 = vld [vmem:[#allocation3 + $0x80] sm:$0xff]  }
 0x4e9   :  { %v8764_v15 = vpop.f32.mrb[84].mxu1  ;;  %8053 = vst.msk [vmem:[#allocation6 + $0x4c] sm:$0xf] %vm8033_vm11, %v8333_v46 }
 0x4ea   :  { %v6991_v7 = vadd.f32 %v12459_v61, %v8764_v15  ;;  %v6982_v27 = vpop.f32.mrb[85].mxu1  ;;  %8051 = vst.msk [vmem:[#allocation6 + $0x44] sm:$0xf] %vm8033_vm11, %v8331_v56 }
 0x4eb   :  { %v6983_v11 = vadd.f32 %v12459_v61, %v6982_v27  ;;  %v8765_v58 = vpop.f32.mrb[86].mxu1  ;;  %v8798_v33 = vpop.f32.mrb[52].mxu0 }
 0x4ec   :  { %v6994_v42 = vadd.f32 %v12459_v61, %v8765_v58  ;;  %v6985_v19 = vpop.f32.mrb[87].mxu1  ;;  %v7083_v59 = vmax.f32 %v6991_v7, 0.0  ;;  %v7355_v55 = vadd.f32 %v8798_v33, %v12608_v51  ;;  %v7346_v49 = vpop.f32.mrb[53].mxu0 }
 0x4ed   :  { %v6986_v24 = vadd.f32 %v12459_v61, %v6985_v19  ;;  %v7081_v28 = vmax.f32 %v6983_v11, 0.0  ;;  %v7347_v41 = vadd.f32 %v12608_v51, %v7346_v49  ;;  %v8799_v43 = vpop.f32.mrb[54].mxu0 }
 0x4ee   :  { %v7084_v25 = vmax.f32 %v6994_v42, 0.0  ;;  %v7671_v61 = vadd.f32 %v8424_v22, %v7355_v55  ;;  %v7358_v4 = vadd.f32 %v8799_v43, %v12608_v51  ;;  %v7349_v9 = vpop.f32.mrb[55].mxu0  ;;  %v8519_v55 = vld [vmem:[#allocation3 + $0x70] sm:$0xff]  }
 0x4ef   :  { %v7082_v30 = vmax.f32 %v6986_v24, 0.0  ;;  %v7669_v57 = vadd.f32 %v8420_v26, %v7347_v41  ;;  %v7350_v1 = vadd.f32 %v12608_v51, %v7349_v9  ;;  %v8436_v41 = vunpack.c.l.bf16 %v8519_v55 }
 0x4f0   :  { %v7120_v35 = vpack.c.bf16 %v7084_v25, %v7083_v59  ;;  %v7735_v37 = vmax.f32 %v7671_v61, 0.0  ;;  %v7672_v21 = vadd.f32 %v8425_v45, %v7358_v4 }
 0x4f1   :  { %v7119_v44 = vpack.c.bf16 %v7082_v30, %v7081_v28  ;;  %v7733_v60 = vmax.f32 %v7669_v57, 0.0  ;;  %v7670_v36 = vadd.f32 %v8421_v50, %v7350_v1  ;;  %v8437_v57 = vunpack.c.h.bf16 %v8519_v55 }
 0x4f2   :  { %v8336_v20 = vpack.c.bf16 %v7735_v37, %v7735_v37  ;;  %v7736_v47 = vmax.f32 %v7672_v21, 0.0 }
 0x4f3   :  { %8828 = vmatprep.mubr.msk.bf16.mxu0 %vm13300_vm6, %v7119_v44  ;;  %v8334_v0 = vpack.c.bf16 %v7733_v60, %v7733_v60  ;;  %v7734_v54 = vmax.f32 %v7670_v36, 0.0  ;;  %v8520_v44 = vld [vmem:[#allocation3 + $0x78] sm:$0xff]  }
 0x4f4   :  { %8829 = vmatmul.mubr.msk.bf16.gmra.mrb[84].mxu0 %vm13301_vm15, %v7120_v35  ;;  %8056 = vst.msk [vmem:[#allocation6 + $0x58] sm:$0xf] %vm8033_vm11, %v8336_v20  ;;  %v8337_v31 = vpack.c.bf16 %v7736_v47, %v7736_v47  ;;  %v8440_v49 = vunpack.c.l.bf16 %v8520_v44  ;;  %v8441_v61 = vunpack.c.h.bf16 %v8520_v44 }
 0x4f5   :  { %8054 = vst.msk [vmem:[#allocation6 + $0x50] sm:$0xf] %vm8033_vm11, %v8334_v0  ;;  %v8335_v13 = vpack.c.bf16 %v7734_v54, %v7734_v54 }
 0x4f6   :  { %8057 = vst.msk [vmem:[#allocation6 + $0x5c] sm:$0xf] %vm8033_vm11, %v8337_v31  ;;  %v8522_v31 = vld [vmem:[#allocation3 + $0x88] sm:$0xff]  }
 0x4f7   :  { %8055 = vst.msk [vmem:[#allocation6 + $0x54] sm:$0xf] %vm8033_vm11, %v8335_v13 }
 0x518   :  { %v8802_v3 = vpop.f32.mrb[56].mxu0 }
 0x519   :  { %v8768_v62 = vpop.f32.mrb[88].mxu1  ;;  %v7371_v5 = vadd.f32 %v8802_v3, %v12608_v51  ;;  %v7362_v18 = vpop.f32.mrb[57].mxu0  ;;  %v8444_v3 = vunpack.c.l.bf16 %v8521_v53 }
 0x51a   :  { %v7007_v2 = vadd.f32 %v12685_v16, %v8768_v62  ;;  %v6998_v14 = vpop.f32.mrb[89].mxu1  ;;  %v7363_v23 = vadd.f32 %v12608_v51, %v7362_v18  ;;  %v8803_v48 = vpop.f32.mrb[58].mxu0 }
 0x51b   :  { %v6999_v63 = vadd.f32 %v12685_v16, %v6998_v14  ;;  %v8769_v10 = vpop.f32.mrb[90].mxu1  ;;  %v7675_v46 = vadd.f32 %v8432_v29, %v7371_v5  ;;  %v7374_v7 = vadd.f32 %v8803_v48, %v12608_v51  ;;  %v7365_v27 = vpop.f32.mrb[59].mxu0  ;;  %v8448_v29 = vunpack.c.l.bf16 %v8522_v31 }
 0x51c   :  { %v7010_v8 = vadd.f32 %v12685_v16, %v8769_v10  ;;  %v7001_v40 = vpop.f32.mrb[91].mxu1  ;;  %v7087_v39 = vmax.f32 %v7007_v2, 0.0  ;;  %v7673_v58 = vadd.f32 %v8428_v17, %v7363_v23  ;;  %v7366_v42 = vadd.f32 %v12608_v51, %v7365_v27  ;;  %v8523_v27 = vld [vmem:[#allocation3 + $0x90] sm:$0xff]  }
 0x51d   :  { %v7002_v6 = vadd.f32 %v12685_v16, %v7001_v40  ;;  %v7085_v56 = vmax.f32 %v6999_v63, 0.0  ;;  %v7739_v32 = vmax.f32 %v7675_v46, 0.0  ;;  %v7676_v24 = vadd.f32 %v8433_v38, %v7374_v7 }
 0x51e   :  { %v7088_v15 = vmax.f32 %v7010_v8, 0.0  ;;  %v7737_v59 = vmax.f32 %v7673_v58, 0.0  ;;  %v7674_v25 = vadd.f32 %v8429_v52, %v7366_v42  ;;  %v8449_v40 = vunpack.c.h.bf16 %v8522_v31 }
 0x51f   :  { %v7086_v11 = vmax.f32 %v7002_v6, 0.0  ;;  %v8340_v28 = vpack.c.bf16 %v7739_v32, %v7739_v32  ;;  %v7740_v30 = vmax.f32 %v7676_v24, 0.0  ;;  %v8445_v38 = vunpack.c.h.bf16 %v8521_v53 }
 0x520   :  { %v7122_v19 = vpack.c.bf16 %v7088_v15, %v7087_v39  ;;  %v8338_v22 = vpack.c.bf16 %v7737_v59, %v7737_v59  ;;  %v7738_v35 = vmax.f32 %v7674_v25, 0.0  ;;  %v8524_v15 = vld [vmem:[#allocation3 + $0x98] sm:$0xff]  }
 0x521   :  { %v7121_v34 = vpack.c.bf16 %v7086_v11, %v7085_v56  ;;  %8060 = vst.msk [vmem:[#allocation6 + $0x68] sm:$0xf] %vm8033_vm11, %v8340_v28  ;;  %v8341_v33 = vpack.c.bf16 %v7740_v30, %v7740_v30  ;;  %v8456_v32 = vunpack.c.l.bf16 %v8524_v15  ;;  %v8452_v30 = vunpack.c.l.bf16 %v8523_v27 }
 0x522   :  { %8058 = vst.msk [vmem:[#allocation6 + $0x60] sm:$0xf] %vm8033_vm11, %v8338_v22  ;;  %v8339_v26 = vpack.c.bf16 %v7738_v35, %v7738_v35  ;;  %v8457_v55 = vunpack.c.h.bf16 %v8524_v15 }
 0x523   :  { %8832 = vmatprep.mubr.msk.bf16.mxu0 %vm13302_vm7, %v7121_v34  ;;  %8061 = vst.msk [vmem:[#allocation6 + $0x6c] sm:$0xf] %vm8033_vm11, %v8341_v33 }
 0x524   :  { %8833 = vmatmul.mubr.msk.bf16.gmra.mrb[88].mxu0 %vm13303_vm9, %v7122_v19  ;;  %8059 = vst.msk [vmem:[#allocation6 + $0x64] sm:$0xf] %vm8033_vm11, %v8339_v26 }
 0x52e   :  { %v8806_v45 = vpop.f32.mrb[60].mxu0 }
 0x52f   :  { %v7387_v43 = vadd.f32 %v8806_v45, %v12608_v51  ;;  %v7378_v50 = vpop.f32.mrb[61].mxu0 }
 0x530   :  { %v7379_v4 = vadd.f32 %v12608_v51, %v7378_v50  ;;  %v8807_v9 = vpop.f32.mrb[62].mxu0 }
 0x531   :  { %v7679_v1 = vadd.f32 %v8440_v49, %v7387_v43  ;;  %v7390_v37 = vadd.f32 %v8807_v9, %v12608_v51  ;;  %v7381_v21 = vpop.f32.mrb[63].mxu0 }
 0x532   :  { %v7677_v60 = vadd.f32 %v8436_v41, %v7379_v4  ;;  %v7382_v36 = vadd.f32 %v12608_v51, %v7381_v21 }
 0x533   :  { %v7743_v20 = vmax.f32 %v7679_v1, 0.0  ;;  %v7680_v47 = vadd.f32 %v8441_v61, %v7390_v37  ;;  %v8453_v61 = vunpack.c.h.bf16 %v8523_v27 }
 0x534   :  { %v7741_v0 = vmax.f32 %v7677_v60, 0.0  ;;  %v7678_v54 = vadd.f32 %v8437_v57, %v7382_v36 }
 0x535   :  { %v8344_v13 = vpack.c.bf16 %v7743_v20, %v7743_v20  ;;  %v7744_v12 = vmax.f32 %v7680_v47, 0.0 }
 0x536   :  { %v8342_v62 = vpack.c.bf16 %v7741_v0, %v7741_v0  ;;  %v7742_v2 = vmax.f32 %v7678_v54, 0.0 }
 0x537   :  { %8064 = vst.msk [vmem:[#allocation6 + $0x78] sm:$0xf] %vm8033_vm11, %v8344_v13  ;;  %v8345_v14 = vpack.c.bf16 %v7744_v12, %v7744_v12 }
 0x538   :  { %8062 = vst.msk [vmem:[#allocation6 + $0x70] sm:$0xf] %vm8033_vm11, %v8342_v62  ;;  %v8343_v63 = vpack.c.bf16 %v7742_v2, %v7742_v2  ;;  %v8810_v10 = vpop.f32.mrb[64].mxu0 }
 0x539   :  { %8065 = vst.msk [vmem:[#allocation6 + $0x7c] sm:$0xf] %vm8033_vm11, %v8345_v14  ;;  %v7403_v17 = vadd.f32 %v8810_v10, %v12608_v51  ;;  %v7394_v8 = vpop.f32.mrb[65].mxu0  ;;  %v8526_v10 = vld [vmem:[#allocation3 + $0xa8] sm:$0xff]  }
 0x53a   :  { %8063 = vst.msk [vmem:[#allocation6 + $0x74] sm:$0xf] %vm8033_vm11, %v8343_v63  ;;  %v7395_v5 = vadd.f32 %v12608_v51, %v7394_v8  ;;  %v8811_v18 = vpop.f32.mrb[66].mxu0 }
 0x53b   :  { %v7683_v6 = vadd.f32 %v8448_v29, %v7403_v17  ;;  %v7406_v23 = vadd.f32 %v8811_v18, %v12608_v51  ;;  %v7397_v48 = vpop.f32.mrb[67].mxu0  ;;  %v8464_v17 = vunpack.c.l.bf16 %v8526_v10 }
 0x53c   :  { %v7681_v52 = vadd.f32 %v8444_v3, %v7395_v5  ;;  %v7398_v39 = vadd.f32 %v12608_v51, %v7397_v48  ;;  %v8525_v3 = vld [vmem:[#allocation3 + $0xa0] sm:$0xff]  }
 0x53d   :  { %v7747_v46 = vmax.f32 %v7683_v6, 0.0  ;;  %v7684_v7 = vadd.f32 %v8449_v40, %v7406_v23  ;;  %v8460_v40 = vunpack.c.l.bf16 %v8525_v3  ;;  %v8461_v48 = vunpack.c.h.bf16 %v8525_v3 }
 0x53e   :  { %v7745_v56 = vmax.f32 %v7681_v52, 0.0  ;;  %v7682_v11 = vadd.f32 %v8445_v38, %v7398_v39  ;;  %v8465_v38 = vunpack.c.h.bf16 %v8526_v10 }
 0x53f   :  { %v8348_v42 = vpack.c.bf16 %v7747_v46, %v7747_v46  ;;  %v7748_v19 = vmax.f32 %v7684_v7, 0.0 }
 0x540   :  { %v8346_v59 = vpack.c.bf16 %v7745_v56, %v7745_v56  ;;  %v7746_v25 = vmax.f32 %v7682_v11, 0.0 }
 0x541   :  { %8068 = vst.msk [vmem:[#allocation6 + $0x88] sm:$0xf] %vm8033_vm11, %v8348_v42  ;;  %v8349_v33 = vpack.c.bf16 %v7748_v19, %v7748_v19 }
 0x542   :  { %8066 = vst.msk [vmem:[#allocation6 + $0x80] sm:$0xf] %vm8033_vm11, %v8346_v59  ;;  %v8347_v41 = vpack.c.bf16 %v7746_v25, %v7746_v25  ;;  %v8528_v25 = vld [vmem:[#allocation3 + $0xb8] sm:$0xff]  }
 0x543   :  { %v8814_v28 = vpop.f32.mrb[68].mxu0  ;;  %8069 = vst.msk [vmem:[#allocation6 + $0x8c] sm:$0xf] %vm8033_vm11, %v8349_v33 }
 0x544   :  { %v7419_v26 = vadd.f32 %v8814_v28, %v12608_v51  ;;  %v7410_v44 = vpop.f32.mrb[69].mxu0  ;;  %8067 = vst.msk [vmem:[#allocation6 + $0x84] sm:$0xf] %vm8033_vm11, %v8347_v41  ;;  %v8527_v28 = vld [vmem:[#allocation3 + $0xb0] sm:$0xff]  }
 0x545   :  { %v8772_v58 = vpop.f32.mrb[92].mxu1  ;;  %v7411_v43 = vadd.f32 %v12608_v51, %v7410_v44  ;;  %v8815_v50 = vpop.f32.mrb[70].mxu0  ;;  %v8473_v44 = vunpack.c.h.bf16 %v8528_v25 }
 0x546   :  { %v7023_v24 = vadd.f32 %v12685_v16, %v8772_v58  ;;  %v7014_v34 = vpop.f32.mrb[93].mxu1  ;;  %v7687_v9 = vadd.f32 %v8456_v32, %v7419_v26  ;;  %v7422_v57 = vadd.f32 %v8815_v50, %v12608_v51  ;;  %v7413_v1 = vpop.f32.mrb[71].mxu0 }
 0x547   :  { %v7015_v22 = vadd.f32 %v12685_v16, %v7014_v34  ;;  %v8773_v35 = vpop.f32.mrb[94].mxu1  ;;  %v7685_v60 = vadd.f32 %v8452_v30, %v7411_v43  ;;  %v7414_v36 = vadd.f32 %v12608_v51, %v7413_v1  ;;  %v8472_v30 = vunpack.c.l.bf16 %v8528_v25 }
 0x548   :  { %v7026_v49 = vadd.f32 %v12685_v16, %v8773_v35  ;;  %v7017_v45 = vpop.f32.mrb[95].mxu1  ;;  %v7091_v37 = vmax.f32 %v7023_v24, 0.0  ;;  %v7751_v0 = vmax.f32 %v7687_v9, 0.0  ;;  %v7688_v54 = vadd.f32 %v8457_v55, %v7422_v57 }
 0x549   :  { %v7018_v4 = vadd.f32 %v12685_v16, %v7017_v45  ;;  %v7089_v20 = vmax.f32 %v7015_v22, 0.0  ;;  %v7749_v13 = vmax.f32 %v7685_v60, 0.0  ;;  %v7686_v16 = vadd.f32 %v8453_v61, %v7414_v36 }
 0x54a   :  { %v7092_v21 = vmax.f32 %v7026_v49, 0.0  ;;  %v8352_v53 = vpack.c.bf16 %v7751_v0, %v7751_v0  ;;  %v7752_v62 = vmax.f32 %v7688_v54, 0.0  ;;  %v8468_v35 = vunpack.c.l.bf16 %v8527_v28  ;;  %v8530_v54 = vld [vmem:[#allocation3 + $0xc8] sm:$0xff]  }
 0x54b   :  { %v7090_v47 = vmax.f32 %v7018_v4, 0.0  ;;  %v8350_v2 = vpack.c.bf16 %v7749_v13, %v7749_v13  ;;  %v7750_v14 = vmax.f32 %v7686_v16, 0.0  ;;  %v8469_v45 = vunpack.c.h.bf16 %v8527_v28 }
 0x54c   :  { %v7124_v31 = vpack.c.bf16 %v7092_v21, %v7091_v37  ;;  %8072 = vst.msk [vmem:[#allocation6 + $0x98] sm:$0xf] %vm8033_vm11, %v8352_v53  ;;  %v8353_v29 = vpack.c.bf16 %v7752_v62, %v7752_v62  ;;  %v8480_v13 = vunpack.c.l.bf16 %v8530_v54 }
 0x54d   :  { %v7123_v12 = vpack.c.bf16 %v7090_v47, %v7089_v20  ;;  %8070 = vst.msk [vmem:[#allocation6 + $0x90] sm:$0xf] %vm8033_vm11, %v8350_v2  ;;  %v8351_v63 = vpack.c.bf16 %v7750_v14, %v7750_v14  ;;  %v8481_v2 = vunpack.c.h.bf16 %v8530_v54 }
 0x54e   :  { %8073 = vst.msk [vmem:[#allocation6 + $0x9c] sm:$0xf] %vm8033_vm11, %v8353_v29 }
 0x54f   :  { %8836 = vmatprep.mubr.msk.bf16.mxu0 %vm13304_vm4, %v7123_v12  ;;  %8071 = vst.msk [vmem:[#allocation6 + $0x94] sm:$0xf] %vm8033_vm11, %v8351_v63 }
 0x550   :  { %8837 = vmatmul.mubr.msk.bf16.gmra.mrb[92].mxu0 %vm13305_vm0, %v7124_v31  ;;  %v8529_v31 = vld [vmem:[#allocation3 + $0xc0] sm:$0xff]  }
 0x551   :  { %v8476_v12 = vunpack.c.l.bf16 %v8529_v31  ;;  %v8477_v63 = vunpack.c.h.bf16 %v8529_v31 }
 0x569   :  { %v8818_v8 = vpop.f32.mrb[72].mxu0 }
 0x56a   :  { %v7435_v5 = vadd.f32 %v8818_v8, %v12608_v51  ;;  %v7426_v18 = vpop.f32.mrb[73].mxu0 }
 0x56b   :  { %v7427_v6 = vadd.f32 %v12608_v51, %v7426_v18  ;;  %v8819_v23 = vpop.f32.mrb[74].mxu0 }
 0x56c   :  { %v7691_v52 = vadd.f32 %v8464_v17, %v7435_v5  ;;  %v7438_v39 = vadd.f32 %v8819_v23, %v12608_v51  ;;  %v7429_v15 = vpop.f32.mrb[75].mxu0 }
 0x56d   :  { %v7689_v46 = vadd.f32 %v8460_v40, %v7427_v6  ;;  %v7430_v7 = vadd.f32 %v12608_v51, %v7429_v15 }
 0x56e   :  { %v7755_v27 = vmax.f32 %v7691_v52, 0.0  ;;  %v7692_v56 = vadd.f32 %v8465_v38, %v7438_v39 }
 0x56f   :  { %v7753_v11 = vmax.f32 %v7689_v46, 0.0  ;;  %v7690_v58 = vadd.f32 %v8461_v48, %v7430_v7  ;;  %v8532_v7 = vld [vmem:[#allocation3 + $0xd8] sm:$0xff]  }
 0x570   :  { %v8356_v42 = vpack.c.bf16 %v7755_v27, %v7755_v27  ;;  %v7756_v19 = vmax.f32 %v7692_v56, 0.0  ;;  %v8531_v27 = vld [vmem:[#allocation3 + $0xd0] sm:$0xff]   ;;  %v8488_v56 = vunpack.c.l.bf16 %v8532_v7 }
 0x571   :  { %v8354_v32 = vpack.c.bf16 %v7753_v11, %v7753_v11  ;;  %v7754_v24 = vmax.f32 %v7690_v58, 0.0  ;;  %v8484_v58 = vunpack.c.l.bf16 %v8531_v27 }
 0x572   :  { %8076 = vst.msk [vmem:[#allocation6 + $0xa8] sm:$0xf] %vm8033_vm11, %v8356_v42  ;;  %v8357_v34 = vpack.c.bf16 %v7756_v19, %v7756_v19 }
 0x573   :  { %8074 = vst.msk [vmem:[#allocation6 + $0xa0] sm:$0xf] %vm8033_vm11, %v8354_v32  ;;  %v8355_v59 = vpack.c.bf16 %v7754_v24, %v7754_v24  ;;  %v8489_v32 = vunpack.c.h.bf16 %v8532_v7 }
 0x574   :  { %8077 = vst.msk [vmem:[#allocation6 + $0xac] sm:$0xf] %vm8033_vm11, %v8357_v34 }
 0x575   :  { %8075 = vst.msk [vmem:[#allocation6 + $0xa4] sm:$0xf] %vm8033_vm11, %v8355_v59  ;;  %v8485_v59 = vunpack.c.h.bf16 %v8531_v27 }
 0x596   :  { %v8822_v22 = vpop.f32.mrb[76].mxu0 }
 0x597   :  { %v7451_v33 = vadd.f32 %v8822_v22, %v12608_v51  ;;  %v7442_v26 = vpop.f32.mrb[77].mxu0 }
 0x598   :  { %v7443_v55 = vadd.f32 %v12608_v51, %v7442_v26  ;;  %v8823_v49 = vpop.f32.mrb[78].mxu0 }
 0x599   :  { %v7695_v41 = vadd.f32 %v8472_v30, %v7451_v33  ;;  %v7454_v43 = vadd.f32 %v8823_v49, %v12608_v51  ;;  %v7445_v50 = vpop.f32.mrb[79].mxu0 }
 0x59a   :  { %v7693_v61 = vadd.f32 %v8468_v35, %v7443_v55  ;;  %v7446_v4 = vadd.f32 %v12608_v51, %v7445_v50 }
 0x59b   :  { %v7759_v9 = vmax.f32 %v7695_v41, 0.0  ;;  %v7696_v57 = vadd.f32 %v8473_v44, %v7454_v43 }
 0x59c   :  { %v7757_v1 = vmax.f32 %v7693_v61, 0.0  ;;  %v7694_v37 = vadd.f32 %v8469_v45, %v7446_v4  ;;  %v8534_v4 = vld [vmem:[#allocation3 + $0xe8] sm:$0xff]  }
 0x59d   :  { %v8360_v21 = vpack.c.bf16 %v7759_v9, %v7759_v9  ;;  %v7760_v60 = vmax.f32 %v7696_v57, 0.0  ;;  %v8496_v9 = vunpack.c.l.bf16 %v8534_v4 }
 0x59e   :  { %v8358_v36 = vpack.c.bf16 %v7757_v1, %v7757_v1  ;;  %v7758_v20 = vmax.f32 %v7694_v37, 0.0  ;;  %v8912_v37 = vld [vmem:[%s12795_s6] ss:$0 sm:$0xff]  ;;  %s8971_s6 = smov [#allocation6]  }
 0x59f   :  { %8080 = vst.msk [vmem:[#allocation6 + $0xb8] sm:$0xf] %vm8033_vm11, %v8360_v21  ;;  %v8361_v47 = vpack.c.bf16 %v7760_v60, %v7760_v60  ;;  %s8103_s23 = sshll.u32 %s8971_s6, 4  ;;  %s8104_s23 = int_to_ptr.vmem [resolvable:$true] %s8103_s23 }
 0x5a0   :  { %8078 = vst.msk [vmem:[#allocation6 + $0xb0] sm:$0xf] %vm8033_vm11, %v8358_v36  ;;  %v8359_v0 = vpack.c.bf16 %v7758_v20, %v7758_v20  ;;  %v8497_v36 = vunpack.c.h.bf16 %v8534_v4  ;;  %s8935_s30 = scalar_lea.vmem %s8104_s23, 4096  ;;  %p8940_p9 = scmp.lt.s32.totalorder %s8104_s23, %s8104_s23 }
 0x5a1   :  { %8081 = vst.msk [vmem:[#allocation6 + $0xbc] sm:$0xf] %vm8033_vm11, %v8361_v47  ;;  %p8936_p8 = scmp.ne.s32.totalorder %s8104_s23, %s8935_s30  ;;  %p8941_p10 = scmp.lt.s32.totalorder %s8935_s30, %s8935_s30 }
 0x5a2   :  { %8079 = vst.msk [vmem:[#allocation6 + $0xb4] sm:$0xf] %vm8033_vm11, %v8359_v0 }
 0x5a3   :  { %p8942_p11 = por %p8941_p10, %p8940_p9 }
 0x5a5   :  { %p8943_p12 = pnand %p8942_p11, %p8936_p8 }
 0x5ae   :  { %v8826_v16 = vpop.f32.mrb[80].mxu0 }
 0x5af   :  { %v7467_v53 = vadd.f32 %v8826_v16, %v12608_v51  ;;  %v7458_v62 = vpop.f32.mrb[81].mxu0 }
 0x5b0   :  { %v7459_v14 = vadd.f32 %v12608_v51, %v7458_v62  ;;  %v8827_v29 = vpop.f32.mrb[82].mxu0 }
 0x5b1   :  { %v7699_v10 = vadd.f32 %v8480_v13, %v7467_v53  ;;  %v7470_v3 = vadd.f32 %v8827_v29, %v12608_v51  ;;  %v7461_v17 = vpop.f32.mrb[83].mxu0 }
 0x5b2   :  { %v7697_v8 = vadd.f32 %v8476_v12, %v7459_v14  ;;  %v7462_v40 = vadd.f32 %v12608_v51, %v7461_v17 }
 0x5b3   :  { %v7763_v5 = vmax.f32 %v7699_v10, 0.0  ;;  %v7700_v18 = vadd.f32 %v8481_v2, %v7470_v3 }
 0x5b4   :  { %v7761_v38 = vmax.f32 %v7697_v8, 0.0  ;;  %v7698_v6 = vadd.f32 %v8477_v63, %v7462_v40  ;;  %v8536_v40 = vld [vmem:[#allocation3 + $0xf8] sm:$0xff]  }
 0x5b5   :  { %v8364_v23 = vpack.c.bf16 %v7763_v5, %v7763_v5  ;;  %v7764_v48 = vmax.f32 %v7700_v18, 0.0  ;;  %v8535_v5 = vld [vmem:[#allocation3 + $0xf0] sm:$0xff]   ;;  %v8504_v18 = vunpack.c.l.bf16 %v8536_v40 }
 0x5b6   :  { %v8362_v52 = vpack.c.bf16 %v7761_v38, %v7761_v38  ;;  %v7762_v39 = vmax.f32 %v7698_v6, 0.0  ;;  %v8500_v6 = vunpack.c.l.bf16 %v8535_v5 }
 0x5b7   :  { %8084 = vst.msk [vmem:[#allocation6 + $0xc8] sm:$0xf] %vm8033_vm11, %v8364_v23  ;;  %v8365_v15 = vpack.c.bf16 %v7764_v48, %v7764_v48 }
 0x5b8   :  { %8082 = vst.msk [vmem:[#allocation6 + $0xc0] sm:$0xf] %vm8033_vm11, %v8362_v52  ;;  %v8363_v46 = vpack.c.bf16 %v7762_v39, %v7762_v39  ;;  %v8505_v52 = vunpack.c.h.bf16 %v8536_v40 }
 0x5b9   :  { %8085 = vst.msk [vmem:[#allocation6 + $0xcc] sm:$0xf] %vm8033_vm11, %v8365_v15 }
 0x5ba   :  { %8083 = vst.msk [vmem:[#allocation6 + $0xc4] sm:$0xf] %vm8033_vm11, %v8363_v46  ;;  %v8501_v46 = vunpack.c.h.bf16 %v8535_v5 }
 0x5c7   :  { %v8830_v11 = vpop.f32.mrb[84].mxu0 }
 0x5c8   :  { %v7483_v42 = vadd.f32 %v8830_v11, %v12608_v51  ;;  %v7474_v19 = vpop.f32.mrb[85].mxu0 }
 0x5c9   :  { %v7475_v24 = vadd.f32 %v12608_v51, %v7474_v19  ;;  %v8831_v34 = vpop.f32.mrb[86].mxu0 }
 0x5ca   :  { %v7703_v25 = vadd.f32 %v8488_v56, %v7483_v42  ;;  %v7486_v28 = vadd.f32 %v8831_v34, %v12608_v51  ;;  %v7477_v30 = vpop.f32.mrb[87].mxu0 }
 0x5cb   :  { %v7701_v22 = vadd.f32 %v8484_v58, %v7475_v24  ;;  %v7478_v35 = vadd.f32 %v12608_v51, %v7477_v30  ;;  %v8533_v51 = vld [vmem:[#allocation3 + $0xe0] sm:$0xff]  }
 0x5cc   :  { %v7767_v33 = vmax.f32 %v7703_v25, 0.0  ;;  %v7704_v26 = vadd.f32 %v8489_v32, %v7486_v28  ;;  %v8492_v1 = vunpack.c.l.bf16 %v8533_v51  ;;  %v8493_v0 = vunpack.c.h.bf16 %v8533_v51 }
 0x5cd   :  { %v7765_v44 = vmax.f32 %v7701_v22, 0.0  ;;  %v7702_v55 = vadd.f32 %v8485_v59, %v7478_v35 }
 0x5ce   :  { %v8368_v49 = vpack.c.bf16 %v7767_v33, %v7767_v33  ;;  %v7768_v45 = vmax.f32 %v7704_v26, 0.0 }
 0x5cf   :  { %v8366_v41 = vpack.c.bf16 %v7765_v44, %v7765_v44  ;;  %v7766_v43 = vmax.f32 %v7702_v55, 0.0 }
 0x5d0   :  { %8088 = vst.msk [vmem:[#allocation6 + $0xd8] sm:$0xf] %vm8033_vm11, %v8368_v49  ;;  %v8369_v50 = vpack.c.bf16 %v7768_v45, %v7768_v45 }
 0x5d1   :  { %8086 = vst.msk [vmem:[#allocation6 + $0xd0] sm:$0xf] %vm8033_vm11, %v8366_v41  ;;  %v8367_v61 = vpack.c.bf16 %v7766_v43, %v7766_v43 }
 0x5d2   :  { %8089 = vst.msk [vmem:[#allocation6 + $0xdc] sm:$0xf] %vm8033_vm11, %v8369_v50 }
 0x5d3   :  { %8087 = vst.msk [vmem:[#allocation6 + $0xd4] sm:$0xf] %vm8033_vm11, %v8367_v61 }
 0x5f7   :  { %v8834_v57 = vpop.f32.mrb[88].mxu0 }
 0x5f8   :  { %v7499_v21 = vadd.f32 %v8912_v37, %v8834_v57  ;;  %v7490_v60 = vpop.f32.mrb[89].mxu0 }
 0x5f9   :  { %v7491_v20 = vadd.f32 %v8912_v37, %v7490_v60  ;;  %v8835_v47 = vpop.f32.mrb[90].mxu0 }
 0x5fa   :  { %v7707_v54 = vadd.f32 %v8496_v9, %v7499_v21  ;;  %v7502_v31 = vadd.f32 %v8912_v37, %v8835_v47  ;;  %v7493_v13 = vpop.f32.mrb[91].mxu0 }
 0x5fb   :  { %v7705_v16 = vadd.f32 %v8492_v1, %v7491_v20  ;;  %v7494_v12 = vadd.f32 %v8912_v37, %v7493_v13 }
 0x5fc   :  { %v7771_v53 = vmax.f32 %v7707_v54, 0.0  ;;  %v7708_v62 = vadd.f32 %v8497_v36, %v7502_v31 }
 0x5fd   :  { %v7769_v2 = vmax.f32 %v7705_v16, 0.0  ;;  %v7706_v14 = vadd.f32 %v8493_v0, %v7494_v12 }
 0x5fe   :  { %v8372_v29 = vpack.c.bf16 %v7771_v53, %v7771_v53  ;;  %v7772_v63 = vmax.f32 %v7708_v62, 0.0 }
 0x5ff   :  { %v8370_v10 = vpack.c.bf16 %v7769_v2, %v7769_v2  ;;  %v7770_v3 = vmax.f32 %v7706_v14, 0.0 }
 0x600   :  { %8092 = vst.msk [vmem:[#allocation6 + $0xe8] sm:$0xf] %vm8033_vm11, %v8372_v29  ;;  %v8373_v17 = vpack.c.bf16 %v7772_v63, %v7772_v63 }
 0x601   :  { %8090 = vst.msk [vmem:[#allocation6 + $0xe0] sm:$0xf] %vm8033_vm11, %v8370_v10  ;;  %v8371_v8 = vpack.c.bf16 %v7770_v3, %v7770_v3 }
 0x602   :  { %8093 = vst.msk [vmem:[#allocation6 + $0xec] sm:$0xf] %vm8033_vm11, %v8373_v17 }
 0x603   :  { %8091 = vst.msk [vmem:[#allocation6 + $0xe4] sm:$0xf] %vm8033_vm11, %v8371_v8 }
 0x623   :  { %v8838_v38 = vpop.f32.mrb[92].mxu0 }
 0x624   :  { %v7515_v23 = vadd.f32 %v8912_v37, %v8838_v38  ;;  %v7506_v48 = vpop.f32.mrb[93].mxu0 }
 0x625   :  { %v7507_v39 = vadd.f32 %v8912_v37, %v7506_v48  ;;  %v8839_v15 = vpop.f32.mrb[94].mxu0 }
 0x626   :  { %v7711_v7 = vadd.f32 %v8504_v18, %v7515_v23  ;;  %v7518_v27 = vadd.f32 %v8912_v37, %v8839_v15  ;;  %v7509_v56 = vpop.f32.mrb[95].mxu0 }
 0x627   :  { %v7709_v11 = vadd.f32 %v8500_v6, %v7507_v39  ;;  %v7510_v58 = vadd.f32 %v8912_v37, %v7509_v56 }
 0x628   :  { %v7775_v42 = vmax.f32 %v7711_v7, 0.0  ;;  %v7712_v19 = vadd.f32 %v8505_v52, %v7518_v27 }
 0x629   :  { %v7773_v32 = vmax.f32 %v7709_v11, 0.0  ;;  %v7710_v24 = vadd.f32 %v8501_v46, %v7510_v58 }
 0x62a   :  { %v8376_v34 = vpack.c.bf16 %v7775_v42, %v7775_v42  ;;  %v7776_v59 = vmax.f32 %v7712_v19, 0.0 }
 0x62b   :  { %v8374_v25 = vpack.c.bf16 %v7773_v32, %v7773_v32  ;;  %v7774_v28 = vmax.f32 %v7710_v24, 0.0 }
 0x62c   :  { %8096 = vst.msk [vmem:[#allocation6 + $0xf8] sm:$0xf] %vm8033_vm11, %v8376_v34  ;;  %v8377_v30 = vpack.c.bf16 %v7776_v59, %v7776_v59 }
 0x62d   :  { %8094 = vst.msk [vmem:[#allocation6 + $0xf0] sm:$0xf] %vm8033_vm11, %v8374_v25  ;;  %v8375_v22 = vpack.c.bf16 %v7774_v28, %v7774_v28 }
 0x62e   :  { %8097 = vst.msk [vmem:[#allocation6 + $0xfc] sm:$0xf] %vm8033_vm11, %v8377_v30 }
 0x62f   :  { %8095 = vst.msk [vmem:[#allocation6 + $0xf4] sm:$0xf] %vm8033_vm11, %v8375_v22 }
 0x630   :  { %8946 = shalt.err (!%p8943_p12)
}
 0x631   :  { %s8947_s10 = scalar_lea.hbm %s12796_s7, 4096 }
 0x632   :  { %p8948_p13 = scmp.ne.s32.totalorder %s12796_s7, %s8947_s10  ;;  %p8951_p0 = scmp.lt.u32.totalorder %s8947_s10, %s12796_s7 }
 0x634   :  { %p8953_p1 = pnand %p8951_p0, %p8948_p13 }
 0x636   :  { %8956 = shalt.err (!%p8953_p1)
}
 0x637   :  { %8109 = dma.vmem_to_hbm [thread:$0]  %s8104_s23, 4096, %s12796_s7, [#allocation5], %s8962_s11, %s8962_s11, %s8963_s12  }
 0x638   :  { %8959 = dma.done.wait [#allocation5], 4096  }
 0x639   :  { %8960 = vsyncadd [#allocation5], 4294963200 }
 0x63a   :  { %8113 = vsyncpa [#allocation4], 1 }
 0x63b   :  { %8114 = vsyncpa [#allocation5], 1 }

</bundles_post_ra>
